<compile_context>
chip_gen: v6e
topology: v6e:2x2x1
jax: 0.10.0
libtpu: 0.0.40
codegen_flags: <defaults>
</compile_context>

<pallas_src>
import jax
import jax.numpy as jnp
import numpy as np
from jax import lax
from jax.experimental import pallas as pl
from jax.experimental.pallas import tpu as pltpu


def segment_head_kernel(x_ref, w1_ref, b1_ref, w2_ref, b2_ref,
                        wo_ref, bo_ref, uw_ref, uh_ref,
                        o_ref, pad1_ref, pad2_ref):
    f32 = jnp.float32
    bf16 = jnp.bfloat16

    _, H, W, Cin = x_ref.shape
    Cmid = b1_ref.shape[1]
    Cmid2 = b2_ref.shape[1]
    ncls = wo_ref.shape[0]
    H2, W2 = 2 * H, 2 * W
    Wo = uw_ref.shape[0]

    # Zero only the 1-pixel halos of the padded scratches (interiors are fully
    # overwritten below).  Re-done every step on purpose: with the batch axis
    # "parallel" each TensorCore owns its own uninitialised scratch, so a
    # first-step-only guard is not portable; the halo slabs are a few KiB.
    pad1_ref[0:1, :, :] = jnp.zeros((1, W + 2, Cin), f32)
    pad1_ref[H + 1:H + 2, :, :] = jnp.zeros((1, W + 2, Cin), f32)
    pad1_ref[:, 0:1, :] = jnp.zeros((H + 2, 1, Cin), f32)
    pad1_ref[:, W + 1:W + 2, :] = jnp.zeros((H + 2, 1, Cin), f32)
    pad2_ref[0:1, :, :] = jnp.zeros((1, W2 + 2, Cmid), f32)
    pad2_ref[H2 + 1:H2 + 2, :, :] = jnp.zeros((1, W2 + 2, Cmid), f32)
    pad2_ref[:, 0:1, :] = jnp.zeros((H2 + 2, 1, Cmid), f32)
    pad2_ref[:, W2 + 1:W2 + 2, :] = jnp.zeros((H2 + 2, 1, Cmid), f32)

    # ---- self.conv : 3x3 conv (BN folded into weights/bias) + ReLU ----------
    # Per-dy im2col slab: K = 3*Cin per MXU dot (3 dots instead of 9).
    pad1_ref[1:H + 1, 1:W + 1, :] = x_ref[0].astype(f32)
    acc1 = None
    for dy in range(3):
        slab = jnp.concatenate(
            [pad1_ref[dy:dy + H, dx:dx + W, :] for dx in range(3)], axis=-1)
        slab = slab.reshape(H * W, 3 * Cin).astype(bf16)
        part = jnp.dot(slab, w1_ref[dy], preferred_element_type=f32)
        acc1 = part if acc1 is None else acc1 + part
    feat1 = jnp.maximum(acc1 + b1_ref[...], 0.0)                 # (H*W, Cmid) f32

    # ---- conv_pre[0] : nearest x2 upsample (no operator matmul) -------------
    f1 = feat1.reshape(H, W, Cmid)
    up = jnp.broadcast_to(f1[:, None, :, None, :], (H, 2, W, 2, Cmid))
    pad2_ref[1:H2 + 1, 1:W2 + 1, :] = up.reshape(H2, W2, Cmid)

    # ---- conv_pre[1] : 3x3 conv (BN folded) + ReLU on the upsampled map -----
    acc2 = None
    for dy in range(3):
        slab = jnp.concatenate(
            [pad2_ref[dy:dy + H2, dx:dx + W2, :] for dx in range(3)], axis=-1)
        slab = slab.reshape(H2 * W2, 3 * Cmid).astype(bf16)
        part = jnp.dot(slab, w2_ref[dy], preferred_element_type=f32)
        acc2 = part if acc2 is None else acc2 + part
    feat2 = jnp.maximum(acc2 + b2_ref[...], 0.0)                 # (H2*W2, Cmid2) f32

    # nn.Dropout(0.1) is identity at inference.
    # TODO(synk): training-mode dropout / BN batch statistics not implemented.

    # ---- conv_out : 1x1 conv with spatial on lanes --------------------------
    # H2-batched A.B^T: (H2, ncls, K) x (H2, W2, K) -> (H2, ncls, W2).
    f2b = feat2.astype(bf16).reshape(H2, W2, Cmid2)
    wo_b = jnp.broadcast_to(wo_ref[...][None], (H2, ncls, Cmid2))
    lt = lax.dot_general(wo_b, f2b, (((2,), (2,)), ((0,), (0,))),
                         preferred_element_type=f32)             # (H2, ncls, W2)
    lt = lt + bo_ref[...]                                        # (ncls, 1) bcast

    # ---- self.upsample : bilinear x(up_factor//2), separable, f32 -----------
    # W pass: (H2, ncls, W2) x (H2, Wo, W2) -> (H2, ncls, Wo)   (spatial on lanes)
    uw_b = jnp.broadcast_to(uw_ref[...][None], (H2, Wo, W2))
    tw = lax.dot_general(lt, uw_b, (((2,), (2,)), ((0,), (0,))),
                         preferred_element_type=f32)             # (H2, ncls, Wo)
    # H pass + lane-dense NCHW store, per class (tiny static unroll).
    uh = uh_ref[...]                                             # (Ho, H2)
    for c in range(ncls):
        out_c = jnp.dot(uh, tw[:, c, :], preferred_element_type=f32)   # (Ho, Wo)
        o_ref[0, c] = out_c.astype(o_ref.dtype)


@jax.jit
def segment_head_pallas(x_nhwc, w1, b1, w2, b2, woT, boT, u_w, u_h):
    N, H, W, Cin = x_nhwc.shape
    Cmid = b1.shape[1]
    Cmid2 = b2.shape[1]
    ncls = woT.shape[0]
    H2, W2 = 2 * H, 2 * W
    Wo = u_w.shape[0]
    Ho = u_h.shape[0]

    return pl.pallas_call(
        segment_head_kernel,
        out_shape=jax.ShapeDtypeStruct((N, ncls, Ho, Wo), x_nhwc.dtype),
        grid_spec=pltpu.PrefetchScalarGridSpec(
            num_scalar_prefetch=0,
            grid=(N,),                      # one sample / step -> megacore + pipelining
            in_specs=[
                pl.BlockSpec((1, H, W, Cin), lambda b: (b, 0, 0, 0)),    # x (NHWC tile)
                pl.BlockSpec((3, 3 * Cin, Cmid), lambda b: (0, 0, 0)),   # conv w (bf16, per-dy im2col)
                pl.BlockSpec((1, Cmid), lambda b: (0, 0)),               # conv bias (BN shift)
                pl.BlockSpec((3, 3 * Cmid, Cmid2), lambda b: (0, 0, 0)), # conv_pre w (bf16)
                pl.BlockSpec((1, Cmid2), lambda b: (0, 0)),              # conv_pre bias
                pl.BlockSpec((ncls, Cmid2), lambda b: (0, 0)),           # conv_out w^T (bf16)
                pl.BlockSpec((ncls, 1), lambda b: (0, 0)),               # conv_out bias (col)
                pl.BlockSpec((Wo, W2), lambda b: (0, 0)),                # bilinear U_w
                pl.BlockSpec((Ho, H2), lambda b: (0, 0)),                # bilinear U_h
            ],
            out_specs=pl.BlockSpec((1, ncls, Ho, Wo), lambda b: (b, 0, 0, 0)),
            scratch_shapes=[
                pltpu.VMEM((H + 2, W + 2, Cin), jnp.float32),            # padded input
                pltpu.VMEM((H2 + 2, W2 + 2, Cmid), jnp.float32),         # padded upsampled
            ],
        ),
        compiler_params=pltpu.CompilerParams(
            dimension_semantics=("parallel",)),
    )(x_nhwc, w1, b1, w2, b2, woT, boT, u_w, u_h)


def make_bn_params(key, c, eps=1e-5):
    k1, k2, k3, k4 = jax.random.split(key, 4)
    gamma = 1.0 + 0.1 * jax.random.normal(k1, (c,), jnp.float32)
    beta = 0.1 * jax.random.normal(k2, (c,), jnp.float32)
    running_mean = 0.1 * jax.random.normal(k3, (c,), jnp.float32)
    running_var = jnp.abs(jax.random.normal(k4, (c,), jnp.float32)) + 0.5
    scale = gamma * lax.rsqrt(running_var + eps)
    shift = beta - running_mean * scale
    return scale, shift


def bilinear_upsample_matrix(in_size, scale):
    # nn.Upsample(scale_factor=scale, mode='bilinear', align_corners=False)
    out_size = in_size * scale
    m = np.zeros((out_size, in_size), np.float32)
    for i in range(out_size):
        src = max((i + 0.5) / scale - 0.5, 0.0)
        i0 = min(int(np.floor(src)), in_size - 1)
        i1 = min(i0 + 1, in_size - 1)
        frac = src - i0
        m[i, i0] += 1.0 - frac
        m[i, i1] += frac
    return m


def segment_head_reference(x_nhwc, w1_hwio, b1, w2_hwio, b2, wo, bo, u_h, u_w):
    # Pure-JAX reference (inference semantics, folded BN), output in NCHW.
    hi = lax.Precision.HIGHEST
    f = lax.conv_general_dilated(x_nhwc, w1_hwio, (1, 1), ((1, 1), (1, 1)),
                                 dimension_numbers=("NHWC", "HWIO", "NHWC"),
                                 precision=hi)
    f = jnp.maximum(f + b1.reshape(1, 1, 1, -1), 0.0)
    f = jnp.repeat(jnp.repeat(f, 2, axis=1), 2, axis=2)          # nearest x2
    f = lax.conv_general_dilated(f, w2_hwio, (1, 1), ((1, 1), (1, 1)),
                                 dimension_numbers=("NHWC", "HWIO", "NHWC"),
                                 precision=hi)
    f = jnp.maximum(f + b2.reshape(1, 1, 1, -1), 0.0)
    t = jnp.einsum("nhwc,cd->nhwd", f, wo, precision=hi) + bo.reshape(1, 1, 1, -1)
    out_nhwc = jnp.einsum("ip,jq,npqc->nijc", u_h, u_w, t, precision=hi)
    return jnp.transpose(out_nhwc, (0, 3, 1, 2))                 # NCHW


if __name__ == "__main__":
    key = jax.random.PRNGKey(0)
    ks = jax.random.split(key, 7)

    N, IN_CH, MID_CH, N_CLASSES, H, W = 2, 64, 64, 19, 8, 8
    UP_FACTOR = 8                       # module default (aux=True)
    MID_CH2 = UP_FACTOR * UP_FACTOR     # = 64
    UP_BI = UP_FACTOR // 2              # bilinear factor in the aux path = 4
    H2, W2 = 2 * H, 2 * W
    OUT_H, OUT_W = UP_BI * H2, UP_BI * W2

    # module input, PyTorch NCHW layout
    x_nchw = jax.random.normal(ks[0], (N, IN_CH, H, W), jnp.float32)
    x_nhwc = jnp.transpose(x_nchw, (0, 2, 3, 1))

    # conv weights in PyTorch (out, in, kh, kw) layout
    w1_t = 0.05 * jax.random.normal(ks[1], (MID_CH, IN_CH, 3, 3), jnp.float32)
    w2_t = 0.05 * jax.random.normal(ks[2], (MID_CH2, MID_CH, 3, 3), jnp.float32)
    wo_t = 0.05 * jax.random.normal(ks[3], (N_CLASSES, MID_CH2, 1, 1), jnp.float32)
    bo = 0.1 * jax.random.normal(ks[4], (N_CLASSES,), jnp.float32)

    s1, sh1 = make_bn_params(ks[5], MID_CH)     # self.conv.bn
    s2, sh2 = make_bn_params(ks[6], MID_CH2)    # conv_pre[1].bn

    # fold inference-mode BN into conv weights/bias; round weights to bf16 once
    # (kernel and reference share the rounded weights so the check isolates the
    #  kernel-side bf16-matmul / layout error)
    w1_hwio = (jnp.transpose(w1_t, (2, 3, 1, 0))
               * s1[None, None, None, :]).astype(jnp.bfloat16)      # (3,3,in,mid)
    w2_hwio = (jnp.transpose(w2_t, (2, 3, 1, 0))
               * s2[None, None, None, :]).astype(jnp.bfloat16)      # (3,3,mid,mid2)
    woT = wo_t[:, :, 0, 0].astype(jnp.bfloat16)                     # (ncls, mid2)
    b1 = sh1.reshape(1, MID_CH)
    b2 = sh2.reshape(1, MID_CH2)
    boT = bo.reshape(N_CLASSES, 1)

    # per-dy im2col weight layout (3, 3*Cin, Cout), rows ordered (dx, cin)
    w1_k = w1_hwio.reshape(3, 3 * IN_CH, MID_CH)
    w2_k = w2_hwio.reshape(3, 3 * MID_CH, MID_CH2)

    # separable bilinear operators (align_corners=False) -- no dense kron
    u_h = jnp.asarray(bilinear_upsample_matrix(H2, UP_BI))          # (OUT_H, H2)
    u_w = jnp.asarray(bilinear_upsample_matrix(W2, UP_BI))          # (OUT_W, W2)

    out_nchw = segment_head_pallas(x_nhwc, w1_k, b1, w2_k, b2, woT, boT, u_w, u_h)
    out_nchw = jax.block_until_ready(out_nchw)
    assert out_nchw.shape == (N, N_CLASSES, OUT_H, OUT_W)

    ref_nchw = segment_head_reference(
        x_nhwc,
        w1_hwio.astype(jnp.float32), b1,
        w2_hwio.astype(jnp.float32), b2,
        jnp.transpose(woT.astype(jnp.float32)), bo,
        u_h, u_w)

    # tolerance covers bf16 matmul operands across the 3-matmul conv chain
    np.testing.assert_allclose(np.asarray(out_nchw), np.asarray(ref_nchw),
                               rtol=2e-2, atol=2e-2)

    print("KERNEL_OK")
</pallas_src>

<mosaic_0001>
module attributes {stable_mosaic.version = 11 : i64} {
  func.func @segment_head_kernel(%arg0: i32, %arg1: memref<1x8x8x64xf32, #tpu.memory_space<vmem>>, %arg2: memref<3x192x64xbf16, #tpu.memory_space<vmem>>, %arg3: memref<1x64xf32, #tpu.memory_space<vmem>>, %arg4: memref<3x192x64xbf16, #tpu.memory_space<vmem>>, %arg5: memref<1x64xf32, #tpu.memory_space<vmem>>, %arg6: memref<19x64xbf16, #tpu.memory_space<vmem>>, %arg7: memref<19x1xf32, #tpu.memory_space<vmem>>, %arg8: memref<64x16xf32, #tpu.memory_space<vmem>>, %arg9: memref<64x16xf32, #tpu.memory_space<vmem>>, %arg10: memref<1x19x64x64xf32, #tpu.memory_space<vmem>>, %arg11: memref<10x10x64xf32, #tpu.memory_space<vmem>>, %arg12: memref<18x18x64xf32, #tpu.memory_space<vmem>>) attributes {dimension_semantics = [#tpu.dimension_semantics<parallel>], iteration_bounds = array<i64: 2>, scalar_prefetch = 0 : i64, scratch_operands = 2 : i64, tpu.core_type = #tpu.core_type<tc>, window_params = [{transform_indices = @transform_0, window_bounds = array<i64: 1, 8, 8, 64>}, {pipeline_mode = #tpu.pipeline_mode<synchronous>, transform_indices = @transform_1, window_bounds = array<i64: 3, 192, 64>}, {pipeline_mode = #tpu.pipeline_mode<synchronous>, transform_indices = @transform_2, window_bounds = array<i64: 1, 64>}, {pipeline_mode = #tpu.pipeline_mode<synchronous>, transform_indices = @transform_3, window_bounds = array<i64: 3, 192, 64>}, {pipeline_mode = #tpu.pipeline_mode<synchronous>, transform_indices = @transform_4, window_bounds = array<i64: 1, 64>}, {pipeline_mode = #tpu.pipeline_mode<synchronous>, transform_indices = @transform_5, window_bounds = array<i64: 19, 64>}, {pipeline_mode = #tpu.pipeline_mode<synchronous>, transform_indices = @transform_6, window_bounds = array<i64: 19, 1>}, {pipeline_mode = #tpu.pipeline_mode<synchronous>, transform_indices = @transform_7, window_bounds = array<i64: 64, 16>}, {pipeline_mode = #tpu.pipeline_mode<synchronous>, transform_indices = @transform_8, window_bounds = array<i64: 64, 16>}, {transform_indices = @transform_9, window_bounds = array<i64: 1, 19, 64, 64>}]} {
    %cst = arith.constant 0.000000e+00 : f32
    %0 = vector.broadcast %cst : f32 to vector<1x10x64xf32>
    %c0 = arith.constant 0 : index
    %c0_0 = arith.constant 0 : index
    %c0_1 = arith.constant 0 : index
    %1 = vector.load %arg11[%c0, %c0_0, %c0_1] : memref<10x10x64xf32, #tpu.memory_space<vmem>>, vector<1x10x64xf32>
    tpu.vector_store %arg11[%c0, %c0_0, %c0_1], %0 {strides = array<i32>} : memref<10x10x64xf32, #tpu.memory_space<vmem>>, vector<1x10x64xf32>,
    %cst_2 = arith.constant 0.000000e+00 : f32
    %2 = vector.broadcast %cst_2 : f32 to vector<1x10x64xf32>
    %c9 = arith.constant 9 : index
    %c0_3 = arith.constant 0 : index
    %c0_4 = arith.constant 0 : index
    %3 = vector.load %arg11[%c9, %c0_3, %c0_4] : memref<10x10x64xf32, #tpu.memory_space<vmem>>, vector<1x10x64xf32>
    tpu.vector_store %arg11[%c9, %c0_3, %c0_4], %2 {strides = array<i32>} : memref<10x10x64xf32, #tpu.memory_space<vmem>>, vector<1x10x64xf32>,
    %cst_5 = arith.constant 0.000000e+00 : f32
    %4 = vector.broadcast %cst_5 : f32 to vector<10x1x64xf32>
    %c0_6 = arith.constant 0 : index
    %c0_7 = arith.constant 0 : index
    %c0_8 = arith.constant 0 : index
    %5 = vector.load %arg11[%c0_6, %c0_7, %c0_8] : memref<10x10x64xf32, #tpu.memory_space<vmem>>, vector<10x1x64xf32>
    tpu.vector_store %arg11[%c0_6, %c0_7, %c0_8], %4 {strides = array<i32>} : memref<10x10x64xf32, #tpu.memory_space<vmem>>, vector<10x1x64xf32>,
    %cst_9 = arith.constant 0.000000e+00 : f32
    %6 = vector.broadcast %cst_9 : f32 to vector<10x1x64xf32>
    %c0_10 = arith.constant 0 : index
    %c9_11 = arith.constant 9 : index
    %c0_12 = arith.constant 0 : index
    %7 = vector.load %arg11[%c0_10, %c9_11, %c0_12] : memref<10x10x64xf32, #tpu.memory_space<vmem>>, vector<10x1x64xf32>
    tpu.vector_store %arg11[%c0_10, %c9_11, %c0_12], %6 {strides = array<i32>} : memref<10x10x64xf32, #tpu.memory_space<vmem>>, vector<10x1x64xf32>,
    %cst_13 = arith.constant 0.000000e+00 : f32
    %8 = vector.broadcast %cst_13 : f32 to vector<1x18x64xf32>
    %c0_14 = arith.constant 0 : index
    %c0_15 = arith.constant 0 : index
    %c0_16 = arith.constant 0 : index
    %9 = vector.load %arg12[%c0_14, %c0_15, %c0_16] : memref<18x18x64xf32, #tpu.memory_space<vmem>>, vector<1x18x64xf32>
    tpu.vector_store %arg12[%c0_14, %c0_15, %c0_16], %8 {strides = array<i32>} : memref<18x18x64xf32, #tpu.memory_space<vmem>>, vector<1x18x64xf32>,
    %cst_17 = arith.constant 0.000000e+00 : f32
    %10 = vector.broadcast %cst_17 : f32 to vector<1x18x64xf32>
    %c17 = arith.constant 17 : index
    %c0_18 = arith.constant 0 : index
    %c0_19 = arith.constant 0 : index
    %11 = vector.load %arg12[%c17, %c0_18, %c0_19] : memref<18x18x64xf32, #tpu.memory_space<vmem>>, vector<1x18x64xf32>
    tpu.vector_store %arg12[%c17, %c0_18, %c0_19], %10 {strides = array<i32>} : memref<18x18x64xf32, #tpu.memory_space<vmem>>, vector<1x18x64xf32>,
    %cst_20 = arith.constant 0.000000e+00 : f32
    %12 = vector.broadcast %cst_20 : f32 to vector<18x1x64xf32>
    %c0_21 = arith.constant 0 : index
    %c0_22 = arith.constant 0 : index
    %c0_23 = arith.constant 0 : index
    %13 = vector.load %arg12[%c0_21, %c0_22, %c0_23] : memref<18x18x64xf32, #tpu.memory_space<vmem>>, vector<18x1x64xf32>
    tpu.vector_store %arg12[%c0_21, %c0_22, %c0_23], %12 {strides = array<i32>} : memref<18x18x64xf32, #tpu.memory_space<vmem>>, vector<18x1x64xf32>,
    %cst_24 = arith.constant 0.000000e+00 : f32
    %14 = vector.broadcast %cst_24 : f32 to vector<18x1x64xf32>
    %c0_25 = arith.constant 0 : index
    %c17_26 = arith.constant 17 : index
    %c0_27 = arith.constant 0 : index
    %15 = vector.load %arg12[%c0_25, %c17_26, %c0_27] : memref<18x18x64xf32, #tpu.memory_space<vmem>>, vector<18x1x64xf32>
    tpu.vector_store %arg12[%c0_25, %c17_26, %c0_27], %14 {strides = array<i32>} : memref<18x18x64xf32, #tpu.memory_space<vmem>>, vector<18x1x64xf32>,
    %c0_28 = arith.constant 0 : index
    %c0_29 = arith.constant 0 : index
    %c0_30 = arith.constant 0 : index
    %c0_31 = arith.constant 0 : index
    %16 = vector.load %arg1[%c0_28, %c0_29, %c0_30, %c0_31] : memref<1x8x8x64xf32, #tpu.memory_space<vmem>>, vector<1x8x8x64xf32>
    %17 = vector.shape_cast %16 : vector<1x8x8x64xf32> to vector<8x8x64xf32>
    %c1 = arith.constant 1 : index
    %c1_32 = arith.constant 1 : index
    %c0_33 = arith.constant 0 : index
    %18 = vector.load %arg11[%c1, %c1_32, %c0_33] : memref<10x10x64xf32, #tpu.memory_space<vmem>>, vector<8x8x64xf32>
    tpu.vector_store %arg11[%c1, %c1_32, %c0_33], %17 {strides = array<i32>} : memref<10x10x64xf32, #tpu.memory_space<vmem>>, vector<8x8x64xf32>,
    %c0_34 = arith.constant 0 : index
    %c0_35 = arith.constant 0 : index
    %c0_36 = arith.constant 0 : index
    %19 = vector.load %arg11[%c0_34, %c0_35, %c0_36] : memref<10x10x64xf32, #tpu.memory_space<vmem>>, vector<8x8x64xf32>
    %c0_37 = arith.constant 0 : index
    %c1_38 = arith.constant 1 : index
    %c0_39 = arith.constant 0 : index
    %20 = vector.load %arg11[%c0_37, %c1_38, %c0_39] : memref<10x10x64xf32, #tpu.memory_space<vmem>>, vector<8x8x64xf32>
    %c0_40 = arith.constant 0 : index
    %c2 = arith.constant 2 : index
    %c0_41 = arith.constant 0 : index
    %21 = vector.load %arg11[%c0_40, %c2, %c0_41] : memref<10x10x64xf32, #tpu.memory_space<vmem>>, vector<8x8x64xf32>
    %22 = tpu.concatenate %19, %20, %21 in 2 : vector<8x8x64xf32>, vector<8x8x64xf32>, vector<8x8x64xf32> -> vector<8x8x192xf32>
    %23 = vector.shape_cast %22 : vector<8x8x192xf32> to vector<64x192xf32>
    %24 = arith.truncf %23 : vector<64x192xf32> to vector<64x192xbf16>
    %c0_42 = arith.constant 0 : index
    %c0_43 = arith.constant 0 : index
    %c0_44 = arith.constant 0 : index
    %25 = vector.load %arg2[%c0_42, %c0_43, %c0_44] : memref<3x192x64xbf16, #tpu.memory_space<vmem>>, vector<1x192x64xbf16>
    %26 = vector.shape_cast %25 : vector<1x192x64xbf16> to vector<192x64xbf16>
    %cst_45 = arith.constant dense<0.000000e+00> : vector<64x64xf32>
    %27 = tpu.matmul %24, %26, %cst_45 {dimension_numbers = #tpu.dot_dimension_numbers<[1], [0], [0], [1], [0, 0, 1, 1], [], []>} : vector<64x192xbf16>, vector<192x64xbf16>, vector<64x64xf32> -> vector<64x64xf32>
    %c1_46 = arith.constant 1 : index
    %c0_47 = arith.constant 0 : index
    %c0_48 = arith.constant 0 : index
    %28 = vector.load %arg11[%c1_46, %c0_47, %c0_48] : memref<10x10x64xf32, #tpu.memory_space<vmem>>, vector<8x8x64xf32>
    %c1_49 = arith.constant 1 : index
    %c1_50 = arith.constant 1 : index
    %c0_51 = arith.constant 0 : index
    %29 = vector.load %arg11[%c1_49, %c1_50, %c0_51] : memref<10x10x64xf32, #tpu.memory_space<vmem>>, vector<8x8x64xf32>
    %c1_52 = arith.constant 1 : index
    %c2_53 = arith.constant 2 : index
    %c0_54 = arith.constant 0 : index
    %30 = vector.load %arg11[%c1_52, %c2_53, %c0_54] : memref<10x10x64xf32, #tpu.memory_space<vmem>>, vector<8x8x64xf32>
    %31 = tpu.concatenate %28, %29, %30 in 2 : vector<8x8x64xf32>, vector<8x8x64xf32>, vector<8x8x64xf32> -> vector<8x8x192xf32>
    %32 = vector.shape_cast %31 : vector<8x8x192xf32> to vector<64x192xf32>
    %33 = arith.truncf %32 : vector<64x192xf32> to vector<64x192xbf16>
    %c1_55 = arith.constant 1 : index
    %c0_56 = arith.constant 0 : index
    %c0_57 = arith.constant 0 : index
    %34 = vector.load %arg2[%c1_55, %c0_56, %c0_57] : memref<3x192x64xbf16, #tpu.memory_space<vmem>>, vector<1x192x64xbf16>
    %35 = vector.shape_cast %34 : vector<1x192x64xbf16> to vector<192x64xbf16>
    %cst_58 = arith.constant dense<0.000000e+00> : vector<64x64xf32>
    %36 = tpu.matmul %33, %35, %cst_58 {dimension_numbers = #tpu.dot_dimension_numbers<[1], [0], [0], [1], [0, 0, 1, 1], [], []>} : vector<64x192xbf16>, vector<192x64xbf16>, vector<64x64xf32> -> vector<64x64xf32>
    %37 = arith.addf %27, %36 : vector<64x64xf32>
    %c2_59 = arith.constant 2 : index
    %c0_60 = arith.constant 0 : index
    %c0_61 = arith.constant 0 : index
    %38 = vector.load %arg11[%c2_59, %c0_60, %c0_61] : memref<10x10x64xf32, #tpu.memory_space<vmem>>, vector<8x8x64xf32>
    %c2_62 = arith.constant 2 : index
    %c1_63 = arith.constant 1 : index
    %c0_64 = arith.constant 0 : index
    %39 = vector.load %arg11[%c2_62, %c1_63, %c0_64] : memref<10x10x64xf32, #tpu.memory_space<vmem>>, vector<8x8x64xf32>
    %c2_65 = arith.constant 2 : index
    %c2_66 = arith.constant 2 : index
    %c0_67 = arith.constant 0 : index
    %40 = vector.load %arg11[%c2_65, %c2_66, %c0_67] : memref<10x10x64xf32, #tpu.memory_space<vmem>>, vector<8x8x64xf32>
    %41 = tpu.concatenate %38, %39, %40 in 2 : vector<8x8x64xf32>, vector<8x8x64xf32>, vector<8x8x64xf32> -> vector<8x8x192xf32>
    %42 = vector.shape_cast %41 : vector<8x8x192xf32> to vector<64x192xf32>
    %43 = arith.truncf %42 : vector<64x192xf32> to vector<64x192xbf16>
    %c2_68 = arith.constant 2 : index
    %c0_69 = arith.constant 0 : index
    %c0_70 = arith.constant 0 : index
    %44 = vector.load %arg2[%c2_68, %c0_69, %c0_70] : memref<3x192x64xbf16, #tpu.memory_space<vmem>>, vector<1x192x64xbf16>
    %45 = vector.shape_cast %44 : vector<1x192x64xbf16> to vector<192x64xbf16>
    %cst_71 = arith.constant dense<0.000000e+00> : vector<64x64xf32>
    %46 = tpu.matmul %43, %45, %cst_71 {dimension_numbers = #tpu.dot_dimension_numbers<[1], [0], [0], [1], [0, 0, 1, 1], [], []>} : vector<64x192xbf16>, vector<192x64xbf16>, vector<64x64xf32> -> vector<64x64xf32>
    %47 = arith.addf %37, %46 : vector<64x64xf32>
    %c0_72 = arith.constant 0 : index
    %c0_73 = arith.constant 0 : index
    %48 = vector.load %arg3[%c0_72, %c0_73] : memref<1x64xf32, #tpu.memory_space<vmem>>, vector<1x64xf32>
    %49 = vector.broadcast %48 : vector<1x64xf32> to vector<64x64xf32>
    %50 = arith.addf %47, %49 : vector<64x64xf32>
    %cst_74 = arith.constant 0.000000e+00 : f32
    %51 = vector.broadcast %cst_74 : f32 to vector<64x64xf32>
    %52 = arith.maximumf %50, %51 : vector<64x64xf32>
    %53 = vector.shape_cast %52 : vector<64x64xf32> to vector<8x8x64xf32>
    %54 = vector.shape_cast %53 : vector<8x8x64xf32> to vector<8x1x8x1x64xf32>
    %55 = vector.shape_cast %54 : vector<8x1x8x1x64xf32> to vector<8x1x8x1x64xf32>
    %56 = vector.broadcast %55 : vector<8x1x8x1x64xf32> to vector<8x2x8x2x64xf32>
    %57 = vector.shape_cast %56 : vector<8x2x8x2x64xf32> to vector<16x16x64xf32>
    %c1_75 = arith.constant 1 : index
    %c1_76 = arith.constant 1 : index
    %c0_77 = arith.constant 0 : index
    %58 = vector.load %arg12[%c1_75, %c1_76, %c0_77] : memref<18x18x64xf32, #tpu.memory_space<vmem>>, vector<16x16x64xf32>
    tpu.vector_store %arg12[%c1_75, %c1_76, %c0_77], %57 {strides = array<i32>} : memref<18x18x64xf32, #tpu.memory_space<vmem>>, vector<16x16x64xf32>,
    %c0_78 = arith.constant 0 : index
    %c0_79 = arith.constant 0 : index
    %c0_80 = arith.constant 0 : index
    %59 = vector.load %arg12[%c0_78, %c0_79, %c0_80] : memref<18x18x64xf32, #tpu.memory_space<vmem>>, vector<16x16x64xf32>
    %c0_81 = arith.constant 0 : index
    %c1_82 = arith.constant 1 : index
    %c0_83 = arith.constant 0 : index
    %60 = vector.load %arg12[%c0_81, %c1_82, %c0_83] : memref<18x18x64xf32, #tpu.memory_space<vmem>>, vector<16x16x64xf32>
    %c0_84 = arith.constant 0 : index
    %c2_85 = arith.constant 2 : index
    %c0_86 = arith.constant 0 : index
    %61 = vector.load %arg12[%c0_84, %c2_85, %c0_86] : memref<18x18x64xf32, #tpu.memory_space<vmem>>, vector<16x16x64xf32>
    %62 = tpu.concatenate %59, %60, %61 in 2 : vector<16x16x64xf32>, vector<16x16x64xf32>, vector<16x16x64xf32> -> vector<16x16x192xf32>
    %63 = vector.shape_cast %62 : vector<16x16x192xf32> to vector<256x192xf32>
    %64 = arith.truncf %63 : vector<256x192xf32> to vector<256x192xbf16>
    %c0_87 = arith.constant 0 : index
    %c0_88 = arith.constant 0 : index
    %c0_89 = arith.constant 0 : index
    %65 = vector.load %arg4[%c0_87, %c0_88, %c0_89] : memref<3x192x64xbf16, #tpu.memory_space<vmem>>, vector<1x192x64xbf16>
    %66 = vector.shape_cast %65 : vector<1x192x64xbf16> to vector<192x64xbf16>
    %cst_90 = arith.constant dense<0.000000e+00> : vector<256x64xf32>
    %67 = tpu.matmul %64, %66, %cst_90 {dimension_numbers = #tpu.dot_dimension_numbers<[1], [0], [0], [1], [0, 0, 1, 1], [], []>} : vector<256x192xbf16>, vector<192x64xbf16>, vector<256x64xf32> -> vector<256x64xf32>
    %c1_91 = arith.constant 1 : index
    %c0_92 = arith.constant 0 : index
    %c0_93 = arith.constant 0 : index
    %68 = vector.load %arg12[%c1_91, %c0_92, %c0_93] : memref<18x18x64xf32, #tpu.memory_space<vmem>>, vector<16x16x64xf32>
    %c1_94 = arith.constant 1 : index
    %c1_95 = arith.constant 1 : index
    %c0_96 = arith.constant 0 : index
    %69 = vector.load %arg12[%c1_94, %c1_95, %c0_96] : memref<18x18x64xf32, #tpu.memory_space<vmem>>, vector<16x16x64xf32>
    %c1_97 = arith.constant 1 : index
    %c2_98 = arith.constant 2 : index
    %c0_99 = arith.constant 0 : index
    %70 = vector.load %arg12[%c1_97, %c2_98, %c0_99] : memref<18x18x64xf32, #tpu.memory_space<vmem>>, vector<16x16x64xf32>
    %71 = tpu.concatenate %68, %69, %70 in 2 : vector<16x16x64xf32>, vector<16x16x64xf32>, vector<16x16x64xf32> -> vector<16x16x192xf32>
    %72 = vector.shape_cast %71 : vector<16x16x192xf32> to vector<256x192xf32>
    %73 = arith.truncf %72 : vector<256x192xf32> to vector<256x192xbf16>
    %c1_100 = arith.constant 1 : index
    %c0_101 = arith.constant 0 : index
    %c0_102 = arith.constant 0 : index
    %74 = vector.load %arg4[%c1_100, %c0_101, %c0_102] : memref<3x192x64xbf16, #tpu.memory_space<vmem>>, vector<1x192x64xbf16>
    %75 = vector.shape_cast %74 : vector<1x192x64xbf16> to vector<192x64xbf16>
    %cst_103 = arith.constant dense<0.000000e+00> : vector<256x64xf32>
    %76 = tpu.matmul %73, %75, %cst_103 {dimension_numbers = #tpu.dot_dimension_numbers<[1], [0], [0], [1], [0, 0, 1, 1], [], []>} : vector<256x192xbf16>, vector<192x64xbf16>, vector<256x64xf32> -> vector<256x64xf32>
    %77 = arith.addf %67, %76 : vector<256x64xf32>
    %c2_104 = arith.constant 2 : index
    %c0_105 = arith.constant 0 : index
    %c0_106 = arith.constant 0 : index
    %78 = vector.load %arg12[%c2_104, %c0_105, %c0_106] : memref<18x18x64xf32, #tpu.memory_space<vmem>>, vector<16x16x64xf32>
    %c2_107 = arith.constant 2 : index
    %c1_108 = arith.constant 1 : index
    %c0_109 = arith.constant 0 : index
    %79 = vector.load %arg12[%c2_107, %c1_108, %c0_109] : memref<18x18x64xf32, #tpu.memory_space<vmem>>, vector<16x16x64xf32>
    %c2_110 = arith.constant 2 : index
    %c2_111 = arith.constant 2 : index
    %c0_112 = arith.constant 0 : index
    %80 = vector.load %arg12[%c2_110, %c2_111, %c0_112] : memref<18x18x64xf32, #tpu.memory_space<vmem>>, vector<16x16x64xf32>
    %81 = tpu.concatenate %78, %79, %80 in 2 : vector<16x16x64xf32>, vector<16x16x64xf32>, vector<16x16x64xf32> -> vector<16x16x192xf32>
    %82 = vector.shape_cast %81 : vector<16x16x192xf32> to vector<256x192xf32>
    %83 = arith.truncf %82 : vector<256x192xf32> to vector<256x192xbf16>
    %c2_113 = arith.constant 2 : index
    %c0_114 = arith.constant 0 : index
    %c0_115 = arith.constant 0 : index
    %84 = vector.load %arg4[%c2_113, %c0_114, %c0_115] : memref<3x192x64xbf16, #tpu.memory_space<vmem>>, vector<1x192x64xbf16>
    %85 = vector.shape_cast %84 : vector<1x192x64xbf16> to vector<192x64xbf16>
    %cst_116 = arith.constant dense<0.000000e+00> : vector<256x64xf32>
    %86 = tpu.matmul %83, %85, %cst_116 {dimension_numbers = #tpu.dot_dimension_numbers<[1], [0], [0], [1], [0, 0, 1, 1], [], []>} : vector<256x192xbf16>, vector<192x64xbf16>, vector<256x64xf32> -> vector<256x64xf32>
    %87 = arith.addf %77, %86 : vector<256x64xf32>
    %c0_117 = arith.constant 0 : index
    %c0_118 = arith.constant 0 : index
    %88 = vector.load %arg5[%c0_117, %c0_118] : memref<1x64xf32, #tpu.memory_space<vmem>>, vector<1x64xf32>
    %89 = vector.broadcast %88 : vector<1x64xf32> to vector<256x64xf32>
    %90 = arith.addf %87, %89 : vector<256x64xf32>
    %cst_119 = arith.constant 0.000000e+00 : f32
    %91 = vector.broadcast %cst_119 : f32 to vector<256x64xf32>
    %92 = arith.maximumf %90, %91 : vector<256x64xf32>
    %93 = arith.truncf %92 : vector<256x64xf32> to vector<256x64xbf16>
    %94 = vector.shape_cast %93 : vector<256x64xbf16> to vector<16x16x64xbf16>
    %c0_120 = arith.constant 0 : index
    %c0_121 = arith.constant 0 : index
    %95 = vector.load %arg6[%c0_120, %c0_121] : memref<19x64xbf16, #tpu.memory_space<vmem>>, vector<19x64xbf16>
    %96 = vector.shape_cast %95 : vector<19x64xbf16> to vector<1x19x64xbf16>
    %97 = vector.shape_cast %96 : vector<1x19x64xbf16> to vector<1x19x64xbf16>
    %98 = vector.broadcast %97 : vector<1x19x64xbf16> to vector<16x19x64xbf16>
    %cst_122 = arith.constant dense<0.000000e+00> : vector<16x19x16xf32>
    %99 = tpu.matmul %98, %94, %cst_122 {dimension_numbers = #tpu.dot_dimension_numbers<[2], [2], [1], [1], [0, 0, 0, 1, 1, 1], [0], [0]>} : vector<16x19x64xbf16>, vector<16x16x64xbf16>, vector<16x19x16xf32> -> vector<16x19x16xf32>
    %c0_123 = arith.constant 0 : index
    %c0_124 = arith.constant 0 : index
    %100 = vector.load %arg7[%c0_123, %c0_124] : memref<19x1xf32, #tpu.memory_space<vmem>>, vector<19x1xf32>
    %101 = vector.shape_cast %100 : vector<19x1xf32> to vector<1x19x1xf32>
    %102 = vector.broadcast %101 : vector<1x19x1xf32> to vector<16x19x16xf32>
    %103 = arith.addf %99, %102 : vector<16x19x16xf32>
    %c0_125 = arith.constant 0 : index
    %c0_126 = arith.constant 0 : index
    %104 = vector.load %arg8[%c0_125, %c0_126] : memref<64x16xf32, #tpu.memory_space<vmem>>, vector<64x16xf32>
    %105 = vector.shape_cast %104 : vector<64x16xf32> to vector<1x64x16xf32>
    %106 = vector.shape_cast %105 : vector<1x64x16xf32> to vector<1x64x16xf32>
    %107 = vector.broadcast %106 : vector<1x64x16xf32> to vector<16x64x16xf32>
    %cst_127 = arith.constant dense<0.000000e+00> : vector<16x19x64xf32>
    %108 = tpu.matmul %103, %107, %cst_127 {dimension_numbers = #tpu.dot_dimension_numbers<[2], [2], [1], [1], [0, 0, 0, 1, 1, 1], [0], [0]>} : vector<16x19x16xf32>, vector<16x64x16xf32>, vector<16x19x64xf32> -> vector<16x19x64xf32>
    %c0_128 = arith.constant 0 : index
    %c0_129 = arith.constant 0 : index
    %109 = vector.load %arg9[%c0_128, %c0_129] : memref<64x16xf32, #tpu.memory_space<vmem>>, vector<64x16xf32>
    %110 = vector.extract_strided_slice %108 {offsets = [0, 0, 0], sizes = [16, 1, 64], strides = [1, 1, 1]} : vector<16x19x64xf32> to vector<16x1x64xf32>
    %111 = vector.shape_cast %110 : vector<16x1x64xf32> to vector<16x64xf32>
    %cst_130 = arith.constant dense<0.000000e+00> : vector<64x64xf32>
    %112 = tpu.matmul %109, %111, %cst_130 {dimension_numbers = #tpu.dot_dimension_numbers<[1], [0], [0], [1], [0, 0, 1, 1], [], []>} : vector<64x16xf32>, vector<16x64xf32>, vector<64x64xf32> -> vector<64x64xf32>
    %c0_131 = arith.constant 0 : index
    %c0_132 = arith.constant 0 : index
    %c0_133 = arith.constant 0 : index
    %c0_134 = arith.constant 0 : index
    %113 = vector.load %arg10[%c0_131, %c0_132, %c0_133, %c0_134] : memref<1x19x64x64xf32, #tpu.memory_space<vmem>>, vector<1x1x64x64xf32>
    %114 = vector.shape_cast %113 : vector<1x1x64x64xf32> to vector<64x64xf32>
    %115 = vector.shape_cast %112 : vector<64x64xf32> to vector<1x1x64x64xf32>
    tpu.vector_store %arg10[%c0_131, %c0_132, %c0_133, %c0_134], %115 {strides = array<i32>} : memref<1x19x64x64xf32, #tpu.memory_space<vmem>>, vector<1x1x64x64xf32>,
    %116 = vector.extract_strided_slice %108 {offsets = [0, 1, 0], sizes = [16, 1, 64], strides = [1, 1, 1]} : vector<16x19x64xf32> to vector<16x1x64xf32>
    %117 = vector.shape_cast %116 : vector<16x1x64xf32> to vector<16x64xf32>
    %cst_135 = arith.constant dense<0.000000e+00> : vector<64x64xf32>
    %118 = tpu.matmul %109, %117, %cst_135 {dimension_numbers = #tpu.dot_dimension_numbers<[1], [0], [0], [1], [0, 0, 1, 1], [], []>} : vector<64x16xf32>, vector<16x64xf32>, vector<64x64xf32> -> vector<64x64xf32>
    %c0_136 = arith.constant 0 : index
    %c1_137 = arith.constant 1 : index
    %c0_138 = arith.constant 0 : index
    %c0_139 = arith.constant 0 : index
    %119 = vector.load %arg10[%c0_136, %c1_137, %c0_138, %c0_139] : memref<1x19x64x64xf32, #tpu.memory_space<vmem>>, vector<1x1x64x64xf32>
    %120 = vector.shape_cast %119 : vector<1x1x64x64xf32> to vector<64x64xf32>
    %121 = vector.shape_cast %118 : vector<64x64xf32> to vector<1x1x64x64xf32>
    tpu.vector_store %arg10[%c0_136, %c1_137, %c0_138, %c0_139], %121 {strides = array<i32>} : memref<1x19x64x64xf32, #tpu.memory_space<vmem>>, vector<1x1x64x64xf32>,
    %122 = vector.extract_strided_slice %108 {offsets = [0, 2, 0], sizes = [16, 1, 64], strides = [1, 1, 1]} : vector<16x19x64xf32> to vector<16x1x64xf32>
    %123 = vector.shape_cast %122 : vector<16x1x64xf32> to vector<16x64xf32>
    %cst_140 = arith.constant dense<0.000000e+00> : vector<64x64xf32>
    %124 = tpu.matmul %109, %123, %cst_140 {dimension_numbers = #tpu.dot_dimension_numbers<[1], [0], [0], [1], [0, 0, 1, 1], [], []>} : vector<64x16xf32>, vector<16x64xf32>, vector<64x64xf32> -> vector<64x64xf32>
    %c0_141 = arith.constant 0 : index
    %c2_142 = arith.constant 2 : index
    %c0_143 = arith.constant 0 : index
    %c0_144 = arith.constant 0 : index
    %125 = vector.load %arg10[%c0_141, %c2_142, %c0_143, %c0_144] : memref<1x19x64x64xf32, #tpu.memory_space<vmem>>, vector<1x1x64x64xf32>
    %126 = vector.shape_cast %125 : vector<1x1x64x64xf32> to vector<64x64xf32>
    %127 = vector.shape_cast %124 : vector<64x64xf32> to vector<1x1x64x64xf32>
    tpu.vector_store %arg10[%c0_141, %c2_142, %c0_143, %c0_144], %127 {strides = array<i32>} : memref<1x19x64x64xf32, #tpu.memory_space<vmem>>, vector<1x1x64x64xf32>,
    %128 = vector.extract_strided_slice %108 {offsets = [0, 3, 0], sizes = [16, 1, 64], strides = [1, 1, 1]} : vector<16x19x64xf32> to vector<16x1x64xf32>
    %129 = vector.shape_cast %128 : vector<16x1x64xf32> to vector<16x64xf32>
    %cst_145 = arith.constant dense<0.000000e+00> : vector<64x64xf32>
    %130 = tpu.matmul %109, %129, %cst_145 {dimension_numbers = #tpu.dot_dimension_numbers<[1], [0], [0], [1], [0, 0, 1, 1], [], []>} : vector<64x16xf32>, vector<16x64xf32>, vector<64x64xf32> -> vector<64x64xf32>
    %c0_146 = arith.constant 0 : index
    %c3 = arith.constant 3 : index
    %c0_147 = arith.constant 0 : index
    %c0_148 = arith.constant 0 : index
    %131 = vector.load %arg10[%c0_146, %c3, %c0_147, %c0_148] : memref<1x19x64x64xf32, #tpu.memory_space<vmem>>, vector<1x1x64x64xf32>
    %132 = vector.shape_cast %131 : vector<1x1x64x64xf32> to vector<64x64xf32>
    %133 = vector.shape_cast %130 : vector<64x64xf32> to vector<1x1x64x64xf32>
    tpu.vector_store %arg10[%c0_146, %c3, %c0_147, %c0_148], %133 {strides = array<i32>} : memref<1x19x64x64xf32, #tpu.memory_space<vmem>>, vector<1x1x64x64xf32>,
    %134 = vector.extract_strided_slice %108 {offsets = [0, 4, 0], sizes = [16, 1, 64], strides = [1, 1, 1]} : vector<16x19x64xf32> to vector<16x1x64xf32>
    %135 = vector.shape_cast %134 : vector<16x1x64xf32> to vector<16x64xf32>
    %cst_149 = arith.constant dense<0.000000e+00> : vector<64x64xf32>
    %136 = tpu.matmul %109, %135, %cst_149 {dimension_numbers = #tpu.dot_dimension_numbers<[1], [0], [0], [1], [0, 0, 1, 1], [], []>} : vector<64x16xf32>, vector<16x64xf32>, vector<64x64xf32> -> vector<64x64xf32>
    %c0_150 = arith.constant 0 : index
    %c4 = arith.constant 4 : index
    %c0_151 = arith.constant 0 : index
    %c0_152 = arith.constant 0 : index
    %137 = vector.load %arg10[%c0_150, %c4, %c0_151, %c0_152] : memref<1x19x64x64xf32, #tpu.memory_space<vmem>>, vector<1x1x64x64xf32>
    %138 = vector.shape_cast %137 : vector<1x1x64x64xf32> to vector<64x64xf32>
    %139 = vector.shape_cast %136 : vector<64x64xf32> to vector<1x1x64x64xf32>
    tpu.vector_store %arg10[%c0_150, %c4, %c0_151, %c0_152], %139 {strides = array<i32>} : memref<1x19x64x64xf32, #tpu.memory_space<vmem>>, vector<1x1x64x64xf32>,
    %140 = vector.extract_strided_slice %108 {offsets = [0, 5, 0], sizes = [16, 1, 64], strides = [1, 1, 1]} : vector<16x19x64xf32> to vector<16x1x64xf32>
    %141 = vector.shape_cast %140 : vector<16x1x64xf32> to vector<16x64xf32>
    %cst_153 = arith.constant dense<0.000000e+00> : vector<64x64xf32>
    %142 = tpu.matmul %109, %141, %cst_153 {dimension_numbers = #tpu.dot_dimension_numbers<[1], [0], [0], [1], [0, 0, 1, 1], [], []>} : vector<64x16xf32>, vector<16x64xf32>, vector<64x64xf32> -> vector<64x64xf32>
    %c0_154 = arith.constant 0 : index
    %c5 = arith.constant 5 : index
    %c0_155 = arith.constant 0 : index
    %c0_156 = arith.constant 0 : index
    %143 = vector.load %arg10[%c0_154, %c5, %c0_155, %c0_156] : memref<1x19x64x64xf32, #tpu.memory_space<vmem>>, vector<1x1x64x64xf32>
    %144 = vector.shape_cast %143 : vector<1x1x64x64xf32> to vector<64x64xf32>
    %145 = vector.shape_cast %142 : vector<64x64xf32> to vector<1x1x64x64xf32>
    tpu.vector_store %arg10[%c0_154, %c5, %c0_155, %c0_156], %145 {strides = array<i32>} : memref<1x19x64x64xf32, #tpu.memory_space<vmem>>, vector<1x1x64x64xf32>,
    %146 = vector.extract_strided_slice %108 {offsets = [0, 6, 0], sizes = [16, 1, 64], strides = [1, 1, 1]} : vector<16x19x64xf32> to vector<16x1x64xf32>
    %147 = vector.shape_cast %146 : vector<16x1x64xf32> to vector<16x64xf32>
    %cst_157 = arith.constant dense<0.000000e+00> : vector<64x64xf32>
    %148 = tpu.matmul %109, %147, %cst_157 {dimension_numbers = #tpu.dot_dimension_numbers<[1], [0], [0], [1], [0, 0, 1, 1], [], []>} : vector<64x16xf32>, vector<16x64xf32>, vector<64x64xf32> -> vector<64x64xf32>
    %c0_158 = arith.constant 0 : index
    %c6 = arith.constant 6 : index
    %c0_159 = arith.constant 0 : index
    %c0_160 = arith.constant 0 : index
    %149 = vector.load %arg10[%c0_158, %c6, %c0_159, %c0_160] : memref<1x19x64x64xf32, #tpu.memory_space<vmem>>, vector<1x1x64x64xf32>
    %150 = vector.shape_cast %149 : vector<1x1x64x64xf32> to vector<64x64xf32>
    %151 = vector.shape_cast %148 : vector<64x64xf32> to vector<1x1x64x64xf32>
    tpu.vector_store %arg10[%c0_158, %c6, %c0_159, %c0_160], %151 {strides = array<i32>} : memref<1x19x64x64xf32, #tpu.memory_space<vmem>>, vector<1x1x64x64xf32>,
    %152 = vector.extract_strided_slice %108 {offsets = [0, 7, 0], sizes = [16, 1, 64], strides = [1, 1, 1]} : vector<16x19x64xf32> to vector<16x1x64xf32>
    %153 = vector.shape_cast %152 : vector<16x1x64xf32> to vector<16x64xf32>
    %cst_161 = arith.constant dense<0.000000e+00> : vector<64x64xf32>
    %154 = tpu.matmul %109, %153, %cst_161 {dimension_numbers = #tpu.dot_dimension_numbers<[1], [0], [0], [1], [0, 0, 1, 1], [], []>} : vector<64x16xf32>, vector<16x64xf32>, vector<64x64xf32> -> vector<64x64xf32>
    %c0_162 = arith.constant 0 : index
    %c7 = arith.constant 7 : index
    %c0_163 = arith.constant 0 : index
    %c0_164 = arith.constant 0 : index
    %155 = vector.load %arg10[%c0_162, %c7, %c0_163, %c0_164] : memref<1x19x64x64xf32, #tpu.memory_space<vmem>>, vector<1x1x64x64xf32>
    %156 = vector.shape_cast %155 : vector<1x1x64x64xf32> to vector<64x64xf32>
    %157 = vector.shape_cast %154 : vector<64x64xf32> to vector<1x1x64x64xf32>
    tpu.vector_store %arg10[%c0_162, %c7, %c0_163, %c0_164], %157 {strides = array<i32>} : memref<1x19x64x64xf32, #tpu.memory_space<vmem>>, vector<1x1x64x64xf32>,
    %158 = vector.extract_strided_slice %108 {offsets = [0, 8, 0], sizes = [16, 1, 64], strides = [1, 1, 1]} : vector<16x19x64xf32> to vector<16x1x64xf32>
    %159 = vector.shape_cast %158 : vector<16x1x64xf32> to vector<16x64xf32>
    %cst_165 = arith.constant dense<0.000000e+00> : vector<64x64xf32>
    %160 = tpu.matmul %109, %159, %cst_165 {dimension_numbers = #tpu.dot_dimension_numbers<[1], [0], [0], [1], [0, 0, 1, 1], [], []>} : vector<64x16xf32>, vector<16x64xf32>, vector<64x64xf32> -> vector<64x64xf32>
    %c0_166 = arith.constant 0 : index
    %c8 = arith.constant 8 : index
    %c0_167 = arith.constant 0 : index
    %c0_168 = arith.constant 0 : index
    %161 = vector.load %arg10[%c0_166, %c8, %c0_167, %c0_168] : memref<1x19x64x64xf32, #tpu.memory_space<vmem>>, vector<1x1x64x64xf32>
    %162 = vector.shape_cast %161 : vector<1x1x64x64xf32> to vector<64x64xf32>
    %163 = vector.shape_cast %160 : vector<64x64xf32> to vector<1x1x64x64xf32>
    tpu.vector_store %arg10[%c0_166, %c8, %c0_167, %c0_168], %163 {strides = array<i32>} : memref<1x19x64x64xf32, #tpu.memory_space<vmem>>, vector<1x1x64x64xf32>,
    %164 = vector.extract_strided_slice %108 {offsets = [0, 9, 0], sizes = [16, 1, 64], strides = [1, 1, 1]} : vector<16x19x64xf32> to vector<16x1x64xf32>
    %165 = vector.shape_cast %164 : vector<16x1x64xf32> to vector<16x64xf32>
    %cst_169 = arith.constant dense<0.000000e+00> : vector<64x64xf32>
    %166 = tpu.matmul %109, %165, %cst_169 {dimension_numbers = #tpu.dot_dimension_numbers<[1], [0], [0], [1], [0, 0, 1, 1], [], []>} : vector<64x16xf32>, vector<16x64xf32>, vector<64x64xf32> -> vector<64x64xf32>
    %c0_170 = arith.constant 0 : index
    %c9_171 = arith.constant 9 : index
    %c0_172 = arith.constant 0 : index
    %c0_173 = arith.constant 0 : index
    %167 = vector.load %arg10[%c0_170, %c9_171, %c0_172, %c0_173] : memref<1x19x64x64xf32, #tpu.memory_space<vmem>>, vector<1x1x64x64xf32>
    %168 = vector.shape_cast %167 : vector<1x1x64x64xf32> to vector<64x64xf32>
    %169 = vector.shape_cast %166 : vector<64x64xf32> to vector<1x1x64x64xf32>
    tpu.vector_store %arg10[%c0_170, %c9_171, %c0_172, %c0_173], %169 {strides = array<i32>} : memref<1x19x64x64xf32, #tpu.memory_space<vmem>>, vector<1x1x64x64xf32>,
    %170 = vector.extract_strided_slice %108 {offsets = [0, 10, 0], sizes = [16, 1, 64], strides = [1, 1, 1]} : vector<16x19x64xf32> to vector<16x1x64xf32>
    %171 = vector.shape_cast %170 : vector<16x1x64xf32> to vector<16x64xf32>
    %cst_174 = arith.constant dense<0.000000e+00> : vector<64x64xf32>
    %172 = tpu.matmul %109, %171, %cst_174 {dimension_numbers = #tpu.dot_dimension_numbers<[1], [0], [0], [1], [0, 0, 1, 1], [], []>} : vector<64x16xf32>, vector<16x64xf32>, vector<64x64xf32> -> vector<64x64xf32>
    %c0_175 = arith.constant 0 : index
    %c10 = arith.constant 10 : index
    %c0_176 = arith.constant 0 : index
    %c0_177 = arith.constant 0 : index
    %173 = vector.load %arg10[%c0_175, %c10, %c0_176, %c0_177] : memref<1x19x64x64xf32, #tpu.memory_space<vmem>>, vector<1x1x64x64xf32>
    %174 = vector.shape_cast %173 : vector<1x1x64x64xf32> to vector<64x64xf32>
    %175 = vector.shape_cast %172 : vector<64x64xf32> to vector<1x1x64x64xf32>
    tpu.vector_store %arg10[%c0_175, %c10, %c0_176, %c0_177], %175 {strides = array<i32>} : memref<1x19x64x64xf32, #tpu.memory_space<vmem>>, vector<1x1x64x64xf32>,
    %176 = vector.extract_strided_slice %108 {offsets = [0, 11, 0], sizes = [16, 1, 64], strides = [1, 1, 1]} : vector<16x19x64xf32> to vector<16x1x64xf32>
    %177 = vector.shape_cast %176 : vector<16x1x64xf32> to vector<16x64xf32>
    %cst_178 = arith.constant dense<0.000000e+00> : vector<64x64xf32>
    %178 = tpu.matmul %109, %177, %cst_178 {dimension_numbers = #tpu.dot_dimension_numbers<[1], [0], [0], [1], [0, 0, 1, 1], [], []>} : vector<64x16xf32>, vector<16x64xf32>, vector<64x64xf32> -> vector<64x64xf32>
    %c0_179 = arith.constant 0 : index
    %c11 = arith.constant 11 : index
    %c0_180 = arith.constant 0 : index
    %c0_181 = arith.constant 0 : index
    %179 = vector.load %arg10[%c0_179, %c11, %c0_180, %c0_181] : memref<1x19x64x64xf32, #tpu.memory_space<vmem>>, vector<1x1x64x64xf32>
    %180 = vector.shape_cast %179 : vector<1x1x64x64xf32> to vector<64x64xf32>
    %181 = vector.shape_cast %178 : vector<64x64xf32> to vector<1x1x64x64xf32>
    tpu.vector_store %arg10[%c0_179, %c11, %c0_180, %c0_181], %181 {strides = array<i32>} : memref<1x19x64x64xf32, #tpu.memory_space<vmem>>, vector<1x1x64x64xf32>,
    %182 = vector.extract_strided_slice %108 {offsets = [0, 12, 0], sizes = [16, 1, 64], strides = [1, 1, 1]} : vector<16x19x64xf32> to vector<16x1x64xf32>
    %183 = vector.shape_cast %182 : vector<16x1x64xf32> to vector<16x64xf32>
    %cst_182 = arith.constant dense<0.000000e+00> : vector<64x64xf32>
    %184 = tpu.matmul %109, %183, %cst_182 {dimension_numbers = #tpu.dot_dimension_numbers<[1], [0], [0], [1], [0, 0, 1, 1], [], []>} : vector<64x16xf32>, vector<16x64xf32>, vector<64x64xf32> -> vector<64x64xf32>
    %c0_183 = arith.constant 0 : index
    %c12 = arith.constant 12 : index
    %c0_184 = arith.constant 0 : index
    %c0_185 = arith.constant 0 : index
    %185 = vector.load %arg10[%c0_183, %c12, %c0_184, %c0_185] : memref<1x19x64x64xf32, #tpu.memory_space<vmem>>, vector<1x1x64x64xf32>
    %186 = vector.shape_cast %185 : vector<1x1x64x64xf32> to vector<64x64xf32>
    %187 = vector.shape_cast %184 : vector<64x64xf32> to vector<1x1x64x64xf32>
    tpu.vector_store %arg10[%c0_183, %c12, %c0_184, %c0_185], %187 {strides = array<i32>} : memref<1x19x64x64xf32, #tpu.memory_space<vmem>>, vector<1x1x64x64xf32>,
    %188 = vector.extract_strided_slice %108 {offsets = [0, 13, 0], sizes = [16, 1, 64], strides = [1, 1, 1]} : vector<16x19x64xf32> to vector<16x1x64xf32>
    %189 = vector.shape_cast %188 : vector<16x1x64xf32> to vector<16x64xf32>
    %cst_186 = arith.constant dense<0.000000e+00> : vector<64x64xf32>
    %190 = tpu.matmul %109, %189, %cst_186 {dimension_numbers = #tpu.dot_dimension_numbers<[1], [0], [0], [1], [0, 0, 1, 1], [], []>} : vector<64x16xf32>, vector<16x64xf32>, vector<64x64xf32> -> vector<64x64xf32>
    %c0_187 = arith.constant 0 : index
    %c13 = arith.constant 13 : index
    %c0_188 = arith.constant 0 : index
    %c0_189 = arith.constant 0 : index
    %191 = vector.load %arg10[%c0_187, %c13, %c0_188, %c0_189] : memref<1x19x64x64xf32, #tpu.memory_space<vmem>>, vector<1x1x64x64xf32>
    %192 = vector.shape_cast %191 : vector<1x1x64x64xf32> to vector<64x64xf32>
    %193 = vector.shape_cast %190 : vector<64x64xf32> to vector<1x1x64x64xf32>
    tpu.vector_store %arg10[%c0_187, %c13, %c0_188, %c0_189], %193 {strides = array<i32>} : memref<1x19x64x64xf32, #tpu.memory_space<vmem>>, vector<1x1x64x64xf32>,
    %194 = vector.extract_strided_slice %108 {offsets = [0, 14, 0], sizes = [16, 1, 64], strides = [1, 1, 1]} : vector<16x19x64xf32> to vector<16x1x64xf32>
    %195 = vector.shape_cast %194 : vector<16x1x64xf32> to vector<16x64xf32>
    %cst_190 = arith.constant dense<0.000000e+00> : vector<64x64xf32>
    %196 = tpu.matmul %109, %195, %cst_190 {dimension_numbers = #tpu.dot_dimension_numbers<[1], [0], [0], [1], [0, 0, 1, 1], [], []>} : vector<64x16xf32>, vector<16x64xf32>, vector<64x64xf32> -> vector<64x64xf32>
    %c0_191 = arith.constant 0 : index
    %c14 = arith.constant 14 : index
    %c0_192 = arith.constant 0 : index
    %c0_193 = arith.constant 0 : index
    %197 = vector.load %arg10[%c0_191, %c14, %c0_192, %c0_193] : memref<1x19x64x64xf32, #tpu.memory_space<vmem>>, vector<1x1x64x64xf32>
    %198 = vector.shape_cast %197 : vector<1x1x64x64xf32> to vector<64x64xf32>
    %199 = vector.shape_cast %196 : vector<64x64xf32> to vector<1x1x64x64xf32>
    tpu.vector_store %arg10[%c0_191, %c14, %c0_192, %c0_193], %199 {strides = array<i32>} : memref<1x19x64x64xf32, #tpu.memory_space<vmem>>, vector<1x1x64x64xf32>,
    %200 = vector.extract_strided_slice %108 {offsets = [0, 15, 0], sizes = [16, 1, 64], strides = [1, 1, 1]} : vector<16x19x64xf32> to vector<16x1x64xf32>
    %201 = vector.shape_cast %200 : vector<16x1x64xf32> to vector<16x64xf32>
    %cst_194 = arith.constant dense<0.000000e+00> : vector<64x64xf32>
    %202 = tpu.matmul %109, %201, %cst_194 {dimension_numbers = #tpu.dot_dimension_numbers<[1], [0], [0], [1], [0, 0, 1, 1], [], []>} : vector<64x16xf32>, vector<16x64xf32>, vector<64x64xf32> -> vector<64x64xf32>
    %c0_195 = arith.constant 0 : index
    %c15 = arith.constant 15 : index
    %c0_196 = arith.constant 0 : index
    %c0_197 = arith.constant 0 : index
    %203 = vector.load %arg10[%c0_195, %c15, %c0_196, %c0_197] : memref<1x19x64x64xf32, #tpu.memory_space<vmem>>, vector<1x1x64x64xf32>
    %204 = vector.shape_cast %203 : vector<1x1x64x64xf32> to vector<64x64xf32>
    %205 = vector.shape_cast %202 : vector<64x64xf32> to vector<1x1x64x64xf32>
    tpu.vector_store %arg10[%c0_195, %c15, %c0_196, %c0_197], %205 {strides = array<i32>} : memref<1x19x64x64xf32, #tpu.memory_space<vmem>>, vector<1x1x64x64xf32>,
    %206 = vector.extract_strided_slice %108 {offsets = [0, 16, 0], sizes = [16, 1, 64], strides = [1, 1, 1]} : vector<16x19x64xf32> to vector<16x1x64xf32>
    %207 = vector.shape_cast %206 : vector<16x1x64xf32> to vector<16x64xf32>
    %cst_198 = arith.constant dense<0.000000e+00> : vector<64x64xf32>
    %208 = tpu.matmul %109, %207, %cst_198 {dimension_numbers = #tpu.dot_dimension_numbers<[1], [0], [0], [1], [0, 0, 1, 1], [], []>} : vector<64x16xf32>, vector<16x64xf32>, vector<64x64xf32> -> vector<64x64xf32>
    %c0_199 = arith.constant 0 : index
    %c16 = arith.constant 16 : index
    %c0_200 = arith.constant 0 : index
    %c0_201 = arith.constant 0 : index
    %209 = vector.load %arg10[%c0_199, %c16, %c0_200, %c0_201] : memref<1x19x64x64xf32, #tpu.memory_space<vmem>>, vector<1x1x64x64xf32>
    %210 = vector.shape_cast %209 : vector<1x1x64x64xf32> to vector<64x64xf32>
    %211 = vector.shape_cast %208 : vector<64x64xf32> to vector<1x1x64x64xf32>
    tpu.vector_store %arg10[%c0_199, %c16, %c0_200, %c0_201], %211 {strides = array<i32>} : memref<1x19x64x64xf32, #tpu.memory_space<vmem>>, vector<1x1x64x64xf32>,
    %212 = vector.extract_strided_slice %108 {offsets = [0, 17, 0], sizes = [16, 1, 64], strides = [1, 1, 1]} : vector<16x19x64xf32> to vector<16x1x64xf32>
    %213 = vector.shape_cast %212 : vector<16x1x64xf32> to vector<16x64xf32>
    %cst_202 = arith.constant dense<0.000000e+00> : vector<64x64xf32>
    %214 = tpu.matmul %109, %213, %cst_202 {dimension_numbers = #tpu.dot_dimension_numbers<[1], [0], [0], [1], [0, 0, 1, 1], [], []>} : vector<64x16xf32>, vector<16x64xf32>, vector<64x64xf32> -> vector<64x64xf32>
    %c0_203 = arith.constant 0 : index
    %c17_204 = arith.constant 17 : index
    %c0_205 = arith.constant 0 : index
    %c0_206 = arith.constant 0 : index
    %215 = vector.load %arg10[%c0_203, %c17_204, %c0_205, %c0_206] : memref<1x19x64x64xf32, #tpu.memory_space<vmem>>, vector<1x1x64x64xf32>
    %216 = vector.shape_cast %215 : vector<1x1x64x64xf32> to vector<64x64xf32>
    %217 = vector.shape_cast %214 : vector<64x64xf32> to vector<1x1x64x64xf32>
    tpu.vector_store %arg10[%c0_203, %c17_204, %c0_205, %c0_206], %217 {strides = array<i32>} : memref<1x19x64x64xf32, #tpu.memory_space<vmem>>, vector<1x1x64x64xf32>,
    %218 = vector.extract_strided_slice %108 {offsets = [0, 18, 0], sizes = [16, 1, 64], strides = [1, 1, 1]} : vector<16x19x64xf32> to vector<16x1x64xf32>
    %219 = vector.shape_cast %218 : vector<16x1x64xf32> to vector<16x64xf32>
    %cst_207 = arith.constant dense<0.000000e+00> : vector<64x64xf32>
    %220 = tpu.matmul %109, %219, %cst_207 {dimension_numbers = #tpu.dot_dimension_numbers<[1], [0], [0], [1], [0, 0, 1, 1], [], []>} : vector<64x16xf32>, vector<16x64xf32>, vector<64x64xf32> -> vector<64x64xf32>
    %c0_208 = arith.constant 0 : index
    %c18 = arith.constant 18 : index
    %c0_209 = arith.constant 0 : index
    %c0_210 = arith.constant 0 : index
    %221 = vector.load %arg10[%c0_208, %c18, %c0_209, %c0_210] : memref<1x19x64x64xf32, #tpu.memory_space<vmem>>, vector<1x1x64x64xf32>
    %222 = vector.shape_cast %221 : vector<1x1x64x64xf32> to vector<64x64xf32>
    %223 = vector.shape_cast %220 : vector<64x64xf32> to vector<1x1x64x64xf32>
    tpu.vector_store %arg10[%c0_208, %c18, %c0_209, %c0_210], %223 {strides = array<i32>} : memref<1x19x64x64xf32, #tpu.memory_space<vmem>>, vector<1x1x64x64xf32>,
    return
  }
  func.func @transform_0(%arg0: i32) -> (i32, i32, i32, i32) {
    %c0_i32 = arith.constant 0 : i32
    %c0_i32_0 = arith.constant 0 : i32
    %c0_i32_1 = arith.constant 0 : i32
    %c0_i32_2 = arith.constant 0 : i32
    return %arg0, %c0_i32, %c0_i32_0, %c0_i32_1 : i32, i32, i32, i32
  }
  func.func @transform_1(%arg0: i32) -> (i32, i32, i32) {
    %c0_i32 = arith.constant 0 : i32
    %c0_i32_0 = arith.constant 0 : i32
    %c0_i32_1 = arith.constant 0 : i32
    %c0_i32_2 = arith.constant 0 : i32
    return %c0_i32, %c0_i32_0, %c0_i32_1 : i32, i32, i32
  }
  func.func @transform_2(%arg0: i32) -> (i32, i32) {
    %c0_i32 = arith.constant 0 : i32
    %c0_i32_0 = arith.constant 0 : i32
    %c0_i32_1 = arith.constant 0 : i32
    return %c0_i32, %c0_i32_0 : i32, i32
  }
  func.func @transform_3(%arg0: i32) -> (i32, i32, i32) {
    %c0_i32 = arith.constant 0 : i32
    %c0_i32_0 = arith.constant 0 : i32
    %c0_i32_1 = arith.constant 0 : i32
    %c0_i32_2 = arith.constant 0 : i32
    return %c0_i32, %c0_i32_0, %c0_i32_1 : i32, i32, i32
  }
  func.func @transform_4(%arg0: i32) -> (i32, i32) {
    %c0_i32 = arith.constant 0 : i32
    %c0_i32_0 = arith.constant 0 : i32
    %c0_i32_1 = arith.constant 0 : i32
    return %c0_i32, %c0_i32_0 : i32, i32
  }
  func.func @transform_5(%arg0: i32) -> (i32, i32) {
    %c0_i32 = arith.constant 0 : i32
    %c0_i32_0 = arith.constant 0 : i32
    %c0_i32_1 = arith.constant 0 : i32
    return %c0_i32, %c0_i32_0 : i32, i32
  }
  func.func @transform_6(%arg0: i32) -> (i32, i32) {
    %c0_i32 = arith.constant 0 : i32
    %c0_i32_0 = arith.constant 0 : i32
    %c0_i32_1 = arith.constant 0 : i32
    return %c0_i32, %c0_i32_0 : i32, i32
  }
  func.func @transform_7(%arg0: i32) -> (i32, i32) {
    %c0_i32 = arith.constant 0 : i32
    %c0_i32_0 = arith.constant 0 : i32
    %c0_i32_1 = arith.constant 0 : i32
    return %c0_i32, %c0_i32_0 : i32, i32
  }
  func.func @transform_8(%arg0: i32) -> (i32, i32) {
    %c0_i32 = arith.constant 0 : i32
    %c0_i32_0 = arith.constant 0 : i32
    %c0_i32_1 = arith.constant 0 : i32
    return %c0_i32, %c0_i32_0 : i32, i32
  }
  func.func @transform_9(%arg0: i32) -> (i32, i32, i32, i32) {
    %c0_i32 = arith.constant 0 : i32
    %c0_i32_0 = arith.constant 0 : i32
    %c0_i32_1 = arith.constant 0 : i32
    %c0_i32_2 = arith.constant 0 : i32
    return %arg0, %c0_i32, %c0_i32_0, %c0_i32_1 : i32, i32, i32, i32
  }
}

</mosaic_0001>

<bundles_post_ra>
// kernel: segment_head_pallas.1
= control target key start
LH: loop header
LB: loop body
LE: loop exit
PB: predicated region body
PF: predicated region fallthrough
CT: control target
= control target key end

     0   :  { %s15949_s0 = inlined_call_operand.hbm [shape: f32[2,8,8,64], index: 0, kind: input, shape index: {}]   ;;  %s15950_s1 = inlined_call_operand.vmem [shape: bf16[3,192,64], index: 1, kind: input, shape index: {}]   ;;  %s15951_s2 = inlined_call_operand.hbm [shape: f32[1,64], index: 2, kind: input, shape index: {}]   ;;  %s15952_s3 = inlined_call_operand.vmem [shape: bf16[3,192,64], index: 3, kind: input, shape index: {}]   ;;  %s15953_s4 = inlined_call_operand.hbm [shape: f32[1,64], index: 4, kind: input, shape index: {}]   ;;  %s15954_s5 = inlined_call_operand.hbm [shape: bf16[19,64], index: 5, kind: input, shape index: {}]   ;;  %s15955_s6 = inlined_call_operand.vmem [shape: f32[19,1], index: 6, kind: input, shape index: {}]   ;;  %s15956_s7 = inlined_call_operand.vmem [shape: f32[64,16], index: 7, kind: input, shape index: {}]   ;;  %s15957_s8 = inlined_call_operand.vmem [shape: f32[64,16], index: 8, kind: input, shape index: {}]   ;;  %s15958_s9 = inlined_call_operand.hbm [shape: f32[2,19,64,64], index: 9, kind: output, shape index: {}]  }
   0x1   :  { %15977 = sst [smem:[#allocation27_spill]] %s15951_s2 }
   0x2   :  { %15978 = sst [smem:[#allocation28_spill]] %s15953_s4 }
   0x3   :  { %15979 = sst [smem:[#allocation29_spill]] %s15954_s5 }
   0x4   :  { %14 = vsyncpa [#allocation5], 0 }
   0x5   :  { %16 = vsyncpa [#allocation5 + $0x1], 0 }
   0x6   :  { %17 = vsyncpa [#allocation8], 0 }
   0x7   :  { %18 = vsyncpa [#allocation11], 0 }
   0x8   :  { %19 = vsyncpa [#allocation6], 0 }
   0x9   :  { %21 = vsyncpa [#allocation6 + $0x1], 0  ;;  %s12073_s30 = smov 0   ;;  %s12075_s10 = smov 0  }
   0xa   :  { %s12077_s11 = smov 0   ;;  %s12079_s12 = smov 0  }
   0xb LB: > { %s12094_s13 = sadd.s32 4294967295, %s12004_s12   ;;  %s9373_s14 = sadd.s32 4294967294, %s12004_s12   ;;  %s12004_s12 = sphi %s12079_s12, %s16042_s12   ;;  %s12000_s11 = sphi %s12077_s11, %s16041_s11   ;;  %s11996_s10 = sphi %s12075_s10, %s16040_s10   ;;  %s11992_s30 = sphi %s12073_s30, %s16039_s30  }
   0xc   : > { %p47_p0 = scmp.ne.s32.totalorder %s11996_s10, %s11992_s30  ;;  %p15959_p1 = scmp.eq.s32.totalorder %s12094_s13, 0 }
   0xd   : > { %p245_p3 = scmp.eq.s32.totalorder %s9373_s14, 1  ;;  %p9374_p5 = scmp.ge.s32.totalorder %s12004_s12, 1 }
   0xe   : > { %p12103_p4 = por %p15959_p1, %p47_p0  ;;  %p252_p7 = scmp.lt.s32.totalorder %s12004_s12, 3 }
   0xf   : > { %p12108_p6 = por %p245_p3, %p47_p0  ;;  %s12006_s18 = smov [#allocation7]  }
  0x10   : > { %s15980_s15 = scalar_select %p12103_p4, 1, 0 }
  0x11   : > { %s15981_s16 = scalar_select %p12108_p6, 1, 0 }
  0x12   : > { %p12113_p8 = pnand %p9374_p5, %p252_p7  ;;  %s268_s19 = sshll.u32 %s12006_s18, 4  ;;  %s269_s19 = int_to_ptr.vmem [resolvable:$true] %s268_s19 }
  0x13   : > { %s12007_s20 = smov [#allocation9]   ;;  %s12008_s23 = smov [#allocation10]  }
  0x14   : > { %s15982_s17 = scalar_select %p12113_p8, 1, 0 }
  0x15   : > { %p11375_p10 = pneg %p12113_p8  ;;  %s282_s21 = sshll.u32 %s12007_s20, 4  ;;  %s283_s21 = int_to_ptr.vmem [resolvable:$true] %s282_s21 }
  0x16   : > { %s292_s24 = sshll.u32 %s12008_s23, 4  ;;  %s11837_s25 = scalar_lea.vmem %s269_s19, 16  ;;  %s12126_s24 = int_to_ptr.vmem [resolvable:$true] %s292_s24 }
  0x17   : > { %p12122_p11 = pnand %p11375_p10, %p15959_p1  ;;  %p11838_p13 = scmp.ne.s32.totalorder %s269_s19, %s11837_s25 }
  0x18   : > { %s11844_s26 = scalar_lea.vmem %s269_s19, 32  ;;  %p11845_p5 = scmp.lt.s32.totalorder %s269_s19, %s269_s19 }
  0x19   : > { %p11828_p12 = pneg %p12122_p11  ;;  %p11846_p7 = scmp.lt.s32.totalorder %s11844_s26, %s11837_s25 }
  0x1b   : > { %p11840_p0 = pnand %p11838_p13, %p11828_p12  ;;  %p11847_p10 = por %p11846_p7, %p11845_p5 }
  0x1d   : > { %p11841_p3 = pneg %p11840_p0 }
  0x1f   : > { %p11848_p9 = pnand %p11847_p10, %p11841_p3 }
  0x21   : > { %11851 = shalt.err (!%p11848_p9)
}
  0x22   : > { %s15984_s2 = sld [smem:[#allocation27_spill]]  ;;  %s11863_s29 = scalar_lea.vmem %s283_s21, 16 }
  0x23   : > { %p11864_p1 = scmp.ne.s32.totalorder %s283_s21, %s11863_s29  ;;  %s11870_s14 = scalar_lea.vmem %s283_s21, 32 }
  0x24   : > { %p11871_p0 = scmp.lt.s32.totalorder %s283_s21, %s283_s21  ;;  %p11872_p6 = scmp.lt.s32.totalorder %s11870_s14, %s11863_s29 }
  0x25   : > { %p11866_p2 = pnand %p11864_p1, %p11828_p12 }
  0x26   : > { %p11873_p4 = por %p11872_p6, %p11871_p0 }
  0x27   : > { %p11867_p13 = pneg %p11866_p2 }
  0x28   : > { %11378 = dma.hbm_to_vmem [thread:$0]  (!%p12122_p11), %s15984_s2, 16, %s269_s19, [#allocation8]  }
  0x29   : > { %p11874_p5 = pnand %p11873_p4, %p11867_p13 }
  0x2b   : > { %11877 = shalt.err (!%p11874_p5)
}
  0x2c   : > { %s15985_s4 = sld [smem:[#allocation28_spill]]  ;;  %s11889_s19 = scalar_lea.vmem %s12126_s24, 192 }
  0x2d   : > { %p11890_p9 = scmp.ne.s32.totalorder %s12126_s24, %s11889_s19  ;;  %p11897_p6 = scmp.lt.s32.totalorder %s12126_s24, %s12126_s24 }
  0x2e   : > { %p11898_p4 = scmp.lt.s32.totalorder %s11889_s19, %s11889_s19 }
  0x2f   : > { %p11892_p1 = pnand %p11890_p9, %p11828_p12 }
  0x30   : > { %p11899_p3 = por %p11898_p4, %p11897_p6 }
  0x31   : > { %p11893_p2 = pneg %p11892_p1 }
  0x32   : > { %11381 = dma.hbm_to_vmem [thread:$0]  (!%p12122_p11), %s15985_s4, 16, %s283_s21, [#allocation8]  }
  0x33   : > { %p11900_p7 = pnand %p11899_p3, %p11893_p2 }
  0x35   : > { %11903 = shalt.err (!%p11900_p7)
}
  0x36   : > { %s12009_s23 = smov 64   ;;  %s12010_s21 = smov 4  }
  0x37   : > { %s15986_s5 = sld [smem:[#allocation29_spill]]  ;;  %s12160_s27 = sadd.s32 1, %s12004_s12  }
  0x38   : > { %s31_s28 = ssub.s32 %s12004_s12, %s12160_s27  ;;  %s34_s29 = sadd.s32 1, %s12000_s11 }
  0x39   : > { %p32_p12 = scmp.eq.s32.totalorder %s31_s28, 0  ;;  %p41_p10 = scmp.ne.s32.totalorder %s12000_s11, %s11996_s10 }
  0x3a   : > { %p42_p13 = scmp.eq.s32.totalorder %s12004_s12, 0  ;;  %p11396_p0 = scmp.lt.s32.totalorder %s12004_s12, 2 }
  0x3b   : > { %s12170_s14 = scalar_select %p32_p12, %s12000_s11, %s34_s29  }
  0x3c   : > { %p43_p5 = por %p42_p13, %p41_p10  ;;  %p15987_p9 = scmp.eq.s32.totalorder %s12094_s13, 1 }
  0x3d   : > { %11384 = dma.hbm_to_vmem [thread:$0]  (!%p12122_p11), %s15986_s5, 192, %s12126_s24, [#allocation11], %s12009_s23, %s12009_s23, %s12010_s21  }
  0x3e   : > { %p12174_p1 = por %p15987_p9, %p41_p10  ;;  %s315_s22 = sand.u32 1, %s12000_s11  }
  0x3f   : > { %s10126_s20 = sshll.u32 %s12004_s12, 10  ;;  %s9379_s24 = sshll.u32 %s315_s22, 6 }
  0x40   : > { %s15988_s18 = scalar_select %p12174_p1, 1, 0 }
  0x41   : > { %s12183_s21 = scalar_lea.hbm %s15949_s0, %s10126_s20  ;;  %s319_s25 = scalar_lea.vmem [#allocation4], %s9379_s24 }
  0x42   : > { %s326_s26 = sshll.u32 %s319_s25, 4  ;;  %p12185_p11 = pnand %p11396_p0, %p43_p5  ;;  %s12189_s26 = int_to_ptr.vmem [resolvable:$true] %s326_s26 }
  0x43   : > { %s12191_s29 = scalar_lea.sflag [#allocation5], %s315_s22  ;;  %s11904_s2 = scalar_lea.hbm %s12183_s21, 1024 }
  0x44   : > { %p11905_p2 = scmp.ne.s32.totalorder %s12183_s21, %s11904_s2  ;;  %p11906_p6 = pneg %p12185_p11 }
  0x45   : > { %s11909_s24 = scalar_lea.hbm %s15949_s0, 2048  ;;  %p11910_p7 = scmp.lt.s32.totalorder %s12183_s21, %s15949_s0 }
  0x46   : > { %p11907_p4 = pnand %p11906_p6, %p11905_p2  ;;  %p11911_p12 = scmp.lt.s32.totalorder %s11909_s24, %s11904_s2 }
  0x48   : > { %p11908_p3 = pneg %p11907_p4  ;;  %p11912_p10 = por %p11911_p12, %p11910_p7 }
  0x4a   : > { %p11913_p13 = pnand %p11912_p10, %p11908_p3 }
  0x4c   : > { %11916 = shalt.err (!%p11913_p13)
}
  0x4d   : > { %s11917_s22 = scalar_lea.vmem %s12189_s26, 1024  ;;  %s12011_s4 = smov [#allocation4]  }
  0x4e   : > { %p11918_p0 = scmp.ne.s32.totalorder %s12189_s26, %s11917_s22  ;;  %s11922_s5 = sshll.u32 %s12011_s4, 4  ;;  %s11923_s5 = int_to_ptr.vmem [resolvable:$false] %s11922_s5 }
  0x4f   : > { %s11924_s20 = scalar_lea.vmem %s11923_s5, 2048  ;;  %p11925_p2 = scmp.lt.s32.totalorder %s12189_s26, %s11923_s5 }
  0x50   : > { %p11920_p5 = pnand %p11918_p0, %p11906_p6  ;;  %p11926_p4 = scmp.lt.s32.totalorder %s11924_s20, %s11917_s22 }
  0x52   : > { %p11921_p9 = pneg %p11920_p5  ;;  %p11927_p1 = por %p11926_p4, %p11925_p2 }
  0x54   : > { %p11928_p8 = pnand %p11927_p1, %p11921_p9 }
  0x56   : > { %11931 = shalt.err (!%p11928_p8)
}
  0x57   : > { %s12012_s2 = smov 128   ;;  %s12013_s19 = smov 8  }
  0x58   : > { %11388 = dma.hbm_to_vmem [thread:$0]  (!%p12185_p11), %s12183_s21, 1024, %s12189_s26, %s12191_s29, %s12012_s2, %s12012_s2, %s12013_s19  }
  0x59   : > { %p15990_p6 = scmp.ne.s32.totalorder %s15982_s17, 0 }
  0x5b   : > { %338 = sbr.rel (%p15990_p6) target bundleno = 2044 (0x7fc), region = 56 }
  0x60   : > { %s12215_s4 = sand.u32 1, %s11996_s10   ;;  %p15991_p8 = scmp.ne.s32.totalorder %s15980_s15, 0 }
  0x61   : > { %s9383_s5 = sshll.u32 %s12215_s4, 6  ;;  %s341_s24 = scalar_lea.sflag [#allocation5], %s12215_s4 }
  0x62   : > { %s12219_s23 = scalar_lea.vmem [#allocation4], %s9383_s5 }
  0x63   : > { %11975 = dma.done.wait (%p15991_p8), %s341_s24, 1024  }
  0x64   : > { %11977 = vsyncadd (%p15991_p8), %s341_s24, 4294966272  ;;  %p15992_p1 = scmp.eq.s32.totalorder %s12094_s13, 0 }
  0x66   : > { %11979 = dma.done.wait (%p15992_p1), [#allocation8], 32   ;;  %p15993_p11 = pmov %p15992_p1 }
  0x67   : > { %p15994_p3 = pmov %p15992_p1 }
  0x68   : > { %11981 = vsyncadd (%p15993_p11), [#allocation8], 4294967264 }
  0x69   : > { %11983 = dma.done.wait (%p15994_p3), [#allocation11], 192   ;;  %p15995_p7 = pmov %p15992_p1 }
  0x6a   : > { %vm392_vm0 = vcmask 523264   ;;  %vm394_vm1 = vcmask 517120   ;;  %v15963_v0 = vmov 0.0   ;;  %vm399_vm2 = vcmask 516096   ;;  %v463_v2 = vld [vmem:[%s12219_s23] sm:$0xff]  ;;  %v464_v3 = vld [vmem:[%s12219_s23 + $0x8] sm:$0xff] }
  0x6b   : > { %11985 = vsyncadd (%p15995_p7), [#allocation11], 4294967104  ;;  %393 = vst.msk [vmem:[#allocation2] sm:$0xff] %vm392_vm0, %v15963_v0  ;;  %v12015_v1 = vmov 0   ;;  %v465_v4 = vld [vmem:[%s12219_s23 + $0x10] sm:$0xff]  ;;  %v466_v5 = vld [vmem:[%s12219_s23 + $0x18] sm:$0xff] }
  0x6c   : > { %395 = vst.msk [vmem:[#allocation2 + $0x8] sm:$0x3] %vm394_vm1, %v15963_v0  ;;  %398 = vst.msk [vmem:[#allocation2 + $0x98] sm:$0x3] %vm394_vm1, %v15963_v0  ;;  %757 = vmatprep.subr.bf16.mxu0 %v12015_v1  ;;  %906 = vmatprep.subr.bf16.mxu1 %v12015_v1  ;;  %v467_v6 = vld [vmem:[%s12219_s23 + $0x20] sm:$0xff]  ;;  %v468_v7 = vld [vmem:[%s12219_s23 + $0x28] sm:$0xff] }
  0x6d   : > { %397 = vst.msk [vmem:[#allocation2 + $0x90] sm:$0xff] %vm392_vm0, %v15963_v0  ;;  %420 = vst.msk [vmem:[#allocation3] sm:$0xff] %vm392_vm0, %v15963_v0  ;;  %11748 = vset.pattern.permute.xlu0 %v12015_v1  ;;  %11749 = vset.pattern.permute.xlu1 %v12015_v1  ;;  %v469_v8 = vld [vmem:[%s12219_s23 + $0x30] sm:$0xff]  ;;  %v470_v9 = vld [vmem:[%s12219_s23 + $0x38] sm:$0xff]  ;;  %s12016_s20 = smov 64   ;;  %vm4986_vm3 = vcmask 130048  }
  0x6e   : > { %421 = vst.msk [vmem:[#allocation3 + $0x8] sm:$0xff] %vm392_vm0, %v15963_v0  ;;  %424 = vst.msk [vmem:[#allocation3 + $0x198] sm:$0xff] %vm392_vm0, %v15963_v0  ;;  %v11750_v10 = vld [vmem:[%s15950_s1 + $0x98] sm:$0xff]   ;;  %v11751_v11 = vld [vmem:[%s15950_s1 + $0x90] sm:$0xff]   ;;  %vm12019_vm4 = vmmov 0   ;;  %vm6460_vm5 = vcmask 1041409  }
  0x6f   : > { %422 = vst.msk [vmem:[#allocation3 + $0x10] sm:$0x3] %vm394_vm1, %v15963_v0  ;;  %426 = vst.msk [vmem:[#allocation3 + $0x1a8] sm:$0x3] %vm394_vm1, %v15963_v0  ;;  %758 = vmatpush1.bf16.msra.mxu0 %v11750_v10  ;;  %v11753_v12 = vld [vmem:[%s15950_s1 + $0x38] sm:$0xff]   ;;  %v11752_v19 = vld [vmem:[%s15950_s1 + $0x88] sm:$0xff]  }
  0x70   : > { %425 = vst.msk [vmem:[#allocation3 + $0x1a0] sm:$0xff] %vm392_vm0, %v15963_v0  ;;  %472 = vst.msk [vmem:[#allocation2 + $0x11] sm:$0xff] %vm392_vm0, %v463_v2  ;;  %759 = vmatprep.subr.bf16.mxu0 %v12015_v1  ;;  %907 = vmatpush1.bf16.msra.mxu1 %v11753_v12  ;;  %v11755_v25 = vld [vmem:[%s15950_s1 + $0x30] sm:$0xff]   ;;  %v11757_v28 = vld [vmem:[%s15950_s1 + $0x28] sm:$0xff]   ;;  %vm6463_vm6 = vcmask 1042434   ;;  %vm6466_vm7 = vcmask 1043459  }
  0x71   : > { %411 = vst.msk [vmem:[#allocation2 + $0x19] sm:$0x1] %vm399_vm2, %v15963_v0  ;;  %412 = vst.msk [vmem:[#allocation2 + $0x29] sm:$0x1] %vm399_vm2, %v15963_v0  ;;  %908 = vmatprep.subr.bf16.mxu1 %v12015_v1  ;;  %v11754_v29 = vld [vmem:[%s15950_s1 + $0x80] sm:$0xff]   ;;  %v11756_v32 = vld [vmem:[%s15950_s1 + $0x78] sm:$0xff]  }
  0x72   : > { %400 = vst.msk [vmem:[#allocation2] sm:$0x1] %vm399_vm2, %v15963_v0  ;;  %401 = vst.msk [vmem:[#allocation2 + $0x10] sm:$0x1] %vm399_vm2, %v15963_v0  ;;  %v11759_v31 = vld [vmem:[%s15950_s1 + $0x20] sm:$0xff]   ;;  %v11761_v34 = vld [vmem:[%s15950_s1 + $0x18] sm:$0xff]  }
  0x73   : > { %402 = vst.msk [vmem:[#allocation2 + $0x20] sm:$0x1] %vm399_vm2, %v15963_v0  ;;  %403 = vst.msk [vmem:[#allocation2 + $0x30] sm:$0x1] %vm399_vm2, %v15963_v0  ;;  %760 = vmatpush1.bf16.msra.mxu0 %v11751_v11  ;;  %v488_v26 = vld [vmem:[#allocation2 + $0x1] sm:$0xff]  ;;  %v11758_v35 = vld [vmem:[%s15950_s1 + $0x70] sm:$0xff]  }
  0x74   : > { %404 = vst.msk [vmem:[#allocation2 + $0x40] sm:$0x1] %vm399_vm2, %v15963_v0  ;;  %405 = vst.msk [vmem:[#allocation2 + $0x50] sm:$0x1] %vm399_vm2, %v15963_v0  ;;  %761 = vmatprep.subr.bf16.mxu0 %v12015_v1  ;;  %909 = vmatpush1.bf16.msra.mxu1 %v11755_v25  ;;  %v987_v37 = vld [vmem:[#allocation2 + $0x91] sm:$0xff]  ;;  %v11760_v39 = vld [vmem:[%s15950_s1 + $0x68] sm:$0xff]  }
  0x75   : > { %406 = vst.msk [vmem:[#allocation2 + $0x60] sm:$0x1] %vm399_vm2, %v15963_v0  ;;  %407 = vst.msk [vmem:[#allocation2 + $0x70] sm:$0x1] %vm399_vm2, %v15963_v0  ;;  %910 = vmatprep.subr.bf16.mxu1 %v12015_v1  ;;  %v11763_v38 = vld [vmem:[%s15950_s1 + $0x10] sm:$0xff]   ;;  %v11765_v44 = vld [vmem:[%s15950_s1 + $0x8] sm:$0xff]  }
  0x76   : > { %408 = vst.msk [vmem:[#allocation2 + $0x80] sm:$0x1] %vm399_vm2, %v15963_v0  ;;  %409 = vst.msk [vmem:[#allocation2 + $0x90] sm:$0x1] %vm399_vm2, %v15963_v0  ;;  %v11762_v46 = vld [vmem:[%s15950_s1 + $0x60] sm:$0xff]   ;;  %v11764_v49 = vld [vmem:[%s15950_s1 + $0xb8] sm:$0xff]  }
  0x77   : > { %410 = vst.msk [vmem:[#allocation2 + $0x9] sm:$0x1] %vm399_vm2, %v15963_v0  ;;  %413 = vst.msk [vmem:[#allocation2 + $0x39] sm:$0x1] %vm399_vm2, %v15963_v0  ;;  %v584_v13 = vld [vmem:[#allocation2 + $0x11] sm:$0xff]  ;;  %762 = vmatpush1.bf16.msra.mxu0 %v11752_v19  ;;  %v11767_v47 = vld [vmem:[%s15950_s1] sm:$0xff]  }
  0x78   : > { %414 = vst.msk [vmem:[#allocation2 + $0x49] sm:$0x1] %vm399_vm2, %v15963_v0  ;;  %415 = vst.msk [vmem:[#allocation2 + $0x59] sm:$0x1] %vm399_vm2, %v15963_v0  ;;  %v11468_v30 = vpack.i.bf16 %v584_v13, %v488_v26  ;;  %763 = vmatprep.subr.bf16.mxu0 %v12015_v1  ;;  %911 = vmatpush1.bf16.msra.mxu1 %v11757_v28  ;;  %v592_v41 = vld [vmem:[#allocation2 + $0x12] sm:$0xff]  ;;  %v11768_v54 = vld [vmem:[%s15950_s1 + $0xa8] sm:$0xff]  }
  0x79   : > { %416 = vst.msk [vmem:[#allocation2 + $0x69] sm:$0x1] %vm399_vm2, %v15963_v0  ;;  %417 = vst.msk [vmem:[#allocation2 + $0x79] sm:$0x1] %vm399_vm2, %v15963_v0  ;;  %912 = vmatprep.subr.bf16.mxu1 %v12015_v1  ;;  %v11769_v51 = vld [vmem:[%s15950_s1 + $0x58] sm:$0xff]   ;;  %v11766_v52 = vld [vmem:[%s15950_s1 + $0xb0] sm:$0xff]  }
  0x7a   : > { %418 = vst.msk [vmem:[#allocation2 + $0x89] sm:$0x1] %vm399_vm2, %v15963_v0  ;;  %419 = vst.msk [vmem:[#allocation2 + $0x99] sm:$0x1] %vm399_vm2, %v15963_v0  ;;  %v11771_v53 = vld [vmem:[%s15950_s1 + $0x50] sm:$0xff]   ;;  %v11773_v55 = vld [vmem:[%s15950_s1 + $0x48] sm:$0xff]  }
  0x7b   : > { %427 = vst.msk [vmem:[#allocation3] sm:$0x1] %vm399_vm2, %v15963_v0  ;;  %428 = vst.msk [vmem:[#allocation3 + $0x18] sm:$0x1] %vm399_vm2, %v15963_v0  ;;  %764 = vmatpush1.bf16.msra.mxu0 %v11754_v29  ;;  %v11770_v56 = vld [vmem:[%s15950_s1 + $0xa0] sm:$0xff]   ;;  %v576_v58 = vld [vmem:[#allocation2 + $0x10] sm:$0xff] }
  0x7c   : > { %429 = vst.msk [vmem:[#allocation3 + $0x30] sm:$0x1] %vm399_vm2, %v15963_v0  ;;  %430 = vst.msk [vmem:[#allocation3 + $0x48] sm:$0x1] %vm399_vm2, %v15963_v0  ;;  %765 = vmatprep.subr.bf16.mxu0 %v12015_v1  ;;  %913 = vmatpush1.bf16.msra.mxu1 %v11759_v31  ;;  %v11775_v57 = vld [vmem:[%s15950_s1 + $0x40] sm:$0xff]   ;;  %vm6469_vm8 = vcmask 1044484  }
  0x7d   : > { %431 = vst.msk [vmem:[#allocation3 + $0x60] sm:$0x1] %vm399_vm2, %v15963_v0  ;;  %432 = vst.msk [vmem:[#allocation3 + $0x78] sm:$0x1] %vm399_vm2, %v15963_v0  ;;  %914 = vmatprep.subr.bf16.mxu1 %v12015_v1  ;;  %vm6472_vm9 = vcmask 1045509   ;;  %vm6475_vm10 = vcmask 1046534  }
  0x7e   : > { %433 = vst.msk [vmem:[#allocation3 + $0x90] sm:$0x1] %vm399_vm2, %v15963_v0  ;;  %434 = vst.msk [vmem:[#allocation3 + $0xa8] sm:$0x1] %vm399_vm2, %v15963_v0  ;;  %v496_v48 = vld [vmem:[#allocation2 + $0x2] sm:$0xff]  ;;  %vm6478_vm11 = vcmask 1047559  }
  0x7f   : > { %435 = vst.msk [vmem:[#allocation3 + $0xc0] sm:$0x1] %vm399_vm2, %v15963_v0  ;;  %436 = vst.msk [vmem:[#allocation3 + $0xd8] sm:$0x1] %vm399_vm2, %v15963_v0  ;;  %766 = vmatpush1.bf16.msra.mxu0 %v11756_v32  ;;  %v545_v50 = vpack.c.bf16 %v592_v41, %v496_v48  ;;  %s11357_s23 = smul.u32 1216, %s12215_s4  ;;  %p16036_p10 = scmp.ne.s32.totalorder %s15988_s18, 0 }
  0x80   : > { %437 = vst.msk [vmem:[#allocation3 + $0xf0] sm:$0x1] %vm399_vm2, %v15963_v0  ;;  %438 = vst.msk [vmem:[#allocation3 + $0x108] sm:$0x1] %vm399_vm2, %v15963_v0  ;;  %767 = vmatprep.subr.bf16.mxu0 %v12015_v1  ;;  %915 = vmatpush1.bf16.msra.mxu1 %v11761_v34  ;;  %s11358_s17 = smul.u32 19456, %s12094_s13  ;;  %s9258_s13 = scalar_lea.sflag [#allocation6], %s12215_s4 }
  0x81   : > { %439 = vst.msk [vmem:[#allocation3 + $0x120] sm:$0x1] %vm399_vm2, %v15963_v0  ;;  %440 = vst.msk [vmem:[#allocation3 + $0x138] sm:$0x1] %vm399_vm2, %v15963_v0  ;;  %916 = vmatprep.subr.bf16.mxu1 %v12015_v1  ;;  %9439 = vmatprep.mubr.msk.bf16.mxu1 %vm392_vm0, %v545_v50  ;;  %s15593_s15 = scalar_lea.vmem [#allocation12], %s11357_s23  ;;  %s12020_s22 = smov [#allocation12]  }
  0x82   : > { %441 = vst.msk [vmem:[#allocation3 + $0x150] sm:$0x1] %vm399_vm2, %v15963_v0  ;;  %442 = vst.msk [vmem:[#allocation3 + $0x168] sm:$0x1] %vm399_vm2, %v15963_v0  ;;  %s9271_s21 = sshll.u32 %s15593_s15, 4  ;;  %s15900_s29 = scalar_lea.hbm %s15958_s9, %s11358_s17  ;;  %s15904_s21 = int_to_ptr.vmem [resolvable:$true] %s9271_s21 }
  0x83   : > { %443 = vst.msk [vmem:[#allocation3 + $0x180] sm:$0x1] %vm399_vm2, %v15963_v0  ;;  %444 = vst.msk [vmem:[#allocation3 + $0x198] sm:$0x1] %vm399_vm2, %v15963_v0  ;;  %768 = vmatpush1.bf16.msra.mxu0 %v11758_v35  ;;  %s11932_s25 = scalar_lea.vmem %s15904_s21, 19456  ;;  %s11936_s2 = sshll.u32 %s12020_s22, 4  ;;  %s11937_s2 = int_to_ptr.vmem [resolvable:$false] %s11936_s2 }
  0x84   : > { %445 = vst.msk [vmem:[#allocation3 + $0x11] sm:$0x1] %vm399_vm2, %v15963_v0  ;;  %446 = vst.msk [vmem:[#allocation3 + $0x29] sm:$0x1] %vm399_vm2, %v15963_v0  ;;  %769 = vmatprep.subr.bf16.mxu0 %v12015_v1  ;;  %917 = vmatpush1.bf16.msra.mxu1 %v11763_v38  ;;  %v11777_v38 = vld [vmem:[%s15950_s1 + $0xe0] sm:$0xff]   ;;  %p11933_p12 = scmp.ne.s32.totalorder %s15904_s21, %s11932_s25  ;;  %p11939_p5 = scmp.lt.s32.totalorder %s15904_s21, %s11937_s2 }
  0x85   : > { %447 = vst.msk [vmem:[#allocation3 + $0x41] sm:$0x1] %vm399_vm2, %v15963_v0  ;;  %448 = vst.msk [vmem:[#allocation3 + $0x59] sm:$0x1] %vm399_vm2, %v15963_v0  ;;  %918 = vmatprep.subr.bf16.mxu1 %v12015_v1 }
  0x86   : > { %449 = vst.msk [vmem:[#allocation3 + $0x71] sm:$0x1] %vm399_vm2, %v15963_v0  ;;  %450 = vst.msk [vmem:[#allocation3 + $0x89] sm:$0x1] %vm399_vm2, %v15963_v0  ;;  %p11934_p13 = pnand %p11933_p12, %p16036_p10 }
  0x87   : > { %451 = vst.msk [vmem:[#allocation3 + $0xa1] sm:$0x1] %vm399_vm2, %v15963_v0  ;;  %452 = vst.msk [vmem:[#allocation3 + $0xb9] sm:$0x1] %vm399_vm2, %v15963_v0  ;;  %770 = vmatpush1.bf16.msra.mxu0 %v11760_v39 }
  0x88   : > { %453 = vst.msk [vmem:[#allocation3 + $0xd1] sm:$0x1] %vm399_vm2, %v15963_v0  ;;  %454 = vst.msk [vmem:[#allocation3 + $0xe9] sm:$0x1] %vm399_vm2, %v15963_v0  ;;  %771 = vmatprep.subr.bf16.mxu0 %v12015_v1  ;;  %919 = vmatpush1.bf16.msra.mxu1 %v11765_v44  ;;  %p11935_p0 = pneg %p11934_p13 }
  0x89   : > { %455 = vst.msk [vmem:[#allocation3 + $0x101] sm:$0x1] %vm399_vm2, %v15963_v0  ;;  %456 = vst.msk [vmem:[#allocation3 + $0x119] sm:$0x1] %vm399_vm2, %v15963_v0  ;;  %920 = vmatprep.subr.bf16.mxu1 %v12015_v1 }
  0x8a   : > { %457 = vst.msk [vmem:[#allocation3 + $0x131] sm:$0x1] %vm399_vm2, %v15963_v0  ;;  %458 = vst.msk [vmem:[#allocation3 + $0x149] sm:$0x1] %vm399_vm2, %v15963_v0 }
  0x8b   : > { %459 = vst.msk [vmem:[#allocation3 + $0x161] sm:$0x1] %vm399_vm2, %v15963_v0  ;;  %460 = vst.msk [vmem:[#allocation3 + $0x179] sm:$0x1] %vm399_vm2, %v15963_v0  ;;  %772 = vmatpush1.bf16.msra.mxu0 %v11762_v46 }
  0x8c   : > { %461 = vst.msk [vmem:[#allocation3 + $0x191] sm:$0x1] %vm399_vm2, %v15963_v0  ;;  %462 = vst.msk [vmem:[#allocation3 + $0x1a9] sm:$0x1] %vm399_vm2, %v15963_v0  ;;  %781 = vmatprep.subr.bf16.mxu0 %v12015_v1  ;;  %921 = vmatpush1.bf16.msra.mxu1 %v11767_v47 }
  0x8d   : > { %473 = vst.msk [vmem:[#allocation2 + $0x21] sm:$0xff] %vm392_vm0, %v464_v3  ;;  %474 = vst.msk [vmem:[#allocation2 + $0x31] sm:$0xff] %vm392_vm0, %v465_v4  ;;  %930 = vmatprep.subr.bf16.mxu1 %v12015_v1 }
  0x8e   : > { %475 = vst.msk [vmem:[#allocation2 + $0x41] sm:$0xff] %vm392_vm0, %v466_v5  ;;  %476 = vst.msk [vmem:[#allocation2 + $0x51] sm:$0xff] %vm392_vm0, %v467_v6  ;;  %v11772_v5 = vld [vmem:[%s15950_s1 + $0xf8] sm:$0xff]  }
  0x8f   : > { %477 = vst.msk [vmem:[#allocation2 + $0x61] sm:$0xff] %vm392_vm0, %v468_v7  ;;  %478 = vst.msk [vmem:[#allocation2 + $0x71] sm:$0xff] %vm392_vm0, %v469_v8  ;;  %782 = vmatpush2.bf16.msra.mxu0 %v11764_v49  ;;  %v11778_v49 = vld [vmem:[%s15950_s1 + $0xd8] sm:$0xff]  }
  0x90   : > { %479 = vst.msk [vmem:[#allocation2 + $0x81] sm:$0xff] %vm392_vm0, %v470_v9  ;;  %783 = vmatprep.subr.bf16.mxu0 %v12015_v1  ;;  %931 = vmatpush2.bf16.msra.mxu1 %v11769_v51 }
  0x91   : > { %932 = vmatprep.subr.bf16.mxu1 %v12015_v1 }
  0x93   : > { %784 = vmatpush2.bf16.msra.mxu0 %v11766_v52 }
  0x94   : > { %v585_v14 = vld [vmem:[#allocation2 + $0x21] sm:$0xff]  ;;  %v586_v15 = vld [vmem:[#allocation2 + $0x31] sm:$0xff]  ;;  %785 = vmatprep.subr.bf16.mxu0 %v12015_v1  ;;  %933 = vmatpush2.bf16.msra.mxu1 %v11771_v53 }
  0x95   : > { %v11448_v16 = vpack.i.bf16 %v585_v14, %v584_v13  ;;  %v587_v17 = vld [vmem:[#allocation2 + $0x41] sm:$0xff]  ;;  %v588_v18 = vld [vmem:[#allocation2 + $0x51] sm:$0xff]  ;;  %v11478_v33 = vpack.i.bf16 %v586_v15, %v585_v14  ;;  %934 = vmatprep.subr.bf16.mxu1 %v12015_v1 }
  0x96   : > { %v589_v20 = vld [vmem:[#allocation2 + $0x61] sm:$0xff]  ;;  %v590_v21 = vld [vmem:[#allocation2 + $0x71] sm:$0xff]  ;;  %v11453_v23 = vpack.i.bf16 %v587_v17, %v586_v15  ;;  %v11488_v36 = vpack.i.bf16 %v588_v18, %v587_v17 }
  0x97   : > { %v591_v22 = vld [vmem:[#allocation2 + $0x81] sm:$0xff]  ;;  %11449 = vrot.lane.b32.xlu0 %v11448_v16, %s12016_s20  ;;  %v11458_v24 = vpack.i.bf16 %v589_v20, %v588_v18  ;;  %v11498_v40 = vpack.i.bf16 %v590_v21, %v589_v20  ;;  %786 = vmatpush2.bf16.msra.mxu0 %v11768_v54  ;;  %v594_v61 = vld [vmem:[#allocation2 + $0x32] sm:$0xff] }
  0x98   : > { %v11463_v27 = vpack.i.bf16 %v591_v22, %v590_v21  ;;  %v12440_v42 = vld [vmem:[#allocation2 + $0x22] sm:$0xff]  ;;  %v11503_v43 = vpack.i.bf16 %v987_v37, %v591_v22  ;;  %787 = vmatprep.subr.bf16.mxu0 %v12015_v1  ;;  %935 = vmatpush2.bf16.msra.mxu1 %v11773_v55  ;;  %v12505_v9 = vld [vmem:[#allocation2 + $0x30] sm:$0xff] }
  0x99   : > { %11459 = vrot.lane.b32.xlu1 %v11458_v24, %s12016_s20  ;;  %v641_v45 = vpack.c.bf16 %v12440_v42, %v592_v41  ;;  %936 = vmatprep.subr.bf16.mxu1 %v12015_v1  ;;  %v12494_v60 = vld [vmem:[#allocation2 + $0x20] sm:$0xff]  ;;  %v11774_v13 = vld [vmem:[%s15950_s1 + $0xf0] sm:$0xff]   ;;  %v12526_v28 = vpack.c.bf16 %v594_v61, %v12440_v42 }
  0x9a   : > { %v12496_v62 = vld [vmem:[#allocation2 + $0x42] sm:$0xff]  ;;  %v596_v21 = vld [vmem:[#allocation2 + $0x52] sm:$0xff] }
  0x9b   : > { %11454 = vrot.lane.b32.xlu0 %v11453_v23, %s12016_s20  ;;  %9423 = vmatprep.mubr.msk.bf16.mxu0 %vm392_vm0, %v641_v45  ;;  %v643_v6 = vpack.c.bf16 %v12496_v62, %v594_v61  ;;  %v12507_v10 = vld [vmem:[#allocation2 + $0x40] sm:$0xff]  ;;  %v598_v44 = vld [vmem:[#allocation2 + $0x72] sm:$0xff]  ;;  %v549_v52 = vpack.c.bf16 %v596_v21, %v12496_v62 }
  0x9c   : > { %788 = vmatpush2.bf16.msra.mxu0 %v11770_v56  ;;  %937 = vmatpush2.bf16.msra.mxu1 %v11775_v57  ;;  %v480_v18 = vld [vmem:[#allocation2] sm:$0xff]  ;;  %v12555_v54 = vld [vmem:[#allocation2 + $0x70] sm:$0xff] }
  0x9d   : > { %11464 = vrot.lane.b32.xlu1 %v11463_v27, %s12016_s20  ;;  %1153 = vmatprep.subr.bf16.mxu0 %v12015_v1  ;;  %v12518_v22 = vld [vmem:[#allocation2 + $0x62] sm:$0xff] }
  0x9e   : > { %2971 = vmatprep.subr.bf16.mxu1 %v12015_v1  ;;  %v11776_v27 = vld [vmem:[%s15950_s1 + $0xe8] sm:$0xff]   ;;  %v12532_v34 = vld [vmem:[#allocation2 + $0x60] sm:$0xff] }
  0x9f   : > { %11469 = vrot.lane.b32.xlu0 %v11468_v30, %s12016_s20  ;;  %v12528_v30 = vld [vmem:[#allocation2 + $0x50] sm:$0xff]  ;;  %v12549_v45 = vld [vmem:[#allocation2 + $0x82] sm:$0xff] }
  0xa0   : > { %v647_v55 = vpack.c.bf16 %v12549_v45, %v598_v44  ;;  %v12559_v56 = vld [vmem:[#allocation2 + $0x80] sm:$0xff] }
  0xa1   : > { %11474 = vrot.lane.b32.xlu1 %v11478_v33, %s12016_s20 }
  0xa3   : > { %11479 = vrot.lane.b32.xlu0 %v11478_v33, %s12016_s20  ;;  %v645_v33 = vpack.c.bf16 %v12518_v22, %v596_v21 }
  0xa5   : > { %11484 = vrot.lane.b32.xlu1 %v11488_v36, %s12016_s20 }
  0xa7   : > { %11489 = vrot.lane.b32.xlu0 %v11488_v36, %s12016_s20 }
  0xa9   : > { %11494 = vrot.lane.b32.xlu1 %v11498_v40, %s12016_s20 }
  0xab   : > { %11499 = vrot.lane.b32.xlu0 %v11498_v40, %s12016_s20 }
  0xad   : > { %11504 = vrot.lane.b32.xlu1 %v11503_v43, %s12016_s20 }
 0x109   : > { %v11450_v59 = vpop.permute.xlu0 %11449 }
 0x10a   : > { %v11452_v63 = vunpack.i.h.bf16 %v11450_v59  ;;  %v11451_v2 = vunpack.i.l.bf16 %v11450_v59 }
 0x10b   : > { %v11460_v16 = vpop.permute.xlu1 %11459 }
 0x10c   : > { %v632_v3 = vsel %vm392_vm0, %v576_v58, %v11451_v2  ;;  %v633_v4 = vsel %vm392_vm0, %v12494_v60, %v11452_v63  ;;  %v11461_v24 = vunpack.i.l.bf16 %v11460_v16  ;;  %v11462_v29 = vunpack.i.h.bf16 %v11460_v16 }
 0x10d   : > { %v11455_v7 = vpop.permute.xlu0 %11454  ;;  %v640_v8 = vpack.c.bf16 %v633_v4, %v632_v3  ;;  %v11780_v4 = vld [vmem:[%s15950_s1 + $0xc8] sm:$0xff]  }
 0x10e   : > { %v11457_v11 = vunpack.i.h.bf16 %v11455_v7  ;;  %v11456_v12 = vunpack.i.l.bf16 %v11455_v7  ;;  %v636_v37 = vsel %vm392_vm0, %v12528_v30, %v11461_v24  ;;  %v637_v41 = vsel %vm392_vm0, %v12532_v34, %v11462_v29 }
 0x10f   : > { %790 = vmatmul.mubr.bf16.vlgmr.msra.gmra.mxu0 %v640_v8  ;;  %v11465_v42 = vpop.permute.xlu1 %11464  ;;  %v644_v47 = vpack.c.bf16 %v637_v41, %v636_v37  ;;  %v551_v7 = vpack.c.bf16 %v598_v44, %v12518_v22  ;;  %v11781_v8 = vld [vmem:[%s15950_s1 + $0xc0] sm:$0xff]  }
 0x110   : > { %1154 = vmatpush1.bf16.msra.mxu0 %v11772_v5  ;;  %9424 = vmatprep.mubr.msk.bf16.mxu0 %vm392_vm0, %v643_v6  ;;  %v634_v14 = vsel %vm392_vm0, %v12505_v9, %v11456_v12  ;;  %v635_v15 = vsel %vm392_vm0, %v12507_v10, %v11457_v11  ;;  %v11466_v48 = vunpack.i.l.bf16 %v11465_v42  ;;  %v11467_v53 = vunpack.i.h.bf16 %v11465_v42  ;;  %v11785_v22 = vld [vmem:[%s15950_s1 + $0x100] sm:$0xff]  }
 0x111   : > { %v11470_v17 = vpop.permute.xlu0 %11469  ;;  %1155 = vmatprep.subr.bf16.mxu0 %v12015_v1  ;;  %v642_v23 = vpack.c.bf16 %v635_v15, %v634_v14  ;;  %v11782_v14 = vld [vmem:[%s15950_s1 + $0x118] sm:$0xff]   ;;  %v11783_v15 = vld [vmem:[%s15950_s1 + $0x110] sm:$0xff]  }
 0x112   : > { %v11472_v19 = vunpack.i.h.bf16 %v11470_v17  ;;  %v11471_v20 = vunpack.i.l.bf16 %v11470_v17  ;;  %v638_v57 = vsel %vm392_vm0, %v12555_v54, %v11466_v48  ;;  %v639_v62 = vsel %vm392_vm0, %v12559_v56, %v11467_v53  ;;  %v11784_v17 = vld [vmem:[%s15950_s1 + $0x108] sm:$0xff]  }
 0x113   : > { %v646_v3 = vpack.c.bf16 %v639_v62, %v638_v57  ;;  %v11475_v16 = vpop.permute.xlu1 %11474 }
 0x114   : > { %1156 = vmatpush1.bf16.msra.mxu0 %v11774_v13  ;;  %v536_v25 = vsel %vm392_vm0, %v480_v18, %v11471_v20  ;;  %v537_v26 = vsel %vm392_vm0, %v576_v58, %v11472_v19  ;;  %v11779_v58 = vld [vmem:[%s15950_s1 + $0xd0] sm:$0xff]   ;;  %v11477_v18 = vunpack.i.h.bf16 %v11475_v16  ;;  %v11476_v19 = vunpack.i.l.bf16 %v11475_v16 }
 0x115   : > { %1157 = vmatprep.subr.bf16.mxu0 %v12015_v1  ;;  %v544_v31 = vpack.c.bf16 %v537_v26, %v536_v25  ;;  %v11480_v32 = vpop.permute.xlu0 %11479 }
 0x116   : > { %v11482_v35 = vunpack.i.h.bf16 %v11480_v32  ;;  %v11481_v36 = vunpack.i.l.bf16 %v11480_v32  ;;  %v1028_v20 = vsel %vm392_vm0, %v12494_v60, %v11476_v19  ;;  %v1029_v21 = vsel %vm392_vm0, %v12505_v9, %v11477_v18 }
 0x117   : > { %939 = vmatmul.mubr.bf16.vlgmr.msra.gmra.mxu1 %v544_v31  ;;  %798 = vmatmul.mubr.bf16.gmra.mxu0 %v642_v23  ;;  %v11485_v23 = vpop.permute.xlu1 %11484  ;;  %v1036_v24 = vpack.c.bf16 %v1029_v21, %v1028_v20  ;;  %v1261_v19 = vlaneseq }
 0x118   : > { %1158 = vmatpush1.bf16.msra.mxu0 %v11776_v27  ;;  %9440 = vmatprep.mubr.msk.bf16.mxu1 %vm392_vm0, %v12526_v28  ;;  %v538_v39 = vsel %vm392_vm0, %v12494_v60, %v11481_v36  ;;  %v539_v40 = vsel %vm392_vm0, %v12505_v9, %v11482_v35  ;;  %v11487_v25 = vunpack.i.h.bf16 %v11485_v23  ;;  %v11486_v26 = vunpack.i.l.bf16 %v11485_v23  ;;  %v995_v36 = vld [vmem:[#allocation2 + $0x92] sm:$0xff] }
 0x119   : > { %1159 = vmatprep.subr.bf16.mxu0 %v12015_v1  ;;  %v11490_v43 = vpop.permute.xlu0 %11489  ;;  %9425 = vmatprep.mubr.msk.bf16.mxu0 %vm392_vm0, %v645_v33  ;;  %v546_v46 = vpack.c.bf16 %v539_v40, %v538_v39  ;;  %v979_v39 = vld [vmem:[#allocation2 + $0x90] sm:$0xff] }
 0x11a   : > { %v11492_v50 = vunpack.i.h.bf16 %v11490_v43  ;;  %v11491_v51 = vunpack.i.l.bf16 %v11490_v43  ;;  %v1030_v60 = vsel %vm392_vm0, %v12507_v10, %v11486_v26  ;;  %v1031_v9 = vsel %vm392_vm0, %v12528_v30, %v11487_v25 }
 0x11b   : > { %v11495_v27 = vpop.permute.xlu1 %11494  ;;  %v12018_v25 = vmov 1983009808  }
 0x11c   : > { %1160 = vmatpush1.bf16.msra.mxu0 %v11777_v38  ;;  %v540_v59 = vsel %vm392_vm0, %v12507_v10, %v11491_v51  ;;  %v541_v61 = vsel %vm392_vm0, %v12528_v30, %v11492_v50  ;;  %v11497_v29 = vunpack.i.h.bf16 %v11495_v27  ;;  %v11496_v31 = vunpack.i.l.bf16 %v11495_v27 }
 0x11d   : > { %1161 = vmatprep.subr.bf16.mxu0 %v12015_v1  ;;  %v11500_v63 = vpop.permute.xlu0 %11499  ;;  %v548_v2 = vpack.c.bf16 %v541_v61, %v540_v59  ;;  %v1043_v30 = vpack.c.bf16 %v995_v36, %v12549_v45  ;;  %v1908_v26 = vunpack.c.l.s4 %v12018_v25 }
 0x11e   : > { %v11502_v5 = vunpack.i.h.bf16 %v11500_v63  ;;  %v11501_v6 = vunpack.i.l.bf16 %v11500_v63  ;;  %v1032_v32 = vsel %vm392_vm0, %v12532_v34, %v11496_v31  ;;  %v1033_v33 = vsel %vm392_vm0, %v12555_v54, %v11497_v29 }
 0x11f   : > { %947 = vmatmul.mubr.bf16.gmra.mxu1 %v546_v46  ;;  %806 = vmatmul.mubr.bf16.gmra.mxu0 %v644_v47  ;;  %v11505_v35 = vpop.permute.xlu1 %11504  ;;  %v1040_v37 = vpack.c.bf16 %v1033_v33, %v1032_v32  ;;  %v1909_v31 = vunpack.c.0.s8 %v1908_v26 }
 0x120   : > { %1162 = vmatpush1.bf16.msra.mxu0 %v11778_v49  ;;  %9441 = vmatprep.mubr.msk.bf16.mxu1 %vm392_vm0, %v549_v52  ;;  %v542_v11 = vsel %vm392_vm0, %v12532_v34, %v11501_v6  ;;  %v543_v12 = vsel %vm392_vm0, %v12555_v54, %v11502_v5  ;;  %v11507_v10 = vunpack.i.h.bf16 %v11505_v35  ;;  %v11506_v38 = vunpack.i.l.bf16 %v11505_v35 }
 0x121   : > { %1163 = vmatprep.subr.bf16.mxu0 %v12015_v1  ;;  %9426 = vmatprep.mubr.msk.bf16.mxu0 %vm392_vm0, %v647_v55  ;;  %v550_v13 = vpack.c.bf16 %v543_v12, %v542_v11 }
 0x122   : > { %v1034_v40 = vsel %vm392_vm0, %v12559_v56, %v11506_v38  ;;  %v1035_v41 = vsel %vm392_vm0, %v979_v39, %v11507_v10 }
 0x123   : > { %v1042_v34 = vpack.c.bf16 %v1035_v41, %v1034_v40 }
 0x124   : > { %1164 = vmatpush1.bf16.msra.mxu0 %v11779_v58 }
 0x125   : > { %1165 = vmatprep.subr.bf16.mxu0 %v12015_v1 }
 0x127   : > { %955 = vmatmul.mubr.bf16.gmra.mxu1 %v548_v2  ;;  %814 = vmatmul.mubr.bf16.gmra.mxu0 %v646_v3 }
 0x128   : > { %1166 = vmatpush1.bf16.msra.mxu0 %v11780_v4  ;;  %9442 = vmatprep.mubr.msk.bf16.mxu1 %vm392_vm0, %v551_v7 }
 0x129   : > { %1167 = vmatprep.subr.bf16.mxu0 %v12015_v1  ;;  %9479 = vmatprep.mubr.msk.bf16.mxu0 %vm392_vm0, %v12526_v28  ;;  %v1038_v28 = vpack.c.bf16 %v1031_v9, %v1030_v60 }
 0x12c   : > { %1168 = vmatpush1.bf16.msra.mxu0 %v11781_v8 }
 0x12d   : > { %1177 = vmatprep.subr.bf16.mxu0 %v12015_v1 }
 0x12f   : > { %963 = vmatmul.mubr.bf16.gmra.mxu1 %v550_v13 }
 0x130   : > { %1178 = vmatpush2.bf16.msra.mxu0 %v11782_v14 }
 0x131   : > { %1179 = vmatprep.subr.bf16.mxu0 %v12015_v1 }
 0x134   : > { %1180 = vmatpush2.bf16.msra.mxu0 %v11783_v15 }
 0x135   : > { %1181 = vmatprep.subr.bf16.mxu0 %v12015_v1 }
 0x138   : > { %1182 = vmatpush2.bf16.msra.mxu0 %v11784_v17  ;;  %v12017_v17 = vmov 1966171168  }
 0x139   : > { %1183 = vmatprep.subr.bf16.mxu0 %v12015_v1  ;;  %v1259_v18 = vunpack.c.l.s4 %v12017_v17 }
 0x13b   : > { %v1260_v21 = vunpack.c.0.s8 %v1259_v18 }
 0x13c   : > { %1184 = vmatpush2.bf16.msra.mxu0 %v11785_v22  ;;  %v1262_v22 = vshrl.u32 %v1261_v19, 7 }
 0x13d   : > { %3252 = vmatprep.subr.bf16.mxu0 %v12015_v1 }
 0x13e   : > { %v12634_v29 = vsub.s32 %v1260_v21, %v1262_v22  ;;  %v12638_v39 = vsub.s32 0, %v1262_v22  ;;  %v12640_v40 = vsub.s32 %v1909_v31, %v1262_v22 }
 0x13f   : > { %1186 = vmatmul.mubr.bf16.vlgmr.msra.gmra.mxu0 %v1036_v24  ;;  %v12631_v24 = vld [vmem:[#allocation7] ss:$0 sm:$0xff] }
 0x140   : > { %9480 = vmatprep.mubr.msk.bf16.mxu0 %vm392_vm0, %v549_v52 }
 0x147   : > { %1194 = vmatmul.mubr.bf16.gmra.mxu0 %v1038_v28 }
 0x148   : > { %9481 = vmatprep.mubr.msk.bf16.mxu0 %vm392_vm0, %v551_v7 }
 0x14f   : > { %1202 = vmatmul.mubr.bf16.gmra.mxu0 %v1040_v37 }
 0x150   : > { %9482 = vmatprep.mubr.msk.bf16.mxu0 %vm392_vm0, %v1043_v30 }
 0x157   : > { %1210 = vmatmul.mubr.bf16.gmra.mxu0 %v1042_v34 }
 0x1cf   : > { %v791_v42 = vpop.f32.mrf.mxu0 }
 0x1d1   : > { %v793_v43 = vpop.f32.mrf.mxu0 }
 0x1d3   : > { %v794_v44 = vpop.f32.mrf.mxu0 }
 0x1d5   : > { %v796_v46 = vpop.f32.mrf.mxu0 }
 0x1d6   : > { %v11786_v46 = vld [vmem:[%s15952_s3 + $0x98] sm:$0xff]  }
 0x1d7   : > { %v940_v47 = vpop.f32.mrf.mxu1  ;;  %v799_v48 = vpop.f32.mrf.mxu0  ;;  %2972 = vmatpush1.bf16.msra.mxu1 %v11786_v46 }
 0x1d8   : > { %v941_v20 = vadd.f32 %v940_v47, %v791_v42  ;;  %2973 = vmatprep.subr.bf16.mxu1 %v12015_v1 }
 0x1d9   : > { %v942_v49 = vpop.f32.mrf.mxu1  ;;  %v801_v50 = vpop.f32.mrf.mxu0 }
 0x1db   : > { %v943_v45 = vpop.f32.mrf.mxu1  ;;  %v802_v51 = vpop.f32.mrf.mxu0 }
 0x1dc   : > { %v944_v27 = vadd.f32 %v943_v45, %v794_v44 }
 0x1dd   : > { %v945_v52 = vpop.f32.mrf.mxu1  ;;  %v804_v53 = vpop.f32.mrf.mxu0 }
 0x1df   : > { %v948_v54 = vpop.f32.mrf.mxu1  ;;  %v807_v55 = vpop.f32.mrf.mxu0 }
 0x1e0   : > { %v949_v30 = vadd.f32 %v948_v54, %v799_v48 }
 0x1e1   : > { %v950_v57 = vpop.f32.mrf.mxu1  ;;  %v809_v56 = vpop.f32.mrf.mxu0 }
 0x1e3   : > { %v951_v58 = vpop.f32.mrf.mxu1  ;;  %v810_v59 = vpop.f32.mrf.mxu0 }
 0x1e4   : > { %v12647_v47 = vadd.f32 %v951_v58, %v802_v51 }
 0x1e5   : > { %v953_v61 = vpop.f32.mrf.mxu1  ;;  %v812_v62 = vpop.f32.mrf.mxu0 }
 0x1e7   : > { %v956_v63 = vpop.f32.mrf.mxu1  ;;  %v815_v2 = vpop.f32.mrf.mxu0 }
 0x1e8   : > { %v12649_v49 = vadd.f32 %v956_v63, %v807_v55 }
 0x1e9   : > { %v958_v3 = vpop.f32.mrf.mxu1  ;;  %v817_v4 = vpop.f32.mrf.mxu0 }
 0x1ea   : > { %v11787_v3 = vld [vmem:[%s15952_s3 + $0x90] sm:$0xff]  }
 0x1eb   : > { %v959_v5 = vpop.f32.mrf.mxu1  ;;  %v818_v6 = vpop.f32.mrf.mxu0  ;;  %2974 = vmatpush1.bf16.msra.mxu1 %v11787_v3 }
 0x1ec   : > { %v12651_v48 = vadd.f32 %v959_v5, %v810_v59  ;;  %2975 = vmatprep.subr.bf16.mxu1 %v12015_v1 }
 0x1ed   : > { %v961_v7 = vpop.f32.mrf.mxu1  ;;  %v820_v8 = vpop.f32.mrf.mxu0 }
 0x1ef   : > { %v964_v11 = vpop.f32.mrf.mxu1 }
 0x1f0   : > { %v12627_v12 = vadd.f32 %v964_v11, %v815_v2 }
 0x1f1   : > { %v966_v13 = vpop.f32.mrf.mxu1 }
 0x1f3   : > { %v967_v14 = vpop.f32.mrf.mxu1 }
 0x1f4   : > { %v12629_v15 = vadd.f32 %v967_v14, %v818_v6 }
 0x1f5   : > { %v969_v16 = vpop.f32.mrf.mxu1 }
 0x1ff   : > { %v1187_v23 = vpop.f32.mrf.mxu0 }
 0x200   : > { %v1218_v60 = vadd.f32 %v1187_v23, %v941_v20 }
 0x201   : > { %v1189_v9 = vpop.f32.mrf.mxu0 }
 0x202   : > { %v1233_v28 = vadd.f32 %v12631_v24, %v1218_v60  ;;  %v11788_v60 = vld [vmem:[%s15952_s3 + $0x88] sm:$0xff]  }
 0x203   : > { %v1190_v32 = vpop.f32.mrf.mxu0  ;;  %2976 = vmatpush1.bf16.msra.mxu1 %v11788_v60 }
 0x204   : > { %v1241_v33 = vmax.f32 %v1233_v28, 0.0  ;;  %v1219_v35 = vadd.f32 %v1190_v32, %v944_v27  ;;  %2977 = vmatprep.subr.bf16.mxu1 %v12015_v1 }
 0x205   : > { %v1192_v36 = vpop.f32.mrf.mxu0 }
 0x206   : > { %v1257_v37 = vcombine.high %v1241_v33, %v1241_v33  ;;  %v1264_v10 = vrot.slane %v1241_v33, %v12634_v29  ;;  %v1234_v38 = vadd.f32 %v12631_v24, %v1219_v35 }
 0x207   : > { %v1195_v41 = vpop.f32.mrf.mxu0 }
 0x208   : > { %v1271_v34 = vrot.slane %v1257_v37, %v12634_v29  ;;  %v1272_v42 = vcombine.high %v1264_v10, %v1264_v10  ;;  %v1280_v43 = vrot.slane %v1264_v10, %v12634_v29  ;;  %v1242_v44 = vmax.f32 %v1234_v38, 0.0 }
 0x209   : > { %v1220_v50 = vadd.f32 %v1195_v41, %v949_v30  ;;  %v1197_v45 = vpop.f32.mrf.mxu0 }
 0x20a   : > { %v1273_v52 = vcombine.high %v1271_v34, %v1271_v34  ;;  %v1287_v53 = vrot.slane %v1271_v34, %v12634_v29  ;;  %v1294_v54 = vrot.slane %v1272_v42, %v12634_v29  ;;  %v1302_v57 = vcombine.high %v1280_v43, %v1280_v43 }
 0x20b   : > { %v1652_v56 = vrot.slane %v1280_v43, %v12638_v39  ;;  %v1306_v61 = vcombine.high %v1242_v44, %v1242_v44  ;;  %v1313_v62 = vrot.slane %v1242_v44, %v12634_v29  ;;  %v1235_v51 = vadd.f32 %v12631_v24, %v1220_v50  ;;  %v1198_v55 = vpop.f32.mrf.mxu0  ;;  %v11789_v50 = vld [vmem:[%s15952_s3 + $0x80] sm:$0xff]  }
 0x20c   : > { %v1301_v58 = vrot.slane %v1273_v52, %v12634_v29  ;;  %v1303_v59 = vcombine.high %v1287_v53, %v1287_v53  ;;  %v1304_v63 = vcombine.high %v1294_v54, %v1294_v54  ;;  %v1656_v2 = vrot.slane %v1294_v54, %v12638_v39  ;;  %2978 = vmatpush1.bf16.msra.mxu1 %v11789_v50 }
 0x20d   : > { %v1660_v4 = vrot.slane %v1302_v57, %v12638_v39  ;;  %v1668_v5 = vrot.slane %v1287_v53, %v12638_v39  ;;  %v1320_v6 = vrot.slane %v1306_v61, %v12634_v29  ;;  %v1321_v7 = vcombine.high %v1313_v62, %v1313_v62  ;;  %v1200_v8 = vpop.f32.mrf.mxu0  ;;  %2979 = vmatprep.subr.bf16.mxu1 %v12015_v1 }
 0x20e   : > { %v1305_v11 = vcombine.high %v1301_v58, %v1301_v58  ;;  %v1664_v13 = vrot.slane %v1304_v63, %v12638_v39  ;;  %v1672_v14 = vrot.slane %v1301_v58, %v12638_v39  ;;  %v1676_v16 = vrot.slane %v1303_v59, %v12638_v39 }
 0x20f   : > { %v1905_v17 = vcombine.low %v1652_v56, %v1656_v2  ;;  %v1322_v18 = vcombine.high %v1320_v6, %v1320_v6  ;;  %v1329_v19 = vrot.slane %v1313_v62, %v12634_v29  ;;  %v1336_v20 = vrot.slane %v1320_v6, %v12634_v29  ;;  %v1203_v21 = vpop.f32.mrf.mxu0  ;;  %v11790_v6 = vld [vmem:[%s15952_s3 + $0x78] sm:$0xff]  }
 0x210   : > { %v1680_v22 = vrot.slane %v1305_v11, %v12638_v39  ;;  %v1906_v23 = vcombine.low %v1660_v4, %v1664_v13  ;;  %v1922_v25 = vcombine.low %v1668_v5, %v1672_v14  ;;  %v1343_v26 = vrot.slane %v1321_v7, %v12634_v29  ;;  %2980 = vmatpush1.bf16.msra.mxu1 %v11790_v6 }
 0x211   : > { %v1913_v9 = vrot.slane %v1905_v17, %v12640_v40  ;;  %v1350_v27 = vrot.slane %v1322_v18, %v12634_v29  ;;  %v1351_v28 = vcombine.high %v1329_v19, %v1329_v19  ;;  %v1352_v31 = vcombine.high %v1336_v20, %v1336_v20  ;;  %v1205_v32 = vpop.f32.mrf.mxu0  ;;  %2981 = vmatprep.subr.bf16.mxu1 %v12015_v1 }
 0x212   : > { %v1920_v33 = vrot.slane %v1906_v23, %v12640_v40  ;;  %v1923_v35 = vcombine.low %v1676_v16, %v1680_v22  ;;  %v1930_v36 = vrot.slane %v1922_v25, %v12640_v40  ;;  %v1353_v37 = vcombine.high %v1343_v26, %v1343_v26 }
 0x213   : > { %v1354_v10 = vcombine.high %v1350_v27, %v1350_v27  ;;  %v1684_v38 = vrot.slane %v1329_v19, %v12638_v39  ;;  %v1688_v30 = vrot.slane %v1343_v26, %v12638_v39  ;;  %v1692_v41 = vrot.slane %v1351_v28, %v12638_v39  ;;  %v1206_v34 = vpop.f32.mrf.mxu0 }
 0x214   : > { %v1921_v42 = vcombine.low %v1913_v9, %v1920_v33  ;;  %v1937_v43 = vrot.slane %v1923_v35, %v12640_v40  ;;  %v1696_v44 = vrot.slane %v1353_v37, %v12638_v39  ;;  %v1700_v46 = vrot.slane %v1336_v20, %v12638_v39  ;;  %v11791_v9 = vld [vmem:[%s15952_s3 + $0x70] sm:$0xff]  }
 0x215   : > { %v1704_v45 = vrot.slane %v1350_v27, %v12638_v39  ;;  %v1708_v52 = vrot.slane %v1352_v31, %v12638_v39  ;;  %v1712_v53 = vrot.slane %v1354_v10, %v12638_v39  ;;  %v1939_v54 = vcombine.low %v1684_v38, %v1688_v30  ;;  %v1208_v57 = vpop.f32.mrf.mxu0  ;;  %2982 = vmatpush1.bf16.msra.mxu1 %v11791_v9  ;;  %v11792_v38 = vld [vmem:[%s15952_s3 + $0x68] sm:$0xff]   ;;  %v11795_v30 = vld [vmem:[%s15952_s3 + $0x38] sm:$0xff]  }
 0x216   : > { %v1938_v56 = vcombine.low %v1930_v36, %v1937_v43  ;;  %2194 = vst.msk [vmem:[#allocation3 + $0x19] sm:$0xff] %vm392_vm0, %v1921_v42  ;;  %2196 = vst.msk [vmem:[#allocation3 + $0x31] sm:$0xff] %vm392_vm0, %v1921_v42  ;;  %v1940_v61 = vcombine.low %v1692_v41, %v1696_v44  ;;  %v1243_v62 = vmax.f32 %v1235_v51, 0.0  ;;  %v1221_v58 = vadd.f32 %v1198_v55, %v12647_v47 }
 0x217   : > { %v1947_v59 = vrot.slane %v1939_v54, %v12640_v40  ;;  %v1956_v63 = vcombine.low %v1700_v46, %v1704_v45  ;;  %v1957_v2 = vcombine.low %v1708_v52, %v1712_v53  ;;  %v1222_v3 = vadd.f32 %v1203_v21, %v12649_v49  ;;  %v12700_v4 = vpop.f32.mrf.mxu0  ;;  %2983 = vmatprep.subr.bf16.mxu1 %v12015_v1  ;;  %v11797_v52 = vld [vmem:[%s15952_s3 + $0x30] sm:$0xff]  }
 0x218   : > { %2195 = vst.msk [vmem:[#allocation3 + $0x21] sm:$0xff] %vm392_vm0, %v1938_v56  ;;  %2197 = vst.msk [vmem:[#allocation3 + $0x39] sm:$0xff] %vm392_vm0, %v1938_v56  ;;  %v1954_v5 = vrot.slane %v1940_v61, %v12640_v40  ;;  %v1355_v51 = vcombine.high %v1243_v62, %v1243_v62  ;;  %v1362_v47 = vrot.slane %v1243_v62, %v12634_v29  ;;  %3253 = vmatpush1.bf16.msra.mxu0 %v11795_v30 }
 0x219   : > { %v1236_v55 = vadd.f32 %v12631_v24, %v1221_v58  ;;  %v1964_v49 = vrot.slane %v1956_v63, %v12640_v40  ;;  %v1971_v7 = vrot.slane %v1957_v2, %v12640_v40  ;;  %v1237_v8 = vadd.f32 %v12631_v24, %v1222_v3  ;;  %v1213_v13 = vpop.f32.mrf.mxu0  ;;  %3254 = vmatprep.subr.bf16.mxu0 %v12015_v1  ;;  %v11793_v63 = vld [vmem:[%s15952_s3 + $0x60] sm:$0xff]  }
 0x21a   : > { %v1223_v11 = vadd.f32 %v1206_v34, %v12651_v48  ;;  %v1955_v14 = vcombine.low %v1947_v59, %v1954_v5  ;;  %v1369_v16 = vrot.slane %v1355_v51, %v12634_v29  ;;  %v1370_v17 = vcombine.high %v1362_v47, %v1362_v47  ;;  %2984 = vmatpush1.bf16.msra.mxu1 %v11792_v38 }
 0x21b   : > { %v1378_v18 = vrot.slane %v1362_v47, %v12634_v29  ;;  %v1972_v19 = vcombine.low %v1964_v49, %v1971_v7  ;;  %v1244_v20 = vmax.f32 %v1236_v55, 0.0  ;;  %v12717_v21 = vmax.f32 %v1237_v8, 0.0  ;;  %v12722_v23 = vpop.f32.mrf.mxu0  ;;  %2985 = vmatprep.subr.bf16.mxu1 %v12015_v1  ;;  %v11799_v7 = vld [vmem:[%s15952_s3 + $0x28] sm:$0xff]  }
 0x21c   : > { %v12720_v22 = vadd.f32 %v12631_v24, %v1223_v11  ;;  %2198 = vst.msk [vmem:[#allocation3 + $0x49] sm:$0xff] %vm392_vm0, %v1955_v14  ;;  %2200 = vst.msk [vmem:[#allocation3 + $0x61] sm:$0xff] %vm392_vm0, %v1955_v14  ;;  %v1371_v48 = vcombine.high %v1369_v16, %v1369_v16  ;;  %v1385_v25 = vrot.slane %v1369_v16, %v12634_v29  ;;  %3255 = vmatpush1.bf16.msra.mxu0 %v11797_v52 }
 0x21d   : > { %v1392_v26 = vrot.slane %v1370_v17, %v12634_v29  ;;  %v1400_v60 = vcombine.high %v1378_v18, %v1378_v18  ;;  %2199 = vst.msk [vmem:[#allocation3 + $0x51] sm:$0xff] %vm392_vm0, %v1972_v19  ;;  %2201 = vst.msk [vmem:[#allocation3 + $0x69] sm:$0xff] %vm392_vm0, %v1972_v19  ;;  %v1716_v27 = vrot.slane %v1378_v18, %v12638_v39  ;;  %v1216_v33 = vpop.f32.mrf.mxu0  ;;  %3256 = vmatprep.subr.bf16.mxu0 %v12015_v1 }
 0x21e   : > { %v1404_v28 = vcombine.high %v1244_v20, %v1244_v20  ;;  %v1411_v31 = vrot.slane %v1244_v20, %v12634_v29  ;;  %v1453_v32 = vcombine.high %v12717_v21, %v12717_v21  ;;  %v1399_v35 = vrot.slane %v1371_v48, %v12634_v29  ;;  %2986 = vmatpush1.bf16.msra.mxu1 %v11793_v63  ;;  %v11794_v20 = vld [vmem:[%s15952_s3 + $0xb8] sm:$0xff]  }
 0x21f   : > { %v1401_v36 = vcombine.high %v1385_v25, %v1385_v25  ;;  %v1402_v37 = vcombine.high %v1392_v26, %v1392_v26  ;;  %v1720_v10 = vrot.slane %v1392_v26, %v12638_v39  ;;  %v1724_v41 = vrot.slane %v1400_v60, %v12638_v39  ;;  %2995 = vmatprep.subr.bf16.mxu1 %v12015_v1 }
 0x220   : > { %v1732_v34 = vrot.slane %v1385_v25, %v12638_v39  ;;  %v1418_v42 = vrot.slane %v1404_v28, %v12634_v29  ;;  %v1419_v43 = vcombine.high %v1411_v31, %v1411_v31  ;;  %v1403_v44 = vcombine.high %v1399_v35, %v1399_v35  ;;  %3257 = vmatpush1.bf16.msra.mxu0 %v11799_v7 }
 0x221   : > { %v1728_v46 = vrot.slane %v1402_v37, %v12638_v39  ;;  %v1736_v50 = vrot.slane %v1399_v35, %v12638_v39  ;;  %v1740_v45 = vrot.slane %v1401_v36, %v12638_v39  ;;  %v1973_v53 = vcombine.low %v1716_v27, %v1720_v10  ;;  %3258 = vmatprep.subr.bf16.mxu0 %v12015_v1 }
 0x222   : > { %v1420_v54 = vcombine.high %v1418_v42, %v1418_v42  ;;  %v1427_v57 = vrot.slane %v1411_v31, %v12634_v29  ;;  %v1434_v56 = vrot.slane %v1418_v42, %v12634_v29  ;;  %v1744_v61 = vrot.slane %v1403_v44, %v12638_v39  ;;  %2996 = vmatpush2.bf16.msra.mxu1 %v11794_v20 }
 0x223   : > { %v1974_v62 = vcombine.low %v1724_v41, %v1728_v46  ;;  %v1990_v58 = vcombine.low %v1732_v34, %v1736_v50  ;;  %v1441_v59 = vrot.slane %v1419_v43, %v12634_v29  ;;  %v1981_v2 = vrot.slane %v1973_v53, %v12640_v40  ;;  %2997 = vmatprep.subr.bf16.mxu1 %v12015_v1 }
 0x224   : > { %v1448_v3 = vrot.slane %v1420_v54, %v12634_v29  ;;  %v1449_v5 = vcombine.high %v1427_v57, %v1427_v57  ;;  %v1450_v51 = vcombine.high %v1434_v56, %v1434_v56  ;;  %v1991_v55 = vcombine.low %v1740_v45, %v1744_v61 }
 0x225   : > { %v1988_v47 = vrot.slane %v1974_v62, %v12640_v40  ;;  %v1998_v6 = vrot.slane %v1990_v58, %v12640_v40  ;;  %v1451_v49 = vcombine.high %v1441_v59, %v1441_v59  ;;  %v1748_v11 = vrot.slane %v1427_v57, %v12638_v39  ;;  %v11798_v58 = vld [vmem:[%s15952_s3 + $0xa8] sm:$0xff]  }
 0x226   : > { %v1452_v8 = vcombine.high %v1448_v3, %v1448_v3  ;;  %v1752_v13 = vrot.slane %v1441_v59, %v12638_v39  ;;  %v1756_v14 = vrot.slane %v1449_v5, %v12638_v39  ;;  %v2005_v17 = vrot.slane %v1991_v55, %v12640_v40 }
 0x227   : > { %v1989_v16 = vcombine.low %v1981_v2, %v1988_v47  ;;  %v1760_v18 = vrot.slane %v1451_v49, %v12638_v39  ;;  %v1764_v19 = vrot.slane %v1434_v56, %v12638_v39  ;;  %v1768_v48 = vrot.slane %v1448_v3, %v12638_v39 }
 0x228   : > { %v1772_v25 = vrot.slane %v1450_v51, %v12638_v39  ;;  %v1776_v26 = vrot.slane %v1452_v8, %v12638_v39  ;;  %v2007_v60 = vcombine.low %v1748_v11, %v1752_v13  ;;  %v2006_v9 = vcombine.low %v1998_v6, %v2005_v17  ;;  %v11800_v17 = vld [vmem:[%s15952_s3 + $0xa0] sm:$0xff]  }
 0x229   : > { %2202 = vst.msk [vmem:[#allocation3 + $0x79] sm:$0xff] %vm392_vm0, %v1989_v16  ;;  %2204 = vst.msk [vmem:[#allocation3 + $0x91] sm:$0xff] %vm392_vm0, %v1989_v16  ;;  %v2008_v27 = vcombine.low %v1756_v14, %v1760_v18  ;;  %v1460_v28 = vrot.slane %v12717_v21, %v12634_v29  ;;  %v1467_v31 = vrot.slane %v1453_v32, %v12634_v29  ;;  %v1246_v37 = vmax.f32 %v12720_v22, 0.0  ;;  %v11796_v32 = vld [vmem:[%s15952_s3 + $0xb0] sm:$0xff]  }
 0x22a   : > { %v2015_v33 = vrot.slane %v2007_v60, %v12640_v40  ;;  %v2024_v35 = vcombine.low %v1764_v19, %v1768_v48  ;;  %v2025_v36 = vcombine.low %v1772_v25, %v1776_v26  ;;  %2203 = vst.msk [vmem:[#allocation3 + $0x81] sm:$0xff] %vm392_vm0, %v2006_v9  ;;  %2205 = vst.msk [vmem:[#allocation3 + $0x99] sm:$0xff] %vm392_vm0, %v2006_v9  ;;  %2998 = vmatpush2.bf16.msra.mxu1 %v11796_v32 }
 0x22b   : > { %v2022_v10 = vrot.slane %v2008_v27, %v12640_v40  ;;  %v1468_v38 = vcombine.high %v1460_v28, %v1460_v28  ;;  %v1469_v30 = vcombine.high %v1467_v31, %v1467_v31  ;;  %v1476_v21 = vrot.slane %v1460_v28, %v12634_v29  ;;  %2999 = vmatprep.subr.bf16.mxu1 %v12015_v1 }
 0x22c   : > { %v2032_v41 = vrot.slane %v2024_v35, %v12640_v40  ;;  %v2039_v22 = vrot.slane %v2025_v36, %v12640_v40  ;;  %v1483_v34 = vrot.slane %v1467_v31, %v12634_v29  ;;  %v1502_v42 = vcombine.high %v1246_v37, %v1246_v37  ;;  %v11802_v35 = vld [vmem:[%s15952_s3 + $0x18] sm:$0xff]  }
 0x22d   : > { %v2023_v43 = vcombine.low %v2015_v33, %v2022_v10  ;;  %v1490_v44 = vrot.slane %v1468_v38, %v12634_v29  ;;  %v1497_v46 = vrot.slane %v1469_v30, %v12634_v29  ;;  %v1498_v50 = vcombine.high %v1476_v21, %v1476_v21  ;;  %v2573_v33 = vld [vmem:[#allocation3 + $0x39] sm:$0xff] }
 0x22e   : > { %v2040_v45 = vcombine.low %v2032_v41, %v2039_v22  ;;  %v1499_v52 = vcombine.high %v1483_v34, %v1483_v34  ;;  %v1780_v53 = vrot.slane %v1476_v21, %v12638_v39  ;;  %v1796_v54 = vrot.slane %v1483_v34, %v12638_v39  ;;  %3000 = vmatpush2.bf16.msra.mxu1 %v11798_v58  ;;  %v2602_v30 = vld [vmem:[#allocation3 + $0x1a] sm:$0xff]  ;;  %v2603_v21 = vld [vmem:[#allocation3 + $0x22] sm:$0xff] }
 0x22f   : > { %2206 = vst.msk [vmem:[#allocation3 + $0xa9] sm:$0xff] %vm392_vm0, %v2023_v43  ;;  %2208 = vst.msk [vmem:[#allocation3 + $0xc1] sm:$0xff] %vm392_vm0, %v2023_v43  ;;  %v1500_v57 = vcombine.high %v1490_v44, %v1490_v44  ;;  %v1501_v56 = vcombine.high %v1497_v46, %v1497_v46  ;;  %v1784_v61 = vrot.slane %v1490_v44, %v12638_v39  ;;  %3001 = vmatprep.subr.bf16.mxu1 %v12015_v1  ;;  %v2571_v43 = vld [vmem:[#allocation3 + $0x21] sm:$0xff] }
 0x230   : > { %v1788_v62 = vrot.slane %v1498_v50, %v12638_v39  ;;  %2207 = vst.msk [vmem:[#allocation3 + $0xb1] sm:$0xff] %vm392_vm0, %v2040_v45  ;;  %2209 = vst.msk [vmem:[#allocation3 + $0xc9] sm:$0xff] %vm392_vm0, %v2040_v45  ;;  %v1800_v59 = vrot.slane %v1497_v46, %v12638_v39  ;;  %v1804_v63 = vrot.slane %v1499_v52, %v12638_v39  ;;  %v2577_v52 = vld [vmem:[#allocation3 + $0x69] sm:$0xff] }
 0x231   : > { %v1509_v2 = vrot.slane %v1246_v37, %v12634_v29  ;;  %v1516_v3 = vrot.slane %v1502_v42, %v12634_v29  ;;  %v1792_v5 = vrot.slane %v1500_v57, %v12638_v39  ;;  %v1808_v51 = vrot.slane %v1501_v56, %v12638_v39  ;;  %v2572_v42 = vld [vmem:[#allocation3 + $0x31] sm:$0xff] }
 0x232   : > { %v2041_v47 = vcombine.low %v1780_v53, %v1784_v61  ;;  %v1224_v55 = vadd.f32 %v12700_v4, %v12627_v12  ;;  %v2058_v6 = vcombine.low %v1796_v54, %v1800_v59  ;;  %v11801_v12 = vld [vmem:[%s15952_s3 + $0x20] sm:$0xff]   ;;  %3002 = vmatpush2.bf16.msra.mxu1 %v11800_v17  ;;  %v1225_v50 = vadd.f32 %v12722_v23, %v12629_v15  ;;  %v11803_v53 = vld [vmem:[%s15952_s3 + $0x10] sm:$0xff]  }
 0x233   : > { %v1517_v49 = vcombine.high %v1509_v2, %v1509_v2  ;;  %v1518_v7 = vcombine.high %v1516_v3, %v1516_v3  ;;  %v1525_v8 = vrot.slane %v1509_v2, %v12634_v29  ;;  %v2042_v11 = vcombine.low %v1788_v62, %v1792_v5  ;;  %3259 = vmatpush1.bf16.msra.mxu0 %v11801_v12  ;;  %v2570_v61 = vld [vmem:[#allocation3 + $0x19] sm:$0xff]  ;;  %v2575_v62 = vld [vmem:[#allocation3 + $0x51] sm:$0xff] }
 0x234   : > { %v2049_v13 = vrot.slane %v2041_v47, %v12640_v40  ;;  %v2059_v14 = vcombine.low %v1804_v63, %v1808_v51  ;;  %v1532_v16 = vrot.slane %v1516_v3, %v12634_v29  ;;  %v2066_v4 = vrot.slane %v2058_v6, %v12640_v40  ;;  %3260 = vmatprep.subr.bf16.mxu0 %v12015_v1  ;;  %v2576_v63 = vld [vmem:[#allocation3 + $0x61] sm:$0xff]  ;;  %v2581_v2 = vld [vmem:[#allocation3 + $0x99] sm:$0xff] }
 0x235   : > { %v1539_v18 = vrot.slane %v1517_v49, %v12634_v29  ;;  %v1546_v19 = vrot.slane %v1518_v7, %v12634_v29  ;;  %v1547_v20 = vcombine.high %v1525_v8, %v1525_v8  ;;  %v2056_v48 = vrot.slane %v2042_v11, %v12640_v40  ;;  %3847 = vmatprep.subr.bf16.mxu1 %v12015_v1  ;;  %v2579_v11 = vld [vmem:[#allocation3 + $0x81] sm:$0xff] }
 0x236   : > { %v2073_v25 = vrot.slane %v2059_v14, %v12640_v40  ;;  %v1548_v26 = vcombine.high %v1532_v16, %v1532_v16  ;;  %v1812_v60 = vrot.slane %v1525_v8, %v12638_v39  ;;  %v1828_v10 = vrot.slane %v1532_v16, %v12638_v39 }
 0x237   : > { %v1549_v9 = vcombine.high %v1539_v18, %v1539_v18  ;;  %v1550_v27 = vcombine.high %v1546_v19, %v1546_v19  ;;  %v1816_v28 = vrot.slane %v1539_v18, %v12638_v39  ;;  %v1820_v31 = vrot.slane %v1547_v20, %v12638_v39  ;;  %3261 = vmatpush1.bf16.msra.mxu0 %v11802_v35  ;;  %v2583_v14 = vld [vmem:[#allocation3 + $0xb1] sm:$0xff] }
 0x238   : > { %v2057_v36 = vcombine.low %v2049_v13, %v2056_v48  ;;  %v2074_v37 = vcombine.low %v2066_v4, %v2073_v25  ;;  %v1832_v38 = vrot.slane %v1546_v19, %v12638_v39  ;;  %v1836_v41 = vrot.slane %v1548_v26, %v12638_v39  ;;  %3262 = vmatprep.subr.bf16.mxu0 %v12015_v1  ;;  %v2585_v13 = vld [vmem:[#allocation3 + $0xc9] sm:$0xff]  ;;  %v2578_v25 = vld [vmem:[#allocation3 + $0x79] sm:$0xff]  ;;  %v2584_v26 = vld [vmem:[#allocation3 + $0xc1] sm:$0xff] }
 0x239   : > { %v1824_v32 = vrot.slane %v1549_v9, %v12638_v39  ;;  %v1840_v22 = vrot.slane %v1550_v27, %v12638_v39  ;;  %v2075_v34 = vcombine.low %v1812_v60, %v1816_v28  ;;  %v1239_v46 = vadd.f32 %v12631_v24, %v1224_v55  ;;  %v2574_v55 = vld [vmem:[#allocation3 + $0x49] sm:$0xff] }
 0x23a   : > { %2210 = vst.msk [vmem:[#allocation3 + $0xd9] sm:$0xff] %vm392_vm0, %v2057_v36  ;;  %2211 = vst.msk [vmem:[#allocation3 + $0xe1] sm:$0xff] %vm392_vm0, %v2074_v37  ;;  %v2092_v44 = vcombine.low %v1828_v10, %v1832_v38  ;;  %v12865_v45 = vpack.i.bf16 %v2573_v33, %v2572_v42  ;;  %v12870_v56 = vpack.c.bf16 %v2603_v21, %v2602_v30  ;;  %v11804_v4 = vld [vmem:[%s15952_s3 + $0x8] sm:$0xff]  }
 0x23b   : > { %2212 = vst.msk [vmem:[#allocation3 + $0xf1] sm:$0xff] %vm392_vm0, %v2057_v36  ;;  %2213 = vst.msk [vmem:[#allocation3 + $0xf9] sm:$0xff] %vm392_vm0, %v2074_v37  ;;  %v2076_v54 = vcombine.low %v1820_v31, %v1824_v32  ;;  %v2093_v57 = vcombine.low %v1836_v41, %v1840_v22  ;;  %v2083_v58 = vrot.slane %v2075_v34, %v12640_v40  ;;  %v1247_v59 = vmax.f32 %v1239_v46, 0.0  ;;  %v2582_v60 = vld [vmem:[#allocation3 + $0xa9] sm:$0xff]  ;;  %v11805_v32 = vld [vmem:[%s15952_s3] sm:$0xff]  }
 0x23c   : > { %v1240_v15 = vadd.f32 %v12631_v24, %v1225_v50  ;;  %11514 = vrot.lane.b32.xlu1 %v12865_v45, %s12016_s20  ;;  %v12877_v23 = vpack.i.bf16 %v2571_v43, %v2570_v61  ;;  %v2100_v5 = vrot.slane %v2092_v44, %v12640_v40  ;;  %9520 = vmatprep.mubr.msk.bf16.mxu1 %vm392_vm0, %v12870_v56  ;;  %v2580_v24 = vld [vmem:[#allocation3 + $0x91] sm:$0xff] }
 0x23d   : > { %v2090_v3 = vrot.slane %v2076_v54, %v12640_v40  ;;  %v2107_v51 = vrot.slane %v2093_v57, %v12640_v40  ;;  %v12884_v47 = vpack.i.bf16 %v2577_v52, %v2576_v63  ;;  %v1551_v6 = vcombine.high %v1247_v59, %v1247_v59  ;;  %3263 = vmatpush1.bf16.msra.mxu0 %v11803_v53 }
 0x23e   : > { %v1558_v49 = vrot.slane %v1247_v59, %v12634_v29  ;;  %v1248_v7 = vmax.f32 %v1240_v15, 0.0  ;;  %11509 = vrot.lane.b32.xlu0 %v12877_v23, %s12016_s20  ;;  %v12889_v8 = vpack.i.bf16 %v2575_v62, %v2574_v55  ;;  %v12891_v12 = vpack.i.bf16 %v2581_v2, %v2580_v24  ;;  %3264 = vmatprep.subr.bf16.mxu0 %v12015_v1  ;;  %v11806_v15 = vld [vmem:[%s15952_s3 + $0x58] sm:$0xff]  }
 0x23f   : > { %v2091_v16 = vcombine.low %v2083_v58, %v2090_v3  ;;  %v2108_v17 = vcombine.low %v2100_v5, %v2107_v51  ;;  %v1565_v18 = vrot.slane %v1551_v6, %v12634_v29  ;;  %v12906_v27 = vpack.i.bf16 %v2579_v11, %v2578_v25 }
 0x240   : > { %v1566_v19 = vcombine.high %v1558_v49, %v1558_v49  ;;  %v1574_v20 = vrot.slane %v1558_v49, %v12634_v29  ;;  %v1600_v48 = vcombine.high %v1248_v7, %v1248_v7  ;;  %11524 = vrot.lane.b32.xlu1 %v12884_v47, %s12016_s20  ;;  %v1607_v9 = vrot.slane %v1248_v7, %v12634_v29 }
 0x241   : > { %2214 = vst.msk [vmem:[#allocation3 + $0x109] sm:$0xff] %vm392_vm0, %v2091_v16  ;;  %2215 = vst.msk [vmem:[#allocation3 + $0x111] sm:$0xff] %vm392_vm0, %v2108_v17  ;;  %v12908_v28 = vpack.i.bf16 %v2585_v13, %v2584_v26  ;;  %v12910_v31 = vpack.i.bf16 %v2583_v14, %v2582_v60  ;;  %v1567_v33 = vcombine.high %v1565_v18, %v1565_v18  ;;  %3265 = vmatpush1.bf16.msra.mxu0 %v11804_v4 }
 0x242   : > { %2216 = vst.msk [vmem:[#allocation3 + $0x121] sm:$0xff] %vm392_vm0, %v2091_v16  ;;  %2217 = vst.msk [vmem:[#allocation3 + $0x129] sm:$0xff] %vm392_vm0, %v2108_v17  ;;  %v1581_v35 = vrot.slane %v1565_v18, %v12634_v29  ;;  %v1588_v36 = vrot.slane %v1566_v19, %v12634_v29  ;;  %v1596_v37 = vcombine.high %v1574_v20, %v1574_v20  ;;  %11519 = vrot.lane.b32.xlu0 %v12889_v8, %s12016_s20  ;;  %v2589_v13 = vld [vmem:[#allocation3 + $0xf9] sm:$0xff]  ;;  %v2587_v18 = vld [vmem:[#allocation3 + $0xe1] sm:$0xff] }
 0x243   : > { %v1844_v10 = vrot.slane %v1574_v20, %v12638_v39  ;;  %v1614_v38 = vrot.slane %v1600_v48, %v12634_v29  ;;  %v1615_v30 = vcombine.high %v1607_v9, %v1607_v9  ;;  %v1623_v21 = vrot.slane %v1607_v9, %v12634_v29  ;;  %3266 = vmatprep.subr.bf16.mxu0 %v12015_v1  ;;  %v2588_v26 = vld [vmem:[#allocation3 + $0xf1] sm:$0xff] }
 0x244   : > { %v1595_v41 = vrot.slane %v1567_v33, %v12634_v29  ;;  %v1597_v22 = vcombine.high %v1581_v35, %v1581_v35  ;;  %v1598_v34 = vcombine.high %v1588_v36, %v1588_v36  ;;  %v1848_v42 = vrot.slane %v1588_v36, %v12638_v39  ;;  %11534 = vrot.lane.b32.xlu1 %v12891_v12, %s12016_s20 }
 0x245   : > { %v1852_v43 = vrot.slane %v1596_v37, %v12638_v39  ;;  %v1860_v44 = vrot.slane %v1581_v35, %v12638_v39  ;;  %v1616_v46 = vcombine.high %v1614_v38, %v1614_v38  ;;  %v1630_v50 = vrot.slane %v1614_v38, %v12634_v29  ;;  %3267 = vmatpush1.bf16.msra.mxu0 %v11805_v32  ;;  %v2586_v37 = vld [vmem:[#allocation3 + $0xd9] sm:$0xff]  ;;  %v11807_v38 = vld [vmem:[%s15952_s3 + $0x50] sm:$0xff]  }
 0x246   : > { %v1599_v52 = vcombine.high %v1595_v41, %v1595_v41  ;;  %v1856_v53 = vrot.slane %v1598_v34, %v12638_v39  ;;  %v1864_v54 = vrot.slane %v1595_v41, %v12638_v39  ;;  %v1868_v57 = vrot.slane %v1597_v22, %v12638_v39  ;;  %11529 = vrot.lane.b32.xlu0 %v12906_v27, %s12016_s20 }
 0x247   : > { %v2109_v61 = vcombine.low %v1844_v10, %v1848_v42  ;;  %v1637_v62 = vrot.slane %v1615_v30, %v12634_v29  ;;  %v1644_v58 = vrot.slane %v1616_v46, %v12634_v29  ;;  %v1645_v59 = vcombine.high %v1623_v21, %v1623_v21  ;;  %3276 = vmatprep.subr.bf16.mxu0 %v12015_v1 }
 0x248   : > { %v1872_v63 = vrot.slane %v1599_v52, %v12638_v39  ;;  %v2110_v2 = vcombine.low %v1852_v43, %v1856_v53  ;;  %v2126_v3 = vcombine.low %v1860_v44, %v1864_v54  ;;  %v1646_v5 = vcombine.high %v1630_v50, %v1630_v50  ;;  %11544 = vrot.lane.b32.xlu1 %v12908_v28, %s12016_s20  ;;  %v2591_v10 = vld [vmem:[#allocation3 + $0x111] sm:$0xff]  ;;  %v2590_v42 = vld [vmem:[#allocation3 + $0x109] sm:$0xff] }
 0x249   : > { %v2117_v51 = vrot.slane %v2109_v61, %v12640_v40  ;;  %v1647_v55 = vcombine.high %v1637_v62, %v1637_v62  ;;  %v1648_v24 = vcombine.high %v1644_v58, %v1644_v58  ;;  %v1876_v29 = vrot.slane %v1623_v21, %v12638_v39  ;;  %3277 = vmatpush2.bf16.msra.mxu0 %v11806_v15  ;;  %v2593_v60 = vld [vmem:[#allocation3 + $0x129] sm:$0xff]  ;;  %v2592_v32 = vld [vmem:[#allocation3 + $0x121] sm:$0xff] }
 0x24a   : > { %v2124_v6 = vrot.slane %v2110_v2, %v12640_v40  ;;  %v2127_v49 = vcombine.low %v1868_v57, %v1872_v63  ;;  %v2134_v7 = vrot.slane %v2126_v3, %v12640_v40  ;;  %v1880_v11 = vrot.slane %v1637_v62, %v12638_v39  ;;  %11539 = vrot.lane.b32.xlu0 %v12910_v31, %s12016_s20  ;;  %v11808_v52 = vld [vmem:[%s15952_s3 + $0x48] sm:$0xff]  }
 0x24b   : > { %v1884_v14 = vrot.slane %v1645_v59, %v12638_v39  ;;  %v1888_v16 = vrot.slane %v1647_v55, %v12638_v39  ;;  %v1892_v17 = vrot.slane %v1630_v50, %v12638_v39  ;;  %v1896_v4 = vrot.slane %v1644_v58, %v12638_v39  ;;  %3278 = vmatprep.subr.bf16.mxu0 %v12015_v1  ;;  %v11809_v59 = vld [vmem:[%s15952_s3 + $0x40] sm:$0xff]   ;;  %v2291_v63 = vld [vmem:[#allocation3 + $0xa] sm:$0xff] }
 0x24c   : > { %v2125_v19 = vcombine.low %v2117_v51, %v2124_v6  ;;  %v2141_v20 = vrot.slane %v2127_v49, %v12640_v40  ;;  %v1900_v48 = vrot.slane %v1646_v5, %v12638_v39  ;;  %v1904_v25 = vrot.slane %v1648_v24, %v12638_v39  ;;  %v2290_v15 = vld [vmem:[#allocation3 + $0x2] sm:$0xff] }
 0x24d   : > { %v2143_v9 = vcombine.low %v1876_v29, %v1880_v11  ;;  %v2144_v33 = vcombine.low %v1884_v14, %v1888_v16  ;;  %v2160_v35 = vcombine.low %v1892_v17, %v1896_v4  ;;  %v12959_v36 = vpack.i.bf16 %v2589_v13, %v2588_v26  ;;  %3279 = vmatpush2.bf16.msra.mxu0 %v11807_v38  ;;  %v2258_v3 = vld [vmem:[#allocation3 + $0x1] sm:$0xff]  ;;  %v2259_v5 = vld [vmem:[#allocation3 + $0x9] sm:$0xff]  ;;  %v11810_v16 = vld [vmem:[%s15952_s3 + $0xf8] sm:$0xff]  }
 0x24e   : > { %v2142_v30 = vcombine.low %v2134_v7, %v2141_v20  ;;  %2218 = vst.msk [vmem:[#allocation3 + $0x139] sm:$0xff] %vm392_vm0, %v2125_v19  ;;  %2220 = vst.msk [vmem:[#allocation3 + $0x151] sm:$0xff] %vm392_vm0, %v2125_v19  ;;  %v2161_v39 = vcombine.low %v1900_v48, %v1904_v25  ;;  %v12966_v21 = vpack.i.bf16 %v2587_v18, %v2586_v37  ;;  %3280 = vmatprep.subr.bf16.mxu0 %v12015_v1  ;;  %v2605_v11 = vld [vmem:[#allocation3 + $0x3a] sm:$0xff]  ;;  %v2606_v38 = vld [vmem:[#allocation3 + $0x4a] sm:$0xff] }
 0x24f   : > { %v2151_v41 = vrot.slane %v2143_v9, %v12640_v40  ;;  %v2158_v22 = vrot.slane %v2144_v33, %v12640_v40  ;;  %11554 = vrot.lane.b32.xlu1 %v12959_v36, %s12016_s20  ;;  %v12972_v34 = vpack.i.bf16 %v2593_v60, %v2592_v32  ;;  %v2168_v43 = vrot.slane %v2160_v35, %v12640_v40  ;;  %v3476_v17 = vld [vmem:[#allocation3 + $0x199] sm:$0xff]  ;;  %v3477_v19 = vld [vmem:[#allocation3 + $0x1a1] sm:$0xff]  ;;  %v11811_v9 = vld [vmem:[%s15952_s3 + $0xf0] sm:$0xff]  }
 0x250   : > { %2219 = vst.msk [vmem:[#allocation3 + $0x141] sm:$0xff] %vm392_vm0, %v2142_v30  ;;  %2221 = vst.msk [vmem:[#allocation3 + $0x159] sm:$0xff] %vm392_vm0, %v2142_v30  ;;  %v2175_v44 = vrot.slane %v2161_v39, %v12640_v40  ;;  %11549 = vrot.lane.b32.xlu0 %v12966_v21, %s12016_s20  ;;  %v11558_v46 = vpack.i.bf16 %v2591_v10, %v2590_v42  ;;  %v2483_v51 = vpack.c.bf16 %v2291_v63, %v2290_v15  ;;  %v13076_v35 = vld [vmem:[#allocation3 + $0x30] sm:$0xff] }
 0x251   : > { %v2159_v50 = vcombine.low %v2151_v41, %v2158_v22  ;;  %3281 = vmatpush2.bf16.msra.mxu0 %v11808_v52  ;;  %v11588_v7 = vpack.i.bf16 %v2259_v5, %v2258_v3  ;;  %v11743_v60 = vpack.i.bf16 %v3477_v19, %v3476_v17  ;;  %v2607_v30 = vld [vmem:[#allocation3 + $0x52] sm:$0xff]  ;;  %v13131_v5 = vld [vmem:[#allocation3 + $0x60] sm:$0xff] }
 0x252   : > { %v2176_v53 = vcombine.low %v2168_v43, %v2175_v44  ;;  %3282 = vmatprep.subr.bf16.mxu0 %v12015_v1  ;;  %9548 = vmatprep.mubr.msk.bf16.mxu0 %vm392_vm0, %v2483_v51  ;;  %v13094_v42 = vpack.c.bf16 %v2607_v30, %v2606_v38  ;;  %v11813_v43 = vld [vmem:[%s15952_s3 + $0xe0] sm:$0xff]   ;;  %v13101_v44 = vld [vmem:[#allocation3 + $0x48] sm:$0xff]  ;;  %v11815_v3 = vld [vmem:[%s15952_s3 + $0xd0] sm:$0xff]  }
 0x253   : > { %2222 = vst.msk [vmem:[#allocation3 + $0x169] sm:$0xff] %vm392_vm0, %v2159_v50  ;;  %2224 = vst.msk [vmem:[#allocation3 + $0x181] sm:$0xff] %vm392_vm0, %v2159_v50  ;;  %11564 = vrot.lane.b32.xlu1 %v12972_v34, %s12016_s20  ;;  %v13133_v51 = vld [vmem:[#allocation3 + $0x68] sm:$0xff]  ;;  %v2613_v19 = vld [vmem:[#allocation3 + $0x9a] sm:$0xff] }
 0x254   : > { %2223 = vst.msk [vmem:[#allocation3 + $0x171] sm:$0xff] %vm392_vm0, %v2176_v53  ;;  %2225 = vst.msk [vmem:[#allocation3 + $0x189] sm:$0xff] %vm392_vm0, %v2176_v53  ;;  %11559 = vrot.lane.b32.xlu0 %v11558_v46, %s12016_s20  ;;  %v11818_v30 = vld [vmem:[%s15952_s3 + $0x118] sm:$0xff]  }
 0x255   : > { %v2596_v40 = vld [vmem:[#allocation3 + $0x151] sm:$0xff]  ;;  %v2594_v57 = vld [vmem:[#allocation3 + $0x139] sm:$0xff]  ;;  %3283 = vmatpush2.bf16.msra.mxu0 %v11809_v59 }
 0x257   : > { %v2597_v54 = vld [vmem:[#allocation3 + $0x159] sm:$0xff]  ;;  %v2595_v61 = vld [vmem:[#allocation3 + $0x141] sm:$0xff] }
 0x258   : > { %v11573_v62 = vpack.i.bf16 %v2597_v54, %v2596_v40  ;;  %v11568_v58 = vpack.i.bf16 %v2595_v61, %v2594_v57  ;;  %v2608_v54 = vld [vmem:[#allocation3 + $0x62] sm:$0xff]  ;;  %v2609_v57 = vld [vmem:[#allocation3 + $0x6a] sm:$0xff]  ;;  %v11814_v61 = vld [vmem:[%s15952_s3 + $0xd8] sm:$0xff]  }
 0x259   : > { %v13120_v15 = vpack.c.bf16 %v2609_v57, %v2608_v54  ;;  %v13408_v54 = vld [vmem:[#allocation3 + $0x138] sm:$0xff] }
 0x25a   : > { %11574 = vrot.lane.b32.xlu1 %v11573_v62, %s12016_s20  ;;  %11569 = vrot.lane.b32.xlu0 %v11568_v58, %s12016_s20  ;;  %v2600_v2 = vld [vmem:[#allocation3 + $0x181] sm:$0xff]  ;;  %v2598_v24 = vld [vmem:[#allocation3 + $0x169] sm:$0xff] }
 0x25b   : > { %v2601_v55 = vld [vmem:[#allocation3 + $0x189] sm:$0xff]  ;;  %v2599_v29 = vld [vmem:[#allocation3 + $0x171] sm:$0xff] }
 0x25c   : > { %v11583_v6 = vpack.i.bf16 %v2601_v55, %v2600_v2  ;;  %v11578_v49 = vpack.i.bf16 %v2599_v29, %v2598_v24  ;;  %v2610_v29 = vld [vmem:[#allocation3 + $0x7a] sm:$0xff] }
 0x25e   : > { %11584 = vrot.lane.b32.xlu1 %v11583_v6, %s12016_s20  ;;  %11579 = vrot.lane.b32.xlu0 %v11578_v49, %s12016_s20 }
 0x262   : > { %11594 = vrot.lane.b32.xlu1 %v12865_v45, %s12016_s20  ;;  %11589 = vrot.lane.b32.xlu0 %v11588_v7, %s12016_s20 }
 0x266   : > { %11604 = vrot.lane.b32.xlu1 %v12889_v8, %s12016_s20  ;;  %11599 = vrot.lane.b32.xlu0 %v12877_v23, %s12016_s20 }
 0x26a   : > { %11614 = vrot.lane.b32.xlu1 %v12884_v47, %s12016_s20  ;;  %11609 = vrot.lane.b32.xlu0 %v12865_v45, %s12016_s20 }
 0x26e   : > { %11624 = vrot.lane.b32.xlu1 %v12906_v27, %s12016_s20  ;;  %11619 = vrot.lane.b32.xlu0 %v12889_v8, %s12016_s20 }
 0x272   : > { %11634 = vrot.lane.b32.xlu1 %v12891_v12, %s12016_s20  ;;  %11629 = vrot.lane.b32.xlu0 %v12884_v47, %s12016_s20  ;;  %v13052_v47 = vld [vmem:[#allocation3 + $0x18] sm:$0xff] }
 0x276   : > { %11644 = vrot.lane.b32.xlu1 %v12910_v31, %s12016_s20  ;;  %11639 = vrot.lane.b32.xlu0 %v12906_v27, %s12016_s20  ;;  %v13054_v27 = vld [vmem:[#allocation3 + $0x20] sm:$0xff] }
 0x27a   : > { %11654 = vrot.lane.b32.xlu1 %v12908_v28, %s12016_s20  ;;  %11649 = vrot.lane.b32.xlu0 %v12891_v12, %s12016_s20 }
 0x27e   : > { %11664 = vrot.lane.b32.xlu1 %v12966_v21, %s12016_s20  ;;  %11659 = vrot.lane.b32.xlu0 %v12910_v31, %s12016_s20  ;;  %v2604_v31 = vld [vmem:[#allocation3 + $0x32] sm:$0xff] }
 0x27f   : > { %v13065_v25 = vpack.c.bf16 %v2605_v11, %v2604_v31 }
 0x282   : > { %11674 = vrot.lane.b32.xlu1 %v12959_v36, %s12016_s20  ;;  %11669 = vrot.lane.b32.xlu0 %v12908_v28, %s12016_s20 }
 0x286   : > { %11684 = vrot.lane.b32.xlu1 %v11558_v46, %s12016_s20  ;;  %11679 = vrot.lane.b32.xlu0 %v12966_v21, %s12016_s20  ;;  %v11812_v21 = vld [vmem:[%s15952_s3 + $0xe8] sm:$0xff]  }
 0x28a   : > { %11694 = vrot.lane.b32.xlu1 %v12972_v34, %s12016_s20  ;;  %11689 = vrot.lane.b32.xlu0 %v12959_v36, %s12016_s20  ;;  %v13078_v36 = vld [vmem:[#allocation3 + $0x38] sm:$0xff] }
 0x28e   : > { %11704 = vrot.lane.b32.xlu1 %v11568_v58, %s12016_s20  ;;  %11699 = vrot.lane.b32.xlu0 %v11558_v46, %s12016_s20  ;;  %v13103_v46 = vld [vmem:[#allocation3 + $0x50] sm:$0xff] }
 0x292   : > { %11714 = vrot.lane.b32.xlu1 %v11573_v62, %s12016_s20  ;;  %11709 = vrot.lane.b32.xlu0 %v12972_v34, %s12016_s20 }
 0x296   : > { %11724 = vrot.lane.b32.xlu1 %v11578_v49, %s12016_s20  ;;  %11719 = vrot.lane.b32.xlu0 %v11568_v58, %s12016_s20 }
 0x29a   : > { %11734 = vrot.lane.b32.xlu1 %v11583_v6, %s12016_s20  ;;  %11729 = vrot.lane.b32.xlu0 %v11573_v62, %s12016_s20  ;;  %v2611_v6 = vld [vmem:[#allocation3 + $0x82] sm:$0xff] }
 0x29e   : > { %11739 = vrot.lane.b32.xlu0 %v11578_v49, %s12016_s20  ;;  %11744 = vrot.lane.b32.xlu1 %v11743_v60, %s12016_s20  ;;  %s11938_s20 = scalar_lea.vmem %s11937_s2, 38912 }
 0x29f   : > { %p11940_p9 = scmp.lt.s32.totalorder %s11938_s20, %s11932_s25 }
 0x2a1   : > { %p11941_p2 = por %p11940_p9, %p11939_p5 }
 0x2a3   : > { %p11942_p4 = pnand %p11941_p2, %p11935_p0 }
 0x2ae   : > { %v11515_v45 = vpop.permute.xlu1 %11514 }
 0x2af   : > { %v11517_v20 = vunpack.i.h.bf16 %v11515_v45  ;;  %v11516_v48 = vunpack.i.l.bf16 %v11515_v45 }
 0x2b0   : > { %v11510_v23 = vpop.permute.xlu0 %11509 }
 0x2b1   : > { %v11512_v8 = vunpack.i.h.bf16 %v11510_v23  ;;  %v11511_v12 = vunpack.i.l.bf16 %v11510_v23  ;;  %v2764_v37 = vsel %vm392_vm0, %v13076_v35, %v11516_v48  ;;  %v2765_v10 = vsel %vm392_vm0, %v13078_v36, %v11517_v20  ;;  %v11816_v23 = vld [vmem:[%s15952_s3 + $0xc8] sm:$0xff]  }
 0x2b2   : > { %v13056_v28 = vpop.permute.xlu1 %11524  ;;  %v2796_v41 = vpack.c.bf16 %v2765_v10, %v2764_v37 }
 0x2b3   : > { %v2762_v13 = vsel %vm392_vm0, %v13052_v47, %v11511_v12  ;;  %v2763_v14 = vsel %vm392_vm0, %v13054_v27, %v11512_v8  ;;  %v11527_v58 = vunpack.i.h.bf16 %v13056_v28  ;;  %v11526_v59 = vunpack.i.l.bf16 %v13056_v28 }
 0x2b4   : > { %v2794_v4 = vpack.c.bf16 %v2763_v14, %v2762_v13  ;;  %v11520_v18 = vpop.permute.xlu0 %11519  ;;  %v13150_v28 = vpack.c.bf16 %v2611_v6, %v2610_v29  ;;  %v13158_v13 = vld [vmem:[#allocation3 + $0x78] sm:$0xff]  ;;  %v13160_v14 = vld [vmem:[#allocation3 + $0x80] sm:$0xff] }
 0x2b5   : > { %v11522_v22 = vunpack.i.h.bf16 %v11520_v18  ;;  %v11521_v34 = vunpack.i.l.bf16 %v11520_v18  ;;  %v2768_v55 = vsel %vm392_vm0, %v13131_v5, %v11526_v59  ;;  %v2769_v24 = vsel %vm392_vm0, %v13133_v51, %v11527_v58  ;;  %v2612_v18 = vld [vmem:[#allocation3 + $0x92] sm:$0xff] }
 0x2b6   : > { %3004 = vmatmul.mubr.bf16.vlgmr.msra.gmra.mxu1 %v2794_v4  ;;  %v13067_v26 = vpop.permute.xlu1 %11534  ;;  %v2800_v45 = vpack.c.bf16 %v2769_v24, %v2768_v55  ;;  %v13172_v38 = vpack.c.bf16 %v2613_v19, %v2612_v18  ;;  %v13194_v58 = vld [vmem:[#allocation3 + $0x90] sm:$0xff]  ;;  %v13196_v59 = vld [vmem:[#allocation3 + $0x98] sm:$0xff]  ;;  %v11820_v18 = vld [vmem:[%s15952_s3 + $0x108] sm:$0xff]  }
 0x2b7   : > { %9521 = vmatprep.mubr.msk.bf16.mxu1 %vm392_vm0, %v13065_v25  ;;  %3848 = vmatpush1.bf16.msra.mxu1 %v11810_v16  ;;  %v2766_v52 = vsel %vm392_vm0, %v13101_v44, %v11521_v34  ;;  %v2767_v53 = vsel %vm392_vm0, %v13103_v46, %v11522_v22  ;;  %v11817_v16 = vld [vmem:[%s15952_s3 + $0xc0] sm:$0xff]   ;;  %v11537_v20 = vunpack.i.h.bf16 %v13067_v26  ;;  %v11536_v48 = vunpack.i.l.bf16 %v13067_v26 }
 0x2b8   : > { %v13074_v33 = vpop.permute.xlu0 %11529  ;;  %3849 = vmatprep.subr.bf16.mxu1 %v12015_v1  ;;  %v2798_v62 = vpack.c.bf16 %v2767_v53, %v2766_v52 }
 0x2b9   : > { %v11532_v8 = vunpack.i.h.bf16 %v13074_v33  ;;  %v11531_v12 = vunpack.i.l.bf16 %v13074_v33  ;;  %v2227_v33 = vld [vmem:[#allocation3 + $0x8] sm:$0xff]  ;;  %v2772_v29 = vsel %vm392_vm0, %v13194_v58, %v11536_v48  ;;  %v2773_v6 = vsel %vm392_vm0, %v13196_v59, %v11537_v20 }
 0x2ba   : > { %v13086_v39 = vpop.permute.xlu1 %11544 }
 0x2bb   : > { %3850 = vmatpush1.bf16.msra.mxu1 %v11811_v9  ;;  %v2770_v17 = vsel %vm392_vm0, %v13158_v13, %v11531_v12  ;;  %v2771_v4 = vsel %vm392_vm0, %v13160_v14, %v11532_v8  ;;  %v2226_v9 = vld [vmem:[#allocation3] sm:$0xff] }
 0x2bc   : > { %v13091_v32 = vpop.permute.xlu0 %11539  ;;  %3851 = vmatprep.subr.bf16.mxu1 %v12015_v1  ;;  %v2802_v10 = vpack.c.bf16 %v2771_v4, %v2770_v17  ;;  %v2804_v17 = vpack.c.bf16 %v2773_v6, %v2772_v29  ;;  %v11547_v29 = vunpack.i.h.bf16 %v13086_v39  ;;  %v11546_v6 = vunpack.i.l.bf16 %v13086_v39  ;;  %v13266_v39 = vld [vmem:[#allocation3 + $0xc0] sm:$0xff] }
 0x2bd   : > { %v11542_v8 = vunpack.i.h.bf16 %v13091_v32  ;;  %v11541_v12 = vunpack.i.l.bf16 %v13091_v32 }
 0x2be   : > { %3012 = vmatmul.mubr.bf16.gmra.mxu1 %v2796_v41 }
 0x2bf   : > { %9522 = vmatprep.mubr.msk.bf16.mxu1 %vm392_vm0, %v13094_v42  ;;  %3852 = vmatpush1.bf16.msra.mxu1 %v11812_v21 }
 0x2c0   : > { %3853 = vmatprep.subr.bf16.mxu1 %v12015_v1 }
 0x2c1   : > { %v13106_v50 = vpop.permute.xlu1 %11554 }
 0x2c2   : > { %v13112_v40 = vpop.permute.xlu0 %11549 }
 0x2c3   : > { %3854 = vmatpush1.bf16.msra.mxu1 %v11813_v43 }
 0x2c4   : > { %3855 = vmatprep.subr.bf16.mxu1 %v12015_v1 }
 0x2c5   : > { %v13122_v63 = vpop.permute.xlu1 %11564 }
 0x2c6   : > { %v13124_v2 = vpop.permute.xlu0 %11559  ;;  %3020 = vmatmul.mubr.bf16.gmra.mxu1 %v2798_v62 }
 0x2c7   : > { %9523 = vmatprep.mubr.msk.bf16.mxu1 %vm392_vm0, %v13120_v15  ;;  %3856 = vmatpush1.bf16.msra.mxu1 %v11814_v61 }
 0x2c8   : > { %3857 = vmatprep.subr.bf16.mxu1 %v12015_v1 }
 0x2cb   : > { %3858 = vmatpush1.bf16.msra.mxu1 %v11815_v3  ;;  %v11819_v3 = vld [vmem:[%s15952_s3 + $0x110] sm:$0xff]  }
 0x2cc   : > { %v13140_v49 = vpop.permute.xlu1 %11574  ;;  %v13142_v7 = vpop.permute.xlu0 %11569  ;;  %3859 = vmatprep.subr.bf16.mxu1 %v12015_v1 }
 0x2ce   : > { %3028 = vmatmul.mubr.bf16.gmra.mxu1 %v2800_v45  ;;  %v2614_v45 = vld [vmem:[#allocation3 + $0xaa] sm:$0xff] }
 0x2cf   : > { %9524 = vmatprep.mubr.msk.bf16.mxu1 %vm392_vm0, %v13150_v28  ;;  %3860 = vmatpush1.bf16.msra.mxu1 %v11816_v23  ;;  %v2615_v23 = vld [vmem:[#allocation3 + $0xb2] sm:$0xff] }
 0x2d0   : > { %v13154_v31 = vpop.permute.xlu1 %11584  ;;  %v13156_v11 = vpop.permute.xlu0 %11579  ;;  %3861 = vmatprep.subr.bf16.mxu1 %v12015_v1  ;;  %v13210_v4 = vpack.c.bf16 %v2615_v23, %v2614_v45 }
 0x2d3   : > { %3862 = vmatpush1.bf16.msra.mxu1 %v11817_v16 }
 0x2d4   : > { %v11595_v60 = vpop.permute.xlu1 %11594  ;;  %v11590_v37 = vpop.permute.xlu0 %11589  ;;  %3871 = vmatprep.subr.bf16.mxu1 %v12015_v1 }
 0x2d5   : > { %v11597_v21 = vunpack.i.h.bf16 %v11595_v60  ;;  %v11596_v41 = vunpack.i.l.bf16 %v11595_v60  ;;  %v11592_v22 = vunpack.i.h.bf16 %v11590_v37  ;;  %v11591_v34 = vunpack.i.l.bf16 %v11590_v37  ;;  %v13222_v60 = vld [vmem:[#allocation3 + $0xa8] sm:$0xff] }
 0x2d6   : > { %3036 = vmatmul.mubr.bf16.gmra.mxu1 %v2802_v10  ;;  %v2774_v10 = vsel %vm392_vm0, %v13222_v60, %v11541_v12 }
 0x2d7   : > { %v13180_v26 = vsel %vm392_vm0, %v13078_v36, %v11597_v21  ;;  %v13184_v43 = vsel %vm392_vm0, %v13076_v35, %v11596_v41  ;;  %v2451_v52 = vsel %vm392_vm0, %v2227_v33, %v11592_v22  ;;  %v2450_v53 = vsel %vm392_vm0, %v2226_v9, %v11591_v34  ;;  %9525 = vmatprep.mubr.msk.bf16.mxu1 %vm392_vm0, %v13172_v38  ;;  %v13224_v9 = vld [vmem:[#allocation3 + $0xb0] sm:$0xff]  ;;  %v2616_v21 = vld [vmem:[#allocation3 + $0xc2] sm:$0xff] }
 0x2d8   : > { %v2482_v57 = vpack.c.bf16 %v2451_v52, %v2450_v53  ;;  %v13192_v61 = vpop.permute.xlu1 %11604  ;;  %v11600_v62 = vpop.permute.xlu0 %11599  ;;  %3872 = vmatpush2.bf16.msra.mxu1 %v11818_v30  ;;  %v2775_v30 = vsel %vm392_vm0, %v13224_v9, %v11542_v8  ;;  %v2617_v41 = vld [vmem:[#allocation3 + $0xca] sm:$0xff]  ;;  %v11821_v22 = vld [vmem:[%s15952_s3 + $0x100] sm:$0xff]  }
 0x2d9   : > { %v11602_v55 = vunpack.i.h.bf16 %v11600_v62  ;;  %v11601_v24 = vunpack.i.l.bf16 %v11600_v62  ;;  %3873 = vmatprep.subr.bf16.mxu1 %v12015_v1 }
 0x2da   : > { %3285 = vmatmul.mubr.bf16.vlgmr.msra.gmra.mxu0 %v2482_v57 }
 0x2db   : > { %9549 = vmatprep.mubr.msk.bf16.mxu0 %vm392_vm0, %v12870_v56  ;;  %v2452_v48 = vsel %vm392_vm0, %v13052_v47, %v11601_v24  ;;  %v2453_v56 = vsel %vm392_vm0, %v13054_v27, %v11602_v55 }
 0x2dc   : > { %v11615_v16 = vpop.permute.xlu1 %11614  ;;  %3874 = vmatpush2.bf16.msra.mxu1 %v11819_v3  ;;  %v11610_v32 = vpop.permute.xlu0 %11609  ;;  %v2484_v37 = vpack.c.bf16 %v2453_v56, %v2452_v48  ;;  %v13246_v3 = vpack.c.bf16 %v2617_v41, %v2616_v21 }
 0x2dd   : > { %v11617_v19 = vunpack.i.h.bf16 %v11615_v16  ;;  %v11616_v20 = vunpack.i.l.bf16 %v11615_v16  ;;  %3875 = vmatprep.subr.bf16.mxu1 %v12015_v1  ;;  %v11612_v52 = vunpack.i.h.bf16 %v11610_v32  ;;  %v11611_v53 = vunpack.i.l.bf16 %v11610_v32  ;;  %v2618_v32 = vld [vmem:[#allocation3 + $0xda] sm:$0xff] }
 0x2de   : > { %3044 = vmatmul.mubr.bf16.gmra.mxu1 %v2804_v17 }
 0x2df   : > { %9526 = vmatprep.mubr.msk.bf16.mxu1 %vm392_vm0, %v13210_v4  ;;  %v13228_v33 = vsel %vm392_vm0, %v13131_v5, %v11616_v20  ;;  %v13232_v47 = vsel %vm392_vm0, %v13133_v51, %v11617_v19  ;;  %v2454_v12 = vsel %vm392_vm0, %v13076_v35, %v11611_v53  ;;  %v2455_v16 = vsel %vm392_vm0, %v13078_v36, %v11612_v52 }
 0x2e0   : > { %v11625_v27 = vpop.permute.xlu1 %11624  ;;  %3876 = vmatpush2.bf16.msra.mxu1 %v11820_v18  ;;  %v11620_v17 = vpop.permute.xlu0 %11619  ;;  %v13268_v18 = vld [vmem:[#allocation3 + $0xc8] sm:$0xff]  ;;  %v2486_v48 = vpack.c.bf16 %v2455_v16, %v2454_v12  ;;  %v2776_v36 = vsel %vm392_vm0, %v13266_v39, %v11546_v6  ;;  %v13306_v16 = vld [vmem:[#allocation3 + $0xd8] sm:$0xff] }
 0x2e1   : > { %v11627_v57 = vunpack.i.h.bf16 %v11625_v27  ;;  %v11626_v62 = vunpack.i.l.bf16 %v11625_v27  ;;  %3877 = vmatprep.subr.bf16.mxu1 %v12015_v1  ;;  %v2806_v1 = vpack.c.bf16 %v2775_v30, %v2774_v10  ;;  %v2777_v56 = vsel %vm392_vm0, %v13268_v18, %v11547_v29  ;;  %v2619_v27 = vld [vmem:[#allocation3 + $0xe2] sm:$0xff] }
 0x2e2   : > { %3293 = vmatmul.mubr.bf16.gmra.mxu0 %v2484_v37  ;;  %v11622_v10 = vunpack.i.h.bf16 %v11620_v17  ;;  %v11621_v30 = vunpack.i.l.bf16 %v11620_v17  ;;  %v2808_v6 = vpack.c.bf16 %v2777_v56, %v2776_v36  ;;  %v2620_v56 = vld [vmem:[#allocation3 + $0xf2] sm:$0xff] }
 0x2e3   : > { %9550 = vmatprep.mubr.msk.bf16.mxu0 %vm392_vm0, %v13065_v25  ;;  %v13250_v55 = vsel %vm392_vm0, %v13158_v13, %v11626_v62  ;;  %v13254_v24 = vsel %vm392_vm0, %v13160_v14, %v11627_v57  ;;  %v11552_v57 = vunpack.i.h.bf16 %v13112_v40  ;;  %v11551_v62 = vunpack.i.l.bf16 %v13112_v40  ;;  %v13308_v40 = vld [vmem:[#allocation3 + $0xe0] sm:$0xff] }
 0x2e4   : > { %v11635_v45 = vpop.permute.xlu1 %11634  ;;  %3878 = vmatpush2.bf16.msra.mxu1 %v11821_v22  ;;  %v13286_v22 = vpack.c.bf16 %v2619_v27, %v2618_v32  ;;  %v11630_v12 = vpop.permute.xlu0 %11629  ;;  %v2621_v32 = vld [vmem:[#allocation3 + $0xfa] sm:$0xff]  ;;  %v13366_v27 = vld [vmem:[#allocation3 + $0x110] sm:$0xff] }
 0x2e5   : > { %v11637_v23 = vunpack.i.h.bf16 %v11635_v45  ;;  %v11636_v8 = vunpack.i.l.bf16 %v11635_v45  ;;  %v2779_v36 = vsel %vm392_vm0, %v13308_v40, %v11552_v57 }
 0x2e6   : > { %3052 = vmatmul.mubr.bf16.gmra.mxu1 %v2806_v1 }
 0x2e7   : > { %9527 = vmatprep.mubr.msk.bf16.mxu1 %vm392_vm0, %v13246_v3  ;;  %v13272_v19 = vsel %vm392_vm0, %v13194_v58, %v11636_v8  ;;  %v13276_v20 = vsel %vm392_vm0, %v13196_v59, %v11637_v23  ;;  %v2456_v23 = vsel %vm392_vm0, %v13101_v44, %v11621_v30  ;;  %v2457_v8 = vsel %vm392_vm0, %v13103_v46, %v11622_v10 }
 0x2e8   : > { %v11645_v35 = vpop.permute.xlu1 %11644  ;;  %v2778_v46 = vsel %vm392_vm0, %v13306_v16, %v11551_v62  ;;  %v11632_v10 = vunpack.i.h.bf16 %v11630_v12  ;;  %v11631_v30 = vunpack.i.l.bf16 %v11630_v12 }
 0x2e9   : > { %v11647_v21 = vunpack.i.h.bf16 %v11645_v35  ;;  %v11646_v41 = vunpack.i.l.bf16 %v11645_v35 }
 0x2ea   : > { %3301 = vmatmul.mubr.bf16.gmra.mxu0 %v2486_v48  ;;  %v2488_v48 = vpack.c.bf16 %v2457_v8, %v2456_v23  ;;  %v2810_v23 = vpack.c.bf16 %v2779_v36, %v2778_v46  ;;  %v13364_v8 = vld [vmem:[#allocation3 + $0x108] sm:$0xff] }
 0x2eb   : > { %9551 = vmatprep.mubr.msk.bf16.mxu0 %vm392_vm0, %v13094_v42  ;;  %v13290_v52 = vsel %vm392_vm0, %v13222_v60, %v11646_v41  ;;  %v13294_v53 = vsel %vm392_vm0, %v13224_v9, %v11647_v21 }
 0x2ec   : > { %v11655_v29 = vpop.permute.xlu1 %11654 }
 0x2ed   : > { %v11657_v42 = vunpack.i.h.bf16 %v11655_v29  ;;  %v11656_v1 = vunpack.i.l.bf16 %v11655_v29  ;;  %v13326_v29 = vpack.c.bf16 %v2621_v32, %v2620_v56  ;;  %v11640_v56 = vpop.permute.xlu0 %11639  ;;  %v13344_v32 = vld [vmem:[#allocation3 + $0xf0] sm:$0xff] }
 0x2ee   : > { %3060 = vmatmul.mubr.bf16.gmra.mxu1 %v2808_v6  ;;  %v11557_v6 = vunpack.i.h.bf16 %v13106_v50 }
 0x2ef   : > { %9528 = vmatprep.mubr.msk.bf16.mxu1 %vm392_vm0, %v13286_v22  ;;  %v13312_v17 = vsel %vm392_vm0, %v13266_v39, %v11656_v1  ;;  %v13316_v35 = vsel %vm392_vm0, %v13268_v18, %v11657_v42  ;;  %v11556_v42 = vunpack.i.l.bf16 %v13106_v50 }
 0x2f0   : > { %v11665_v44 = vpop.permute.xlu1 %11664 }
 0x2f1   : > { %v11667_v21 = vunpack.i.h.bf16 %v11665_v44  ;;  %v11666_v41 = vunpack.i.l.bf16 %v11665_v44  ;;  %v2458_v44 = vsel %vm392_vm0, %v13131_v5, %v11631_v30  ;;  %v11650_v25 = vpop.permute.xlu0 %11649 }
 0x2f2   : > { %3309 = vmatmul.mubr.bf16.gmra.mxu0 %v2488_v48  ;;  %v2459_v48 = vsel %vm392_vm0, %v13133_v51, %v11632_v10  ;;  %v2780_v10 = vsel %vm392_vm0, %v13344_v32, %v11556_v42 }
 0x2f3   : > { %9552 = vmatprep.mubr.msk.bf16.mxu0 %vm392_vm0, %v13120_v15  ;;  %v13330_v62 = vsel %vm392_vm0, %v13306_v16, %v11666_v41  ;;  %v13334_v57 = vsel %vm392_vm0, %v13308_v40, %v11667_v21  ;;  %v13346_v21 = vld [vmem:[#allocation3 + $0xf8] sm:$0xff]  ;;  %v2490_v36 = vpack.c.bf16 %v2459_v48, %v2458_v44  ;;  %v2622_v41 = vld [vmem:[#allocation3 + $0x10a] sm:$0xff]  ;;  %v11562_v48 = vunpack.i.h.bf16 %v13124_v2 }
 0x2f4   : > { %v11675_v1 = vpop.permute.xlu1 %11674  ;;  %v2781_v30 = vsel %vm392_vm0, %v13346_v21, %v11557_v6 }
 0x2f5   : > { %v11677_v15 = vunpack.i.h.bf16 %v11675_v1  ;;  %v11676_v12 = vunpack.i.l.bf16 %v11675_v1  ;;  %v2623_v1 = vld [vmem:[#allocation3 + $0x112] sm:$0xff]  ;;  %v2812_v5 = vpack.c.bf16 %v2781_v30, %v2780_v10 }
 0x2f6   : > { %3068 = vmatmul.mubr.bf16.gmra.mxu1 %v2810_v23  ;;  %v11642_v23 = vunpack.i.h.bf16 %v11640_v56  ;;  %v13378_v6 = vpack.c.bf16 %v2623_v1, %v2622_v41  ;;  %v13388_v41 = vld [vmem:[#allocation3 + $0x120] sm:$0xff]  ;;  %v13390_v1 = vld [vmem:[#allocation3 + $0x128] sm:$0xff] }
 0x2f7   : > { %v13350_v50 = vsel %vm392_vm0, %v13346_v21, %v11677_v15  ;;  %v13354_v46 = vsel %vm392_vm0, %v13344_v32, %v11676_v12  ;;  %9529 = vmatprep.mubr.msk.bf16.mxu1 %vm392_vm0, %v13326_v29  ;;  %v11641_v15 = vunpack.i.l.bf16 %v11640_v56  ;;  %v11561_v56 = vunpack.i.l.bf16 %v13124_v2 }
 0x2f8   : > { %15996 = vst [vmem:[#allocation17_spill] sm:$0xff] %v13350_v50  ;;  %15997 = vst [vmem:[#allocation18_spill] sm:$0xff] %v13354_v46  ;;  %v11685_v51 = vpop.permute.xlu1 %11684  ;;  %v2461_v37 = vsel %vm392_vm0, %v13160_v14, %v11642_v23  ;;  %v13454_v46 = vld [vmem:[#allocation3 + $0x170] sm:$0xff] }
 0x2f9   : > { %v11687_v12 = vunpack.i.h.bf16 %v11685_v51  ;;  %v11686_v0 = vunpack.i.l.bf16 %v11685_v51  ;;  %v2782_v23 = vsel %vm392_vm0, %v13364_v8, %v11561_v56  ;;  %v11651_v51 = vunpack.i.l.bf16 %v11650_v25 }
 0x2fa   : > { %3317 = vmatmul.mubr.bf16.gmra.mxu0 %v2490_v36 }
 0x2fb   : > { %v13370_v44 = vsel %vm392_vm0, %v13366_v27, %v11687_v12  ;;  %v13374_v42 = vsel %vm392_vm0, %v13364_v8, %v11686_v0  ;;  %9553 = vmatprep.mubr.msk.bf16.mxu0 %vm392_vm0, %v13150_v28  ;;  %v2460_v0 = vsel %vm392_vm0, %v13158_v13, %v11641_v15  ;;  %v2624_v15 = vld [vmem:[#allocation3 + $0x122] sm:$0xff] }
 0x2fc   : > { %15998 = vst [vmem:[#allocation19_spill] sm:$0xff] %v13370_v44  ;;  %15999 = vst [vmem:[#allocation20_spill] sm:$0xff] %v13374_v42  ;;  %v11695_v36 = vpop.permute.xlu1 %11694  ;;  %v2492_v30 = vpack.c.bf16 %v2461_v37, %v2460_v0  ;;  %v13410_v42 = vld [vmem:[#allocation3 + $0x140] sm:$0xff]  ;;  %v11566_v0 = vunpack.i.l.bf16 %v13122_v63  ;;  %v11660_v44 = vpop.permute.xlu0 %11659 }
 0x2fd   : > { %v11697_v12 = vunpack.i.h.bf16 %v11695_v36  ;;  %v11696_v45 = vunpack.i.l.bf16 %v11695_v36  ;;  %v2625_v36 = vld [vmem:[#allocation3 + $0x12a] sm:$0xff] }
 0x2fe   : > { %3076 = vmatmul.mubr.bf16.gmra.mxu1 %v2812_v5  ;;  %v2783_v5 = vsel %vm392_vm0, %v13366_v27, %v11562_v48  ;;  %v13422_v48 = vpack.c.bf16 %v2625_v36, %v2624_v15  ;;  %v13432_v15 = vld [vmem:[#allocation3 + $0x150] sm:$0xff]  ;;  %v13434_v36 = vld [vmem:[#allocation3 + $0x158] sm:$0xff] }
 0x2ff   : > { %v13394_v2 = vsel %vm392_vm0, %v13390_v1, %v11697_v12  ;;  %v13398_v10 = vsel %vm392_vm0, %v13388_v41, %v11696_v45  ;;  %9530 = vmatprep.mubr.msk.bf16.mxu1 %vm392_vm0, %v13378_v6  ;;  %v11652_v12 = vunpack.i.h.bf16 %v11650_v25  ;;  %v11567_v25 = vunpack.i.h.bf16 %v13122_v63 }
 0x300   : > { %16000 = vst [vmem:[#allocation21_spill] sm:$0xff] %v13394_v2  ;;  %16001 = vst [vmem:[#allocation22_spill] sm:$0xff] %v13398_v10  ;;  %v11705_v14 = vpop.permute.xlu1 %11704  ;;  %v2814_v13 = vpack.c.bf16 %v2783_v5, %v2782_v23  ;;  %v2784_v5 = vsel %vm392_vm0, %v13388_v41, %v11566_v0  ;;  %v11670_v50 = vpop.permute.xlu0 %11669 }
 0x301   : > { %v11707_v45 = vunpack.i.h.bf16 %v11705_v14  ;;  %v11706_v34 = vunpack.i.l.bf16 %v11705_v14  ;;  %v2463_v2 = vsel %vm392_vm0, %v13196_v59, %v11652_v12  ;;  %v2626_v12 = vld [vmem:[#allocation3 + $0x13a] sm:$0xff]  ;;  %v11661_v14 = vunpack.i.l.bf16 %v11660_v44 }
 0x302   : > { %3325 = vmatmul.mubr.bf16.gmra.mxu0 %v2492_v30 }
 0x303   : > { %v13414_v37 = vsel %vm392_vm0, %v13410_v42, %v11707_v45  ;;  %v13418_v56 = vsel %vm392_vm0, %v13408_v54, %v11706_v34  ;;  %9554 = vmatprep.mubr.msk.bf16.mxu0 %vm392_vm0, %v13172_v38  ;;  %v2462_v34 = vsel %vm392_vm0, %v13194_v58, %v11651_v51 }
 0x304   : > { %16002 = vst [vmem:[#allocation23_spill] sm:$0xff] %v13414_v37  ;;  %16003 = vst [vmem:[#allocation24_spill] sm:$0xff] %v13418_v56  ;;  %v11715_v30 = vpop.permute.xlu1 %11714  ;;  %v2494_v51 = vpack.c.bf16 %v2463_v2, %v2462_v34  ;;  %v13452_v37 = vld [vmem:[#allocation3 + $0x168] sm:$0xff]  ;;  %v11571_v34 = vunpack.i.l.bf16 %v13142_v7 }
 0x305   : > { %v11717_v45 = vunpack.i.h.bf16 %v11715_v30  ;;  %v11716_v10 = vunpack.i.l.bf16 %v11715_v30  ;;  %v2627_v30 = vld [vmem:[#allocation3 + $0x142] sm:$0xff] }
 0x306   : > { %3084 = vmatmul.mubr.bf16.gmra.mxu1 %v2814_v13  ;;  %v2785_v13 = vsel %vm392_vm0, %v13390_v1, %v11567_v25  ;;  %v13466_v25 = vpack.c.bf16 %v2627_v30, %v2626_v12  ;;  %v13476_v12 = vld [vmem:[#allocation3 + $0x180] sm:$0xff]  ;;  %v13478_v30 = vld [vmem:[#allocation3 + $0x188] sm:$0xff] }
 0x307   : > { %v13438_v63 = vsel %vm392_vm0, %v13434_v36, %v11717_v45  ;;  %v13442_v23 = vsel %vm392_vm0, %v13432_v15, %v11716_v10  ;;  %9531 = vmatprep.mubr.msk.bf16.mxu1 %vm392_vm0, %v13422_v48  ;;  %v11662_v45 = vunpack.i.h.bf16 %v11660_v44  ;;  %v11572_v44 = vunpack.i.h.bf16 %v13142_v7 }
 0x308   : > { %16004 = vst [vmem:[#allocation25_spill] sm:$0xff] %v13438_v63  ;;  %16005 = vst [vmem:[#allocation26_spill] sm:$0xff] %v13442_v23  ;;  %v11725_v59 = vpop.permute.xlu1 %11724  ;;  %v2816_v58 = vpack.c.bf16 %v2785_v13, %v2784_v5  ;;  %v11671_v13 = vunpack.i.l.bf16 %v11670_v50 }
 0x309   : > { %v11727_v10 = vunpack.i.h.bf16 %v11725_v59  ;;  %v11726_v56 = vunpack.i.l.bf16 %v11725_v59  ;;  %v2465_v63 = vsel %vm392_vm0, %v13224_v9, %v11662_v45  ;;  %v2787_v45 = vsel %vm392_vm0, %v13410_v42, %v11572_v44  ;;  %v11680_v44 = vpop.permute.xlu0 %11679 }
 0x30a   : > { %3333 = vmatmul.mubr.bf16.gmra.mxu0 %v2494_v51 }
 0x30b   : > { %v13458_v2 = vsel %vm392_vm0, %v13454_v46, %v11727_v10  ;;  %v13462_v0 = vsel %vm392_vm0, %v13452_v37, %v11726_v56  ;;  %9555 = vmatprep.mubr.msk.bf16.mxu0 %vm392_vm0, %v13210_v4  ;;  %v2464_v56 = vsel %vm392_vm0, %v13222_v60, %v11661_v14  ;;  %v11672_v14 = vunpack.i.h.bf16 %v11670_v50 }
 0x30c   : > { %v11735_v51 = vpop.permute.xlu1 %11734  ;;  %v2496_v9 = vpack.c.bf16 %v2465_v63, %v2464_v56  ;;  %v11577_v60 = vunpack.i.h.bf16 %v13140_v49  ;;  %v11576_v63 = vunpack.i.l.bf16 %v13140_v49  ;;  %v2466_v50 = vsel %vm392_vm0, %v13266_v39, %v11671_v13 }
 0x30d   : > { %v11737_v10 = vunpack.i.h.bf16 %v11735_v51  ;;  %v11736_v23 = vunpack.i.l.bf16 %v11735_v51  ;;  %v2628_v51 = vld [vmem:[#allocation3 + $0x152] sm:$0xff]  ;;  %v11581_v13 = vunpack.i.l.bf16 %v13156_v11 }
 0x30e   : > { %3092 = vmatmul.mubr.bf16.gmra.mxu1 %v2816_v58  ;;  %v2786_v58 = vsel %vm392_vm0, %v13408_v54, %v11571_v34  ;;  %v2467_v34 = vsel %vm392_vm0, %v13268_v18, %v11672_v14  ;;  %v2789_v49 = vsel %vm392_vm0, %v13434_v36, %v11577_v60  ;;  %v11582_v14 = vunpack.i.h.bf16 %v13156_v11  ;;  %v11690_v60 = vpop.permute.xlu0 %11689 }
 0x30f   : > { %v13482_v7 = vsel %vm392_vm0, %v13478_v30, %v11737_v10  ;;  %v13486_v5 = vsel %vm392_vm0, %v13476_v12, %v11736_v23  ;;  %9532 = vmatprep.mubr.msk.bf16.mxu1 %vm392_vm0, %v13466_v25  ;;  %v2629_v10 = vld [vmem:[#allocation3 + $0x15a] sm:$0xff]  ;;  %v2818_v23 = vpack.c.bf16 %v2787_v45, %v2786_v58  ;;  %v2498_v56 = vpack.c.bf16 %v2467_v34, %v2466_v50 }
 0x310   : > { %v13498_v59 = vpack.c.bf16 %v2629_v10, %v2628_v51  ;;  %v11681_v58 = vunpack.i.l.bf16 %v11680_v44  ;;  %v2788_v45 = vsel %vm392_vm0, %v13432_v15, %v11576_v63  ;;  %v2630_v51 = vld [vmem:[#allocation3 + $0x16a] sm:$0xff]  ;;  %v2631_v10 = vld [vmem:[#allocation3 + $0x172] sm:$0xff]  ;;  %v11692_v34 = vunpack.i.h.bf16 %v11690_v60 }
 0x311   : > { %v2820_v39 = vpack.c.bf16 %v2789_v49, %v2788_v45  ;;  %v13514_v18 = vpack.c.bf16 %v2631_v10, %v2630_v51  ;;  %v2791_v11 = vsel %vm392_vm0, %v13454_v46, %v11582_v14  ;;  %v2632_v45 = vld [vmem:[#allocation3 + $0x182] sm:$0xff]  ;;  %v2633_v49 = vld [vmem:[#allocation3 + $0x18a] sm:$0xff] }
 0x312   : > { %3341 = vmatmul.mubr.bf16.gmra.mxu0 %v2496_v9  ;;  %v11682_v9 = vunpack.i.h.bf16 %v11680_v44  ;;  %v11691_v44 = vunpack.i.l.bf16 %v11690_v60  ;;  %v2471_v10 = vsel %vm392_vm0, %v13346_v21, %v11692_v34  ;;  %v3478_v60 = vld [vmem:[#allocation3 + $0x32] sm:$0xff] }
 0x313   : > { %9556 = vmatprep.mubr.msk.bf16.mxu0 %vm392_vm0, %v13246_v3 }
 0x314   : > { %v2469_v63 = vsel %vm392_vm0, %v13308_v40, %v11682_v9  ;;  %v13530_v40 = vpack.c.bf16 %v2633_v49, %v2632_v45  ;;  %v11587_v9 = vunpack.i.h.bf16 %v13154_v31  ;;  %v2470_v51 = vsel %vm392_vm0, %v13344_v32, %v11691_v44  ;;  %v3479_v32 = vld [vmem:[#allocation3 + $0x3a] sm:$0xff]  ;;  %v3480_v45 = vld [vmem:[#allocation3 + $0x4a] sm:$0xff]  ;;  %v3481_v49 = vld [vmem:[#allocation3 + $0x52] sm:$0xff] }
 0x315   : > { %v2502_v14 = vpack.c.bf16 %v2471_v10, %v2470_v51  ;;  %v3671_v44 = vpack.c.bf16 %v3479_v32, %v3478_v60  ;;  %v16006_v10 = vpack.c.bf16 %v13180_v26, %v13184_v43  ;;  %v3483_v60 = vld [vmem:[#allocation3 + $0x6a] sm:$0xff] }
 0x316   : > { %3100 = vmatmul.mubr.bf16.gmra.mxu1 %v2818_v23  ;;  %v2468_v23 = vsel %vm392_vm0, %v13306_v16, %v11681_v58  ;;  %v11586_v58 = vunpack.i.l.bf16 %v13154_v31  ;;  %v2793_v31 = vsel %vm392_vm0, %v13478_v30, %v11587_v9  ;;  %v11606_v9 = vunpack.i.l.bf16 %v13192_v61 }
 0x317   : > { %9533 = vmatprep.mubr.msk.bf16.mxu1 %vm392_vm0, %v13498_v59  ;;  %v2500_v50 = vpack.c.bf16 %v2469_v63, %v2468_v23 }
 0x318   : > { %v2792_v63 = vsel %vm392_vm0, %v13476_v12, %v11586_v58 }
 0x319   : > { %v2824_v21 = vpack.c.bf16 %v2793_v31, %v2792_v63 }
 0x31a   : > { %3349 = vmatmul.mubr.bf16.gmra.mxu0 %v2498_v56  ;;  %v2790_v56 = vsel %vm392_vm0, %v13452_v37, %v11581_v13 }
 0x31b   : > { %9557 = vmatprep.mubr.msk.bf16.mxu0 %vm392_vm0, %v13286_v22  ;;  %v2822_v16 = vpack.c.bf16 %v2791_v11, %v2790_v56 }
 0x31e   : > { %3108 = vmatmul.mubr.bf16.gmra.mxu1 %v2820_v39  ;;  %v11700_v39 = vpop.permute.xlu0 %11699 }
 0x31f   : > { %9534 = vmatprep.mubr.msk.bf16.mxu1 %vm392_vm0, %v13514_v18  ;;  %v11702_v13 = vunpack.i.h.bf16 %v11700_v39  ;;  %v11701_v23 = vunpack.i.l.bf16 %v11700_v39 }
 0x321   : > { %v2473_v34 = vsel %vm392_vm0, %v13366_v27, %v11702_v13  ;;  %v3417_v13 = vld [vmem:[#allocation3 + $0x50] sm:$0xff] }
 0x322   : > { %3357 = vmatmul.mubr.bf16.gmra.mxu0 %v2500_v50  ;;  %v2472_v50 = vsel %vm392_vm0, %v13364_v8, %v11701_v23  ;;  %v11710_v56 = vpop.permute.xlu0 %11709  ;;  %v11607_v8 = vunpack.i.h.bf16 %v13192_v61 }
 0x323   : > { %9558 = vmatprep.mubr.msk.bf16.mxu0 %vm392_vm0, %v13326_v29  ;;  %v2504_v12 = vpack.c.bf16 %v2473_v34, %v2472_v50  ;;  %v11712_v30 = vunpack.i.h.bf16 %v11710_v56  ;;  %v11711_v11 = vunpack.i.l.bf16 %v11710_v56 }
 0x324   : > { %v3641_v31 = vsel %vm392_vm0, %v3417_v13, %v11607_v8  ;;  %v16020_v8 = vld [vmem:[#allocation22_spill] sm:$0xff]  ;;  %v13634_v13 = vld [vmem:[#allocation10] sm:$0xff]  }
 0x325   : > { %v2474_v27 = vsel %vm392_vm0, %v13388_v41, %v11711_v11  ;;  %v2475_v58 = vsel %vm392_vm0, %v13390_v1, %v11712_v30  ;;  %v3482_v41 = vld [vmem:[#allocation3 + $0x62] sm:$0xff] }
 0x326   : > { %3116 = vmatmul.mubr.bf16.gmra.mxu1 %v2822_v16  ;;  %v3673_v16 = vpack.c.bf16 %v3481_v49, %v3480_v45  ;;  %v11720_v51 = vpop.permute.xlu0 %11719  ;;  %v2506_v39 = vpack.c.bf16 %v2475_v58, %v2474_v27  ;;  %v3675_v32 = vpack.c.bf16 %v3483_v60, %v3482_v41 }
 0x327   : > { %9535 = vmatprep.mubr.msk.bf16.mxu1 %vm392_vm0, %v13530_v40  ;;  %v11722_v23 = vunpack.i.h.bf16 %v11720_v51  ;;  %v11721_v63 = vunpack.i.l.bf16 %v11720_v51 }
 0x329   : > { %v2476_v26 = vsel %vm392_vm0, %v13408_v54, %v11721_v63  ;;  %v2477_v43 = vsel %vm392_vm0, %v13410_v42, %v11722_v23  ;;  %v16007_v42 = vpack.c.bf16 %v13232_v47, %v13228_v33  ;;  %v16008_v33 = vpack.c.bf16 %v13254_v24, %v13250_v55  ;;  %v16013_v24 = vld [vmem:[#allocation17_spill] sm:$0xff] }
 0x32a   : > { %3365 = vmatmul.mubr.bf16.gmra.mxu0 %v2502_v14  ;;  %v3416_v14 = vld [vmem:[#allocation3 + $0x48] sm:$0xff]  ;;  %v2508_v50 = vpack.c.bf16 %v2477_v43, %v2476_v26  ;;  %v16009_v47 = vpack.c.bf16 %v13276_v20, %v13272_v19  ;;  %v16011_v55 = vpack.c.bf16 %v13316_v35, %v13312_v17  ;;  %v16017_v35 = vld [vmem:[#allocation20_spill] sm:$0xff] }
 0x32b   : > { %9559 = vmatprep.mubr.msk.bf16.mxu0 %vm392_vm0, %v13378_v6  ;;  %v3640_v61 = vsel %vm392_vm0, %v3416_v14, %v11606_v9  ;;  %v16014_v19 = vld [vmem:[#allocation18_spill] sm:$0xff] }
 0x32c   : > { %v3672_v1 = vpack.c.bf16 %v3641_v31, %v3640_v61  ;;  %v16015_v20 = vpack.c.bf16 %v16013_v24, %v16014_v19  ;;  %v16025_v61 = vld [vmem:[#allocation25_spill] sm:$0xff]  ;;  %v16026_v31 = vld [vmem:[#allocation26_spill] sm:$0xff] }
 0x32d   : > { %v16027_v41 = vpack.c.bf16 %v16025_v61, %v16026_v31 }
 0x32e   : > { %3124 = vmatmul.mubr.bf16.gmra.mxu1 %v2824_v21  ;;  %v11730_v21 = vpop.permute.xlu0 %11729 }
 0x32f   : > { %9600 = vmatprep.mubr.msk.bf16.mxu1 %vm392_vm0, %v3671_v44  ;;  %v11732_v34 = vunpack.i.h.bf16 %v11730_v21  ;;  %v11731_v44 = vunpack.i.l.bf16 %v11730_v21 }
 0x331   : > { %v2478_v56 = vsel %vm392_vm0, %v13432_v15, %v11731_v44  ;;  %v2479_v54 = vsel %vm392_vm0, %v13434_v36, %v11732_v34  ;;  %v16028_v34 = vpack.c.bf16 %v13458_v2, %v13462_v0  ;;  %v3444_v0 = vld [vmem:[#allocation3 + $0x198] sm:$0xff] }
 0x332   : > { %3373 = vmatmul.mubr.bf16.gmra.mxu0 %v2504_v12  ;;  %v11740_v12 = vpop.permute.xlu0 %11739  ;;  %v2510_v30 = vpack.c.bf16 %v2479_v54, %v2478_v56 }
 0x333   : > { %9560 = vmatprep.mubr.msk.bf16.mxu0 %vm392_vm0, %v13422_v48  ;;  %v11742_v11 = vunpack.i.h.bf16 %v11740_v12  ;;  %v11741_v45 = vunpack.i.l.bf16 %v11740_v12  ;;  %v3508_v12 = vld [vmem:[#allocation3 + $0x19a] sm:$0xff] }
 0x335   : > { %v2480_v15 = vsel %vm392_vm0, %v13452_v37, %v11741_v45  ;;  %v2481_v36 = vsel %vm392_vm0, %v13454_v46, %v11742_v11  ;;  %v16010_v37 = vpack.c.bf16 %v13294_v53, %v13290_v52 }
 0x336   : > { %3880 = vmatmul.mubr.bf16.vlgmr.msra.gmra.mxu1 %v16006_v10  ;;  %v16022_v10 = vld [vmem:[#allocation23_spill] sm:$0xff] }
 0x337   : > { %9601 = vmatprep.mubr.msk.bf16.mxu1 %vm392_vm0, %v3673_v16  ;;  %v16019_v16 = vld [vmem:[#allocation21_spill] sm:$0xff] }
 0x338   : > { %v16021_v9 = vpack.c.bf16 %v16019_v16, %v16020_v8 }
 0x33a   : > { %3381 = vmatmul.mubr.bf16.gmra.mxu0 %v2506_v39  ;;  %v16023_v39 = vld [vmem:[#allocation24_spill] sm:$0xff] }
 0x33b   : > { %9561 = vmatprep.mubr.msk.bf16.mxu0 %vm392_vm0, %v13466_v25  ;;  %v16024_v14 = vpack.c.bf16 %v16022_v10, %v16023_v39 }
 0x33e   : > { %3888 = vmatmul.mubr.bf16.gmra.mxu1 %v3672_v1 }
 0x33f   : > { %9602 = vmatprep.mubr.msk.bf16.mxu1 %vm392_vm0, %v3675_v32 }
 0x342   : > { %3389 = vmatmul.mubr.bf16.gmra.mxu0 %v2508_v50 }
 0x343   : > { %9562 = vmatprep.mubr.msk.bf16.mxu0 %vm392_vm0, %v13498_v59 }
 0x346   : > { %3896 = vmatmul.mubr.bf16.gmra.mxu1 %v16007_v42  ;;  %v3509_v42 = vld [vmem:[#allocation3 + $0x1a2] sm:$0xff] }
 0x347   : > { %9603 = vmatprep.mubr.msk.bf16.mxu1 %vm392_vm0, %v13150_v28  ;;  %v2512_v28 = vpack.c.bf16 %v2481_v36, %v2480_v15 }
 0x34a   : > { %3397 = vmatmul.mubr.bf16.gmra.mxu0 %v2510_v30 }
 0x34b   : > { %9563 = vmatprep.mubr.msk.bf16.mxu0 %vm392_vm0, %v13514_v18 }
 0x34e   : > { %3904 = vmatmul.mubr.bf16.gmra.mxu1 %v16008_v33  ;;  %v3701_v33 = vpack.c.bf16 %v3509_v42, %v3508_v12 }
 0x34f   : > { %9604 = vmatprep.mubr.msk.bf16.mxu1 %vm392_vm0, %v13172_v38  ;;  %v16012_v38 = vpack.c.bf16 %v13334_v57, %v13330_v62 }
 0x352   : > { %3405 = vmatmul.mubr.bf16.gmra.mxu0 %v2512_v28 }
 0x353   : > { %10549 = vmatprep.mubr.msk.bf16.mxu0 %vm392_vm0, %v13634_v13 }
 0x356   : > { %3912 = vmatmul.mubr.bf16.gmra.mxu1 %v16009_v47  ;;  %v3445_v47 = vld [vmem:[#allocation3 + $0x1a0] sm:$0xff] }
 0x357   : > { %9605 = vmatprep.mubr.msk.bf16.mxu1 %vm392_vm0, %v13210_v4 }
 0x35e   : > { %3920 = vmatmul.mubr.bf16.gmra.mxu1 %v16010_v37 }
 0x35f   : > { %9606 = vmatprep.mubr.msk.bf16.mxu1 %vm392_vm0, %v13246_v3 }
 0x366   : > { %3928 = vmatmul.mubr.bf16.gmra.mxu1 %v16011_v55 }
 0x367   : > { %9607 = vmatprep.mubr.msk.bf16.mxu1 %vm392_vm0, %v13286_v22  ;;  %v16016_v22 = vld [vmem:[#allocation19_spill] sm:$0xff] }
 0x368   : > { %v16018_v46 = vpack.c.bf16 %v16016_v22, %v16017_v35 }
 0x36e   : > { %3936 = vmatmul.mubr.bf16.gmra.mxu1 %v16012_v38 }
 0x36f   : > { %9608 = vmatprep.mubr.msk.bf16.mxu1 %vm392_vm0, %v13326_v29 }
 0x376   : > { %v3005_v4 = vpop.f32.mrf.mxu1  ;;  %3944 = vmatmul.mubr.bf16.gmra.mxu1 %v16015_v20 }
 0x377   : > { %9609 = vmatprep.mubr.msk.bf16.mxu1 %vm392_vm0, %v13378_v6 }
 0x378   : > { %v3007_v3 = vpop.f32.mrf.mxu1 }
 0x37a   : > { %v3008_v52 = vpop.f32.mrf.mxu1 }
 0x37c   : > { %v3010_v53 = vpop.f32.mrf.mxu1 }
 0x37e   : > { %v3013_v17 = vpop.f32.mrf.mxu1  ;;  %3952 = vmatmul.mubr.bf16.gmra.mxu1 %v16018_v46 }
 0x37f   : > { %9610 = vmatprep.mubr.msk.bf16.mxu1 %vm392_vm0, %v13422_v48 }
 0x380   : > { %v3015_v29 = vpop.f32.mrf.mxu1 }
 0x382   : > { %v3016_v62 = vpop.f32.mrf.mxu1 }
 0x384   : > { %v3018_v57 = vpop.f32.mrf.mxu1 }
 0x386   : > { %v3021_v49 = vpop.f32.mrf.mxu1  ;;  %3960 = vmatmul.mubr.bf16.gmra.mxu1 %v16021_v9 }
 0x387   : > { %9611 = vmatprep.mubr.msk.bf16.mxu1 %vm392_vm0, %v13466_v25 }
 0x388   : > { %v3023_v6 = vpop.f32.mrf.mxu1 }
 0x38a   : > { %v3024_v27 = vpop.f32.mrf.mxu1 }
 0x38c   : > { %v3026_v58 = vpop.f32.mrf.mxu1 }
 0x38e   : > { %v3029_v51 = vpop.f32.mrf.mxu1  ;;  %3968 = vmatmul.mubr.bf16.gmra.mxu1 %v16024_v14 }
 0x38f   : > { %9612 = vmatprep.mubr.msk.bf16.mxu1 %vm392_vm0, %v13498_v59 }
 0x390   : > { %v3031_v48 = vpop.f32.mrf.mxu1 }
 0x392   : > { %v3032_v23 = vpop.f32.mrf.mxu1 }
 0x394   : > { %v3034_v63 = vpop.f32.mrf.mxu1 }
 0x396   : > { %v13638_v25 = vpop.f32.mrf.mxu1  ;;  %3976 = vmatmul.mubr.bf16.gmra.mxu1 %v16027_v41 }
 0x397   : > { %9613 = vmatprep.mubr.msk.bf16.mxu1 %vm392_vm0, %v13514_v18  ;;  %v11745_v18 = vpop.permute.xlu1 %11744 }
 0x398   : > { %v3039_v60 = vpop.f32.mrf.mxu1  ;;  %v11747_v15 = vunpack.i.h.bf16 %v11745_v18  ;;  %v11746_v36 = vunpack.i.l.bf16 %v11745_v18 }
 0x39a   : > { %v3286_v1 = vpop.f32.mrf.mxu0  ;;  %v13645_v59 = vpop.f32.mrf.mxu1  ;;  %v3668_v24 = vsel %vm392_vm0, %v3444_v0, %v11746_v36 }
 0x39b   : > { %v13647_v26 = vadd.f32 %v3286_v1, %v3005_v4  ;;  %v3669_v4 = vsel %vm392_vm0, %v3445_v47, %v11747_v15 }
 0x39c   : > { %v3288_v43 = vpop.f32.mrf.mxu0  ;;  %v3042_v32 = vpop.f32.mrf.mxu1 }
 0x39e   : > { %v3289_v21 = vpop.f32.mrf.mxu0  ;;  %v13649_v50 = vpop.f32.mrf.mxu1  ;;  %3984 = vmatmul.mubr.bf16.gmra.mxu1 %v16028_v34 }
 0x39f   : > { %v13654_v44 = vadd.f32 %v3289_v21, %v3008_v52  ;;  %9614 = vmatprep.mubr.msk.bf16.mxu1 %vm392_vm0, %v13530_v40  ;;  %v16029_v40 = vpack.c.bf16 %v13482_v7, %v13486_v5  ;;  %v3700_v52 = vpack.c.bf16 %v3669_v4, %v3668_v24 }
 0x3a0   : > { %v3291_v56 = vpop.f32.mrf.mxu0  ;;  %v3047_v54 = vpop.f32.mrf.mxu1 }
 0x3a2   : > { %v3294_v30 = vpop.f32.mrf.mxu0  ;;  %v3048_v11 = vpop.f32.mrf.mxu1 }
 0x3a3   : > { %v13658_v45 = vadd.f32 %v3294_v30, %v3013_v17 }
 0x3a4   : > { %v3296_v28 = vpop.f32.mrf.mxu0  ;;  %v3050_v2 = vpop.f32.mrf.mxu1 }
 0x3a6   : > { %v3297_v37 = vpop.f32.mrf.mxu0  ;;  %v3053_v55 = vpop.f32.mrf.mxu1  ;;  %3992 = vmatmul.mubr.bf16.gmra.mxu1 %v16029_v40 }
 0x3a7   : > { %v13663_v38 = vadd.f32 %v3297_v37, %v3016_v62  ;;  %9615 = vmatprep.mubr.msk.bf16.mxu1 %vm392_vm0, %v3701_v33 }
 0x3a8   : > { %v3299_v19 = vpop.f32.mrf.mxu0  ;;  %v3055_v20 = vpop.f32.mrf.mxu1 }
 0x3aa   : > { %v3302_v3 = vpop.f32.mrf.mxu0  ;;  %v3056_v53 = vpop.f32.mrf.mxu1 }
 0x3ab   : > { %v13668_v17 = vadd.f32 %v3302_v3, %v3021_v49 }
 0x3ac   : > { %v3304_v22 = vpop.f32.mrf.mxu0  ;;  %v3058_v35 = vpop.f32.mrf.mxu1 }
 0x3ad   : > { %v4130_v22 = vld [vmem:[%s15955_s6] sm:$0xff] }
 0x3ae   : > { %v3305_v46 = vpop.f32.mrf.mxu0  ;;  %v3061_v7 = vpop.f32.mrf.mxu1  ;;  %4000 = vmatmul.mubr.bf16.gmra.mxu1 %v3700_v52  ;;  %4135 = vperm.xlu0 %11748, %v4130_v22   ;;  %v13733_v22 = vld [vmem:[#allocation9] ss:$0 sm:$0xff] }
 0x3af   : > { %v13670_v5 = vadd.f32 %v3305_v46, %v3024_v27  ;;  %10543 = vmatprep.mubr.msk.bf16.mxu1 %vm392_vm0, %v13634_v13 }
 0x3b0   : > { %v3307_v29 = vpop.f32.mrf.mxu0  ;;  %v3063_v62 = vpop.f32.mrf.mxu1 }
 0x3b2   : > { %v3310_v57 = vpop.f32.mrf.mxu0  ;;  %v3064_v16 = vpop.f32.mrf.mxu1 }
 0x3b3   : > { %v13674_v8 = vadd.f32 %v3310_v57, %v3029_v51 }
 0x3b4   : > { %v3312_v9 = vpop.f32.mrf.mxu0  ;;  %v3066_v6 = vpop.f32.mrf.mxu1 }
 0x3b6   : > { %v3313_v49 = vpop.f32.mrf.mxu0  ;;  %v3069_v58 = vpop.f32.mrf.mxu1 }
 0x3b7   : > { %v13676_v10 = vadd.f32 %v3313_v49, %v3032_v23 }
 0x3b8   : > { %v3315_v39 = vpop.f32.mrf.mxu0  ;;  %v3071_v14 = vpop.f32.mrf.mxu1 }
 0x3ba   : > { %v3318_v48 = vpop.f32.mrf.mxu0  ;;  %v3072_v27 = vpop.f32.mrf.mxu1 }
 0x3bb   : > { %v13679_v63 = vadd.f32 %v3318_v48, %v13638_v25 }
 0x3bc   : > { %v3320_v61 = vpop.f32.mrf.mxu0  ;;  %v3074_v31 = vpop.f32.mrf.mxu1 }
 0x3be   : > { %v3321_v41 = vpop.f32.mrf.mxu0  ;;  %v3077_v60 = vpop.f32.mrf.mxu1 }
 0x3bf   : > { %v13682_v51 = vadd.f32 %v3321_v41, %v13645_v59 }
 0x3c0   : > { %v3323_v1 = vpop.f32.mrf.mxu0  ;;  %v3079_v43 = vpop.f32.mrf.mxu1 }
 0x3c2   : > { %v3326_v32 = vpop.f32.mrf.mxu0  ;;  %v3080_v21 = vpop.f32.mrf.mxu1 }
 0x3c3   : > { %v13685_v23 = vadd.f32 %v3326_v32, %v13649_v50 }
 0x3c4   : > { %v3328_v34 = vpop.f32.mrf.mxu0  ;;  %v3082_v18 = vpop.f32.mrf.mxu1 }
 0x3c6   : > { %v3329_v56 = vpop.f32.mrf.mxu0  ;;  %v3085_v54 = vpop.f32.mrf.mxu1 }
 0x3c7   : > { %v13687_v25 = vadd.f32 %v3329_v56, %v3048_v11 }
 0x3c8   : > { %v3331_v12 = vpop.f32.mrf.mxu0  ;;  %v3087_v42 = vpop.f32.mrf.mxu1 }
 0x3c9   : > { %v4132_v12 = vld [vmem:[%s15955_s6 + $0x10] sm:$0x7] }
 0x3ca   : > { %v3334_v30 = vpop.f32.mrf.mxu0  ;;  %v3088_v15 = vpop.f32.mrf.mxu1 }
 0x3cb   : > { %v13689_v36 = vadd.f32 %v3334_v30, %v3053_v55 }
 0x3cc   : > { %v3336_v59 = vpop.f32.mrf.mxu0  ;;  %v3090_v33 = vpop.f32.mrf.mxu1 }
 0x3ce   : > { %v3337_v28 = vpop.f32.mrf.mxu0  ;;  %v3093_v2 = vpop.f32.mrf.mxu1 }
 0x3cf   : > { %v13691_v0 = vadd.f32 %v3337_v28, %v3056_v53 }
 0x3d0   : > { %v3339_v50 = vpop.f32.mrf.mxu0  ;;  %v3095_v47 = vpop.f32.mrf.mxu1 }
 0x3d2   : > { %v3342_v37 = vpop.f32.mrf.mxu0  ;;  %v3096_v40 = vpop.f32.mrf.mxu1 }
 0x3d3   : > { %v13693_v4 = vadd.f32 %v3342_v37, %v3061_v7 }
 0x3d4   : > { %v3344_v11 = vpop.f32.mrf.mxu0  ;;  %v3098_v24 = vpop.f32.mrf.mxu1 }
 0x3d6   : > { %v3345_v19 = vpop.f32.mrf.mxu0  ;;  %v3101_v20 = vpop.f32.mrf.mxu1 }
 0x3d7   : > { %v13695_v3 = vadd.f32 %v3345_v19, %v3064_v16 }
 0x3d8   : > { %v3347_v55 = vpop.f32.mrf.mxu0  ;;  %v3103_v52 = vpop.f32.mrf.mxu1 }
 0x3da   : > { %v3350_v53 = vpop.f32.mrf.mxu0  ;;  %v3104_v35 = vpop.f32.mrf.mxu1 }
 0x3db   : > { %v13700_v46 = vadd.f32 %v3350_v53, %v3069_v58 }
 0x3dc   : > { %v3352_v29 = vpop.f32.mrf.mxu0  ;;  %v3106_v7 = vpop.f32.mrf.mxu1 }
 0x3de   : > { %v3353_v62 = vpop.f32.mrf.mxu0  ;;  %v3109_v57 = vpop.f32.mrf.mxu1 }
 0x3df   : > { %v13702_v9 = vadd.f32 %v3353_v62, %v3072_v27  ;;  %v4131_v27 = vld [vmem:[%s15955_s6 + $0x8] sm:$0xff] }
 0x3e0   : > { %v3355_v6 = vpop.f32.mrf.mxu0  ;;  %v3111_v16 = vpop.f32.mrf.mxu1  ;;  %4140 = vperm.xlu1 %11749, %v4131_v27  }
 0x3e2   : > { %v3358_v49 = vpop.f32.mrf.mxu0  ;;  %v13704_v39 = vpop.f32.mrf.mxu1 }
 0x3e3   : > { %v13706_v14 = vadd.f32 %v3358_v49, %v3077_v60 }
 0x3e4   : > { %v3360_v48 = vpop.f32.mrf.mxu0  ;;  %v3114_v61 = vpop.f32.mrf.mxu1  ;;  %4145 = vperm.xlu1 %11749, %v4132_v12  }
 0x3e6   : > { %v3361_v31 = vpop.f32.mrf.mxu0  ;;  %v13708_v41 = vpop.f32.mrf.mxu1 }
 0x3e7   : > { %v13710_v58 = vadd.f32 %v3361_v31, %v3080_v21 }
 0x3e8   : > { %v3363_v1 = vpop.f32.mrf.mxu0  ;;  %v3119_v43 = vpop.f32.mrf.mxu1 }
 0x3ea   : > { %v3366_v32 = vpop.f32.mrf.mxu0  ;;  %v13715_v34 = vpop.f32.mrf.mxu1 }
 0x3eb   : > { %v13717_v18 = vadd.f32 %v3366_v32, %v3085_v54 }
 0x3ec   : > { %v3368_v60 = vpop.f32.mrf.mxu0  ;;  %v3122_v56 = vpop.f32.mrf.mxu1 }
 0x3ee   : > { %v3369_v21 = vpop.f32.mrf.mxu0  ;;  %v13722_v42 = vpop.f32.mrf.mxu1 }
 0x3ef   : > { %v13724_v30 = vadd.f32 %v3369_v21, %v3088_v15 }
 0x3f0   : > { %v3371_v59 = vpop.f32.mrf.mxu0  ;;  %v3127_v33 = vpop.f32.mrf.mxu1 }
 0x3f2   : > { %v3374_v28 = vpop.f32.mrf.mxu0  ;;  %v13726_v50 = vpop.f32.mrf.mxu1 }
 0x3f3   : > { %v13728_v47 = vadd.f32 %v3374_v28, %v3093_v2 }
 0x3f4   : > { %v3376_v54 = vpop.f32.mrf.mxu0  ;;  %v3130_v37 = vpop.f32.mrf.mxu1 }
 0x3f6   : > { %v3377_v11 = vpop.f32.mrf.mxu0  ;;  %v3881_v24 = vpop.f32.mrf.mxu1 }
 0x3f7   : > { %v13730_v19 = vadd.f32 %v3377_v11, %v3096_v40  ;;  %v4008_v55 = vadd.f32 %v3881_v24, %v13647_v26  ;;  %v13754_v24 = vld [vmem:[#allocation10 + $0x8] ss:$0 sps:$4 sm:$0x33]  }
 0x3f8   : > { %v3379_v52 = vpop.f32.mrf.mxu0  ;;  %v3883_v15 = vpop.f32.mrf.mxu1 }
 0x3f9   : > { %v4047_v62 = vadd.f32 %v13733_v22, %v4008_v55 }
 0x3fa   : > { %v3382_v53 = vpop.f32.mrf.mxu0  ;;  %v3884_v29 = vpop.f32.mrf.mxu1 }
 0x3fb   : > { %v13735_v7 = vadd.f32 %v3382_v53, %v3101_v20  ;;  %v4009_v2 = vadd.f32 %v3884_v29, %v13654_v44  ;;  %v4079_v61 = vmax.f32 %v4047_v62, 0.0 }
 0x3fc   : > { %v3384_v6 = vpop.f32.mrf.mxu0  ;;  %v3886_v16 = vpop.f32.mrf.mxu1 }
 0x3fd   : > { %v4048_v49 = vadd.f32 %v13733_v22, %v4009_v2 }
 0x3fe   : > { %v3385_v40 = vpop.f32.mrf.mxu0  ;;  %v3889_v48 = vpop.f32.mrf.mxu1 }
 0x3ff   : > { %v13740_v26 = vadd.f32 %v3385_v40, %v3104_v35  ;;  %v4080_v31 = vmax.f32 %v4048_v49, 0.0  ;;  %v4010_v1 = vadd.f32 %v3889_v48, %v13658_v45 }
 0x400   : > { %v3387_v43 = vpop.f32.mrf.mxu0  ;;  %v3891_v27 = vpop.f32.mrf.mxu1 }
 0x401   : > { %v4111_v20 = vpack.c.bf16 %v4080_v31, %v4079_v61  ;;  %v4049_v44 = vadd.f32 %v13733_v22, %v4010_v1 }
 0x402   : > { %v3390_v32 = vpop.f32.mrf.mxu0  ;;  %v3892_v60 = vpop.f32.mrf.mxu1 }
 0x403   : > { %v13743_v56 = vadd.f32 %v3390_v32, %v3109_v57  ;;  %v4011_v12 = vadd.f32 %v3892_v60, %v13663_v38  ;;  %11341 = vmatprep.subr.msk.bf16.mxu1 %vm392_vm0, %v4111_v20  ;;  %v4163_v21 = vsel %vm392_vm0, %v4111_v20, 0  ;;  %v4081_v54 = vmax.f32 %v4049_v44, 0.0 }
 0x404   : > { %v3392_v35 = vpop.f32.mrf.mxu0  ;;  %v3894_v59 = vpop.f32.mrf.mxu1  ;;  %10542 = vmatpush3.bf16.xpose.msra.mxu1 %v4163_v21 }
 0x405   : > { %v4050_v45 = vadd.f32 %v13733_v22, %v4011_v12 }
 0x406   : > { %v3393_v33 = vpop.f32.mrf.mxu0  ;;  %v3897_v28 = vpop.f32.mrf.mxu1 }
 0x407   : > { %v13751_v37 = vadd.f32 %v3393_v33, %v13704_v39  ;;  %v4082_v57 = vmax.f32 %v4050_v45, 0.0  ;;  %v4012_v11 = vadd.f32 %v3897_v28, %v13668_v17 }
 0x408   : > { %v3395_v38 = vpop.f32.mrf.mxu0  ;;  %v3899_v55 = vpop.f32.mrf.mxu1 }
 0x409   : > { %v4112_v52 = vpack.c.bf16 %v4082_v57, %v4081_v54  ;;  %v4051_v62 = vadd.f32 %v13733_v22, %v4012_v11 }
 0x40a   : > { %v3398_v15 = vpop.f32.mrf.mxu0  ;;  %v3900_v53 = vpop.f32.mrf.mxu1 }
 0x40b   : > { %v13757_v29 = vadd.f32 %v3398_v15, %v13708_v41  ;;  %v4013_v2 = vadd.f32 %v3900_v53, %v13670_v5  ;;  %10544 = vmatmul.mubr.msk.bf16.vlgmr.msra.gmra.mxu1 %vm392_vm0, %v13754_v24  ;;  %11342 = vmatprep.subr.msk.bf16.mxu0 %vm392_vm0, %v4112_v52  ;;  %v4214_v17 = vsel %vm392_vm0, %v4112_v52, 0  ;;  %v4083_v40 = vmax.f32 %v4051_v62, 0.0 }
 0x40c   : > { %v3400_v39 = vpop.f32.mrf.mxu0  ;;  %v3902_v6 = vpop.f32.mrf.mxu1  ;;  %10548 = vmatpush3.bf16.xpose.msra.mxu0 %v4214_v17  ;;  %10609 = vmatprep.mubr.msk.bf16.mxu1 %vm392_vm0, %v13634_v13 }
 0x40d   : > { %v4052_v41 = vadd.f32 %v13733_v22, %v4013_v2 }
 0x40e   : > { %v3401_v16 = vpop.f32.mrf.mxu0  ;;  %v3905_v49 = vpop.f32.mrf.mxu1 }
 0x40f   : > { %v13769_v5 = vadd.f32 %v3401_v16, %v13715_v34  ;;  %v4084_v48 = vmax.f32 %v4052_v41, 0.0  ;;  %v4014_v61 = vadd.f32 %v3905_v49, %v13674_v8 }
 0x410   : > { %v3403_v31 = vpop.f32.mrf.mxu0  ;;  %v3907_v1 = vpop.f32.mrf.mxu1 }
 0x411   : > { %v4113_v43 = vpack.c.bf16 %v4084_v48, %v4083_v40  ;;  %v4053_v60 = vadd.f32 %v13733_v22, %v4014_v61 }
 0x412   : > { %v3406_v27 = vpop.f32.mrf.mxu0  ;;  %v3908_v20 = vpop.f32.mrf.mxu1 }
 0x413   : > { %v13773_v32 = vadd.f32 %v3406_v27, %v13722_v42  ;;  %v4015_v44 = vadd.f32 %v3908_v20, %v13676_v10  ;;  %10550 = vmatmul.mubr.msk.bf16.vlgmr.msra.gmra.mxu0 %vm392_vm0, %v13754_v24  ;;  %11343 = vmatprep.subr.msk.bf16.mxu0 %vm392_vm0, %v4113_v43  ;;  %v4265_v34 = vsel %vm392_vm0, %v4113_v43, 0  ;;  %v4085_v59 = vmax.f32 %v4053_v60, 0.0 }
 0x414   : > { %v3408_v8 = vpop.f32.mrf.mxu0  ;;  %v3910_v12 = vpop.f32.mrf.mxu1  ;;  %10554 = vmatpush3.bf16.xpose.msra.mxu0 %v4265_v34  ;;  %10555 = vmatprep.mubr.msk.bf16.mxu0 %vm392_vm0, %v13634_v13 }
 0x415   : > { %v4054_v42 = vadd.f32 %v13733_v22, %v4015_v44 }
 0x416   : > { %v3409_v21 = vpop.f32.mrf.mxu0  ;;  %v3913_v35 = vpop.f32.mrf.mxu1 }
 0x417   : > { %v13785_v10 = vadd.f32 %v3409_v21, %v13726_v50  ;;  %v4086_v45 = vmax.f32 %v4054_v42, 0.0  ;;  %v4016_v33 = vadd.f32 %v3913_v35, %v13679_v63 }
 0x418   : > { %v3411_v28 = vpop.f32.mrf.mxu0  ;;  %v3915_v54 = vpop.f32.mrf.mxu1 }
 0x419   : > { %v4114_v57 = vpack.c.bf16 %v4086_v45, %v4085_v59  ;;  %v4055_v38 = vadd.f32 %v13733_v22, %v4016_v33 }
 0x41a   : > { %v3916_v11 = vpop.f32.mrf.mxu1 }
 0x41b   : > { %v4017_v55 = vadd.f32 %v3916_v11, %v13682_v51  ;;  %11344 = vmatprep.subr.msk.bf16.mxu0 %vm392_vm0, %v4114_v57  ;;  %10556 = vmatmul.mubr.msk.bf16.vlgmr.msra.gmra.mxu0 %vm392_vm0, %v13754_v24  ;;  %v4316_v52 = vsel %vm392_vm0, %v4114_v57, 0  ;;  %v4087_v53 = vmax.f32 %v4055_v38, 0.0 }
 0x41c   : > { %v3918_v50 = vpop.f32.mrf.mxu1  ;;  %10560 = vmatpush3.bf16.xpose.msra.mxu0 %v4316_v52  ;;  %10561 = vmatprep.mubr.msk.bf16.mxu0 %vm392_vm0, %v13634_v13 }
 0x41d   : > { %v4056_v63 = vadd.f32 %v13733_v22, %v4017_v55 }
 0x41e   : > { %v3921_v15 = vpop.f32.mrf.mxu1 }
 0x41f   : > { %v4088_v62 = vmax.f32 %v4056_v63, 0.0  ;;  %v4018_v2 = vadd.f32 %v3921_v15, %v13685_v23 }
 0x420   : > { %v3923_v51 = vpop.f32.mrf.mxu1 }
 0x421   : > { %v4115_v17 = vpack.c.bf16 %v4088_v62, %v4087_v53  ;;  %v4057_v6 = vadd.f32 %v13733_v22, %v4018_v2 }
 0x422   : > { %v3924_v39 = vpop.f32.mrf.mxu1 }
 0x423   : > { %v4019_v41 = vadd.f32 %v3924_v39, %v13687_v25  ;;  %11345 = vmatprep.subr.msk.bf16.mxu0 %vm392_vm0, %v4115_v17  ;;  %10562 = vmatmul.mubr.msk.bf16.vlgmr.msra.gmra.mxu0 %vm392_vm0, %v13754_v24  ;;  %v4367_v16 = vsel %vm392_vm0, %v4115_v17, 0  ;;  %v4089_v48 = vmax.f32 %v4057_v6, 0.0 }
 0x424   : > { %v3926_v49 = vpop.f32.mrf.mxu1  ;;  %10566 = vmatpush3.bf16.xpose.msra.mxu0 %v4367_v16  ;;  %10567 = vmatprep.mubr.msk.bf16.mxu0 %vm392_vm0, %v13634_v13 }
 0x425   : > { %v4058_v23 = vadd.f32 %v13733_v22, %v4019_v41 }
 0x426   : > { %v3929_v40 = vpop.f32.mrf.mxu1 }
 0x427   : > { %v4090_v61 = vmax.f32 %v4058_v23, 0.0  ;;  %v4020_v31 = vadd.f32 %v3929_v40, %v13689_v36 }
 0x428   : > { %v3931_v25 = vpop.f32.mrf.mxu1 }
 0x429   : > { %v4116_v1 = vpack.c.bf16 %v4090_v61, %v4089_v48  ;;  %v4059_v27 = vadd.f32 %v13733_v22, %v4020_v31 }
 0x42a   : > { %v3932_v43 = vpop.f32.mrf.mxu1 }
 0x42b   : > { %v4021_v20 = vadd.f32 %v3932_v43, %v13691_v0  ;;  %11346 = vmatprep.subr.msk.bf16.mxu0 %vm392_vm0, %v4116_v1  ;;  %10568 = vmatmul.mubr.msk.bf16.vlgmr.msra.gmra.mxu0 %vm392_vm0, %v13754_v24  ;;  %v4418_v60 = vsel %vm392_vm0, %v4116_v1, 0  ;;  %v4091_v8 = vmax.f32 %v4059_v27, 0.0 }
 0x42c   : > { %v3934_v44 = vpop.f32.mrf.mxu1  ;;  %10572 = vmatpush3.bf16.xpose.msra.mxu0 %v4418_v60  ;;  %10573 = vmatprep.mubr.msk.bf16.mxu0 %vm392_vm0, %v13634_v13 }
 0x42d   : > { %v4060_v36 = vadd.f32 %v13733_v22, %v4021_v20 }
 0x42e   : > { %v3937_v34 = vpop.f32.mrf.mxu1 }
 0x42f   : > { %v4092_v12 = vmax.f32 %v4060_v36, 0.0  ;;  %v4022_v42 = vadd.f32 %v3937_v34, %v13693_v4 }
 0x430   : > { %v3939_v0 = vpop.f32.mrf.mxu1 }
 0x431   : > { %v4117_v21 = vpack.c.bf16 %v4092_v12, %v4091_v8  ;;  %v4061_v59 = vadd.f32 %v13733_v22, %v4022_v42 }
 0x432   : > { %v3940_v35 = vpop.f32.mrf.mxu1 }
 0x433   : > { %v4023_v45 = vadd.f32 %v3940_v35, %v13695_v3  ;;  %11347 = vmatprep.subr.msk.bf16.mxu0 %vm392_vm0, %v4117_v21  ;;  %10574 = vmatmul.mubr.msk.bf16.vlgmr.msra.gmra.mxu0 %vm392_vm0, %v13754_v24  ;;  %v4469_v33 = vsel %vm392_vm0, %v4117_v21, 0  ;;  %v4093_v57 = vmax.f32 %v4061_v59, 0.0 }
 0x434   : > { %v3942_v28 = vpop.f32.mrf.mxu1  ;;  %10578 = vmatpush3.bf16.xpose.msra.mxu0 %v4469_v33  ;;  %10579 = vmatprep.mubr.msk.bf16.mxu0 %vm392_vm0, %v13634_v13 }
 0x435   : > { %v4062_v4 = vadd.f32 %v13733_v22, %v4023_v45 }
 0x436   : > { %v3945_v54 = vpop.f32.mrf.mxu1 }
 0x437   : > { %v4094_v11 = vmax.f32 %v4062_v4, 0.0  ;;  %v4024_v38 = vadd.f32 %v3945_v54, %v13700_v46 }
 0x438   : > { %v3947_v3 = vpop.f32.mrf.mxu1 }
 0x439   : > { %v4118_v55 = vpack.c.bf16 %v4094_v11, %v4093_v57  ;;  %v4063_v50 = vadd.f32 %v13733_v22, %v4024_v38 }
 0x43a   : > { %v3948_v52 = vpop.f32.mrf.mxu1 }
 0x43b   : > { %v4025_v63 = vadd.f32 %v3948_v52, %v13702_v9  ;;  %11348 = vmatprep.subr.msk.bf16.mxu0 %vm392_vm0, %v4118_v55  ;;  %10580 = vmatmul.mubr.msk.bf16.vlgmr.msra.gmra.mxu0 %vm392_vm0, %v13754_v24  ;;  %v4520_v15 = vsel %vm392_vm0, %v4118_v55, 0  ;;  %v4095_v2 = vmax.f32 %v4063_v50, 0.0 }
 0x43c   : > { %v3950_v53 = vpop.f32.mrf.mxu1  ;;  %10584 = vmatpush3.bf16.xpose.msra.mxu0 %v4520_v15  ;;  %10585 = vmatprep.mubr.msk.bf16.mxu0 %vm392_vm0, %v13634_v13 }
 0x43d   : > { %v4064_v46 = vadd.f32 %v13733_v22, %v4025_v63 }
 0x43e   : > { %v3953_v62 = vpop.f32.mrf.mxu1 }
 0x43f   : > { %v4096_v51 = vmax.f32 %v4064_v46, 0.0  ;;  %v4026_v17 = vadd.f32 %v3953_v62, %v13706_v14 }
 0x440   : > { %v3955_v9 = vpop.f32.mrf.mxu1 }
 0x441   : > { %v4119_v39 = vpack.c.bf16 %v4096_v51, %v4095_v2  ;;  %v4065_v41 = vadd.f32 %v13733_v22, %v4026_v17 }
 0x442   : > { %v3956_v6 = vpop.f32.mrf.mxu1 }
 0x443   : > { %v4027_v16 = vadd.f32 %v3956_v6, %v13710_v58  ;;  %11349 = vmatprep.subr.msk.bf16.mxu0 %vm392_vm0, %v4119_v39  ;;  %10586 = vmatmul.mubr.msk.bf16.vlgmr.msra.gmra.mxu0 %vm392_vm0, %v13754_v24  ;;  %v4571_v49 = vsel %vm392_vm0, %v4119_v39, 0  ;;  %v4097_v48 = vmax.f32 %v4065_v41, 0.0 }
 0x444   : > { %v3958_v23 = vpop.f32.mrf.mxu1  ;;  %10590 = vmatpush3.bf16.xpose.msra.mxu0 %v4571_v49  ;;  %10591 = vmatprep.mubr.msk.bf16.mxu0 %vm392_vm0, %v13634_v13 }
 0x445   : > { %v4066_v14 = vadd.f32 %v13733_v22, %v4027_v16 }
 0x446   : > { %v3961_v40 = vpop.f32.mrf.mxu1 }
 0x447   : > { %v4098_v61 = vmax.f32 %v4066_v14, 0.0  ;;  %v4028_v31 = vadd.f32 %v3961_v40, %v13717_v18 }
 0x448   : > { %v3963_v58 = vpop.f32.mrf.mxu1 }
 0x449   : > { %v4120_v25 = vpack.c.bf16 %v4098_v61, %v4097_v48  ;;  %v4067_v43 = vadd.f32 %v13733_v22, %v4028_v31 }
 0x44a   : > { %v3964_v1 = vpop.f32.mrf.mxu1 }
 0x44b   : > { %v4029_v27 = vadd.f32 %v3964_v1, %v13724_v30  ;;  %11350 = vmatprep.subr.msk.bf16.mxu0 %vm392_vm0, %v4120_v25  ;;  %10592 = vmatmul.mubr.msk.bf16.vlgmr.msra.gmra.mxu0 %vm392_vm0, %v13754_v24  ;;  %v4622_v20 = vsel %vm392_vm0, %v4120_v25, 0  ;;  %v4099_v36 = vmax.f32 %v4067_v43, 0.0 }
 0x44c   : > { %v3966_v60 = vpop.f32.mrf.mxu1  ;;  %10596 = vmatpush3.bf16.xpose.msra.mxu0 %v4622_v20  ;;  %10597 = vmatprep.mubr.msk.bf16.mxu0 %vm392_vm0, %v13634_v13 }
 0x44d   : > { %v4068_v18 = vadd.f32 %v13733_v22, %v4029_v27 }
 0x44e   : > { %v3969_v44 = vpop.f32.mrf.mxu1 }
 0x44f   : > { %v4100_v34 = vmax.f32 %v4068_v18, 0.0  ;;  %v4030_v8 = vadd.f32 %v3969_v44, %v13728_v47  ;;  %v16030_v44 = vmov 0.0  }
 0x450   : > { %v3971_v30 = vpop.f32.mrf.mxu1 }
 0x451   : > { %v4121_v12 = vpack.c.bf16 %v4100_v34, %v4099_v36  ;;  %v4069_v0 = vadd.f32 %v13733_v22, %v4030_v8 }
 0x452   : > { %v3972_v42 = vpop.f32.mrf.mxu1 }
 0x453   : > { %v4031_v21 = vadd.f32 %v3972_v42, %v13730_v19  ;;  %11351 = vmatprep.subr.msk.bf16.mxu0 %vm392_vm0, %v4121_v12  ;;  %10598 = vmatmul.mubr.msk.bf16.vlgmr.msra.gmra.mxu0 %vm392_vm0, %v13754_v24  ;;  %v4673_v35 = vsel %vm392_vm0, %v4121_v12, 0  ;;  %v4101_v33 = vmax.f32 %v4069_v0, 0.0  ;;  %v13947_v12 = vld [vmem:[%s15956_s7 + $0x20] sm:$0xff]  ;;  %v13971_v42 = vld [vmem:[%s15956_s7 + $0x10] sm:$0xff]  ;;  %v13982_v0 = vld [vmem:[%s15956_s7 + $0x8] sm:$0xff] }
 0x454   : > { %v3974_v59 = vpop.f32.mrf.mxu1  ;;  %10602 = vmatpush3.bf16.xpose.msra.mxu0 %v4673_v35  ;;  %10603 = vmatprep.mubr.msk.bf16.mxu0 %vm392_vm0, %v13634_v13 }
 0x455   : > { %v4070_v47 = vadd.f32 %v13733_v22, %v4031_v21  ;;  %v13993_v21 = vld [vmem:[%s15956_s7] sm:$0xff]  ;;  %v14007_v59 = vpop.permute.xlu0 %4135 }
 0x456   : > { %v3977_v45 = vpop.f32.mrf.mxu1 }
 0x457   : > { %v4102_v28 = vmax.f32 %v4070_v47, 0.0  ;;  %v4032_v4 = vadd.f32 %v3977_v45, %v13735_v7 }
 0x458   : > { %v3979_v19 = vpop.f32.mrf.mxu1 }
 0x459   : > { %v4122_v54 = vpack.c.bf16 %v4102_v28, %v4101_v33  ;;  %v4071_v11 = vadd.f32 %v13733_v22, %v4032_v4 }
 0x45a   : > { %v3980_v57 = vpop.f32.mrf.mxu1 }
 0x45b   : > { %v4033_v38 = vadd.f32 %v3980_v57, %v13740_v26  ;;  %11352 = vmatprep.subr.msk.bf16.mxu1 %vm392_vm0, %v4122_v54  ;;  %v4724_v3 = vsel %vm392_vm0, %v4122_v54, 0  ;;  %10604 = vmatmul.mubr.msk.bf16.vlgmr.msra.gmra.mxu0 %vm392_vm0, %v13754_v24  ;;  %v4103_v50 = vmax.f32 %v4071_v11, 0.0  ;;  %v14009_v45 = vpop.permute.xlu1 %4140 }
 0x45c   : > { %v3982_v55 = vpop.f32.mrf.mxu1  ;;  %10608 = vmatpush3.bf16.xpose.msra.mxu1 %v4724_v3  ;;  %10615 = vmatprep.mubr.msk.bf16.mxu0 %vm392_vm0, %v13634_v13 }
 0x45d   : > { %v4072_v7 = vadd.f32 %v13733_v22, %v4033_v38 }
 0x45e   : > { %v3985_v52 = vpop.f32.mrf.mxu1 }
 0x45f   : > { %v4104_v63 = vmax.f32 %v4072_v7, 0.0  ;;  %v4034_v15 = vadd.f32 %v3985_v52, %v13743_v56  ;;  %v14019_v57 = vpop.permute.xlu1 %4145 }
 0x460   : > { %v3987_v26 = vpop.f32.mrf.mxu1 }
 0x461   : > { %v4123_v53 = vpack.c.bf16 %v4104_v63, %v4103_v50  ;;  %v4073_v62 = vadd.f32 %v13733_v22, %v4034_v15 }
 0x462   : > { %v3988_v46 = vpop.f32.mrf.mxu1 }
 0x463   : > { %v4035_v2 = vadd.f32 %v3988_v46, %v13751_v37  ;;  %11353 = vmatprep.subr.msk.bf16.mxu0 %vm392_vm0, %v4123_v53  ;;  %v4775_v51 = vsel %vm392_vm0, %v4123_v53, 0  ;;  %10610 = vmatmul.mubr.msk.bf16.vlgmr.msra.gmra.mxu1 %vm392_vm0, %v13754_v24  ;;  %v4105_v39 = vmax.f32 %v4073_v62, 0.0 }
 0x464   : > { %v3990_v17 = vpop.f32.mrf.mxu1  ;;  %10614 = vmatpush3.bf16.xpose.msra.mxu0 %v4775_v51  ;;  %10621 = vmatprep.mubr.msk.bf16.mxu1 %vm392_vm0, %v13634_v13 }
 0x465   : > { %v4074_v56 = vadd.f32 %v13733_v22, %v4035_v2 }
 0x466   : > { %v3993_v9 = vpop.f32.mrf.mxu1 }
 0x467   : > { %v4106_v6 = vmax.f32 %v4074_v56, 0.0  ;;  %v4036_v41 = vadd.f32 %v3993_v9, %v13757_v29 }
 0x468   : > { %v3995_v37 = vpop.f32.mrf.mxu1 }
 0x469   : > { %v4124_v16 = vpack.c.bf16 %v4106_v6, %v4105_v39  ;;  %v4075_v23 = vadd.f32 %v13733_v22, %v4036_v41 }
 0x46a   : > { %v3996_v49 = vpop.f32.mrf.mxu1 }
 0x46b   : > { %v4037_v14 = vadd.f32 %v3996_v49, %v13769_v5  ;;  %11354 = vmatprep.subr.msk.bf16.mxu1 %vm392_vm0, %v4124_v16  ;;  %v4826_v40 = vsel %vm392_vm0, %v4124_v16, 0  ;;  %10616 = vmatmul.mubr.msk.bf16.vlgmr.msra.gmra.mxu0 %vm392_vm0, %v13754_v24  ;;  %v4107_v31 = vmax.f32 %v4075_v23, 0.0 }
 0x46c   : > { %v3998_v48 = vpop.f32.mrf.mxu1  ;;  %10620 = vmatpush3.bf16.xpose.msra.mxu1 %v4826_v40  ;;  %10627 = vmatprep.mubr.msk.bf16.mxu0 %vm392_vm0, %v13634_v13 }
 0x46d   : > { %v4076_v29 = vadd.f32 %v13733_v22, %v4037_v14 }
 0x46e   : > { %v4001_v61 = vpop.f32.mrf.mxu1 }
 0x46f   : > { %v4108_v58 = vmax.f32 %v4076_v29, 0.0  ;;  %v4038_v25 = vadd.f32 %v4001_v61, %v13773_v32 }
 0x470   : > { %v4003_v5 = vpop.f32.mrf.mxu1 }
 0x471   : > { %v4125_v1 = vpack.c.bf16 %v4108_v58, %v4107_v31  ;;  %v4077_v27 = vadd.f32 %v13733_v22, %v4038_v25 }
 0x472   : > { %v4004_v43 = vpop.f32.mrf.mxu1 }
 0x473   : > { %v4039_v20 = vadd.f32 %v4004_v43, %v13785_v10  ;;  %11355 = vmatprep.subr.msk.bf16.mxu0 %vm392_vm0, %v4125_v1  ;;  %v4877_v60 = vsel %vm392_vm0, %v4125_v1, 0  ;;  %10622 = vmatmul.mubr.msk.bf16.vlgmr.msra.gmra.mxu1 %vm392_vm0, %v13754_v24  ;;  %v4109_v36 = vmax.f32 %v4077_v27, 0.0  ;;  %v13911_v10 = vld [vmem:[%s15956_s7 + $0x38] sm:$0xff] }
 0x474   : > { %10626 = vmatpush3.bf16.xpose.msra.mxu0 %v4877_v60  ;;  %10633 = vmatprep.mubr.msk.bf16.mxu1 %vm392_vm0, %v13634_v13  ;;  %v4006_v18 = vpop.f32.mrf.mxu1  ;;  %v13923_v13 = vld [vmem:[%s15956_s7 + $0x30] sm:$0xff] }
 0x475   : > { %v4078_v32 = vadd.f32 %v13733_v22, %v4039_v20  ;;  %10637 = vmatprep.subr.mxu0 %v16030_v44  ;;  %v13934_v22 = vld [vmem:[%s15956_s7 + $0x28] sm:$0xff] }
 0x477   : > { %v4110_v34 = vmax.f32 %v4078_v32, 0.0 }
 0x479   : > { %v4126_v8 = vpack.c.bf16 %v4110_v34, %v4109_v36 }
 0x47b   : > { %11356 = vmatprep.subr.msk.bf16.mxu1 %vm392_vm0, %v4126_v8  ;;  %v4928_v30 = vsel %vm392_vm0, %v4126_v8, 0  ;;  %10628 = vmatmul.mubr.msk.bf16.vlgmr.msra.gmra.mxu0 %vm392_vm0, %v13754_v24 }
 0x47c   : > { %10632 = vmatpush3.bf16.xpose.msra.mxu1 %v4928_v30  ;;  %10638 = vmatpush3.xpose.msk.msra.mxu0 %vm4986_vm3, %v13911_v10 }
 0x47d   : > { %10639 = vmatprep.subr.mxu0 %v16030_v44  ;;  %10662 = vmatprep.subr.mxu1 %v16030_v44 }
 0x47e   : > { %10653 = vmatprep.mubr.msk.f32.mxu0 %vm12019_vm4, %v16030_v44 }
 0x480   : > { %10640 = vmatpush3.xpose.msk.msra.mxu0 %vm4986_vm3, %v13923_v13 }
 0x481   : > { %10641 = vmatprep.subr.mxu0 %v16030_v44 }
 0x483   : > { %10634 = vmatmul.mubr.msk.bf16.vlgmr.msra.gmra.mxu1 %vm392_vm0, %v13754_v24  ;;  %v13960_v24 = vld [vmem:[%s15956_s7 + $0x18] sm:$0xff] }
 0x484   : > { %10642 = vmatpush3.xpose.msk.msra.mxu0 %vm4986_vm3, %v13934_v22  ;;  %10663 = vmatpush3.xpose.msk.msra.mxu1 %vm4986_vm3, %v13911_v10 }
 0x485   : > { %10643 = vmatprep.subr.mxu0 %v16030_v44  ;;  %10664 = vmatprep.subr.mxu1 %v16030_v44 }
 0x486   : > { %10678 = vmatprep.mubr.msk.f32.mxu1 %vm12019_vm4, %v16030_v44 }
 0x488   : > { %10644 = vmatpush3.xpose.msk.msra.mxu0 %vm4986_vm3, %v13947_v12  ;;  %10665 = vmatpush3.xpose.msk.msra.mxu1 %vm4986_vm3, %v13923_v13 }
 0x489   : > { %10645 = vmatprep.subr.mxu0 %v16030_v44  ;;  %10666 = vmatprep.subr.mxu1 %v16030_v44 }
 0x48c   : > { %10646 = vmatpush3.xpose.msk.msra.mxu0 %vm4986_vm3, %v13960_v24  ;;  %10667 = vmatpush3.xpose.msk.msra.mxu1 %vm4986_vm3, %v13934_v22 }
 0x48d   : > { %10647 = vmatprep.subr.mxu0 %v16030_v44  ;;  %10668 = vmatprep.subr.mxu1 %v16030_v44 }
 0x490   : > { %10648 = vmatpush3.xpose.msk.msra.mxu0 %vm4986_vm3, %v13971_v42  ;;  %10669 = vmatpush3.xpose.msk.msra.mxu1 %vm4986_vm3, %v13947_v12 }
 0x491   : > { %10649 = vmatprep.subr.mxu0 %v16030_v44  ;;  %10670 = vmatprep.subr.mxu1 %v16030_v44 }
 0x494   : > { %10650 = vmatpush3.xpose.msk.msra.mxu0 %vm4986_vm3, %v13982_v0  ;;  %10671 = vmatpush3.xpose.msk.msra.mxu1 %vm4986_vm3, %v13960_v24 }
 0x495   : > { %10651 = vmatprep.subr.mxu0 %v16030_v44  ;;  %10672 = vmatprep.subr.mxu1 %v16030_v44 }
 0x498   : > { %10652 = vmatpush3.xpose.msk.msra.mxu0 %vm4986_vm3, %v13993_v21  ;;  %10673 = vmatpush3.xpose.msk.msra.mxu1 %vm4986_vm3, %v13971_v42 }
 0x499   : > { %10674 = vmatprep.subr.mxu1 %v16030_v44  ;;  %10687 = vmatprep.subr.mxu0 %v16030_v44 }
 0x49c   : > { %10675 = vmatpush3.xpose.msk.msra.mxu1 %vm4986_vm3, %v13982_v0 }
 0x49d   : > { %10676 = vmatprep.subr.mxu1 %v16030_v44 }
 0x4a0   : > { %10677 = vmatpush3.xpose.msk.msra.mxu1 %vm4986_vm3, %v13993_v21 }
 0x4a1   : > { %10712 = vmatprep.subr.mxu1 %v16030_v44 }
 0x4cb   : > { %v10545_v35 = vpop.f32.mrf.mxu1 }
 0x4cc   : > { %v4208_v3 = vadd.f32 %v10545_v35, %v14019_v57 }
 0x4cd   : > { %v4199_v47 = vpop.f32.mrf.mxu1 }
 0x4ce   : > { %v4200_v33 = vadd.f32 %v4199_v47, %v14007_v59 }
 0x4cf   : > { %v10546_v28 = vpop.f32.mrf.mxu1 }
 0x4d0   : > { %10654 = vmatmul.mubr.msk.f32.vlgmr.msra.gmra.mxu0 %vm4986_vm3, %v4200_v33 }
 0x4d1   : > { %10688 = vmatpush3.xpose.msk.msra.mxu0 %vm4986_vm3, %v13911_v10  ;;  %v4202_v4 = vpop.f32.mrf.mxu1  ;;  %10656 = vmatprep.mubr.msk.f32.mxu0 %vm12019_vm4, %v16030_v44 }
 0x4d2   : > { %10689 = vmatprep.subr.mxu0 %v16030_v44  ;;  %v4203_v19 = vadd.f32 %v4202_v4, %v14009_v45 }
 0x4d3   : > { %v10551_v54 = vpop.f32.mrf.mxu0 }
 0x4d4   : > { %10657 = vmatmul.mubr.msk.f32.gmra.mxu0 %vm4986_vm3, %v4203_v19  ;;  %v4259_v15 = vadd.f32 %v10551_v54, %v14019_v57 }
 0x4d5   : > { %10690 = vmatpush3.xpose.msk.msra.mxu0 %vm4986_vm3, %v13923_v13  ;;  %v4250_v11 = vpop.f32.mrf.mxu0  ;;  %10659 = vmatprep.mubr.msk.f32.mxu0 %vm12019_vm4, %v16030_v44 }
 0x4d6   : > { %v4251_v38 = vadd.f32 %v4250_v11, %v14007_v59  ;;  %10691 = vmatprep.subr.mxu0 %v16030_v44 }
 0x4d7   : > { %v10552_v55 = vpop.f32.mrf.mxu0 }
 0x4d8   : > { %10679 = vmatmul.mubr.msk.f32.vlgmr.msra.gmra.mxu1 %vm4986_vm3, %v4251_v38  ;;  %10660 = vmatmul.mubr.msk.f32.gmra.mxu0 %vm4986_vm3, %v4208_v3 }
 0x4d9   : > { %10692 = vmatpush3.xpose.msk.msra.mxu0 %vm4986_vm3, %v13934_v22  ;;  %10713 = vmatpush3.xpose.msk.msra.mxu1 %vm4986_vm3, %v13911_v10  ;;  %v4253_v7 = vpop.f32.mrf.mxu0 }
 0x4da   : > { %10693 = vmatprep.subr.mxu0 %v16030_v44  ;;  %10714 = vmatprep.subr.mxu1 %v16030_v44  ;;  %v4254_v52 = vadd.f32 %v4253_v7, %v14009_v45 }
 0x4db   : > { %v10557_v50 = vpop.f32.mrf.mxu0  ;;  %10681 = vmatprep.mubr.msk.f32.mxu1 %vm12019_vm4, %v16030_v44  ;;  %10703 = vmatprep.mubr.msk.f32.mxu0 %vm12019_vm4, %v16030_v44 }
 0x4dc   : > { %10682 = vmatmul.mubr.msk.f32.gmra.mxu1 %vm4986_vm3, %v4254_v52  ;;  %v4310_v49 = vadd.f32 %v10557_v50, %v14019_v57 }
 0x4dd   : > { %10694 = vmatpush3.xpose.msk.msra.mxu0 %vm4986_vm3, %v13947_v12  ;;  %10715 = vmatpush3.xpose.msk.msra.mxu1 %vm4986_vm3, %v13923_v13  ;;  %v4301_v63 = vpop.f32.mrf.mxu0 }
 0x4de   : > { %10695 = vmatprep.subr.mxu0 %v16030_v44  ;;  %10716 = vmatprep.subr.mxu1 %v16030_v44  ;;  %v4302_v9 = vadd.f32 %v4301_v63, %v14007_v59 }
 0x4df   : > { %v10558_v26 = vpop.f32.mrf.mxu0  ;;  %10684 = vmatprep.mubr.msk.f32.mxu1 %vm12019_vm4, %v16030_v44 }
 0x4e0   : > { %10685 = vmatmul.mubr.msk.f32.gmra.mxu1 %vm4986_vm3, %v4259_v15 }
 0x4e1   : > { %10696 = vmatpush3.xpose.msk.msra.mxu0 %vm4986_vm3, %v13960_v24  ;;  %10717 = vmatpush3.xpose.msk.msra.mxu1 %vm4986_vm3, %v13934_v22  ;;  %v4304_v53 = vpop.f32.mrf.mxu0 }
 0x4e2   : > { %10697 = vmatprep.subr.mxu0 %v16030_v44  ;;  %10718 = vmatprep.subr.mxu1 %v16030_v44  ;;  %v4305_v41 = vadd.f32 %v4304_v53, %v14009_v45 }
 0x4e3   : > { %v10563_v46 = vpop.f32.mrf.mxu0  ;;  %10728 = vmatprep.mubr.msk.f32.mxu1 %vm12019_vm4, %v16030_v44 }
 0x4e4   : > { %v4361_v31 = vadd.f32 %v10563_v46, %v14019_v57 }
 0x4e5   : > { %10698 = vmatpush3.xpose.msk.msra.mxu0 %vm4986_vm3, %v13971_v42  ;;  %10719 = vmatpush3.xpose.msk.msra.mxu1 %vm4986_vm3, %v13947_v12  ;;  %v4352_v62 = vpop.f32.mrf.mxu0 }
 0x4e6   : > { %10699 = vmatprep.subr.mxu0 %v16030_v44  ;;  %10720 = vmatprep.subr.mxu1 %v16030_v44  ;;  %v4353_v23 = vadd.f32 %v4352_v62, %v14007_v59 }
 0x4e7   : > { %v10564_v2 = vpop.f32.mrf.mxu0 }
 0x4e9   : > { %10700 = vmatpush3.xpose.msk.msra.mxu0 %vm4986_vm3, %v13982_v0  ;;  %10721 = vmatpush3.xpose.msk.msra.mxu1 %vm4986_vm3, %v13960_v24  ;;  %v4355_v51 = vpop.f32.mrf.mxu0 }
 0x4ea   : > { %10701 = vmatprep.subr.mxu0 %v16030_v44  ;;  %10722 = vmatprep.subr.mxu1 %v16030_v44  ;;  %v4356_v48 = vadd.f32 %v4355_v51, %v14009_v45 }
 0x4eb   : > { %v14073_v17 = vpop.f32.mrf.mxu0 }
 0x4ec   : > { %v4412_v35 = vadd.f32 %v14073_v17, %v14019_v57 }
 0x4ed   : > { %10702 = vmatpush3.xpose.msk.msra.mxu0 %vm4986_vm3, %v13993_v21  ;;  %10723 = vmatpush3.xpose.msk.msra.mxu1 %vm4986_vm3, %v13971_v42  ;;  %v14079_v56 = vpop.f32.mrf.mxu0 }
 0x4ee   : > { %10724 = vmatprep.subr.mxu1 %v16030_v44  ;;  %10737 = vmatprep.subr.mxu0 %v16030_v44  ;;  %v4404_v18 = vadd.f32 %v14079_v56, %v14007_v59 }
 0x4ef   : > { %v10570_v39 = vpop.f32.mrf.mxu0 }
 0x4f0   : > { %10704 = vmatmul.mubr.msk.f32.vlgmr.msra.gmra.mxu0 %vm4986_vm3, %v4302_v9 }
 0x4f1   : > { %10725 = vmatpush3.xpose.msk.msra.mxu1 %vm4986_vm3, %v13982_v0  ;;  %10738 = vmatpush3.xpose.msk.msra.mxu0 %vm4986_vm3, %v13911_v10  ;;  %v14089_v6 = vpop.f32.mrf.mxu0 }
 0x4f2   : > { %10726 = vmatprep.subr.mxu1 %v16030_v44  ;;  %10739 = vmatprep.subr.mxu0 %v16030_v44  ;;  %v4407_v34 = vadd.f32 %v14089_v6, %v14009_v45 }
 0x4f3   : > { %10706 = vmatprep.mubr.msk.f32.mxu0 %vm12019_vm4, %v16030_v44  ;;  %v14096_v37 = vpop.f32.mrf.mxu0 }
 0x4f4   : > { %10707 = vmatmul.mubr.msk.f32.gmra.mxu0 %vm4986_vm3, %v4305_v41  ;;  %v4463_v11 = vadd.f32 %v14096_v37, %v14019_v57 }
 0x4f5   : > { %10727 = vmatpush3.xpose.msk.msra.mxu1 %vm4986_vm3, %v13993_v21  ;;  %10740 = vmatpush3.xpose.msk.msra.mxu0 %vm4986_vm3, %v13923_v13  ;;  %v14103_v16 = vpop.f32.mrf.mxu0 }
 0x4f6   : > { %10741 = vmatprep.subr.mxu0 %v16030_v44  ;;  %10762 = vmatprep.subr.mxu1 %v16030_v44  ;;  %v4455_v47 = vadd.f32 %v14103_v16, %v14007_v59 }
 0x4f7   : > { %10709 = vmatprep.mubr.msk.f32.mxu0 %vm12019_vm4, %v16030_v44  ;;  %v10576_v14 = vpop.f32.mrf.mxu0 }
 0x4f8   : > { %10729 = vmatmul.mubr.msk.f32.vlgmr.msra.gmra.mxu1 %vm4986_vm3, %v4353_v23  ;;  %10710 = vmatmul.mubr.msk.f32.gmra.mxu0 %vm4986_vm3, %v4310_v49 }
 0x4f9   : > { %10742 = vmatpush3.xpose.msk.msra.mxu0 %vm4986_vm3, %v13934_v22  ;;  %10763 = vmatpush3.xpose.msk.msra.mxu1 %vm4986_vm3, %v13911_v10  ;;  %v14117_v40 = vpop.f32.mrf.mxu0 }
 0x4fa   : > { %10743 = vmatprep.subr.mxu0 %v16030_v44  ;;  %10764 = vmatprep.subr.mxu1 %v16030_v44  ;;  %v4458_v4 = vadd.f32 %v14117_v40, %v14009_v45 }
 0x4fb   : > { %10731 = vmatprep.mubr.msk.f32.mxu1 %vm12019_vm4, %v16030_v44  ;;  %10753 = vmatprep.mubr.msk.f32.mxu0 %vm12019_vm4, %v16030_v44  ;;  %v14126_v29 = vpop.f32.mrf.mxu0 }
 0x4fc   : > { %10732 = vmatmul.mubr.msk.f32.gmra.mxu1 %vm4986_vm3, %v4356_v48  ;;  %v4514_v51 = vadd.f32 %v14126_v29, %v14019_v57 }
 0x4fd   : > { %10744 = vmatpush3.xpose.msk.msra.mxu0 %vm4986_vm3, %v13947_v12  ;;  %10765 = vmatpush3.xpose.msk.msra.mxu1 %vm4986_vm3, %v13923_v13  ;;  %v14133_v61 = vpop.f32.mrf.mxu0 }
 0x4fe   : > { %10745 = vmatprep.subr.mxu0 %v16030_v44  ;;  %10766 = vmatprep.subr.mxu1 %v16030_v44  ;;  %v4506_v15 = vadd.f32 %v14133_v61, %v14007_v59 }
 0x4ff   : > { %10734 = vmatprep.mubr.msk.f32.mxu1 %vm12019_vm4, %v16030_v44  ;;  %v10582_v58 = vpop.f32.mrf.mxu0 }
 0x500   : > { %10735 = vmatmul.mubr.msk.f32.gmra.mxu1 %vm4986_vm3, %v4361_v31 }
 0x501   : > { %10746 = vmatpush3.xpose.msk.msra.mxu0 %vm4986_vm3, %v13960_v24  ;;  %10767 = vmatpush3.xpose.msk.msra.mxu1 %vm4986_vm3, %v13934_v22  ;;  %v14145_v25 = vpop.f32.mrf.mxu0 }
 0x502   : > { %10747 = vmatprep.subr.mxu0 %v16030_v44  ;;  %10768 = vmatprep.subr.mxu1 %v16030_v44  ;;  %v4509_v46 = vadd.f32 %v14145_v25, %v14009_v45 }
 0x503   : > { %10778 = vmatprep.mubr.msk.f32.mxu1 %vm12019_vm4, %v16030_v44  ;;  %v14151_v5 = vpop.f32.mrf.mxu0 }
 0x504   : > { %v4565_v37 = vadd.f32 %v14151_v5, %v14019_v57 }
 0x505   : > { %10748 = vmatpush3.xpose.msk.msra.mxu0 %vm4986_vm3, %v13971_v42  ;;  %10769 = vmatpush3.xpose.msk.msra.mxu1 %vm4986_vm3, %v13947_v12  ;;  %v14157_v1 = vpop.f32.mrf.mxu0 }
 0x506   : > { %10749 = vmatprep.subr.mxu0 %v16030_v44  ;;  %10770 = vmatprep.subr.mxu1 %v16030_v44  ;;  %v4557_v17 = vadd.f32 %v14157_v1, %v14007_v59 }
 0x507   : > { %v10588_v43 = vpop.f32.mrf.mxu0 }
 0x509   : > { %10750 = vmatpush3.xpose.msk.msra.mxu0 %vm4986_vm3, %v13982_v0  ;;  %10771 = vmatpush3.xpose.msk.msra.mxu1 %vm4986_vm3, %v13960_v24  ;;  %v14165_v27 = vpop.f32.mrf.mxu0 }
 0x50a   : > { %10751 = vmatprep.subr.mxu0 %v16030_v44  ;;  %10772 = vmatprep.subr.mxu1 %v16030_v44  ;;  %v4560_v39 = vadd.f32 %v14165_v27, %v14009_v45 }
 0x50b   : > { %v14169_v20 = vpop.f32.mrf.mxu0 }
 0x50c   : > { %v4616_v61 = vadd.f32 %v14169_v20, %v14019_v57 }
 0x50d   : > { %10752 = vmatpush3.xpose.msk.msra.mxu0 %vm4986_vm3, %v13993_v21  ;;  %10773 = vmatpush3.xpose.msk.msra.mxu1 %vm4986_vm3, %v13971_v42  ;;  %v14175_v60 = vpop.f32.mrf.mxu0 }
 0x50e   : > { %10774 = vmatprep.subr.mxu1 %v16030_v44  ;;  %10787 = vmatprep.subr.mxu0 %v16030_v44  ;;  %v4608_v48 = vadd.f32 %v14175_v60, %v14007_v59 }
 0x50f   : > { %v10594_v32 = vpop.f32.mrf.mxu0 }
 0x510   : > { %10754 = vmatmul.mubr.msk.f32.vlgmr.msra.gmra.mxu0 %vm4986_vm3, %v4404_v18 }
 0x511   : > { %10775 = vmatpush3.xpose.msk.msra.mxu1 %vm4986_vm3, %v13982_v0  ;;  %10788 = vmatpush3.xpose.msk.msra.mxu0 %vm4986_vm3, %v13911_v10  ;;  %v14186_v36 = vpop.f32.mrf.mxu0 }
 0x512   : > { %10776 = vmatprep.subr.mxu1 %v16030_v44  ;;  %10789 = vmatprep.subr.mxu0 %v16030_v44  ;;  %v4611_v29 = vadd.f32 %v14186_v36, %v14009_v45 }
 0x513   : > { %10756 = vmatprep.mubr.msk.f32.mxu0 %vm12019_vm4, %v16030_v44  ;;  %v14194_v8 = vpop.f32.mrf.mxu0 }
 0x514   : > { %10757 = vmatmul.mubr.msk.f32.gmra.mxu0 %vm4986_vm3, %v4407_v34  ;;  %v4667_v25 = vadd.f32 %v14194_v8, %v14019_v57 }
 0x515   : > { %10777 = vmatpush3.xpose.msk.msra.mxu1 %vm4986_vm3, %v13993_v21  ;;  %10790 = vmatpush3.xpose.msk.msra.mxu0 %vm4986_vm3, %v13923_v13  ;;  %v14201_v30 = vpop.f32.mrf.mxu0 }
 0x516   : > { %10791 = vmatprep.subr.mxu0 %v16030_v44  ;;  %10812 = vmatprep.subr.mxu1 %v16030_v44  ;;  %v4659_v31 = vadd.f32 %v14201_v30, %v14007_v59 }
 0x517   : > { %10759 = vmatprep.mubr.msk.f32.mxu0 %vm12019_vm4, %v16030_v44  ;;  %v10600_v33 = vpop.f32.mrf.mxu0 }
 0x518   : > { %10779 = vmatmul.mubr.msk.f32.vlgmr.msra.gmra.mxu1 %vm4986_vm3, %v4455_v47  ;;  %10760 = vmatmul.mubr.msk.f32.gmra.mxu0 %vm4986_vm3, %v4412_v35 }
 0x519   : > { %10792 = vmatpush3.xpose.msk.msra.mxu0 %vm4986_vm3, %v13934_v22  ;;  %10813 = vmatpush3.xpose.msk.msra.mxu1 %vm4986_vm3, %v13911_v10  ;;  %v14217_v28 = vpop.f32.mrf.mxu0 }
 0x51a   : > { %10793 = vmatprep.subr.mxu0 %v16030_v44  ;;  %10814 = vmatprep.subr.mxu1 %v16030_v44  ;;  %v4662_v58 = vadd.f32 %v14217_v28, %v14009_v45 }
 0x51b   : > { %10781 = vmatprep.mubr.msk.f32.mxu1 %vm12019_vm4, %v16030_v44  ;;  %10803 = vmatprep.mubr.msk.f32.mxu0 %vm12019_vm4, %v16030_v44  ;;  %v14227_v19 = vpop.f32.mrf.mxu0 }
 0x51c   : > { %10782 = vmatmul.mubr.msk.f32.gmra.mxu1 %vm4986_vm3, %v4458_v4  ;;  %v4718_v43 = vadd.f32 %v14227_v19, %v14019_v57 }
 0x51d   : > { %10794 = vmatpush3.xpose.msk.msra.mxu0 %vm4986_vm3, %v13947_v12  ;;  %10815 = vmatpush3.xpose.msk.msra.mxu1 %vm4986_vm3, %v13923_v13  ;;  %v14234_v54 = vpop.f32.mrf.mxu0 }
 0x51e   : > { %10795 = vmatprep.subr.mxu0 %v16030_v44  ;;  %10816 = vmatprep.subr.mxu1 %v16030_v44  ;;  %v4710_v5 = vadd.f32 %v14234_v54, %v14007_v59 }
 0x51f   : > { %10784 = vmatprep.mubr.msk.f32.mxu1 %vm12019_vm4, %v16030_v44  ;;  %v10606_v38 = vpop.f32.mrf.mxu0 }
 0x520   : > { %10785 = vmatmul.mubr.msk.f32.gmra.mxu1 %vm4986_vm3, %v4463_v11 }
 0x521   : > { %10796 = vmatpush3.xpose.msk.msra.mxu0 %vm4986_vm3, %v13960_v24  ;;  %10817 = vmatpush3.xpose.msk.msra.mxu1 %vm4986_vm3, %v13934_v22  ;;  %v14265_v52 = vpop.f32.mrf.mxu0 }
 0x522   : > { %10797 = vmatprep.subr.mxu0 %v16030_v44  ;;  %10818 = vmatprep.subr.mxu1 %v16030_v44  ;;  %v4713_v1 = vadd.f32 %v14265_v52, %v14009_v45 }
 0x523   : > { %v14249_v3 = vpop.f32.mrf.mxu1  ;;  %10828 = vmatprep.mubr.msk.f32.mxu1 %vm12019_vm4, %v16030_v44 }
 0x524   : > { %v4769_v60 = vadd.f32 %v14249_v3, %v14019_v57 }
 0x525   : > { %10798 = vmatpush3.xpose.msk.msra.mxu0 %vm4986_vm3, %v13971_v42  ;;  %10819 = vmatpush3.xpose.msk.msra.mxu1 %vm4986_vm3, %v13947_v12  ;;  %v14257_v55 = vpop.f32.mrf.mxu1 }
 0x526   : > { %10799 = vmatprep.subr.mxu0 %v16030_v44  ;;  %10820 = vmatprep.subr.mxu1 %v16030_v44  ;;  %v4761_v27 = vadd.f32 %v14257_v55, %v14007_v59 }
 0x527   : > { %v10612_v7 = vpop.f32.mrf.mxu1 }
 0x529   : > { %10800 = vmatpush3.xpose.msk.msra.mxu0 %vm4986_vm3, %v13982_v0  ;;  %10821 = vmatpush3.xpose.msk.msra.mxu1 %vm4986_vm3, %v13960_v24  ;;  %v14286_v53 = vpop.f32.mrf.mxu1 }
 0x52a   : > { %10801 = vmatprep.subr.mxu0 %v16030_v44  ;;  %10822 = vmatprep.subr.mxu1 %v16030_v44  ;;  %v4764_v20 = vadd.f32 %v14286_v53, %v14009_v45 }
 0x52b   : > { %v14269_v50 = vpop.f32.mrf.mxu0 }
 0x52c   : > { %v4820_v30 = vadd.f32 %v14269_v50, %v14019_v57 }
 0x52d   : > { %10802 = vmatpush3.xpose.msk.msra.mxu0 %vm4986_vm3, %v13993_v21  ;;  %10823 = vmatpush3.xpose.msk.msra.mxu1 %vm4986_vm3, %v13971_v42  ;;  %v14275_v63 = vpop.f32.mrf.mxu0 }
 0x52e   : > { %10824 = vmatprep.subr.mxu1 %v16030_v44  ;;  %10837 = vmatprep.subr.mxu0 %v16030_v44  ;;  %v4812_v18 = vadd.f32 %v14275_v63, %v14007_v59 }
 0x52f   : > { %v10618_v26 = vpop.f32.mrf.mxu0 }
 0x530   : > { %10804 = vmatmul.mubr.msk.f32.vlgmr.msra.gmra.mxu0 %vm4986_vm3, %v4506_v15 }
 0x531   : > { %10825 = vmatpush3.xpose.msk.msra.mxu1 %vm4986_vm3, %v13982_v0  ;;  %10838 = vmatpush3.xpose.msk.msra.mxu0 %vm4986_vm3, %v13911_v10  ;;  %v14317_v9 = vpop.f32.mrf.mxu0 }
 0x532   : > { %10826 = vmatprep.subr.mxu1 %v16030_v44  ;;  %10839 = vmatprep.subr.mxu0 %v16030_v44  ;;  %v4815_v34 = vadd.f32 %v14317_v9, %v14009_v45 }
 0x533   : > { %v14292_v62 = vpop.f32.mrf.mxu1  ;;  %10806 = vmatprep.mubr.msk.f32.mxu0 %vm12019_vm4, %v16030_v44 }
 0x534   : > { %10807 = vmatmul.mubr.msk.f32.gmra.mxu0 %vm4986_vm3, %v4509_v46  ;;  %v14555_v47 = vadd.f32 %v14292_v62, %v14019_v57 }
 0x535   : > { %10827 = vmatpush3.xpose.msk.msra.mxu1 %vm4986_vm3, %v13993_v21  ;;  %10840 = vmatpush3.xpose.msk.msra.mxu0 %vm4986_vm3, %v13923_v13  ;;  %v14301_v2 = vpop.f32.mrf.mxu1 }
 0x536   : > { %10841 = vmatprep.subr.mxu0 %v16030_v44  ;;  %10862 = vmatprep.subr.mxu1 %v16030_v44  ;;  %v4863_v33 = vadd.f32 %v14301_v2, %v14007_v59 }
 0x537   : > { %v10624_v56 = vpop.f32.mrf.mxu1  ;;  %10809 = vmatprep.mubr.msk.f32.mxu0 %vm12019_vm4, %v16030_v44 }
 0x538   : > { %10829 = vmatmul.mubr.msk.f32.vlgmr.msra.gmra.mxu1 %vm4986_vm3, %v4557_v17  ;;  %10810 = vmatmul.mubr.msk.f32.gmra.mxu0 %vm4986_vm3, %v4514_v51 }
 0x539   : > { %10842 = vmatpush3.xpose.msk.msra.mxu0 %vm4986_vm3, %v13934_v22  ;;  %10863 = vmatpush3.xpose.msk.msra.mxu1 %vm4986_vm3, %v13911_v10  ;;  %v14347_v49 = vpop.f32.mrf.mxu1 }
 0x53a   : > { %10843 = vmatprep.subr.mxu0 %v16030_v44  ;;  %10864 = vmatprep.subr.mxu1 %v16030_v44  ;;  %v4866_v4 = vadd.f32 %v14347_v49, %v14009_v45 }
 0x53b   : > { %v14323_v6 = vpop.f32.mrf.mxu0  ;;  %10831 = vmatprep.mubr.msk.f32.mxu1 %vm12019_vm4, %v16030_v44  ;;  %10853 = vmatprep.mubr.msk.f32.mxu0 %vm12019_vm4, %v16030_v44 }
 0x53c   : > { %10832 = vmatmul.mubr.msk.f32.gmra.mxu1 %vm4986_vm3, %v4560_v39 }
 0x53d   : > { %10844 = vmatpush3.xpose.msk.msra.mxu0 %vm4986_vm3, %v13947_v12  ;;  %10865 = vmatpush3.xpose.msk.msra.mxu1 %vm4986_vm3, %v13923_v13  ;;  %v14334_v41 = vpop.f32.mrf.mxu0 }
 0x53e   : > { %10845 = vmatprep.subr.mxu0 %v16030_v44  ;;  %10866 = vmatprep.subr.mxu1 %v16030_v44 }
 0x53f   : > { %10834 = vmatprep.mubr.msk.f32.mxu1 %vm12019_vm4, %v16030_v44  ;;  %v10630_v16 = vpop.f32.mrf.mxu0 }
 0x540   : > { %10835 = vmatmul.mubr.msk.f32.gmra.mxu1 %vm4986_vm3, %v4565_v37 }
 0x541   : > { %10846 = vmatpush3.xpose.msk.msra.mxu0 %vm4986_vm3, %v13960_v24  ;;  %10867 = vmatpush3.xpose.msk.msra.mxu1 %vm4986_vm3, %v13934_v22  ;;  %v14531_v32 = vpop.f32.mrf.mxu0 }
 0x542   : > { %10847 = vmatprep.subr.mxu0 %v16030_v44  ;;  %10868 = vmatprep.subr.mxu1 %v16030_v44 }
 0x543   : > { %v14351_v23 = vpop.f32.mrf.mxu1  ;;  %10878 = vmatprep.mubr.msk.f32.mxu1 %vm12019_vm4, %v16030_v44 }
 0x545   : > { %10848 = vmatpush3.xpose.msk.msra.mxu0 %vm4986_vm3, %v13971_v42  ;;  %10869 = vmatpush3.xpose.msk.msra.mxu1 %vm4986_vm3, %v13947_v12  ;;  %v14359_v14 = vpop.f32.mrf.mxu1 }
 0x546   : > { %10849 = vmatprep.subr.mxu0 %v16030_v44  ;;  %10870 = vmatprep.subr.mxu1 %v16030_v44 }
 0x547   : > { %v10636_v40 = vpop.f32.mrf.mxu1 }
 0x549   : > { %10850 = vmatpush3.xpose.msk.msra.mxu0 %vm4986_vm3, %v13982_v0  ;;  %10871 = vmatpush3.xpose.msk.msra.mxu1 %vm4986_vm3, %v13960_v24  ;;  %v14566_v19 = vpop.f32.mrf.mxu1 }
 0x54a   : > { %10851 = vmatprep.subr.mxu0 %v16030_v44  ;;  %10872 = vmatprep.subr.mxu1 %v16030_v44 }
 0x54d   : > { %10852 = vmatpush3.xpose.msk.msra.mxu0 %vm4986_vm3, %v13993_v21  ;;  %10873 = vmatpush3.xpose.msk.msra.mxu1 %vm4986_vm3, %v13971_v42 }
 0x54e   : > { %10874 = vmatprep.subr.mxu1 %v16030_v44  ;;  %10887 = vmatprep.subr.mxu0 %v16030_v44 }
 0x550   : > { %10854 = vmatmul.mubr.msk.f32.vlgmr.msra.gmra.mxu0 %vm4986_vm3, %v4608_v48 }
 0x551   : > { %10875 = vmatpush3.xpose.msk.msra.mxu1 %vm4986_vm3, %v13982_v0  ;;  %10888 = vmatpush3.xpose.msk.msra.mxu0 %vm4986_vm3, %v13911_v10 }
 0x552   : > { %10876 = vmatprep.subr.mxu1 %v16030_v44  ;;  %10889 = vmatprep.subr.mxu0 %v16030_v44 }
 0x553   : > { %10856 = vmatprep.mubr.msk.f32.mxu0 %vm12019_vm4, %v16030_v44 }
 0x554   : > { %10857 = vmatmul.mubr.msk.f32.gmra.mxu0 %vm4986_vm3, %v4611_v29 }
 0x555   : > { %10877 = vmatpush3.xpose.msk.msra.mxu1 %vm4986_vm3, %v13993_v21  ;;  %10890 = vmatpush3.xpose.msk.msra.mxu0 %vm4986_vm3, %v13923_v13 }
 0x556   : > { %10891 = vmatprep.subr.mxu0 %v16030_v44  ;;  %10912 = vmatprep.subr.mxu1 %v16030_v44 }
 0x557   : > { %10859 = vmatprep.mubr.msk.f32.mxu0 %vm12019_vm4, %v16030_v44 }
 0x558   : > { %10879 = vmatmul.mubr.msk.f32.vlgmr.msra.gmra.mxu1 %vm4986_vm3, %v4659_v31  ;;  %10860 = vmatmul.mubr.msk.f32.gmra.mxu0 %vm4986_vm3, %v4616_v61 }
 0x559   : > { %10892 = vmatpush3.xpose.msk.msra.mxu0 %vm4986_vm3, %v13934_v22  ;;  %10913 = vmatpush3.xpose.msk.msra.mxu1 %vm4986_vm3, %v13911_v10 }
 0x55a   : > { %10881 = vmatprep.mubr.msk.f32.mxu1 %vm12019_vm4, %v16030_v44  ;;  %10893 = vmatprep.subr.mxu0 %v16030_v44 }
 0x55b   : > { %10914 = vmatprep.subr.mxu1 %v16030_v44  ;;  %10903 = vmatprep.mubr.msk.f32.mxu0 %vm12019_vm4, %v16030_v44 }
 0x55c   : > { %10882 = vmatmul.mubr.msk.f32.gmra.mxu1 %vm4986_vm3, %v4662_v58 }
 0x55d   : > { %10894 = vmatpush3.xpose.msk.msra.mxu0 %vm4986_vm3, %v13947_v12  ;;  %10915 = vmatpush3.xpose.msk.msra.mxu1 %vm4986_vm3, %v13923_v13 }
 0x55e   : > { %10884 = vmatprep.mubr.msk.f32.mxu1 %vm12019_vm4, %v16030_v44  ;;  %10895 = vmatprep.subr.mxu0 %v16030_v44 }
 0x55f   : > { %10916 = vmatprep.subr.mxu1 %v16030_v44 }
 0x560   : > { %10885 = vmatmul.mubr.msk.f32.gmra.mxu1 %vm4986_vm3, %v4667_v25 }
 0x561   : > { %10896 = vmatpush3.xpose.msk.msra.mxu0 %vm4986_vm3, %v13960_v24  ;;  %10917 = vmatpush3.xpose.msk.msra.mxu1 %vm4986_vm3, %v13934_v22 }
 0x562   : > { %10897 = vmatprep.subr.mxu0 %v16030_v44  ;;  %10918 = vmatprep.subr.mxu1 %v16030_v44 }
 0x563   : > { %10928 = vmatprep.mubr.msk.f32.mxu1 %vm12019_vm4, %v16030_v44 }
 0x565   : > { %10898 = vmatpush3.xpose.msk.msra.mxu0 %vm4986_vm3, %v13971_v42  ;;  %10919 = vmatpush3.xpose.msk.msra.mxu1 %vm4986_vm3, %v13947_v12 }
 0x566   : > { %10899 = vmatprep.subr.mxu0 %v16030_v44  ;;  %10920 = vmatprep.subr.mxu1 %v16030_v44 }
 0x569   : > { %10900 = vmatpush3.xpose.msk.msra.mxu0 %vm4986_vm3, %v13982_v0  ;;  %10921 = vmatpush3.xpose.msk.msra.mxu1 %vm4986_vm3, %v13960_v24 }
 0x56a   : > { %10901 = vmatprep.subr.mxu0 %v16030_v44  ;;  %10922 = vmatprep.subr.mxu1 %v16030_v44 }
 0x56d   : > { %10902 = vmatpush3.xpose.msk.msra.mxu0 %vm4986_vm3, %v13993_v21  ;;  %10923 = vmatpush3.xpose.msk.msra.mxu1 %vm4986_vm3, %v13971_v42 }
 0x56e   : > { %10924 = vmatprep.subr.mxu1 %v16030_v44  ;;  %10937 = vmatprep.subr.mxu0 %v16030_v44 }
 0x570   : > { %10904 = vmatmul.mubr.msk.f32.vlgmr.msra.gmra.mxu0 %vm4986_vm3, %v4710_v5 }
 0x571   : > { %10925 = vmatpush3.xpose.msk.msra.mxu1 %vm4986_vm3, %v13982_v0  ;;  %10938 = vmatpush3.xpose.msk.msra.mxu0 %vm4986_vm3, %v13911_v10 }
 0x572   : > { %10906 = vmatprep.mubr.msk.f32.mxu0 %vm12019_vm4, %v16030_v44  ;;  %10926 = vmatprep.subr.mxu1 %v16030_v44 }
 0x573   : > { %10939 = vmatprep.subr.mxu0 %v16030_v44 }
 0x574   : > { %10907 = vmatmul.mubr.msk.f32.gmra.mxu0 %vm4986_vm3, %v4713_v1 }
 0x575   : > { %10927 = vmatpush3.xpose.msk.msra.mxu1 %vm4986_vm3, %v13993_v21  ;;  %10940 = vmatpush3.xpose.msk.msra.mxu0 %vm4986_vm3, %v13923_v13 }
 0x576   : > { %10909 = vmatprep.mubr.msk.f32.mxu0 %vm12019_vm4, %v16030_v44  ;;  %10941 = vmatprep.subr.mxu0 %v16030_v44 }
 0x577   : > { %10962 = vmatprep.subr.mxu1 %v16030_v44 }
 0x578   : > { %10910 = vmatmul.mubr.msk.f32.gmra.mxu0 %vm4986_vm3, %v4718_v43  ;;  %10929 = vmatmul.mubr.msk.f32.vlgmr.msra.gmra.mxu1 %vm4986_vm3, %v4761_v27 }
 0x579   : > { %10942 = vmatpush3.xpose.msk.msra.mxu0 %vm4986_vm3, %v13934_v22  ;;  %10963 = vmatpush3.xpose.msk.msra.mxu1 %vm4986_vm3, %v13911_v10 }
 0x57a   : > { %10931 = vmatprep.mubr.msk.f32.mxu1 %vm12019_vm4, %v16030_v44  ;;  %10943 = vmatprep.subr.mxu0 %v16030_v44 }
 0x57b   : > { %10964 = vmatprep.subr.mxu1 %v16030_v44  ;;  %10953 = vmatprep.mubr.msk.f32.mxu0 %vm12019_vm4, %v16030_v44 }
 0x57c   : > { %10932 = vmatmul.mubr.msk.f32.gmra.mxu1 %vm4986_vm3, %v4764_v20 }
 0x57d   : > { %10944 = vmatpush3.xpose.msk.msra.mxu0 %vm4986_vm3, %v13947_v12  ;;  %10965 = vmatpush3.xpose.msk.msra.mxu1 %vm4986_vm3, %v13923_v13 }
 0x57e   : > { %10934 = vmatprep.mubr.msk.f32.mxu1 %vm12019_vm4, %v16030_v44  ;;  %10945 = vmatprep.subr.mxu0 %v16030_v44 }
 0x57f   : > { %10966 = vmatprep.subr.mxu1 %v16030_v44 }
 0x580   : > { %10935 = vmatmul.mubr.msk.f32.gmra.mxu1 %vm4986_vm3, %v4769_v60 }
 0x581   : > { %10946 = vmatpush3.xpose.msk.msra.mxu0 %vm4986_vm3, %v13960_v24  ;;  %10967 = vmatpush3.xpose.msk.msra.mxu1 %vm4986_vm3, %v13934_v22 }
 0x582   : > { %10947 = vmatprep.subr.mxu0 %v16030_v44  ;;  %10968 = vmatprep.subr.mxu1 %v16030_v44 }
 0x583   : > { %10978 = vmatprep.mubr.msk.f32.mxu1 %vm12019_vm4, %v16030_v44 }
 0x585   : > { %10948 = vmatpush3.xpose.msk.msra.mxu0 %vm4986_vm3, %v13971_v42  ;;  %10969 = vmatpush3.xpose.msk.msra.mxu1 %vm4986_vm3, %v13947_v12 }
 0x586   : > { %10949 = vmatprep.subr.mxu0 %v16030_v44  ;;  %10970 = vmatprep.subr.mxu1 %v16030_v44 }
 0x589   : > { %10950 = vmatpush3.xpose.msk.msra.mxu0 %vm4986_vm3, %v13982_v0  ;;  %10971 = vmatpush3.xpose.msk.msra.mxu1 %vm4986_vm3, %v13960_v24 }
 0x58a   : > { %10951 = vmatprep.subr.mxu0 %v16030_v44  ;;  %10972 = vmatprep.subr.mxu1 %v16030_v44 }
 0x58d   : > { %10952 = vmatpush3.xpose.msk.msra.mxu0 %vm4986_vm3, %v13993_v21  ;;  %10973 = vmatpush3.xpose.msk.msra.mxu1 %vm4986_vm3, %v13971_v42 }
 0x58e   : > { %10974 = vmatprep.subr.mxu1 %v16030_v44  ;;  %10987 = vmatprep.subr.mxu0 %v16030_v44 }
 0x590   : > { %10954 = vmatmul.mubr.msk.f32.vlgmr.msra.gmra.mxu0 %vm4986_vm3, %v4812_v18  ;;  %v14536_v36 = vpop.f32.mrf.mxu0 }
 0x591   : > { %10975 = vmatpush3.xpose.msk.msra.mxu1 %vm4986_vm3, %v13982_v0  ;;  %10988 = vmatpush3.xpose.msk.msra.mxu0 %vm4986_vm3, %v13911_v10  ;;  %v6633_v28 = vrot.slane %v14536_v36, 1  ;;  %v6777_v11 = vrot.slane %v14536_v36, 2  ;;  %v6921_v38 = vrot.slane %v14536_v36, 3  ;;  %v7065_v3 = vrot.slane %v14536_v36, 4 }
 0x592   : > { %10956 = vmatprep.mubr.msk.f32.mxu0 %vm12019_vm4, %v16030_v44  ;;  %10976 = vmatprep.subr.mxu1 %v16030_v44  ;;  %v10655_v8 = vpop.f32.mrf.mxu0  ;;  %v7209_v55 = vrot.slane %v14536_v36, 5  ;;  %v7353_v7 = vrot.slane %v14536_v36, 6  ;;  %v7497_v52 = vrot.slane %v14536_v36, 7 }
 0x593   : > { %10989 = vmatprep.subr.mxu0 %v16030_v44 }
 0x594   : > { %10957 = vmatmul.mubr.msk.f32.gmra.mxu0 %vm4986_vm3, %v4815_v34  ;;  %v14551_v35 = vpop.f32.mrf.mxu0 }
 0x595   : > { %10977 = vmatpush3.xpose.msk.msra.mxu1 %vm4986_vm3, %v13993_v21  ;;  %10990 = vmatpush3.xpose.msk.msra.mxu0 %vm4986_vm3, %v13923_v13  ;;  %v7801_v50 = vrot.slane %v14551_v35, 1  ;;  %v7945_v26 = vrot.slane %v14551_v35, 2  ;;  %v8089_v53 = vrot.slane %v14551_v35, 3  ;;  %v8233_v46 = vrot.slane %v14551_v35, 4 }
 0x596   : > { %10959 = vmatprep.mubr.msk.f32.mxu0 %vm12019_vm4, %v16030_v44  ;;  %10991 = vmatprep.subr.mxu0 %v16030_v44  ;;  %v10658_v54 = vpop.f32.mrf.mxu0  ;;  %v8377_v62 = vrot.slane %v14551_v35, 5  ;;  %v8521_v17 = vrot.slane %v14551_v35, 6  ;;  %v8665_v56 = vrot.slane %v14551_v35, 7 }
 0x597   : > { %11012 = vmatprep.subr.mxu1 %v16030_v44 }
 0x598   : > { %10960 = vmatmul.mubr.msk.f32.gmra.mxu0 %vm4986_vm3, %v4820_v30  ;;  %10979 = vmatmul.mubr.msk.f32.vlgmr.msra.gmra.mxu1 %vm4986_vm3, %v4863_v33  ;;  %v5175_v63 = vpop.f32.mrf.mxu1  ;;  %v14581_v15 = vpop.f32.mrf.mxu0 }
 0x599   : > { %10992 = vmatpush3.xpose.msk.msra.mxu0 %vm4986_vm3, %v13934_v22  ;;  %11013 = vmatpush3.xpose.msk.msra.mxu1 %vm4986_vm3, %v13911_v10  ;;  %v6459_v2 = vrot.slane %v5175_v63, 7  ;;  %v14592_v51 = vsel %vm6460_vm5, %v5175_v63, %v6633_v28  ;;  %v6778_v37 = vrot.slane %v5175_v63, 1  ;;  %v6922_v16 = vrot.slane %v5175_v63, 2 }
 0x59a   : > { %10981 = vmatprep.mubr.msk.f32.mxu1 %vm12019_vm4, %v16030_v44  ;;  %10993 = vmatprep.subr.mxu0 %v16030_v44  ;;  %v10680_v9 = vpop.f32.mrf.mxu1  ;;  %v10661_v39 = vpop.f32.mrf.mxu0  ;;  %v7066_v49 = vrot.slane %v5175_v63, 3  ;;  %v7210_v40 = vrot.slane %v5175_v63, 4  ;;  %v8969_v10 = vrot.slane %v14581_v15, 1  ;;  %v7354_v29 = vrot.slane %v5175_v63, 5 }
 0x59b   : > { %11014 = vmatprep.subr.mxu1 %v16030_v44  ;;  %11003 = vmatprep.mubr.msk.f32.mxu0 %vm12019_vm4, %v16030_v44  ;;  %v14605_v48 = vsel %vm6460_vm5, %v6459_v2, %v14536_v36  ;;  %v7498_v61 = vrot.slane %v5175_v63, 6  ;;  %v14609_v58 = vsel %vm6460_vm5, %v6778_v37, %v6777_v11  ;;  %v14612_v25 = vsel %vm6460_vm5, %v6922_v16, %v6921_v38 }
 0x59c   : > { %10982 = vmatmul.mubr.msk.f32.gmra.mxu1 %vm4986_vm3, %v4866_v4  ;;  %v5180_v31 = vpop.f32.mrf.mxu1  ;;  %v14615_v5 = vsel %vm6460_vm5, %v7066_v49, %v7065_v3  ;;  %v14618_v1 = vsel %vm6460_vm5, %v7210_v40, %v7209_v55  ;;  %v14625_v43 = vsel %vm6460_vm5, %v7354_v29, %v7353_v7  ;;  %v9113_v30 = vrot.slane %v14581_v15, 2 }
 0x59d   : > { %10994 = vmatpush3.xpose.msk.msra.mxu0 %vm4986_vm3, %v13947_v12  ;;  %11015 = vmatpush3.xpose.msk.msra.mxu1 %vm4986_vm3, %v13923_v13  ;;  %v14628_v27 = vsel %vm6460_vm5, %v7498_v61, %v7497_v52  ;;  %v7657_v20 = vrot.slane %v5180_v31, 7  ;;  %v14631_v60 = vsel %vm6460_vm5, %v5180_v31, %v7801_v50  ;;  %v7946_v36 = vrot.slane %v5180_v31, 1 }
 0x59e   : > { %10984 = vmatprep.mubr.msk.f32.mxu1 %vm12019_vm4, %v16030_v44  ;;  %10995 = vmatprep.subr.mxu0 %v16030_v44  ;;  %v10683_v18 = vpop.f32.mrf.mxu1  ;;  %v8090_v34 = vrot.slane %v5180_v31, 2  ;;  %v8234_v8 = vrot.slane %v5180_v31, 3  ;;  %v8378_v13 = vrot.slane %v5180_v31, 4  ;;  %v8522_v28 = vrot.slane %v5180_v31, 5 }
 0x59f   : > { %11016 = vmatprep.subr.mxu1 %v16030_v44  ;;  %v14640_v33 = vsel %vm6460_vm5, %v7657_v20, %v14551_v35  ;;  %v8666_v4 = vrot.slane %v5180_v31, 6  ;;  %v14645_v11 = vsel %vm6460_vm5, %v7946_v36, %v7945_v26  ;;  %v4965_v61 = vadd.f32 %v14359_v14, %v14007_v59 }
 0x5a0   : > { %10985 = vmatmul.mubr.msk.f32.gmra.mxu1 %vm4986_vm3, %v14555_v47  ;;  %v5185_v54 = vpop.f32.mrf.mxu1  ;;  %v14648_v38 = vsel %vm6460_vm5, %v8090_v34, %v8089_v53  ;;  %v14651_v3 = vsel %vm6460_vm5, %v8234_v8, %v8233_v46  ;;  %v14654_v55 = vsel %vm6460_vm5, %v8378_v13, %v8377_v62  ;;  %v14664_v52 = vsel %vm6460_vm5, %v8522_v28, %v8521_v17 }
 0x5a1   : > { %10996 = vmatpush3.xpose.msk.msra.mxu0 %vm4986_vm3, %v13960_v24  ;;  %11017 = vmatpush3.xpose.msk.msra.mxu1 %vm4986_vm3, %v13934_v22  ;;  %v8825_v35 = vrot.slane %v5185_v54, 7  ;;  %v14661_v47 = vsel %vm6460_vm5, %v5185_v54, %v8969_v10  ;;  %v9114_v7 = vrot.slane %v5185_v54, 1  ;;  %v14669_v63 = vsel %vm6460_vm5, %v8666_v4, %v8665_v56 }
 0x5a2   : > { %10997 = vmatprep.subr.mxu0 %v16030_v44  ;;  %11018 = vmatprep.subr.mxu1 %v16030_v44  ;;  %v10686_v50 = vpop.f32.mrf.mxu1  ;;  %v14713_v56 = vadd.f32 %v14351_v23, %v14019_v57 }
 0x5a3   : > { %11028 = vmatprep.mubr.msk.f32.mxu1 %vm12019_vm4, %v16030_v44  ;;  %v14675_v22 = vsel %vm6460_vm5, %v8825_v35, %v14581_v15  ;;  %v14678_v26 = vsel %vm6460_vm5, %v9114_v7, %v9113_v30  ;;  %v4922_v15 = vadd.f32 %v14323_v6, %v14019_v57 }
 0x5a5   : > { %10998 = vmatpush3.xpose.msk.msra.mxu0 %vm4986_vm3, %v13971_v42  ;;  %11019 = vmatpush3.xpose.msk.msra.mxu1 %vm4986_vm3, %v13947_v12  ;;  %v4914_v12 = vadd.f32 %v14334_v41, %v14007_v59 }
 0x5a6   : > { %10999 = vmatprep.subr.mxu0 %v16030_v44  ;;  %11020 = vmatprep.subr.mxu1 %v16030_v44 }
 0x5a9   : > { %11000 = vmatpush3.xpose.msk.msra.mxu0 %vm4986_vm3, %v13982_v0  ;;  %11021 = vmatpush3.xpose.msk.msra.mxu1 %vm4986_vm3, %v13960_v24  ;;  %v4917_v24 = vadd.f32 %v14531_v32, %v14009_v45 }
 0x5aa   : > { %11001 = vmatprep.subr.mxu0 %v16030_v44  ;;  %11022 = vmatprep.subr.mxu1 %v16030_v44 }
 0x5ad   : > { %11002 = vmatpush3.xpose.msk.msra.mxu0 %vm4986_vm3, %v13993_v21  ;;  %11023 = vmatpush3.xpose.msk.msra.mxu1 %vm4986_vm3, %v13971_v42 }
 0x5ae   : > { %11024 = vmatprep.subr.mxu1 %v16030_v44 }
 0x5b0   : > { %11004 = vmatmul.mubr.msk.f32.vlgmr.msra.gmra.mxu0 %vm4986_vm3, %v4914_v12  ;;  %v5264_v53 = vpop.f32.mrf.mxu0 }
 0x5b1   : > { %11025 = vmatpush3.xpose.msk.msra.mxu1 %vm4986_vm3, %v13982_v0  ;;  %11006 = vmatprep.mubr.msk.f32.mxu0 %vm12019_vm4, %v16030_v44  ;;  %v6462_v42 = vrot.slane %v5264_v53, 6  ;;  %v6635_v21 = vrot.slane %v5264_v53, 7  ;;  %v6780_v41 = vsel %vm6463_vm6, %v5264_v53, %v14609_v58  ;;  %v6924_v46 = vrot.slane %v5264_v53, 1 }
 0x5b2   : > { %11026 = vmatprep.subr.mxu1 %v16030_v44  ;;  %v10705_v6 = vpop.f32.mrf.mxu0  ;;  %v7068_v32 = vrot.slane %v5264_v53, 2  ;;  %v7212_v62 = vrot.slane %v5264_v53, 3  ;;  %v7356_v2 = vrot.slane %v5264_v53, 4  ;;  %v7500_v17 = vrot.slane %v5264_v53, 5 }
 0x5b3   : > { %v6464_v0 = vsel %vm6463_vm6, %v6462_v42, %v14605_v48  ;;  %v6636_v9 = vsel %vm6463_vm6, %v6635_v21, %v14592_v51  ;;  %v6925_v39 = vsel %vm6463_vm6, %v6924_v46, %v14612_v25  ;;  %v11824_v51 = vld [vmem:[%s15956_s7] sm:$0xff] }
 0x5b4   : > { %11007 = vmatmul.mubr.msk.f32.gmra.mxu0 %vm4986_vm3, %v4917_v24  ;;  %v14722_v37 = vpop.f32.mrf.mxu0  ;;  %v7069_v16 = vsel %vm6463_vm6, %v7068_v32, %v14615_v5  ;;  %v7213_v57 = vsel %vm6463_vm6, %v7212_v62, %v14618_v1  ;;  %v7357_v23 = vsel %vm6463_vm6, %v7356_v2, %v14625_v43  ;;  %v7501_v49 = vsel %vm6463_vm6, %v7500_v17, %v14628_v27 }
 0x5b5   : > { %11027 = vmatpush3.xpose.msk.msra.mxu1 %vm4986_vm3, %v11824_v51  ;;  %11009 = vmatprep.mubr.msk.f32.mxu0 %vm12019_vm4, %v16030_v44  ;;  %v7659_v40 = vrot.slane %v14722_v37, 6  ;;  %v7803_v10 = vrot.slane %v14722_v37, 7  ;;  %v7948_v48 = vsel %vm6463_vm6, %v14722_v37, %v14645_v11  ;;  %v8092_v29 = vrot.slane %v14722_v37, 1 }
 0x5b6   : > { %v10708_v31 = vpop.f32.mrf.mxu0  ;;  %v8236_v58 = vrot.slane %v14722_v37, 2  ;;  %v8380_v25 = vrot.slane %v14722_v37, 3  ;;  %v8524_v5 = vrot.slane %v14722_v37, 4  ;;  %v4968_v1 = vadd.f32 %v14566_v19, %v14009_v45 }
 0x5b7   : > { %v7660_v43 = vsel %vm6463_vm6, %v7659_v40, %v14640_v33  ;;  %v7804_v27 = vsel %vm6463_vm6, %v7803_v10, %v14631_v60  ;;  %v8093_v20 = vsel %vm6463_vm6, %v8092_v29, %v14648_v38  ;;  %v8668_v60 = vrot.slane %v14722_v37, 5 }
 0x5b8   : > { %11010 = vmatmul.mubr.msk.f32.gmra.mxu0 %vm4986_vm3, %v4922_v15  ;;  %11029 = vmatmul.mubr.msk.f32.vlgmr.msra.gmra.mxu1 %vm4986_vm3, %v4965_v61  ;;  %v5353_v59 = vpop.f32.mrf.mxu1  ;;  %v5274_v14 = vpop.f32.mrf.mxu0  ;;  %v8237_v18 = vsel %vm6463_vm6, %v8236_v58, %v14651_v3  ;;  %v8381_v45 = vsel %vm6463_vm6, %v8380_v25, %v14654_v55  ;;  %v8525_v19 = vsel %vm6463_vm6, %v8524_v5, %v14664_v52 }
 0x5b9   : > { %11031 = vmatprep.mubr.msk.f32.mxu1 %vm12019_vm4, %v16030_v44  ;;  %v8827_v36 = vrot.slane %v5274_v14, 6  ;;  %v8971_v34 = vrot.slane %v5274_v14, 7  ;;  %v9116_v8 = vsel %vm6463_vm6, %v5274_v14, %v14678_v26  ;;  %v6465_v13 = vrot.slane %v5353_v59, 5 }
 0x5ba   : > { %v10730_v30 = vpop.f32.mrf.mxu1  ;;  %v10711_v33 = vpop.f32.mrf.mxu0  ;;  %v6637_v28 = vrot.slane %v5353_v59, 6  ;;  %v6781_v4 = vrot.slane %v5353_v59, 7  ;;  %v6926_v54 = vsel %vm6466_vm7, %v5353_v59, %v6925_v39  ;;  %v7070_v11 = vrot.slane %v5353_v59, 1 }
 0x5bb   : > { %v8828_v38 = vsel %vm6463_vm6, %v8827_v36, %v14675_v22  ;;  %v8972_v3 = vsel %vm6463_vm6, %v8971_v34, %v14661_v47  ;;  %v6467_v55 = vsel %vm6466_vm7, %v6465_v13, %v6464_v0  ;;  %v7214_v35 = vrot.slane %v5353_v59, 2 }
 0x5bc   : > { %11032 = vmatmul.mubr.msk.f32.gmra.mxu1 %vm4986_vm3, %v4968_v1  ;;  %v5358_v7 = vpop.f32.mrf.mxu1  ;;  %v6638_v52 = vsel %vm6466_vm7, %v6637_v28, %v6636_v9  ;;  %v6782_v50 = vsel %vm6466_vm7, %v6781_v4, %v6780_v41  ;;  %v7071_v26 = vsel %vm6466_vm7, %v7070_v11, %v7069_v16  ;;  %v7358_v12 = vrot.slane %v5353_v59, 3 }
 0x5bd   : > { %11034 = vmatprep.mubr.msk.f32.mxu1 %vm12019_vm4, %v16030_v44  ;;  %v7215_v22 = vsel %vm6466_vm7, %v7214_v35, %v7213_v57  ;;  %v7502_v15 = vrot.slane %v5353_v59, 4  ;;  %v7661_v47 = vrot.slane %v5358_v7, 5  ;;  %v7805_v24 = vrot.slane %v5358_v7, 6 }
 0x5be   : > { %v10733_v53 = vpop.f32.mrf.mxu1  ;;  %v7359_v42 = vsel %vm6466_vm7, %v7358_v12, %v7357_v23  ;;  %v7949_v21 = vrot.slane %v5358_v7, 7  ;;  %v8094_v46 = vsel %vm6466_vm7, %v5358_v7, %v8093_v20  ;;  %v8238_v6 = vrot.slane %v5358_v7, 1 }
 0x5bf   : > { %v7503_v41 = vsel %vm6466_vm7, %v7502_v15, %v7501_v49  ;;  %v7662_v32 = vsel %vm6466_vm7, %v7661_v47, %v7660_v43  ;;  %v7806_v62 = vsel %vm6466_vm7, %v7805_v24, %v7804_v27  ;;  %v8382_v2 = vrot.slane %v5358_v7, 2 }
 0x5c0   : > { %11035 = vmatmul.mubr.msk.f32.gmra.mxu1 %vm4986_vm3, %v14713_v56  ;;  %v5363_v44 = vpop.f32.mrf.mxu1  ;;  %v7950_v17 = vsel %vm6466_vm7, %v7949_v21, %v7948_v48  ;;  %v8239_v0 = vsel %vm6466_vm7, %v8238_v6, %v8237_v18  ;;  %v8526_v9 = vrot.slane %v5358_v7, 3  ;;  %v8669_v39 = vsel %vm6463_vm6, %v8668_v60, %v14669_v63 }
 0x5c1   : > { %v8829_v37 = vrot.slane %v5363_v44, 5  ;;  %v8973_v16 = vrot.slane %v5363_v44, 6  ;;  %v9117_v57 = vrot.slane %v5363_v44, 7  ;;  %v8383_v23 = vsel %vm6466_vm7, %v8382_v2, %v8381_v45 }
 0x5c2   : > { %v10736_v49 = vpop.f32.mrf.mxu1  ;;  %v8527_v51 = vsel %vm6466_vm7, %v8526_v9, %v8525_v19  ;;  %v8670_v40 = vrot.slane %v5358_v7, 4 }
 0x5c3   : > { %v8830_v56 = vsel %vm6466_vm7, %v8829_v37, %v8828_v38  ;;  %v8974_v10 = vsel %vm6466_vm7, %v8973_v16, %v8972_v3  ;;  %v9118_v48 = vsel %vm6466_vm7, %v9117_v57, %v9116_v8 }
 0x5c4   : > { %v8671_v29 = vsel %vm6466_vm7, %v8670_v40, %v8669_v39 }
 0x5d0   : > { %v5442_v61 = vpop.f32.mrf.mxu0 }
 0x5d1   : > { %v6468_v63 = vrot.slane %v5442_v61, 4  ;;  %v6639_v31 = vrot.slane %v5442_v61, 5  ;;  %v6783_v58 = vrot.slane %v5442_v61, 6  ;;  %v6927_v25 = vrot.slane %v5442_v61, 7 }
 0x5d2   : > { %v10755_v5 = vpop.f32.mrf.mxu0  ;;  %v7072_v1 = vsel %vm6469_vm8, %v5442_v61, %v7071_v26  ;;  %v7216_v43 = vrot.slane %v5442_v61, 1  ;;  %v7360_v27 = vrot.slane %v5442_v61, 2  ;;  %v7504_v20 = vrot.slane %v5442_v61, 3 }
 0x5d3   : > { %v6470_v59 = vsel %vm6469_vm8, %v6468_v63, %v6467_v55  ;;  %v6640_v14 = vsel %vm6469_vm8, %v6639_v31, %v6638_v52  ;;  %v6784_v18 = vsel %vm6469_vm8, %v6783_v58, %v6782_v50  ;;  %v6928_v45 = vsel %vm6469_vm8, %v6927_v25, %v6926_v54 }
 0x5d4   : > { %v5447_v19 = vpop.f32.mrf.mxu0  ;;  %v7217_v60 = vsel %vm6469_vm8, %v7216_v43, %v7215_v22  ;;  %v7361_v36 = vsel %vm6469_vm8, %v7360_v27, %v7359_v42  ;;  %v7505_v34 = vsel %vm6469_vm8, %v7504_v20, %v7503_v41 }
 0x5d5   : > { %v7663_v8 = vrot.slane %v5447_v19, 4  ;;  %v7807_v13 = vrot.slane %v5447_v19, 5  ;;  %v7951_v30 = vrot.slane %v5447_v19, 6  ;;  %v8095_v33 = vrot.slane %v5447_v19, 7 }
 0x5d6   : > { %v10758_v28 = vpop.f32.mrf.mxu0  ;;  %v8240_v4 = vsel %vm6469_vm8, %v5447_v19, %v8239_v0  ;;  %v8384_v11 = vrot.slane %v5447_v19, 1  ;;  %v8528_v38 = vrot.slane %v5447_v19, 2  ;;  %v8672_v3 = vrot.slane %v5447_v19, 3 }
 0x5d7   : > { %v7664_v55 = vsel %vm6469_vm8, %v7663_v8, %v7662_v32  ;;  %v7808_v54 = vsel %vm6469_vm8, %v7807_v13, %v7806_v62  ;;  %v7952_v35 = vsel %vm6469_vm8, %v7951_v30, %v7950_v17  ;;  %v8096_v7 = vsel %vm6469_vm8, %v8095_v33, %v8094_v46 }
 0x5d8   : > { %v5531_v52 = vpop.f32.mrf.mxu1  ;;  %v5452_v50 = vpop.f32.mrf.mxu0  ;;  %v8385_v26 = vsel %vm6469_vm8, %v8384_v11, %v8383_v23  ;;  %v8529_v12 = vsel %vm6469_vm8, %v8528_v38, %v8527_v51  ;;  %v8673_v22 = vsel %vm6469_vm8, %v8672_v3, %v8671_v29 }
 0x5d9   : > { %v8831_v15 = vrot.slane %v5452_v50, 4  ;;  %v8975_v47 = vrot.slane %v5452_v50, 5  ;;  %v9119_v24 = vrot.slane %v5452_v50, 6  ;;  %v6471_v53 = vrot.slane %v5531_v52, 3 }
 0x5da   : > { %v10780_v42 = vpop.f32.mrf.mxu1  ;;  %v10761_v21 = vpop.f32.mrf.mxu0  ;;  %v6641_v6 = vrot.slane %v5531_v52, 4  ;;  %v6785_v41 = vrot.slane %v5531_v52, 5  ;;  %v6929_v32 = vrot.slane %v5531_v52, 6  ;;  %v7073_v62 = vrot.slane %v5531_v52, 7 }
 0x5db   : > { %v8832_v46 = vsel %vm6469_vm8, %v8831_v15, %v8830_v56  ;;  %v8976_v2 = vsel %vm6469_vm8, %v8975_v47, %v8974_v10  ;;  %v9120_v44 = vsel %vm6469_vm8, %v9119_v24, %v9118_v48  ;;  %v6473_v17 = vsel %vm6472_vm9, %v6471_v53, %v6470_v59 }
 0x5dc   : > { %v5536_v0 = vpop.f32.mrf.mxu1  ;;  %v6642_v9 = vsel %vm6472_vm9, %v6641_v6, %v6640_v14  ;;  %v6786_v39 = vsel %vm6472_vm9, %v6785_v41, %v6784_v18  ;;  %v6930_v37 = vsel %vm6472_vm9, %v6929_v32, %v6928_v45  ;;  %v7074_v16 = vsel %vm6472_vm9, %v7073_v62, %v7072_v1 }
 0x5dd   : > { %v7218_v57 = vsel %vm6472_vm9, %v5531_v52, %v7217_v60  ;;  %v7362_v23 = vrot.slane %v5531_v52, 1  ;;  %v7506_v49 = vrot.slane %v5531_v52, 2  ;;  %v7665_v51 = vrot.slane %v5536_v0, 3 }
 0x5de   : > { %v10783_v40 = vpop.f32.mrf.mxu1  ;;  %v7809_v56 = vrot.slane %v5536_v0, 4  ;;  %v7953_v10 = vrot.slane %v5536_v0, 5  ;;  %v8097_v48 = vrot.slane %v5536_v0, 6  ;;  %v8241_v29 = vrot.slane %v5536_v0, 7 }
 0x5df   : > { %v7363_v61 = vsel %vm6472_vm9, %v7362_v23, %v7361_v36  ;;  %v7507_v63 = vsel %vm6472_vm9, %v7506_v49, %v7505_v34  ;;  %v7666_v31 = vsel %vm6472_vm9, %v7665_v51, %v7664_v55  ;;  %v8386_v58 = vsel %vm6472_vm9, %v5536_v0, %v8385_v26 }
 0x5e0   : > { %v5541_v25 = vpop.f32.mrf.mxu1  ;;  %v7810_v5 = vsel %vm6472_vm9, %v7809_v56, %v7808_v54  ;;  %v7954_v1 = vsel %vm6472_vm9, %v7953_v10, %v7952_v35  ;;  %v8098_v43 = vsel %vm6472_vm9, %v8097_v48, %v8096_v7  ;;  %v8242_v27 = vsel %vm6472_vm9, %v8241_v29, %v8240_v4 }
 0x5e1   : > { %v8833_v20 = vrot.slane %v5541_v25, 3  ;;  %v8977_v59 = vrot.slane %v5541_v25, 4  ;;  %v9121_v14 = vrot.slane %v5541_v25, 5  ;;  %v8530_v18 = vrot.slane %v5536_v0, 1 }
 0x5e2   : > { %v10786_v45 = vpop.f32.mrf.mxu1  ;;  %v8674_v19 = vrot.slane %v5536_v0, 2 }
 0x5e3   : > { %v8531_v60 = vsel %vm6472_vm9, %v8530_v18, %v8529_v12  ;;  %v14835_v36 = vsel %vm6472_vm9, %v8833_v20, %v8832_v46  ;;  %v14838_v34 = vsel %vm6472_vm9, %v8977_v59, %v8976_v2  ;;  %v14841_v8 = vsel %vm6472_vm9, %v9121_v14, %v9120_v44 }
 0x5e4   : > { %v8675_v13 = vsel %vm6472_vm9, %v8674_v19, %v8673_v22 }
 0x5f0   : > { %v5620_v30 = vpop.f32.mrf.mxu0 }
 0x5f1   : > { %v6474_v33 = vrot.slane %v5620_v30, 2  ;;  %v6643_v28 = vrot.slane %v5620_v30, 3  ;;  %v6787_v4 = vrot.slane %v5620_v30, 4  ;;  %v6931_v11 = vrot.slane %v5620_v30, 5 }
 0x5f2   : > { %v10805_v38 = vpop.f32.mrf.mxu0  ;;  %v7075_v3 = vrot.slane %v5620_v30, 6  ;;  %v7219_v55 = vrot.slane %v5620_v30, 7  ;;  %v7364_v54 = vsel %vm6475_vm10, %v5620_v30, %v7363_v61  ;;  %v7508_v35 = vrot.slane %v5620_v30, 1 }
 0x5f3   : > { %v6476_v7 = vsel %vm6475_vm10, %v6474_v33, %v6473_v17  ;;  %v6644_v52 = vsel %vm6475_vm10, %v6643_v28, %v6642_v9  ;;  %v6788_v50 = vsel %vm6475_vm10, %v6787_v4, %v6786_v39  ;;  %v6932_v26 = vsel %vm6475_vm10, %v6931_v11, %v6930_v37  ;;  %v14887_v4 = vld [vmem:[%s15957_s8] sm:$0xff] }
 0x5f4   : > { %v5625_v12 = vpop.f32.mrf.mxu0  ;;  %v7076_v22 = vsel %vm6475_vm10, %v7075_v3, %v7074_v16  ;;  %v7220_v15 = vsel %vm6475_vm10, %v7219_v55, %v7218_v57  ;;  %v7509_v47 = vsel %vm6475_vm10, %v7508_v35, %v7507_v63  ;;  %11041 = vmatprep.mubr.msk.f32.mxu0 %vm4986_vm3, %v14887_v4  ;;  %11057 = vmatprep.mubr.msk.f32.mxu1 %vm4986_vm3, %v14887_v4 }
 0x5f5   : > { %v7667_v24 = vrot.slane %v5625_v12, 2  ;;  %v7811_v53 = vrot.slane %v5625_v12, 3  ;;  %v7955_v42 = vrot.slane %v5625_v12, 4  ;;  %v8099_v21 = vrot.slane %v5625_v12, 5 }
 0x5f6   : > { %v10808_v6 = vpop.f32.mrf.mxu0  ;;  %v8243_v41 = vrot.slane %v5625_v12, 6  ;;  %v8387_v32 = vrot.slane %v5625_v12, 7  ;;  %v8532_v62 = vsel %vm6475_vm10, %v5625_v12, %v8531_v60  ;;  %v8676_v46 = vrot.slane %v5625_v12, 1 }
 0x5f7   : > { %v7668_v2 = vsel %vm6475_vm10, %v7667_v24, %v7666_v31  ;;  %v7812_v44 = vsel %vm6475_vm10, %v7811_v53, %v7810_v5  ;;  %v7956_v17 = vsel %vm6475_vm10, %v7955_v42, %v7954_v1  ;;  %v8100_v0 = vsel %vm6475_vm10, %v8099_v21, %v8098_v43 }
 0x5f8   : > { %v5709_v9 = vpop.f32.mrf.mxu1  ;;  %v5630_v39 = vpop.f32.mrf.mxu0  ;;  %v8244_v37 = vsel %vm6475_vm10, %v8243_v41, %v8242_v27  ;;  %v8388_v16 = vsel %vm6475_vm10, %v8387_v32, %v8386_v58  ;;  %v8677_v57 = vsel %vm6475_vm10, %v8676_v46, %v8675_v13 }
 0x5f9   : > { %v8835_v23 = vrot.slane %v5630_v39, 2  ;;  %v8979_v49 = vrot.slane %v5630_v39, 3  ;;  %v9123_v51 = vrot.slane %v5630_v39, 4  ;;  %v6477_v40 = vrot.slane %v5709_v9, 1 }
 0x5fa   : > { %v10830_v56 = vpop.f32.mrf.mxu1  ;;  %v10811_v10 = vpop.f32.mrf.mxu0  ;;  %v6645_v48 = vrot.slane %v5709_v9, 2  ;;  %v6789_v29 = vrot.slane %v5709_v9, 3  ;;  %v6933_v61 = vrot.slane %v5709_v9, 4  ;;  %v7077_v63 = vrot.slane %v5709_v9, 5 }
 0x5fb   : > { %v14861_v31 = vsel %vm6478_vm11, %v6477_v40, %v6476_v7  ;;  %v7221_v25 = vrot.slane %v5709_v9, 6  ;;  %v7365_v5 = vrot.slane %v5709_v9, 7  ;;  %v14864_v1 = vsel %vm6478_vm11, %v5709_v9, %v7509_v47 }
 0x5fc   : > { %v5714_v58 = vpop.f32.mrf.mxu1  ;;  %v14867_v43 = vsel %vm6478_vm11, %v6645_v48, %v6644_v52  ;;  %v14870_v27 = vsel %vm6478_vm11, %v6789_v29, %v6788_v50  ;;  %v14873_v20 = vsel %vm6478_vm11, %v6933_v61, %v6932_v26  ;;  %v14876_v59 = vsel %vm6478_vm11, %v7077_v63, %v7076_v22 }
 0x5fd   : > { %v14879_v14 = vsel %vm6478_vm11, %v7221_v25, %v7220_v15  ;;  %v14882_v18 = vsel %vm6478_vm11, %v7365_v5, %v7364_v54  ;;  %v7669_v45 = vrot.slane %v5714_v58, 1  ;;  %v7813_v19 = vrot.slane %v5714_v58, 2 }
 0x5fe   : > { %v10833_v60 = vpop.f32.mrf.mxu1  ;;  %v7957_v13 = vrot.slane %v5714_v58, 3  ;;  %v8101_v30 = vrot.slane %v5714_v58, 4  ;;  %v8245_v33 = vrot.slane %v5714_v58, 5  ;;  %v8389_v28 = vrot.slane %v5714_v58, 6 }
 0x5ff   : > { %v14890_v11 = vsel %vm6478_vm11, %v7669_v45, %v7668_v2  ;;  %v14893_v38 = vsel %vm6478_vm11, %v7813_v19, %v7812_v44  ;;  %v8533_v3 = vrot.slane %v5714_v58, 7  ;;  %v14896_v55 = vsel %vm6478_vm11, %v5714_v58, %v8677_v57 }
 0x600   : > { %v5719_v54 = vpop.f32.mrf.mxu1  ;;  %v14903_v35 = vsel %vm6478_vm11, %v7957_v13, %v7956_v17  ;;  %v14906_v7 = vsel %vm6478_vm11, %v8101_v30, %v8100_v0  ;;  %v14909_v52 = vsel %vm6478_vm11, %v8245_v33, %v8244_v37  ;;  %v14912_v22 = vsel %vm6478_vm11, %v8389_v28, %v8388_v16 }
 0x601   : > { %v8837_v50 = vrot.slane %v5719_v54, 1  ;;  %v8981_v26 = vrot.slane %v5719_v54, 2  ;;  %v9125_v12 = vrot.slane %v5719_v54, 3  ;;  %v14915_v47 = vsel %vm6478_vm11, %v8533_v3, %v8532_v62 }
 0x602   : > { %v10836_v15 = vpop.f32.mrf.mxu1  ;;  %v8836_v24 = vsel %vm6475_vm10, %v8835_v23, %v14835_v36  ;;  %v8980_v53 = vsel %vm6475_vm10, %v8979_v49, %v14838_v34  ;;  %v9124_v42 = vsel %vm6475_vm10, %v9123_v51, %v14841_v8 }
 0x603   : > { %v14924_v21 = vsel %vm6478_vm11, %v8837_v50, %v8836_v24  ;;  %v14927_v6 = vsel %vm6478_vm11, %v8981_v26, %v8980_v53  ;;  %v14930_v41 = vsel %vm6478_vm11, %v9125_v12, %v9124_v42 }
 0x604   : > { %16031 = vst [vmem:[#allocation17_spill] sm:$0xff] %v14927_v6  ;;  %16032 = vst [vmem:[#allocation18_spill] sm:$0xff] %v14930_v41 }
 0x610   : > { %v5798_v32 = vpop.f32.mrf.mxu0 }
 0x611   : > { %v6647_v36 = vrot.slane %v5798_v32, 1  ;;  %v6791_v44 = vrot.slane %v5798_v32, 2  ;;  %v6935_v17 = vrot.slane %v5798_v32, 3  ;;  %v7079_v34 = vrot.slane %v5798_v32, 4 }
 0x612   : > { %v10855_v62 = vpop.f32.mrf.mxu0  ;;  %v7223_v0 = vrot.slane %v5798_v32, 5  ;;  %v7367_v9 = vrot.slane %v5798_v32, 6  ;;  %v7511_v8 = vrot.slane %v5798_v32, 7 }
 0x614   : > { %v5803_v46 = vpop.f32.mrf.mxu0 }
 0x615   : > { %v7815_v39 = vrot.slane %v5803_v46, 1  ;;  %v7959_v57 = vrot.slane %v5803_v46, 2  ;;  %v8103_v23 = vrot.slane %v5803_v46, 3  ;;  %v8247_v49 = vrot.slane %v5803_v46, 4 }
 0x616   : > { %v10858_v2 = vpop.f32.mrf.mxu0  ;;  %v8391_v51 = vrot.slane %v5803_v46, 5  ;;  %v8535_v10 = vrot.slane %v5803_v46, 6  ;;  %v8679_v48 = vrot.slane %v5803_v46, 7 }
 0x618   : > { %v5887_v37 = vpop.f32.mrf.mxu1  ;;  %v5808_v16 = vpop.f32.mrf.mxu0 }
 0x619   : > { %v6480_v40 = vrot.slane %v5887_v37, 7  ;;  %v6648_v56 = vsel %vm6460_vm5, %v5887_v37, %v6647_v36  ;;  %v6792_v63 = vrot.slane %v5887_v37, 1  ;;  %v6936_v25 = vrot.slane %v5887_v37, 2 }
 0x61a   : > { %v10880_v29 = vpop.f32.mrf.mxu1  ;;  %v10861_v61 = vpop.f32.mrf.mxu0  ;;  %v7080_v5 = vrot.slane %v5887_v37, 3  ;;  %v7224_v58 = vrot.slane %v5887_v37, 4  ;;  %v8983_v45 = vrot.slane %v5808_v16, 1  ;;  %v7368_v60 = vrot.slane %v5887_v37, 5 }
 0x61b   : > { %v6481_v19 = vsel %vm6460_vm5, %v6480_v40, %v5798_v32  ;;  %v7512_v13 = vrot.slane %v5887_v37, 6  ;;  %v6793_v33 = vsel %vm6460_vm5, %v6792_v63, %v6791_v44  ;;  %v6937_v28 = vsel %vm6460_vm5, %v6936_v25, %v6935_v17 }
 0x61c   : > { %v5892_v30 = vpop.f32.mrf.mxu1  ;;  %v7081_v3 = vsel %vm6460_vm5, %v7080_v5, %v7079_v34  ;;  %v7225_v54 = vsel %vm6460_vm5, %v7224_v58, %v7223_v0  ;;  %v7369_v50 = vsel %vm6460_vm5, %v7368_v60, %v7367_v9  ;;  %v9127_v2 = vrot.slane %v5808_v16, 2 }
 0x61d   : > { %v7513_v26 = vsel %vm6460_vm5, %v7512_v13, %v7511_v8  ;;  %v7671_v12 = vrot.slane %v5892_v30, 7  ;;  %v7816_v15 = vsel %vm6460_vm5, %v5892_v30, %v7815_v39  ;;  %v7960_v53 = vrot.slane %v5892_v30, 1 }
 0x61e   : > { %v10883_v24 = vpop.f32.mrf.mxu1  ;;  %v8104_v42 = vrot.slane %v5892_v30, 2  ;;  %v8248_v32 = vrot.slane %v5892_v30, 3  ;;  %v8392_v62 = vrot.slane %v5892_v30, 4  ;;  %v8536_v44 = vrot.slane %v5892_v30, 5 }
 0x61f   : > { %v7672_v36 = vsel %vm6460_vm5, %v7671_v12, %v5803_v46  ;;  %v8680_v17 = vrot.slane %v5892_v30, 6  ;;  %v7961_v0 = vsel %vm6460_vm5, %v7960_v53, %v7959_v57 }
 0x620   : > { %v5897_v34 = vpop.f32.mrf.mxu1  ;;  %v8105_v9 = vsel %vm6460_vm5, %v8104_v42, %v8103_v23  ;;  %v8249_v8 = vsel %vm6460_vm5, %v8248_v32, %v8247_v49  ;;  %v8393_v37 = vsel %vm6460_vm5, %v8392_v62, %v8391_v51  ;;  %v8537_v61 = vsel %vm6460_vm5, %v8536_v44, %v8535_v10 }
 0x621   : > { %v8839_v39 = vrot.slane %v5897_v34, 7  ;;  %v8984_v40 = vsel %vm6460_vm5, %v5897_v34, %v8983_v45  ;;  %v9128_v29 = vrot.slane %v5897_v34, 1  ;;  %v8681_v46 = vsel %vm6460_vm5, %v8680_v17, %v8679_v48 }
 0x622   : > { %v10886_v63 = vpop.f32.mrf.mxu1 }
 0x623   : > { %v8840_v25 = vsel %vm6460_vm5, %v8839_v39, %v5808_v16  ;;  %v9129_v5 = vsel %vm6460_vm5, %v9128_v29, %v9127_v2 }
 0x630   : > { %v5976_v57 = vpop.f32.mrf.mxu0 }
 0x631   : > { %v6482_v58 = vrot.slane %v5976_v57, 6  ;;  %v6649_v23 = vrot.slane %v5976_v57, 7  ;;  %v6794_v49 = vsel %vm6463_vm6, %v5976_v57, %v6793_v33  ;;  %v6938_v60 = vrot.slane %v5976_v57, 1 }
 0x632   : > { %v10905_v51 = vpop.f32.mrf.mxu0  ;;  %v7082_v13 = vrot.slane %v5976_v57, 2  ;;  %v7226_v30 = vrot.slane %v5976_v57, 3  ;;  %v7370_v45 = vrot.slane %v5976_v57, 4  ;;  %v7514_v12 = vrot.slane %v5976_v57, 5 }
 0x633   : > { %v14953_v10 = vsel %vm6463_vm6, %v6482_v58, %v6481_v19  ;;  %v14956_v48 = vsel %vm6463_vm6, %v6649_v23, %v6648_v56  ;;  %v6939_v16 = vsel %vm6463_vm6, %v6938_v60, %v6937_v28 }
 0x634   : > { %v5981_v24 = vpop.f32.mrf.mxu0  ;;  %v7083_v53 = vsel %vm6463_vm6, %v7082_v13, %v7081_v3  ;;  %v7227_v42 = vsel %vm6463_vm6, %v7226_v30, %v7225_v54  ;;  %v7371_v33 = vsel %vm6463_vm6, %v7370_v45, %v7369_v50  ;;  %v7515_v32 = vsel %vm6463_vm6, %v7514_v12, %v7513_v26 }
 0x635   : > { %v7673_v62 = vrot.slane %v5981_v24, 6  ;;  %v7817_v2 = vrot.slane %v5981_v24, 7  ;;  %v7962_v44 = vsel %vm6463_vm6, %v5981_v24, %v7961_v0  ;;  %v8106_v19 = vrot.slane %v5981_v24, 1 }
 0x636   : > { %v10908_v17 = vpop.f32.mrf.mxu0  ;;  %v8250_v34 = vrot.slane %v5981_v24, 2  ;;  %v8394_v56 = vrot.slane %v5981_v24, 3  ;;  %v8538_v39 = vrot.slane %v5981_v24, 4  ;;  %v8682_v29 = vrot.slane %v5981_v24, 5 }
 0x637   : > { %v7674_v28 = vsel %vm6463_vm6, %v7673_v62, %v7672_v36  ;;  %v7818_v3 = vsel %vm6463_vm6, %v7817_v2, %v7816_v15  ;;  %v8107_v54 = vsel %vm6463_vm6, %v8106_v19, %v8105_v9 }
 0x638   : > { %v5986_v63 = vpop.f32.mrf.mxu0  ;;  %v14967_v50 = vpop.f32.mrf.mxu1  ;;  %v8251_v26 = vsel %vm6463_vm6, %v8250_v34, %v8249_v8  ;;  %v8395_v57 = vsel %vm6463_vm6, %v8394_v56, %v8393_v37  ;;  %v8539_v0 = vsel %vm6463_vm6, %v8538_v39, %v8537_v61  ;;  %v8683_v58 = vsel %vm6463_vm6, %v8682_v29, %v8681_v46 }
 0x639   : > { %v8841_v23 = vrot.slane %v5986_v63, 6  ;;  %v8985_v60 = vrot.slane %v5986_v63, 7  ;;  %v9130_v51 = vsel %vm6463_vm6, %v5986_v63, %v9129_v5  ;;  %v6795_v15 = vrot.slane %v14967_v50, 7 }
 0x63a   : > { %v10911_v36 = vpop.f32.mrf.mxu0  ;;  %v10930_v13 = vpop.f32.mrf.mxu1  ;;  %v14977_v9 = vsel %vm6466_vm7, %v14967_v50, %v6939_v16  ;;  %v7084_v8 = vrot.slane %v14967_v50, 1  ;;  %v7228_v46 = vrot.slane %v14967_v50, 2  ;;  %v7372_v12 = vrot.slane %v14967_v50, 3 }
 0x63b   : > { %v8842_v37 = vsel %vm6463_vm6, %v8841_v23, %v8840_v25  ;;  %v8986_v61 = vsel %vm6463_vm6, %v8985_v60, %v8984_v40  ;;  %v14984_v45 = vsel %vm6466_vm7, %v6795_v15, %v6794_v49  ;;  %v7516_v24 = vrot.slane %v14967_v50, 4 }
 0x63c   : > { %v6070_v30 = vpop.f32.mrf.mxu1  ;;  %v14987_v5 = vsel %vm6466_vm7, %v7084_v8, %v7083_v53  ;;  %v14991_v16 = vsel %vm6466_vm7, %v7228_v46, %v7227_v42  ;;  %v7373_v40 = vsel %vm6466_vm7, %v7372_v12, %v7371_v33 }
 0x63d   : > { %v7675_v62 = vrot.slane %v6070_v30, 5  ;;  %v7819_v25 = vrot.slane %v6070_v30, 6  ;;  %v7963_v19 = vrot.slane %v6070_v30, 7  ;;  %v8108_v17 = vsel %vm6466_vm7, %v6070_v30, %v8107_v54 }
 0x63e   : > { %v10933_v2 = vpop.f32.mrf.mxu1  ;;  %v8252_v49 = vrot.slane %v6070_v30, 1  ;;  %v7517_v34 = vsel %vm6466_vm7, %v7516_v24, %v7515_v32  ;;  %v8396_v39 = vrot.slane %v6070_v30, 2  ;;  %v8540_v23 = vrot.slane %v6070_v30, 3 }
 0x63f   : > { %v7676_v53 = vsel %vm6466_vm7, %v7675_v62, %v7674_v28  ;;  %v7820_v56 = vsel %vm6466_vm7, %v7819_v25, %v7818_v3  ;;  %v7964_v29 = vsel %vm6466_vm7, %v7963_v19, %v7962_v44  ;;  %v8684_v60 = vrot.slane %v6070_v30, 4 }
 0x640   : > { %v6075_v42 = vpop.f32.mrf.mxu1  ;;  %v8253_v63 = vsel %vm6466_vm7, %v8252_v49, %v8251_v26  ;;  %v8397_v54 = vsel %vm6466_vm7, %v8396_v39, %v8395_v57  ;;  %v8541_v32 = vsel %vm6466_vm7, %v8540_v23, %v8539_v0 }
 0x641   : > { %v8843_v36 = vrot.slane %v6075_v42, 5  ;;  %v8987_v33 = vrot.slane %v6075_v42, 6  ;;  %v9131_v13 = vrot.slane %v6075_v42, 7  ;;  %v8685_v28 = vsel %vm6466_vm7, %v8684_v60, %v8683_v58 }
 0x642   : > { %v10936_v15 = vpop.f32.mrf.mxu1 }
 0x643   : > { %v8844_v3 = vsel %vm6466_vm7, %v8843_v36, %v8842_v37  ;;  %v8988_v8 = vsel %vm6466_vm7, %v8987_v33, %v8986_v61  ;;  %v9132_v44 = vsel %vm6466_vm7, %v9131_v13, %v9130_v51 }
 0x650   : > { %v15007_v46 = vpop.f32.mrf.mxu0 }
 0x651   : > { %v7374_v30 = vrot.slane %v15007_v46, 2  ;;  %v7518_v12 = vrot.slane %v15007_v46, 3 }
 0x652   : > { %v10955_v26 = vpop.f32.mrf.mxu0 }
 0x653   : > { %v15012_v57 = vsel %vm6469_vm8, %v7374_v30, %v7373_v40  ;;  %v15015_v0 = vsel %vm6469_vm8, %v7518_v12, %v7517_v34 }
 0x654   : > { %v6159_v24 = vpop.f32.mrf.mxu0 }
 0x655   : > { %v7677_v58 = vrot.slane %v6159_v24, 4  ;;  %v7821_v37 = vrot.slane %v6159_v24, 5  ;;  %v7965_v62 = vrot.slane %v6159_v24, 6  ;;  %v8109_v61 = vrot.slane %v6159_v24, 7 }
 0x656   : > { %v10958_v25 = vpop.f32.mrf.mxu0  ;;  %v8254_v51 = vsel %vm6469_vm8, %v6159_v24, %v8253_v63  ;;  %v8398_v2 = vrot.slane %v6159_v24, 1  ;;  %v8542_v19 = vrot.slane %v6159_v24, 2  ;;  %v8686_v49 = vrot.slane %v6159_v24, 3 }
 0x657   : > { %v7678_v39 = vsel %vm6469_vm8, %v7677_v58, %v7676_v53  ;;  %v7822_v42 = vsel %vm6469_vm8, %v7821_v37, %v7820_v56  ;;  %v7966_v40 = vsel %vm6469_vm8, %v7965_v62, %v7964_v29  ;;  %v8110_v23 = vsel %vm6469_vm8, %v8109_v61, %v8108_v17 }
 0x658   : > { %v6164_v34 = vpop.f32.mrf.mxu0  ;;  %v15022_v60 = vpop.f32.mrf.mxu1  ;;  %v8399_v36 = vsel %vm6469_vm8, %v8398_v2, %v8397_v54  ;;  %v8543_v33 = vsel %vm6469_vm8, %v8542_v19, %v8541_v32  ;;  %v8687_v63 = vsel %vm6469_vm8, %v8686_v49, %v8685_v28 }
 0x659   : > { %v8845_v13 = vrot.slane %v6164_v34, 4  ;;  %v8989_v15 = vrot.slane %v6164_v34, 5  ;;  %v9133_v26 = vrot.slane %v6164_v34, 6 }
 0x65a   : > { %v10961_v30 = vpop.f32.mrf.mxu0  ;;  %v10980_v53 = vpop.f32.mrf.mxu1 }
 0x65b   : > { %v8846_v56 = vsel %vm6469_vm8, %v8845_v13, %v8844_v3  ;;  %v8990_v29 = vsel %vm6469_vm8, %v8989_v15, %v8988_v8  ;;  %v9134_v17 = vsel %vm6469_vm8, %v9133_v26, %v9132_v44  ;;  %v6651_v30 = vrot.slane %v14967_v50, 6 }
 0x65c   : > { %v6248_v12 = vpop.f32.mrf.mxu1 }
 0x65d   : > { %v7679_v24 = vrot.slane %v6248_v12, 3  ;;  %v7823_v37 = vrot.slane %v6248_v12, 4  ;;  %v7967_v54 = vrot.slane %v6248_v12, 5  ;;  %v8111_v62 = vrot.slane %v6248_v12, 6 }
 0x65e   : > { %v10983_v58 = vpop.f32.mrf.mxu1  ;;  %v8255_v32 = vrot.slane %v6248_v12, 7  ;;  %v8400_v61 = vsel %vm6472_vm9, %v6248_v12, %v8399_v36  ;;  %v8544_v13 = vrot.slane %v6248_v12, 1  ;;  %v8688_v26 = vrot.slane %v6248_v12, 2 }
 0x65f   : > { %v15031_v28 = vsel %vm6472_vm9, %v7679_v24, %v7678_v39  ;;  %v15035_v2 = vsel %vm6472_vm9, %v7823_v37, %v7822_v42  ;;  %v7968_v3 = vsel %vm6472_vm9, %v7967_v54, %v7966_v40  ;;  %v8112_v8 = vsel %vm6472_vm9, %v8111_v62, %v8110_v23 }
 0x660   : > { %v6253_v25 = vpop.f32.mrf.mxu1  ;;  %v8256_v44 = vsel %vm6472_vm9, %v8255_v32, %v8254_v51  ;;  %v8545_v39 = vsel %vm6472_vm9, %v8544_v13, %v8543_v33  ;;  %v8689_v23 = vsel %vm6472_vm9, %v8688_v26, %v8687_v63  ;;  %v6484_v51 = vrot.slane %v14967_v50, 5 }
 0x661   : > { %v8847_v19 = vrot.slane %v6253_v25, 3  ;;  %v8991_v49 = vrot.slane %v6253_v25, 4  ;;  %v9135_v34 = vrot.slane %v6253_v25, 5  ;;  %v6486_v12 = vrot.slane %v15007_v46, 4 }
 0x662   : > { %v10986_v15 = vpop.f32.mrf.mxu1  ;;  %v6797_v24 = vrot.slane %v15007_v46, 6  ;;  %v6941_v63 = vrot.slane %v15007_v46, 7  ;;  %v6488_v37 = vrot.slane %v15022_v60, 3  ;;  %v15070_v54 = vsel %vm6469_vm8, %v15007_v46, %v14987_v5 }
 0x663   : > { %v15042_v36 = vsel %vm6472_vm9, %v8847_v19, %v8846_v56  ;;  %v15045_v42 = vsel %vm6472_vm9, %v8991_v49, %v8990_v29  ;;  %v15048_v40 = vsel %vm6472_vm9, %v9135_v34, %v9134_v17  ;;  %v6485_v56 = vsel %vm6466_vm7, %v6484_v51, %v14953_v10 }
 0x664   : > { %v6652_v29 = vsel %vm6466_vm7, %v6651_v30, %v14956_v48  ;;  %v6653_v17 = vrot.slane %v15007_v46, 5  ;;  %v6487_v50 = vsel %vm6469_vm8, %v6486_v12, %v6485_v56  ;;  %v6655_v62 = vrot.slane %v15022_v60, 4 }
 0x665   : > { %v6799_v56 = vrot.slane %v15022_v60, 5 }
 0x666   : > { %v6654_v15 = vsel %vm6469_vm8, %v6653_v17, %v6652_v29  ;;  %v6489_v17 = vsel %vm6472_vm9, %v6488_v37, %v6487_v50  ;;  %v6942_v37 = vsel %vm6469_vm8, %v6941_v63, %v14977_v9 }
 0x667   : > { %v6656_v6 = vsel %vm6472_vm9, %v6655_v62, %v6654_v15 }
 0x670   : > { %v15053_v53 = vpop.f32.mrf.mxu0 }
 0x671   : > { %v6490_v48 = vrot.slane %v15053_v53, 2  ;;  %v6657_v26 = vrot.slane %v15053_v53, 3  ;;  %v7089_v63 = vrot.slane %v15053_v53, 6 }
 0x672   : > { %v11005_v33 = vpop.f32.mrf.mxu0 }
 0x673   : > { %v6491_v41 = vsel %vm6475_vm10, %v6490_v48, %v6489_v17  ;;  %v6658_v50 = vsel %vm6475_vm10, %v6657_v26, %v6656_v6  ;;  %v15123_v6 = vld [vmem:[%s15957_s8 + $0x8] sm:$0xff] }
 0x674   : > { %v15063_v58 = vpop.f32.mrf.mxu0 }
 0x675   : > { %v7969_v32 = vrot.slane %v15063_v58, 4  ;;  %v8113_v25 = vrot.slane %v15063_v58, 5  ;;  %v8257_v49 = vrot.slane %v15063_v58, 6  ;;  %v8401_v34 = vrot.slane %v15063_v58, 7 }
 0x676   : > { %v11008_v19 = vpop.f32.mrf.mxu0  ;;  %v15081_v13 = vsel %vm6475_vm10, %v15063_v58, %v8545_v39  ;;  %v8690_v5 = vrot.slane %v15063_v58, 1 }
 0x677   : > { %v15087_v51 = vsel %vm6475_vm10, %v7969_v32, %v7968_v3  ;;  %v15090_v30 = vsel %vm6475_vm10, %v8113_v25, %v8112_v8  ;;  %v8258_v39 = vsel %vm6475_vm10, %v8257_v49, %v8256_v44  ;;  %v8402_v19 = vsel %vm6475_vm10, %v8401_v34, %v8400_v61 }
 0x678   : > { %v15092_v12 = vpop.f32.mrf.mxu0  ;;  %v15094_v33 = vpop.f32.mrf.mxu1  ;;  %v8691_v29 = vsel %vm6475_vm10, %v8690_v5, %v8689_v23  ;;  %v6801_v32 = vrot.slane %v15053_v53, 4  ;;  %v6943_v8 = vrot.slane %v15022_v60, 6  ;;  %v6798_v61 = vsel %vm6469_vm8, %v6797_v24, %v14984_v45 }
 0x679   : > { %v6492_v3 = vrot.slane %v15094_v33, 1  ;;  %v6659_v44 = vrot.slane %v15094_v33, 2  ;;  %v6945_v49 = vrot.slane %v15053_v53, 5  ;;  %v6800_v48 = vsel %vm6472_vm9, %v6799_v56, %v6798_v61 }
 0x67a   : > { %v11011_v25 = vpop.f32.mrf.mxu0  ;;  %v11030_v10 = vpop.f32.mrf.mxu1  ;;  %v6803_v62 = vrot.slane %v15094_v33, 3  ;;  %v6947_v45 = vrot.slane %v15094_v33, 4  ;;  %v6944_v9 = vsel %vm6472_vm9, %v6943_v8, %v6942_v37  ;;  %v7087_v24 = vrot.slane %v15022_v60, 7 }
 0x67b   : > { %v6493_v23 = vsel %vm6478_vm11, %v6492_v3, %v6491_v41  ;;  %v6660_v10 = vsel %vm6478_vm11, %v6659_v44, %v6658_v50  ;;  %v6802_v41 = vsel %vm6475_vm10, %v6801_v32, %v6800_v48  ;;  %v8849_v5 = vrot.slane %v15092_v12, 2 }
 0x67c   : > { %v15114_v34 = vpop.f32.mrf.mxu1  ;;  %11037 = vmatprep.subr.mxu0 %v6493_v23  ;;  %11053 = vmatprep.subr.mxu1 %v6660_v10  ;;  %v8993_v15 = vrot.slane %v15092_v12, 3  ;;  %v9137_v3 = vrot.slane %v15092_v12, 4  ;;  %v6946_v32 = vsel %vm6475_vm10, %v6945_v49, %v6944_v9  ;;  %v6804_v12 = vsel %vm6478_vm11, %v6803_v62, %v6802_v41 }
 0x67d   : > { %11038 = vmatpush3.msra.mxu0 %v6493_v23  ;;  %11054 = vmatpush3.msra.mxu1 %v6660_v10  ;;  %v8259_v56 = vrot.slane %v15114_v34, 5  ;;  %v8403_v17 = vrot.slane %v15114_v34, 6  ;;  %v8547_v8 = vrot.slane %v15114_v34, 7  ;;  %v15141_v25 = vsel %vm6478_vm11, %v15114_v34, %v8691_v29 }
 0x67e   : > { %v11033_v26 = vpop.f32.mrf.mxu1  ;;  %11039 = vmatprep.subr.mxu0 %v14861_v31  ;;  %11055 = vmatprep.subr.mxu1 %v14867_v43  ;;  %v6948_v61 = vsel %vm6478_vm11, %v6947_v45, %v6946_v32  ;;  %v8850_v62 = vsel %vm6475_vm10, %v8849_v5, %v15042_v36  ;;  %v8994_v45 = vsel %vm6475_vm10, %v8993_v15, %v15045_v42  ;;  %v7235_v41 = vrot.slane %v15094_v33, 6 }
 0x67f   : > { %11040 = vmatpush3.msra.mxu0 %v14861_v31  ;;  %11056 = vmatpush3.msra.mxu1 %v14867_v43  ;;  %v7233_v31 = vrot.slane %v15053_v53, 7  ;;  %v15150_v23 = vsel %vm6478_vm11, %v8259_v56, %v8258_v39  ;;  %v15157_v43 = vld [vmem:[%s15957_s8 + $0x10] sm:$0xff]  ;;  %v15160_v29 = vsel %vm6478_vm11, %v8403_v17, %v8402_v19  ;;  %v7091_v39 = vrot.slane %v15094_v33, 5  ;;  %v15175_v19 = vld [vmem:[%s15957_s8 + $0x18] sm:$0xff] }
 0x680   : > { %v6431_v44 = vpop.f32.mrf.mxu1  ;;  %11042 = vmatmul.mubr.msk.f32.vlgmr.msra.gmra.mxu0 %vm4986_vm3, %v15123_v6  ;;  %11058 = vmatmul.mubr.msk.f32.vlgmr.msra.gmra.mxu1 %vm4986_vm3, %v15123_v6  ;;  %v15165_v48 = vsel %vm6478_vm11, %v8547_v8, %v15081_v13  ;;  %v9138_v36 = vsel %vm6475_vm10, %v9137_v3, %v15048_v40  ;;  %v7088_v42 = vsel %vm6472_vm9, %v7087_v24, %v15070_v54  ;;  %v16033_v5 = vrot.slane %v15007_v46, 1  ;;  %v15207_v54 = vld [vmem:[%s15957_s8 + $0x20] sm:$0xff]  ;;  %v15220_v24 = vld [vmem:[%s15957_s8 + $0x28] sm:$0xff] }
 0x681   : > { %v8851_v50 = vrot.slane %v6431_v44, 1  ;;  %v8995_v37 = vrot.slane %v6431_v44, 2  ;;  %v9139_v49 = vrot.slane %v6431_v44, 3  ;;  %11069 = vmatprep.subr.mxu0 %v6804_v12  ;;  %11085 = vmatprep.subr.mxu1 %v6948_v61  ;;  %v7090_v40 = vsel %vm6475_vm10, %v7089_v63, %v7088_v42  ;;  %v15240_v63 = vld [vmem:[%s15957_s8 + $0x38] sm:$0xff] }
 0x682   : > { %11070 = vmatpush3.msra.mxu0 %v6804_v12  ;;  %v11036_v10 = vpop.f32.mrf.mxu1  ;;  %11086 = vmatpush3.msra.mxu1 %v6948_v61  ;;  %v7231_v15 = vsel %vm6469_vm8, %v16033_v5, %v14991_v16  ;;  %v7092_v16 = vsel %vm6478_vm11, %v7091_v39, %v7090_v40  ;;  %v7376_v17 = vrot.slane %v15022_v60, 1  ;;  %v7520_v3 = vrot.slane %v15022_v60, 2 }
 0x683   : > { %11071 = vmatprep.subr.mxu0 %v14870_v27  ;;  %v15179_v9 = vsel %vm6478_vm11, %v8851_v50, %v8850_v62  ;;  %v15182_v13 = vsel %vm6478_vm11, %v8995_v37, %v8994_v45  ;;  %11087 = vmatprep.subr.mxu1 %v14873_v20  ;;  %v15196_v26 = vsel %vm6478_vm11, %v9139_v49, %v9138_v36  ;;  %v7379_v32 = vrot.slane %v15094_v33, 7 }
 0x684   : > { %11044 = vmatprep.mubr.msk.f32.mxu0 %vm4986_vm3, %v15157_v43  ;;  %11060 = vmatprep.mubr.msk.f32.mxu1 %vm4986_vm3, %v15157_v43  ;;  %v7232_v56 = vsel %vm6472_vm9, %v15022_v60, %v7231_v15  ;;  %v7522_v8 = vrot.slane %v15053_v53, 1  ;;  %v7377_v44 = vsel %vm6472_vm9, %v7376_v17, %v15012_v57  ;;  %v7521_v12 = vsel %vm6472_vm9, %v7520_v3, %v15015_v0 }
 0x685   : > { %11072 = vmatpush3.msra.mxu0 %v14870_v27  ;;  %11088 = vmatpush3.msra.mxu1 %v14873_v20  ;;  %v7234_v46 = vsel %vm6475_vm10, %v7233_v31, %v7232_v56  ;;  %v15227_v20 = vld [vmem:[%s15957_s8 + $0x30] sm:$0xff]  ;;  %v7378_v60 = vsel %vm6475_vm10, %v15053_v53, %v7377_v44  ;;  %v7683_v57 = vrot.slane %v15114_v34, 1  ;;  %v7825_v0 = vrot.slane %v15063_v58, 3 }
 0x686   : > { %11045 = vmatmul.mubr.msk.f32.gmra.mxu0 %vm4986_vm3, %v15175_v19  ;;  %11061 = vmatmul.mubr.msk.f32.gmra.mxu1 %vm4986_vm3, %v15175_v19  ;;  %v7236_v27 = vsel %vm6478_vm11, %v7235_v41, %v7234_v46  ;;  %v7380_v61 = vsel %vm6478_vm11, %v7379_v32, %v7378_v60  ;;  %v7523_v31 = vsel %vm6475_vm10, %v7522_v8, %v7521_v12  ;;  %v7827_v53 = vrot.slane %v15114_v34, 2 }
 0x687   : > { %11101 = vmatprep.subr.mxu0 %v7092_v16  ;;  %11117 = vmatprep.subr.mxu1 %v7236_v27  ;;  %v7826_v50 = vsel %vm6475_vm10, %v7825_v0, %v15035_v2 }
 0x688   : > { %11047 = vmatprep.mubr.msk.f32.mxu0 %vm4986_vm3, %v15207_v54  ;;  %11063 = vmatprep.mubr.msk.f32.mxu1 %vm4986_vm3, %v15207_v54  ;;  %v7828_v37 = vsel %vm6478_vm11, %v7827_v53, %v7826_v50 }
 0x68a   : > { %11048 = vmatmul.mubr.msk.f32.gmra.mxu0 %vm4986_vm3, %v15220_v24  ;;  %11064 = vmatmul.mubr.msk.f32.gmra.mxu1 %vm4986_vm3, %v15220_v24 }
 0x68b   : > { %11050 = vmatprep.mubr.msk.f32.mxu0 %vm4986_vm3, %v15227_v20  ;;  %11066 = vmatprep.mubr.msk.f32.mxu1 %vm4986_vm3, %v15227_v20 }
 0x68e   : > { %11051 = vmatmul.mubr.msk.f32.gmra.mxu0 %vm4986_vm3, %v15240_v63  ;;  %11067 = vmatmul.mubr.msk.f32.gmra.mxu1 %vm4986_vm3, %v15240_v63 }
 0x68f   : > { %11073 = vmatprep.mubr.msk.f32.mxu0 %vm4986_vm3, %v14887_v4  ;;  %11089 = vmatprep.mubr.msk.f32.mxu1 %vm4986_vm3, %v14887_v4 }
 0x692   : > { %11074 = vmatmul.mubr.msk.f32.vlgmr.msra.gmra.mxu0 %vm4986_vm3, %v15123_v6  ;;  %11090 = vmatmul.mubr.msk.f32.vlgmr.msra.gmra.mxu1 %vm4986_vm3, %v15123_v6 }
 0x693   : > { %11102 = vmatpush3.msra.mxu0 %v7092_v16  ;;  %11118 = vmatpush3.msra.mxu1 %v7236_v27 }
 0x694   : > { %11103 = vmatprep.subr.mxu0 %v14876_v59  ;;  %11119 = vmatprep.subr.mxu1 %v14879_v14 }
 0x695   : > { %11104 = vmatpush3.msra.mxu0 %v14876_v59  ;;  %11120 = vmatpush3.msra.mxu1 %v14879_v14  ;;  %v7524_v59 = vsel %vm6478_vm11, %v15094_v33, %v7523_v31  ;;  %v7681_v14 = vrot.slane %v15063_v58, 2 }
 0x696   : > { %11076 = vmatprep.mubr.msk.f32.mxu0 %vm4986_vm3, %v15157_v43  ;;  %11092 = vmatprep.mubr.msk.f32.mxu1 %vm4986_vm3, %v15157_v43 }
 0x697   : > { %11133 = vmatprep.subr.mxu0 %v7380_v61  ;;  %11149 = vmatprep.subr.mxu1 %v7524_v59  ;;  %v7682_v33 = vsel %vm6475_vm10, %v7681_v14, %v15031_v28 }
 0x698   : > { %11077 = vmatmul.mubr.msk.f32.gmra.mxu0 %vm4986_vm3, %v15175_v19  ;;  %11093 = vmatmul.mubr.msk.f32.gmra.mxu1 %vm4986_vm3, %v15175_v19  ;;  %v7684_v58 = vsel %vm6478_vm11, %v7683_v57, %v7682_v33 }
 0x699   : > { %11079 = vmatprep.mubr.msk.f32.mxu0 %vm4986_vm3, %v15207_v54  ;;  %11095 = vmatprep.mubr.msk.f32.mxu1 %vm4986_vm3, %v15207_v54 }
 0x69c   : > { %11080 = vmatmul.mubr.msk.f32.gmra.mxu0 %vm4986_vm3, %v15220_v24  ;;  %11096 = vmatmul.mubr.msk.f32.gmra.mxu1 %vm4986_vm3, %v15220_v24 }
 0x69d   : > { %11082 = vmatprep.mubr.msk.f32.mxu0 %vm4986_vm3, %v15227_v20  ;;  %11098 = vmatprep.mubr.msk.f32.mxu1 %vm4986_vm3, %v15227_v20 }
 0x6a0   : > { %11083 = vmatmul.mubr.msk.f32.gmra.mxu0 %vm4986_vm3, %v15240_v63  ;;  %11099 = vmatmul.mubr.msk.f32.gmra.mxu1 %vm4986_vm3, %v15240_v63 }
 0x6a1   : > { %11105 = vmatprep.mubr.msk.f32.mxu0 %vm4986_vm3, %v14887_v4  ;;  %11121 = vmatprep.mubr.msk.f32.mxu1 %vm4986_vm3, %v14887_v4 }
 0x6a4   : > { %11106 = vmatmul.mubr.msk.f32.vlgmr.msra.gmra.mxu0 %vm4986_vm3, %v15123_v6  ;;  %11122 = vmatmul.mubr.msk.f32.vlgmr.msra.gmra.mxu1 %vm4986_vm3, %v15123_v6 }
 0x6a5   : > { %11134 = vmatpush3.msra.mxu0 %v7380_v61  ;;  %11150 = vmatpush3.msra.mxu1 %v7524_v59 }
 0x6a6   : > { %11135 = vmatprep.subr.mxu0 %v14882_v18  ;;  %11151 = vmatprep.subr.mxu1 %v14864_v1 }
 0x6a7   : > { %11136 = vmatpush3.msra.mxu0 %v14882_v18  ;;  %11152 = vmatpush3.msra.mxu1 %v14864_v1  ;;  %v7971_v1 = vrot.slane %v15114_v34, 3  ;;  %v8115_v18 = vrot.slane %v15114_v34, 4 }
 0x6a8   : > { %11108 = vmatprep.mubr.msk.f32.mxu0 %vm4986_vm3, %v15157_v43  ;;  %11124 = vmatprep.mubr.msk.f32.mxu1 %vm4986_vm3, %v15157_v43 }
 0x6a9   : > { %11165 = vmatprep.subr.mxu0 %v7684_v58  ;;  %11181 = vmatprep.subr.mxu1 %v7828_v37  ;;  %v7972_v28 = vsel %vm6478_vm11, %v7971_v1, %v15087_v51  ;;  %v8116_v2 = vsel %vm6478_vm11, %v8115_v18, %v15090_v30 }
 0x6aa   : > { %11109 = vmatmul.mubr.msk.f32.gmra.mxu0 %vm4986_vm3, %v15175_v19  ;;  %11125 = vmatmul.mubr.msk.f32.gmra.mxu1 %vm4986_vm3, %v15175_v19 }
 0x6ab   : > { %11111 = vmatprep.mubr.msk.f32.mxu0 %vm4986_vm3, %v15207_v54  ;;  %11127 = vmatprep.mubr.msk.f32.mxu1 %vm4986_vm3, %v15207_v54 }
 0x6ae   : > { %11112 = vmatmul.mubr.msk.f32.gmra.mxu0 %vm4986_vm3, %v15220_v24  ;;  %11128 = vmatmul.mubr.msk.f32.gmra.mxu1 %vm4986_vm3, %v15220_v24 }
 0x6af   : > { %11114 = vmatprep.mubr.msk.f32.mxu0 %vm4986_vm3, %v15227_v20  ;;  %11130 = vmatprep.mubr.msk.f32.mxu1 %vm4986_vm3, %v15227_v20 }
 0x6b2   : > { %11115 = vmatmul.mubr.msk.f32.gmra.mxu0 %vm4986_vm3, %v15240_v63  ;;  %11131 = vmatmul.mubr.msk.f32.gmra.mxu1 %vm4986_vm3, %v15240_v63 }
 0x6b3   : > { %11137 = vmatprep.mubr.msk.f32.mxu0 %vm4986_vm3, %v14887_v4  ;;  %11153 = vmatprep.mubr.msk.f32.mxu1 %vm4986_vm3, %v14887_v4 }
 0x6b6   : > { %11138 = vmatmul.mubr.msk.f32.vlgmr.msra.gmra.mxu0 %vm4986_vm3, %v15123_v6  ;;  %11154 = vmatmul.mubr.msk.f32.vlgmr.msra.gmra.mxu1 %vm4986_vm3, %v15123_v6 }
 0x6b7   : > { %11166 = vmatpush3.msra.mxu0 %v7684_v58  ;;  %11182 = vmatpush3.msra.mxu1 %v7828_v37 }
 0x6b8   : > { %11167 = vmatprep.subr.mxu0 %v14890_v11  ;;  %11183 = vmatprep.subr.mxu1 %v14893_v38 }
 0x6b9   : > { %11168 = vmatpush3.msra.mxu0 %v14890_v11  ;;  %11184 = vmatpush3.msra.mxu1 %v14893_v38  ;;  %v16034_v11 = vld [vmem:[#allocation17_spill] sm:$0xff]  ;;  %v16035_v38 = vld [vmem:[#allocation18_spill] sm:$0xff] }
 0x6ba   : > { %11140 = vmatprep.mubr.msk.f32.mxu0 %vm4986_vm3, %v15157_v43  ;;  %11156 = vmatprep.mubr.msk.f32.mxu1 %vm4986_vm3, %v15157_v43 }
 0x6bb   : > { %11197 = vmatprep.subr.mxu0 %v7972_v28  ;;  %11213 = vmatprep.subr.mxu1 %v8116_v2 }
 0x6bc   : > { %11141 = vmatmul.mubr.msk.f32.gmra.mxu0 %vm4986_vm3, %v15175_v19  ;;  %11157 = vmatmul.mubr.msk.f32.gmra.mxu1 %vm4986_vm3, %v15175_v19 }
 0x6bd   : > { %11143 = vmatprep.mubr.msk.f32.mxu0 %vm4986_vm3, %v15207_v54  ;;  %11159 = vmatprep.mubr.msk.f32.mxu1 %vm4986_vm3, %v15207_v54 }
 0x6c0   : > { %11144 = vmatmul.mubr.msk.f32.gmra.mxu0 %vm4986_vm3, %v15220_v24  ;;  %11160 = vmatmul.mubr.msk.f32.gmra.mxu1 %vm4986_vm3, %v15220_v24 }
 0x6c1   : > { %11146 = vmatprep.mubr.msk.f32.mxu0 %vm4986_vm3, %v15227_v20  ;;  %11162 = vmatprep.mubr.msk.f32.mxu1 %vm4986_vm3, %v15227_v20 }
 0x6c4   : > { %11147 = vmatmul.mubr.msk.f32.gmra.mxu0 %vm4986_vm3, %v15240_v63  ;;  %11163 = vmatmul.mubr.msk.f32.gmra.mxu1 %vm4986_vm3, %v15240_v63 }
 0x6c5   : > { %11169 = vmatprep.mubr.msk.f32.mxu0 %vm4986_vm3, %v14887_v4  ;;  %11185 = vmatprep.mubr.msk.f32.mxu1 %vm4986_vm3, %v14887_v4 }
 0x6c8   : > { %11170 = vmatmul.mubr.msk.f32.vlgmr.msra.gmra.mxu0 %vm4986_vm3, %v15123_v6  ;;  %11186 = vmatmul.mubr.msk.f32.vlgmr.msra.gmra.mxu1 %vm4986_vm3, %v15123_v6 }
 0x6c9   : > { %11198 = vmatpush3.msra.mxu0 %v7972_v28  ;;  %11214 = vmatpush3.msra.mxu1 %v8116_v2 }
 0x6ca   : > { %11199 = vmatprep.subr.mxu0 %v14903_v35  ;;  %11215 = vmatprep.subr.mxu1 %v14906_v7 }
 0x6cb   : > { %11200 = vmatpush3.msra.mxu0 %v14903_v35  ;;  %11216 = vmatpush3.msra.mxu1 %v14906_v7 }
 0x6cc   : > { %11172 = vmatprep.mubr.msk.f32.mxu0 %vm4986_vm3, %v15157_v43  ;;  %11188 = vmatprep.mubr.msk.f32.mxu1 %vm4986_vm3, %v15157_v43 }
 0x6cd   : > { %11229 = vmatprep.subr.mxu0 %v15150_v23  ;;  %11245 = vmatprep.subr.mxu1 %v15160_v29 }
 0x6ce   : > { %11173 = vmatmul.mubr.msk.f32.gmra.mxu0 %vm4986_vm3, %v15175_v19  ;;  %11189 = vmatmul.mubr.msk.f32.gmra.mxu1 %vm4986_vm3, %v15175_v19 }
 0x6cf   : > { %11175 = vmatprep.mubr.msk.f32.mxu0 %vm4986_vm3, %v15207_v54  ;;  %11191 = vmatprep.mubr.msk.f32.mxu1 %vm4986_vm3, %v15207_v54 }
 0x6d2   : > { %11176 = vmatmul.mubr.msk.f32.gmra.mxu0 %vm4986_vm3, %v15220_v24  ;;  %11192 = vmatmul.mubr.msk.f32.gmra.mxu1 %vm4986_vm3, %v15220_v24 }
 0x6d3   : > { %11178 = vmatprep.mubr.msk.f32.mxu0 %vm4986_vm3, %v15227_v20  ;;  %11194 = vmatprep.mubr.msk.f32.mxu1 %vm4986_vm3, %v15227_v20 }
 0x6d6   : > { %11179 = vmatmul.mubr.msk.f32.gmra.mxu0 %vm4986_vm3, %v15240_v63  ;;  %11195 = vmatmul.mubr.msk.f32.gmra.mxu1 %vm4986_vm3, %v15240_v63 }
 0x6d7   : > { %11201 = vmatprep.mubr.msk.f32.mxu0 %vm4986_vm3, %v14887_v4  ;;  %11217 = vmatprep.mubr.msk.f32.mxu1 %vm4986_vm3, %v14887_v4 }
 0x6da   : > { %11202 = vmatmul.mubr.msk.f32.vlgmr.msra.gmra.mxu0 %vm4986_vm3, %v15123_v6  ;;  %11218 = vmatmul.mubr.msk.f32.vlgmr.msra.gmra.mxu1 %vm4986_vm3, %v15123_v6 }
 0x6db   : > { %11230 = vmatpush3.msra.mxu0 %v15150_v23  ;;  %11246 = vmatpush3.msra.mxu1 %v15160_v29 }
 0x6dc   : > { %11231 = vmatprep.subr.mxu0 %v14909_v52  ;;  %11247 = vmatprep.subr.mxu1 %v14912_v22 }
 0x6dd   : > { %11232 = vmatpush3.msra.mxu0 %v14909_v52  ;;  %11248 = vmatpush3.msra.mxu1 %v14912_v22 }
 0x6de   : > { %11204 = vmatprep.mubr.msk.f32.mxu0 %vm4986_vm3, %v15157_v43  ;;  %11220 = vmatprep.mubr.msk.f32.mxu1 %vm4986_vm3, %v15157_v43 }
 0x6df   : > { %11261 = vmatprep.subr.mxu0 %v15165_v48  ;;  %11277 = vmatprep.subr.mxu1 %v15141_v25 }
 0x6e0   : > { %11205 = vmatmul.mubr.msk.f32.gmra.mxu0 %vm4986_vm3, %v15175_v19  ;;  %11221 = vmatmul.mubr.msk.f32.gmra.mxu1 %vm4986_vm3, %v15175_v19 }
 0x6e1   : > { %11207 = vmatprep.mubr.msk.f32.mxu0 %vm4986_vm3, %v15207_v54  ;;  %11223 = vmatprep.mubr.msk.f32.mxu1 %vm4986_vm3, %v15207_v54 }
 0x6e4   : > { %11208 = vmatmul.mubr.msk.f32.gmra.mxu0 %vm4986_vm3, %v15220_v24  ;;  %11224 = vmatmul.mubr.msk.f32.gmra.mxu1 %vm4986_vm3, %v15220_v24 }
 0x6e5   : > { %11210 = vmatprep.mubr.msk.f32.mxu0 %vm4986_vm3, %v15227_v20  ;;  %11226 = vmatprep.mubr.msk.f32.mxu1 %vm4986_vm3, %v15227_v20 }
 0x6e8   : > { %11211 = vmatmul.mubr.msk.f32.gmra.mxu0 %vm4986_vm3, %v15240_v63  ;;  %11227 = vmatmul.mubr.msk.f32.gmra.mxu1 %vm4986_vm3, %v15240_v63 }
 0x6e9   : > { %11233 = vmatprep.mubr.msk.f32.mxu0 %vm4986_vm3, %v14887_v4  ;;  %11249 = vmatprep.mubr.msk.f32.mxu1 %vm4986_vm3, %v14887_v4  ;;  %v11825_v4 = vld [vmem:[%s15957_s8] sm:$0xff] }
 0x6ec   : > { %11234 = vmatmul.mubr.msk.f32.vlgmr.msra.gmra.mxu0 %vm4986_vm3, %v15123_v6  ;;  %11250 = vmatmul.mubr.msk.f32.vlgmr.msra.gmra.mxu1 %vm4986_vm3, %v15123_v6 }
 0x6ed   : > { %11262 = vmatpush3.msra.mxu0 %v15165_v48  ;;  %11278 = vmatpush3.msra.mxu1 %v15141_v25 }
 0x6ee   : > { %11263 = vmatprep.subr.mxu0 %v14915_v47  ;;  %11279 = vmatprep.subr.mxu1 %v14896_v55 }
 0x6ef   : > { %11264 = vmatpush3.msra.mxu0 %v14915_v47  ;;  %11280 = vmatpush3.msra.mxu1 %v14896_v55 }
 0x6f0   : > { %11236 = vmatprep.mubr.msk.f32.mxu0 %vm4986_vm3, %v15157_v43  ;;  %11252 = vmatprep.mubr.msk.f32.mxu1 %vm4986_vm3, %v15157_v43 }
 0x6f1   : > { %11293 = vmatprep.subr.mxu0 %v15179_v9  ;;  %11309 = vmatprep.subr.mxu1 %v15182_v13 }
 0x6f2   : > { %11237 = vmatmul.mubr.msk.f32.gmra.mxu0 %vm4986_vm3, %v15175_v19  ;;  %11253 = vmatmul.mubr.msk.f32.gmra.mxu1 %vm4986_vm3, %v15175_v19 }
 0x6f3   : > { %11239 = vmatprep.mubr.msk.f32.mxu0 %vm4986_vm3, %v15207_v54  ;;  %11255 = vmatprep.mubr.msk.f32.mxu1 %vm4986_vm3, %v15207_v54 }
 0x6f6   : > { %11240 = vmatmul.mubr.msk.f32.gmra.mxu0 %vm4986_vm3, %v15220_v24  ;;  %11256 = vmatmul.mubr.msk.f32.gmra.mxu1 %vm4986_vm3, %v15220_v24 }
 0x6f7   : > { %11242 = vmatprep.mubr.msk.f32.mxu0 %vm4986_vm3, %v15227_v20  ;;  %11258 = vmatprep.mubr.msk.f32.mxu1 %vm4986_vm3, %v15227_v20 }
 0x6fa   : > { %11243 = vmatmul.mubr.msk.f32.gmra.mxu0 %vm4986_vm3, %v15240_v63  ;;  %11259 = vmatmul.mubr.msk.f32.gmra.mxu1 %vm4986_vm3, %v15240_v63 }
 0x6fb   : > { %11265 = vmatprep.mubr.msk.f32.mxu0 %vm4986_vm3, %v11825_v4  ;;  %11281 = vmatprep.mubr.msk.f32.mxu1 %vm4986_vm3, %v11825_v4 }
 0x6fe   : > { %11266 = vmatmul.mubr.msk.f32.vlgmr.msra.gmra.mxu0 %vm4986_vm3, %v15123_v6  ;;  %11282 = vmatmul.mubr.msk.f32.vlgmr.msra.gmra.mxu1 %vm4986_vm3, %v15123_v6 }
 0x6ff   : > { %11294 = vmatpush3.msra.mxu0 %v15179_v9  ;;  %11310 = vmatpush3.msra.mxu1 %v15182_v13 }
 0x700   : > { %11295 = vmatprep.subr.mxu0 %v14924_v21  ;;  %11311 = vmatprep.subr.mxu1 %v16034_v11 }
 0x701   : > { %11296 = vmatpush3.msra.mxu0 %v14924_v21  ;;  %11312 = vmatpush3.msra.mxu1 %v16034_v11 }
 0x702   : > { %11268 = vmatprep.mubr.msk.f32.mxu0 %vm4986_vm3, %v15157_v43  ;;  %11325 = vmatprep.subr.mxu0 %v15196_v26 }
 0x703   : > { %11269 = vmatmul.mubr.msk.f32.gmra.mxu0 %vm4986_vm3, %v15175_v19  ;;  %11284 = vmatprep.mubr.msk.f32.mxu1 %vm4986_vm3, %v15157_v43 }
 0x704   : > { %11271 = vmatprep.mubr.msk.f32.mxu0 %vm4986_vm3, %v15207_v54  ;;  %11285 = vmatmul.mubr.msk.f32.gmra.mxu1 %vm4986_vm3, %v15175_v19 }
 0x705   : > { %11287 = vmatprep.mubr.msk.f32.mxu1 %vm4986_vm3, %v15207_v54 }
 0x707   : > { %11272 = vmatmul.mubr.msk.f32.gmra.mxu0 %vm4986_vm3, %v15220_v24 }
 0x708   : > { %11274 = vmatprep.mubr.msk.f32.mxu0 %vm4986_vm3, %v15227_v20  ;;  %11288 = vmatmul.mubr.msk.f32.gmra.mxu1 %vm4986_vm3, %v15220_v24 }
 0x709   : > { %11290 = vmatprep.mubr.msk.f32.mxu1 %vm4986_vm3, %v15227_v20 }
 0x70b   : > { %11275 = vmatmul.mubr.msk.f32.gmra.mxu0 %vm4986_vm3, %v15240_v63 }
 0x70c   : > { %11297 = vmatprep.mubr.msk.f32.mxu0 %vm4986_vm3, %v11825_v4  ;;  %11291 = vmatmul.mubr.msk.f32.gmra.mxu1 %vm4986_vm3, %v15240_v63 }
 0x70d   : > { %11313 = vmatprep.mubr.msk.f32.mxu1 %vm4986_vm3, %v11825_v4 }
 0x70f   : > { %11298 = vmatmul.mubr.msk.f32.vlgmr.msra.gmra.mxu0 %vm4986_vm3, %v15123_v6 }
 0x710   : > { %11326 = vmatpush3.msra.mxu0 %v15196_v26  ;;  %11300 = vmatprep.mubr.msk.f32.mxu0 %vm4986_vm3, %v15157_v43 }
 0x711   : > { %11327 = vmatprep.subr.mxu0 %v16035_v38  ;;  %11314 = vmatmul.mubr.msk.f32.vlgmr.msra.gmra.mxu1 %vm4986_vm3, %v15123_v6 }
 0x712   : > { %11328 = vmatpush3.msra.mxu0 %v16035_v38  ;;  %11316 = vmatprep.mubr.msk.f32.mxu1 %vm4986_vm3, %v15157_v43 }
 0x713   : > { %11301 = vmatmul.mubr.msk.f32.gmra.mxu0 %vm4986_vm3, %v15175_v19 }
 0x714   : > { %11303 = vmatprep.mubr.msk.f32.mxu0 %vm4986_vm3, %v15207_v54 }
 0x715   : > { %11317 = vmatmul.mubr.msk.f32.gmra.mxu1 %vm4986_vm3, %v15175_v19 }
 0x716   : > { %11319 = vmatprep.mubr.msk.f32.mxu1 %vm4986_vm3, %v15207_v54 }
 0x717   : > { %11304 = vmatmul.mubr.msk.f32.gmra.mxu0 %vm4986_vm3, %v15220_v24 }
 0x718   : > { %11306 = vmatprep.mubr.msk.f32.mxu0 %vm4986_vm3, %v15227_v20 }
 0x719   : > { %11320 = vmatmul.mubr.msk.f32.gmra.mxu1 %vm4986_vm3, %v15220_v24 }
 0x71a   : > { %11322 = vmatprep.mubr.msk.f32.mxu1 %vm4986_vm3, %v15227_v20 }
 0x71b   : > { %11307 = vmatmul.mubr.msk.f32.gmra.mxu0 %vm4986_vm3, %v15240_v63 }
 0x71c   : > { %11329 = vmatprep.mubr.msk.f32.mxu0 %vm4986_vm3, %v11825_v4 }
 0x71d   : > { %11323 = vmatmul.mubr.msk.f32.gmra.mxu1 %vm4986_vm3, %v15240_v63 }
 0x71f   : > { %11330 = vmatmul.mubr.msk.f32.vlgmr.msra.gmra.mxu0 %vm4986_vm3, %v15123_v6 }
 0x720   : > { %11332 = vmatprep.mubr.msk.f32.mxu0 %vm4986_vm3, %v15157_v43 }
 0x723   : > { %11333 = vmatmul.mubr.msk.f32.gmra.mxu0 %vm4986_vm3, %v15175_v19 }
 0x724   : > { %11335 = vmatprep.mubr.msk.f32.mxu0 %vm4986_vm3, %v15207_v54 }
 0x727   : > { %11336 = vmatmul.mubr.msk.f32.gmra.mxu0 %vm4986_vm3, %v15220_v24 }
 0x728   : > { %11338 = vmatprep.mubr.msk.f32.mxu0 %vm4986_vm3, %v15227_v20 }
 0x72b   : > { %11339 = vmatmul.mubr.msk.f32.gmra.mxu0 %vm4986_vm3, %v15240_v63 }
 0x740   : > { %v11043_v55 = vpop.f32.mrf.mxu0  ;;  %v11059_v35 = vpop.f32.mrf.mxu1 }
 0x741   : > { %6626 = vst.msk [vmem:[%s15593_s15 + $0x8] sm:$0xff] %vm392_vm0, %v11043_v55  ;;  %9844 = vst.msk [vmem:[%s15593_s15 + $0x48] sm:$0xff] %vm392_vm0, %v11059_v35 }
 0x742   : > { %v6586_v7 = vpop.f32.mrf.mxu0  ;;  %v6729_v52 = vpop.f32.mrf.mxu1 }
 0x743   : > { %6625 = vst.msk [vmem:[%s15593_s15] sm:$0xff] %vm392_vm0, %v6586_v7  ;;  %9843 = vst.msk [vmem:[%s15593_s15 + $0x40] sm:$0xff] %vm392_vm0, %v6729_v52 }
 0x746   : > { %v11046_v22 = vpop.f32.mrf.mxu0  ;;  %v11062_v47 = vpop.f32.mrf.mxu1 }
 0x747   : > { %6628 = vst.msk [vmem:[%s15593_s15 + $0x18] sm:$0xff] %vm392_vm0, %v11046_v22  ;;  %9846 = vst.msk [vmem:[%s15593_s15 + $0x58] sm:$0xff] %vm392_vm0, %v11062_v47 }
 0x748   : > { %v6596_v21 = vpop.f32.mrf.mxu0  ;;  %v6739_v51 = vpop.f32.mrf.mxu1 }
 0x749   : > { %6627 = vst.msk [vmem:[%s15593_s15 + $0x10] sm:$0xff] %vm392_vm0, %v6596_v21  ;;  %9845 = vst.msk [vmem:[%s15593_s15 + $0x50] sm:$0xff] %vm392_vm0, %v6739_v51 }
 0x74a   : > { %v11049_v30 = vpop.f32.mrf.mxu0  ;;  %v11065_v34 = vpop.f32.mrf.mxu1 }
 0x74b   : > { %6630 = vst.msk [vmem:[%s15593_s15 + $0x28] sm:$0xff] %vm392_vm0, %v11049_v30  ;;  %9848 = vst.msk [vmem:[%s15593_s15 + $0x68] sm:$0xff] %vm392_vm0, %v11065_v34 }
 0x74c   : > { %v6606_v6 = vpop.f32.mrf.mxu0  ;;  %v6749_v25 = vpop.f32.mrf.mxu1 }
 0x74d   : > { %6629 = vst.msk [vmem:[%s15593_s15 + $0x20] sm:$0xff] %vm392_vm0, %v6606_v6  ;;  %9847 = vst.msk [vmem:[%s15593_s15 + $0x60] sm:$0xff] %vm392_vm0, %v6749_v25 }
 0x74e   : > { %v11052_v23 = vpop.f32.mrf.mxu0  ;;  %v11068_v49 = vpop.f32.mrf.mxu1 }
 0x74f   : > { %6632 = vst.msk [vmem:[%s15593_s15 + $0x38] sm:$0xff] %vm392_vm0, %v11052_v23  ;;  %9850 = vst.msk [vmem:[%s15593_s15 + $0x78] sm:$0xff] %vm392_vm0, %v11068_v49 }
 0x750   : > { %v6616_v43 = vpop.f32.mrf.mxu0  ;;  %v6759_v29 = vpop.f32.mrf.mxu1 }
 0x751   : > { %6631 = vst.msk [vmem:[%s15593_s15 + $0x30] sm:$0xff] %vm392_vm0, %v6616_v43  ;;  %9849 = vst.msk [vmem:[%s15593_s15 + $0x70] sm:$0xff] %vm392_vm0, %v6759_v29 }
 0x752   : > { %v11075_v10 = vpop.f32.mrf.mxu0  ;;  %v11091_v39 = vpop.f32.mrf.mxu1 }
 0x753   : > { %9860 = vst.msk [vmem:[%s15593_s15 + $0x88] sm:$0xff] %vm392_vm0, %v11075_v10  ;;  %9876 = vst.msk [vmem:[%s15593_s15 + $0xc8] sm:$0xff] %vm392_vm0, %v11091_v39 }
 0x754   : > { %v6873_v48 = vpop.f32.mrf.mxu0  ;;  %v7017_v62 = vpop.f32.mrf.mxu1 }
 0x755   : > { %9859 = vst.msk [vmem:[%s15593_s15 + $0x80] sm:$0xff] %vm392_vm0, %v6873_v48  ;;  %9875 = vst.msk [vmem:[%s15593_s15 + $0xc0] sm:$0xff] %vm392_vm0, %v7017_v62 }
 0x758   : > { %v11078_v45 = vpop.f32.mrf.mxu0  ;;  %v11094_v19 = vpop.f32.mrf.mxu1 }
 0x759   : > { %9862 = vst.msk [vmem:[%s15593_s15 + $0x98] sm:$0xff] %vm392_vm0, %v11078_v45  ;;  %9878 = vst.msk [vmem:[%s15593_s15 + $0xd8] sm:$0xff] %vm392_vm0, %v11094_v19 }
 0x75a   : > { %v6883_v41 = vpop.f32.mrf.mxu0  ;;  %v7027_v9 = vpop.f32.mrf.mxu1 }
 0x75b   : > { %9861 = vst.msk [vmem:[%s15593_s15 + $0x90] sm:$0xff] %vm392_vm0, %v6883_v41  ;;  %9877 = vst.msk [vmem:[%s15593_s15 + $0xd0] sm:$0xff] %vm392_vm0, %v7027_v9 }
 0x75c   : > { %v11081_v13 = vpop.f32.mrf.mxu0  ;;  %v11097_v36 = vpop.f32.mrf.mxu1 }
 0x75d   : > { %9864 = vst.msk [vmem:[%s15593_s15 + $0xa8] sm:$0xff] %vm392_vm0, %v11081_v13  ;;  %9880 = vst.msk [vmem:[%s15593_s15 + $0xe8] sm:$0xff] %vm392_vm0, %v11097_v36 }
 0x75e   : > { %v6893_v42 = vpop.f32.mrf.mxu0  ;;  %v7037_v5 = vpop.f32.mrf.mxu1 }
 0x75f   : > { %9863 = vst.msk [vmem:[%s15593_s15 + $0xa0] sm:$0xff] %vm392_vm0, %v6893_v42  ;;  %9879 = vst.msk [vmem:[%s15593_s15 + $0xe0] sm:$0xff] %vm392_vm0, %v7037_v5 }
 0x760   : > { %v11084_v15 = vpop.f32.mrf.mxu0  ;;  %v11100_v26 = vpop.f32.mrf.mxu1 }
 0x761   : > { %9866 = vst.msk [vmem:[%s15593_s15 + $0xb8] sm:$0xff] %vm392_vm0, %v11084_v15  ;;  %9882 = vst.msk [vmem:[%s15593_s15 + $0xf8] sm:$0xff] %vm392_vm0, %v11100_v26 }
 0x762   : > { %v6903_v40 = vpop.f32.mrf.mxu0  ;;  %v7047_v56 = vpop.f32.mrf.mxu1 }
 0x763   : > { %9865 = vst.msk [vmem:[%s15593_s15 + $0xb0] sm:$0xff] %vm392_vm0, %v6903_v40  ;;  %9881 = vst.msk [vmem:[%s15593_s15 + $0xf0] sm:$0xff] %vm392_vm0, %v7047_v56 }
 0x764   : > { %v11107_v54 = vpop.f32.mrf.mxu0  ;;  %v11123_v16 = vpop.f32.mrf.mxu1 }
 0x765   : > { %9892 = vst.msk [vmem:[%s15593_s15 + $0x108] sm:$0xff] %vm392_vm0, %v11107_v54  ;;  %9908 = vst.msk [vmem:[%s15593_s15 + $0x148] sm:$0xff] %vm392_vm0, %v11123_v16 }
 0x766   : > { %v7161_v46 = vpop.f32.mrf.mxu0  ;;  %v7305_v27 = vpop.f32.mrf.mxu1 }
 0x767   : > { %9891 = vst.msk [vmem:[%s15593_s15 + $0x100] sm:$0xff] %vm392_vm0, %v7161_v46  ;;  %9907 = vst.msk [vmem:[%s15593_s15 + $0x140] sm:$0xff] %vm392_vm0, %v7305_v27 }
 0x76a   : > { %v11110_v24 = vpop.f32.mrf.mxu0  ;;  %v11126_v20 = vpop.f32.mrf.mxu1 }
 0x76b   : > { %9894 = vst.msk [vmem:[%s15593_s15 + $0x118] sm:$0xff] %vm392_vm0, %v11110_v24  ;;  %9910 = vst.msk [vmem:[%s15593_s15 + $0x158] sm:$0xff] %vm392_vm0, %v11126_v20 }
 0x76c   : > { %v7171_v63 = vpop.f32.mrf.mxu0  ;;  %v7315_v17 = vpop.f32.mrf.mxu1 }
 0x76d   : > { %9893 = vst.msk [vmem:[%s15593_s15 + $0x110] sm:$0xff] %vm392_vm0, %v7171_v63  ;;  %9909 = vst.msk [vmem:[%s15593_s15 + $0x150] sm:$0xff] %vm392_vm0, %v7315_v17 }
 0x76e   : > { %v11113_v3 = vpop.f32.mrf.mxu0  ;;  %v11129_v32 = vpop.f32.mrf.mxu1 }
 0x76f   : > { %9896 = vst.msk [vmem:[%s15593_s15 + $0x128] sm:$0xff] %vm392_vm0, %v11113_v3  ;;  %9912 = vst.msk [vmem:[%s15593_s15 + $0x168] sm:$0xff] %vm392_vm0, %v11129_v32 }
 0x770   : > { %v7181_v8 = vpop.f32.mrf.mxu0  ;;  %v7325_v44 = vpop.f32.mrf.mxu1 }
 0x771   : > { %9895 = vst.msk [vmem:[%s15593_s15 + $0x120] sm:$0xff] %vm392_vm0, %v7181_v8  ;;  %9911 = vst.msk [vmem:[%s15593_s15 + $0x160] sm:$0xff] %vm392_vm0, %v7325_v44 }
 0x772   : > { %v11116_v60 = vpop.f32.mrf.mxu0  ;;  %v11132_v12 = vpop.f32.mrf.mxu1 }
 0x773   : > { %9898 = vst.msk [vmem:[%s15593_s15 + $0x138] sm:$0xff] %vm392_vm0, %v11116_v60  ;;  %9914 = vst.msk [vmem:[%s15593_s15 + $0x178] sm:$0xff] %vm392_vm0, %v11132_v12 }
 0x774   : > { %v7191_v61 = vpop.f32.mrf.mxu0  ;;  %v7335_v31 = vpop.f32.mrf.mxu1 }
 0x775   : > { %9897 = vst.msk [vmem:[%s15593_s15 + $0x130] sm:$0xff] %vm392_vm0, %v7191_v61  ;;  %9913 = vst.msk [vmem:[%s15593_s15 + $0x170] sm:$0xff] %vm392_vm0, %v7335_v31 }
 0x776   : > { %v11139_v59 = vpop.f32.mrf.mxu0  ;;  %v11155_v14 = vpop.f32.mrf.mxu1 }
 0x777   : > { %9924 = vst.msk [vmem:[%s15593_s15 + $0x188] sm:$0xff] %vm392_vm0, %v11139_v59  ;;  %9940 = vst.msk [vmem:[%s15593_s15 + $0x1c8] sm:$0xff] %vm392_vm0, %v11155_v14 }
 0x778   : > { %v7449_v57 = vpop.f32.mrf.mxu0  ;;  %v7593_v0 = vpop.f32.mrf.mxu1 }
 0x779   : > { %9923 = vst.msk [vmem:[%s15593_s15 + $0x180] sm:$0xff] %vm392_vm0, %v7449_v57  ;;  %9939 = vst.msk [vmem:[%s15593_s15 + $0x1c0] sm:$0xff] %vm392_vm0, %v7593_v0 }
 0x77c   : > { %v11142_v53 = vpop.f32.mrf.mxu0  ;;  %v11158_v33 = vpop.f32.mrf.mxu1 }
 0x77d   : > { %9926 = vst.msk [vmem:[%s15593_s15 + $0x198] sm:$0xff] %vm392_vm0, %v11142_v53  ;;  %9942 = vst.msk [vmem:[%s15593_s15 + $0x1d8] sm:$0xff] %vm392_vm0, %v11158_v33 }
 0x77e   : > { %v7459_v58 = vpop.f32.mrf.mxu0  ;;  %v7603_v50 = vpop.f32.mrf.mxu1 }
 0x77f   : > { %9925 = vst.msk [vmem:[%s15593_s15 + $0x190] sm:$0xff] %vm392_vm0, %v7459_v58  ;;  %9941 = vst.msk [vmem:[%s15593_s15 + $0x1d0] sm:$0xff] %vm392_vm0, %v7603_v50 }
 0x780   : > { %v11145_v37 = vpop.f32.mrf.mxu0  ;;  %v11161_v1 = vpop.f32.mrf.mxu1 }
 0x781   : > { %9928 = vst.msk [vmem:[%s15593_s15 + $0x1a8] sm:$0xff] %vm392_vm0, %v11145_v37  ;;  %9944 = vst.msk [vmem:[%s15593_s15 + $0x1e8] sm:$0xff] %vm392_vm0, %v11161_v1 }
 0x782   : > { %v7469_v18 = vpop.f32.mrf.mxu0  ;;  %v7613_v28 = vpop.f32.mrf.mxu1 }
 0x783   : > { %9927 = vst.msk [vmem:[%s15593_s15 + $0x1a0] sm:$0xff] %vm392_vm0, %v7469_v18  ;;  %9943 = vst.msk [vmem:[%s15593_s15 + $0x1e0] sm:$0xff] %vm392_vm0, %v7613_v28 }
 0x784   : > { %v11148_v2 = vpop.f32.mrf.mxu0  ;;  %v11164_v4 = vpop.f32.mrf.mxu1 }
 0x785   : > { %9930 = vst.msk [vmem:[%s15593_s15 + $0x1b8] sm:$0xff] %vm392_vm0, %v11148_v2  ;;  %9946 = vst.msk [vmem:[%s15593_s15 + $0x1f8] sm:$0xff] %vm392_vm0, %v11164_v4 }
 0x786   : > { %v7479_v11 = vpop.f32.mrf.mxu0  ;;  %v7623_v38 = vpop.f32.mrf.mxu1 }
 0x787   : > { %9929 = vst.msk [vmem:[%s15593_s15 + $0x1b0] sm:$0xff] %vm392_vm0, %v7479_v11  ;;  %9945 = vst.msk [vmem:[%s15593_s15 + $0x1f0] sm:$0xff] %vm392_vm0, %v7623_v38 }
 0x788   : > { %v11171_v55 = vpop.f32.mrf.mxu0  ;;  %v11187_v35 = vpop.f32.mrf.mxu1 }
 0x789   : > { %9956 = vst.msk [vmem:[%s15593_s15 + $0x208] sm:$0xff] %vm392_vm0, %v11171_v55  ;;  %9972 = vst.msk [vmem:[%s15593_s15 + $0x248] sm:$0xff] %vm392_vm0, %v11187_v35 }
 0x78a   : > { %v7753_v7 = vpop.f32.mrf.mxu0  ;;  %v7897_v52 = vpop.f32.mrf.mxu1 }
 0x78b   : > { %9955 = vst.msk [vmem:[%s15593_s15 + $0x200] sm:$0xff] %vm392_vm0, %v7753_v7  ;;  %9971 = vst.msk [vmem:[%s15593_s15 + $0x240] sm:$0xff] %vm392_vm0, %v7897_v52 }
 0x78e   : > { %v11174_v22 = vpop.f32.mrf.mxu0  ;;  %v11190_v47 = vpop.f32.mrf.mxu1 }
 0x78f   : > { %9958 = vst.msk [vmem:[%s15593_s15 + $0x218] sm:$0xff] %vm392_vm0, %v11174_v22  ;;  %9974 = vst.msk [vmem:[%s15593_s15 + $0x258] sm:$0xff] %vm392_vm0, %v11190_v47 }
 0x790   : > { %v7763_v21 = vpop.f32.mrf.mxu0  ;;  %v7907_v51 = vpop.f32.mrf.mxu1 }
 0x791   : > { %9957 = vst.msk [vmem:[%s15593_s15 + $0x210] sm:$0xff] %vm392_vm0, %v7763_v21  ;;  %9973 = vst.msk [vmem:[%s15593_s15 + $0x250] sm:$0xff] %vm392_vm0, %v7907_v51 }
 0x792   : > { %v11177_v30 = vpop.f32.mrf.mxu0  ;;  %v11193_v34 = vpop.f32.mrf.mxu1 }
 0x793   : > { %9960 = vst.msk [vmem:[%s15593_s15 + $0x228] sm:$0xff] %vm392_vm0, %v11177_v30  ;;  %9976 = vst.msk [vmem:[%s15593_s15 + $0x268] sm:$0xff] %vm392_vm0, %v11193_v34 }
 0x794   : > { %v7773_v6 = vpop.f32.mrf.mxu0  ;;  %v7917_v25 = vpop.f32.mrf.mxu1 }
 0x795   : > { %9959 = vst.msk [vmem:[%s15593_s15 + $0x220] sm:$0xff] %vm392_vm0, %v7773_v6  ;;  %9975 = vst.msk [vmem:[%s15593_s15 + $0x260] sm:$0xff] %vm392_vm0, %v7917_v25 }
 0x796   : > { %v11180_v23 = vpop.f32.mrf.mxu0  ;;  %v11196_v49 = vpop.f32.mrf.mxu1 }
 0x797   : > { %9962 = vst.msk [vmem:[%s15593_s15 + $0x238] sm:$0xff] %vm392_vm0, %v11180_v23  ;;  %9978 = vst.msk [vmem:[%s15593_s15 + $0x278] sm:$0xff] %vm392_vm0, %v11196_v49 }
 0x798   : > { %v7783_v43 = vpop.f32.mrf.mxu0  ;;  %v7927_v29 = vpop.f32.mrf.mxu1 }
 0x799   : > { %9961 = vst.msk [vmem:[%s15593_s15 + $0x230] sm:$0xff] %vm392_vm0, %v7783_v43  ;;  %9977 = vst.msk [vmem:[%s15593_s15 + $0x270] sm:$0xff] %vm392_vm0, %v7927_v29 }
 0x79a   : > { %v11203_v10 = vpop.f32.mrf.mxu0  ;;  %v11219_v39 = vpop.f32.mrf.mxu1 }
 0x79b   : > { %9988 = vst.msk [vmem:[%s15593_s15 + $0x288] sm:$0xff] %vm392_vm0, %v11203_v10  ;;  %10004 = vst.msk [vmem:[%s15593_s15 + $0x2c8] sm:$0xff] %vm392_vm0, %v11219_v39 }
 0x79c   : > { %v8041_v48 = vpop.f32.mrf.mxu0  ;;  %v8185_v62 = vpop.f32.mrf.mxu1 }
 0x79d   : > { %9987 = vst.msk [vmem:[%s15593_s15 + $0x280] sm:$0xff] %vm392_vm0, %v8041_v48  ;;  %10003 = vst.msk [vmem:[%s15593_s15 + $0x2c0] sm:$0xff] %vm392_vm0, %v8185_v62 }
 0x7a0   : > { %v11206_v45 = vpop.f32.mrf.mxu0  ;;  %v11222_v19 = vpop.f32.mrf.mxu1 }
 0x7a1   : > { %9990 = vst.msk [vmem:[%s15593_s15 + $0x298] sm:$0xff] %vm392_vm0, %v11206_v45  ;;  %10006 = vst.msk [vmem:[%s15593_s15 + $0x2d8] sm:$0xff] %vm392_vm0, %v11222_v19 }
 0x7a2   : > { %v8051_v41 = vpop.f32.mrf.mxu0  ;;  %v8195_v9 = vpop.f32.mrf.mxu1 }
 0x7a3   : > { %9989 = vst.msk [vmem:[%s15593_s15 + $0x290] sm:$0xff] %vm392_vm0, %v8051_v41  ;;  %10005 = vst.msk [vmem:[%s15593_s15 + $0x2d0] sm:$0xff] %vm392_vm0, %v8195_v9 }
 0x7a4   : > { %v11209_v13 = vpop.f32.mrf.mxu0  ;;  %v11225_v36 = vpop.f32.mrf.mxu1 }
 0x7a5   : > { %9992 = vst.msk [vmem:[%s15593_s15 + $0x2a8] sm:$0xff] %vm392_vm0, %v11209_v13  ;;  %10008 = vst.msk [vmem:[%s15593_s15 + $0x2e8] sm:$0xff] %vm392_vm0, %v11225_v36 }
 0x7a6   : > { %v8061_v42 = vpop.f32.mrf.mxu0  ;;  %v8205_v5 = vpop.f32.mrf.mxu1 }
 0x7a7   : > { %9991 = vst.msk [vmem:[%s15593_s15 + $0x2a0] sm:$0xff] %vm392_vm0, %v8061_v42  ;;  %10007 = vst.msk [vmem:[%s15593_s15 + $0x2e0] sm:$0xff] %vm392_vm0, %v8205_v5 }
 0x7a8   : > { %v11212_v15 = vpop.f32.mrf.mxu0  ;;  %v11228_v26 = vpop.f32.mrf.mxu1 }
 0x7a9   : > { %9994 = vst.msk [vmem:[%s15593_s15 + $0x2b8] sm:$0xff] %vm392_vm0, %v11212_v15  ;;  %10010 = vst.msk [vmem:[%s15593_s15 + $0x2f8] sm:$0xff] %vm392_vm0, %v11228_v26 }
 0x7aa   : > { %v8071_v40 = vpop.f32.mrf.mxu0  ;;  %v8215_v56 = vpop.f32.mrf.mxu1 }
 0x7ab   : > { %9993 = vst.msk [vmem:[%s15593_s15 + $0x2b0] sm:$0xff] %vm392_vm0, %v8071_v40  ;;  %10009 = vst.msk [vmem:[%s15593_s15 + $0x2f0] sm:$0xff] %vm392_vm0, %v8215_v56 }
 0x7ac   : > { %v11235_v54 = vpop.f32.mrf.mxu0  ;;  %v11251_v16 = vpop.f32.mrf.mxu1 }
 0x7ad   : > { %10020 = vst.msk [vmem:[%s15593_s15 + $0x308] sm:$0xff] %vm392_vm0, %v11235_v54  ;;  %10036 = vst.msk [vmem:[%s15593_s15 + $0x348] sm:$0xff] %vm392_vm0, %v11251_v16 }
 0x7ae   : > { %v8329_v46 = vpop.f32.mrf.mxu0  ;;  %v8473_v27 = vpop.f32.mrf.mxu1 }
 0x7af   : > { %10019 = vst.msk [vmem:[%s15593_s15 + $0x300] sm:$0xff] %vm392_vm0, %v8329_v46  ;;  %10035 = vst.msk [vmem:[%s15593_s15 + $0x340] sm:$0xff] %vm392_vm0, %v8473_v27 }
 0x7b2   : > { %v11238_v24 = vpop.f32.mrf.mxu0  ;;  %v11254_v20 = vpop.f32.mrf.mxu1 }
 0x7b3   : > { %10022 = vst.msk [vmem:[%s15593_s15 + $0x318] sm:$0xff] %vm392_vm0, %v11238_v24  ;;  %10038 = vst.msk [vmem:[%s15593_s15 + $0x358] sm:$0xff] %vm392_vm0, %v11254_v20 }
 0x7b4   : > { %v8339_v63 = vpop.f32.mrf.mxu0  ;;  %v8483_v17 = vpop.f32.mrf.mxu1 }
 0x7b5   : > { %10021 = vst.msk [vmem:[%s15593_s15 + $0x310] sm:$0xff] %vm392_vm0, %v8339_v63  ;;  %10037 = vst.msk [vmem:[%s15593_s15 + $0x350] sm:$0xff] %vm392_vm0, %v8483_v17 }
 0x7b6   : > { %v11241_v3 = vpop.f32.mrf.mxu0  ;;  %v11257_v32 = vpop.f32.mrf.mxu1 }
 0x7b7   : > { %10024 = vst.msk [vmem:[%s15593_s15 + $0x328] sm:$0xff] %vm392_vm0, %v11241_v3  ;;  %10040 = vst.msk [vmem:[%s15593_s15 + $0x368] sm:$0xff] %vm392_vm0, %v11257_v32 }
 0x7b8   : > { %v8349_v8 = vpop.f32.mrf.mxu0  ;;  %v8493_v44 = vpop.f32.mrf.mxu1 }
 0x7b9   : > { %10023 = vst.msk [vmem:[%s15593_s15 + $0x320] sm:$0xff] %vm392_vm0, %v8349_v8  ;;  %10039 = vst.msk [vmem:[%s15593_s15 + $0x360] sm:$0xff] %vm392_vm0, %v8493_v44 }
 0x7ba   : > { %v11244_v60 = vpop.f32.mrf.mxu0  ;;  %v11260_v12 = vpop.f32.mrf.mxu1 }
 0x7bb   : > { %10026 = vst.msk [vmem:[%s15593_s15 + $0x338] sm:$0xff] %vm392_vm0, %v11244_v60  ;;  %10042 = vst.msk [vmem:[%s15593_s15 + $0x378] sm:$0xff] %vm392_vm0, %v11260_v12 }
 0x7bc   : > { %v8359_v61 = vpop.f32.mrf.mxu0  ;;  %v8503_v31 = vpop.f32.mrf.mxu1 }
 0x7bd   : > { %10025 = vst.msk [vmem:[%s15593_s15 + $0x330] sm:$0xff] %vm392_vm0, %v8359_v61  ;;  %10041 = vst.msk [vmem:[%s15593_s15 + $0x370] sm:$0xff] %vm392_vm0, %v8503_v31 }
 0x7be   : > { %v11267_v59 = vpop.f32.mrf.mxu0  ;;  %v11283_v14 = vpop.f32.mrf.mxu1 }
 0x7bf   : > { %10052 = vst.msk [vmem:[%s15593_s15 + $0x388] sm:$0xff] %vm392_vm0, %v11267_v59  ;;  %10068 = vst.msk [vmem:[%s15593_s15 + $0x3c8] sm:$0xff] %vm392_vm0, %v11283_v14 }
 0x7c0   : > { %v8617_v57 = vpop.f32.mrf.mxu0  ;;  %v8761_v0 = vpop.f32.mrf.mxu1 }
 0x7c1   : > { %10051 = vst.msk [vmem:[%s15593_s15 + $0x380] sm:$0xff] %vm392_vm0, %v8617_v57  ;;  %10067 = vst.msk [vmem:[%s15593_s15 + $0x3c0] sm:$0xff] %vm392_vm0, %v8761_v0 }
 0x7c3   : > { %v11270_v53 = vpop.f32.mrf.mxu0 }
 0x7c4   : > { %10054 = vst.msk [vmem:[%s15593_s15 + $0x398] sm:$0xff] %vm392_vm0, %v11270_v53  ;;  %v11286_v58 = vpop.f32.mrf.mxu1 }
 0x7c5   : > { %v8627_v33 = vpop.f32.mrf.mxu0  ;;  %10070 = vst.msk [vmem:[%s15593_s15 + $0x3d8] sm:$0xff] %vm392_vm0, %v11286_v58 }
 0x7c6   : > { %10053 = vst.msk [vmem:[%s15593_s15 + $0x390] sm:$0xff] %vm392_vm0, %v8627_v33  ;;  %v8771_v37 = vpop.f32.mrf.mxu1 }
 0x7c7   : > { %v11273_v50 = vpop.f32.mrf.mxu0  ;;  %10069 = vst.msk [vmem:[%s15593_s15 + $0x3d0] sm:$0xff] %vm392_vm0, %v8771_v37 }
 0x7c8   : > { %10056 = vst.msk [vmem:[%s15593_s15 + $0x3a8] sm:$0xff] %vm392_vm0, %v11273_v50  ;;  %v11289_v18 = vpop.f32.mrf.mxu1 }
 0x7c9   : > { %v8637_v1 = vpop.f32.mrf.mxu0  ;;  %10072 = vst.msk [vmem:[%s15593_s15 + $0x3e8] sm:$0xff] %vm392_vm0, %v11289_v18 }
 0x7ca   : > { %10055 = vst.msk [vmem:[%s15593_s15 + $0x3a0] sm:$0xff] %vm392_vm0, %v8637_v1  ;;  %v8781_v2 = vpop.f32.mrf.mxu1 }
 0x7cb   : > { %v11276_v28 = vpop.f32.mrf.mxu0  ;;  %10071 = vst.msk [vmem:[%s15593_s15 + $0x3e0] sm:$0xff] %vm392_vm0, %v8781_v2 }
 0x7cc   : > { %10058 = vst.msk [vmem:[%s15593_s15 + $0x3b8] sm:$0xff] %vm392_vm0, %v11276_v28  ;;  %v11292_v11 = vpop.f32.mrf.mxu1 }
 0x7cd   : > { %v8647_v4 = vpop.f32.mrf.mxu0  ;;  %10074 = vst.msk [vmem:[%s15593_s15 + $0x3f8] sm:$0xff] %vm392_vm0, %v11292_v11 }
 0x7ce   : > { %10057 = vst.msk [vmem:[%s15593_s15 + $0x3b0] sm:$0xff] %vm392_vm0, %v8647_v4  ;;  %v8791_v55 = vpop.f32.mrf.mxu1 }
 0x7cf   : > { %v11299_v38 = vpop.f32.mrf.mxu0  ;;  %10073 = vst.msk [vmem:[%s15593_s15 + $0x3f0] sm:$0xff] %vm392_vm0, %v8791_v55 }
 0x7d0   : > { %10084 = vst.msk [vmem:[%s15593_s15 + $0x408] sm:$0xff] %vm392_vm0, %v11299_v38 }
 0x7d1   : > { %v8921_v35 = vpop.f32.mrf.mxu0  ;;  %v11315_v7 = vpop.f32.mrf.mxu1 }
 0x7d2   : > { %10083 = vst.msk [vmem:[%s15593_s15 + $0x400] sm:$0xff] %vm392_vm0, %v8921_v35  ;;  %10100 = vst.msk [vmem:[%s15593_s15 + $0x448] sm:$0xff] %vm392_vm0, %v11315_v7 }
 0x7d3   : > { %v11302_v52 = vpop.f32.mrf.mxu0  ;;  %v9065_v22 = vpop.f32.mrf.mxu1 }
 0x7d4   : > { %10086 = vst.msk [vmem:[%s15593_s15 + $0x418] sm:$0xff] %vm392_vm0, %v11302_v52  ;;  %10099 = vst.msk [vmem:[%s15593_s15 + $0x440] sm:$0xff] %vm392_vm0, %v9065_v22 }
 0x7d5   : > { %v8931_v47 = vpop.f32.mrf.mxu0  ;;  %v11318_v21 = vpop.f32.mrf.mxu1 }
 0x7d6   : > { %10085 = vst.msk [vmem:[%s15593_s15 + $0x410] sm:$0xff] %vm392_vm0, %v8931_v47  ;;  %10102 = vst.msk [vmem:[%s15593_s15 + $0x458] sm:$0xff] %vm392_vm0, %v11318_v21 }
 0x7d7   : > { %v11305_v51 = vpop.f32.mrf.mxu0  ;;  %v9075_v30 = vpop.f32.mrf.mxu1 }
 0x7d8   : > { %10088 = vst.msk [vmem:[%s15593_s15 + $0x428] sm:$0xff] %vm392_vm0, %v11305_v51  ;;  %10101 = vst.msk [vmem:[%s15593_s15 + $0x450] sm:$0xff] %vm392_vm0, %v9075_v30 }
 0x7d9   : > { %v8941_v34 = vpop.f32.mrf.mxu0  ;;  %v11321_v6 = vpop.f32.mrf.mxu1 }
 0x7da   : > { %10087 = vst.msk [vmem:[%s15593_s15 + $0x420] sm:$0xff] %vm392_vm0, %v8941_v34  ;;  %10104 = vst.msk [vmem:[%s15593_s15 + $0x468] sm:$0xff] %vm392_vm0, %v11321_v6 }
 0x7db   : > { %v11308_v25 = vpop.f32.mrf.mxu0  ;;  %v9085_v23 = vpop.f32.mrf.mxu1 }
 0x7dc   : > { %10090 = vst.msk [vmem:[%s15593_s15 + $0x438] sm:$0xff] %vm392_vm0, %v11308_v25  ;;  %10103 = vst.msk [vmem:[%s15593_s15 + $0x460] sm:$0xff] %vm392_vm0, %v9085_v23 }
 0x7dd   : > { %v8951_v49 = vpop.f32.mrf.mxu0  ;;  %v11324_v43 = vpop.f32.mrf.mxu1 }
 0x7de   : > { %10089 = vst.msk [vmem:[%s15593_s15 + $0x430] sm:$0xff] %vm392_vm0, %v8951_v49  ;;  %10106 = vst.msk [vmem:[%s15593_s15 + $0x478] sm:$0xff] %vm392_vm0, %v11324_v43 }
 0x7df   : > { %v11331_v29 = vpop.f32.mrf.mxu0  ;;  %v9095_v10 = vpop.f32.mrf.mxu1 }
 0x7e0   : > { %10116 = vst.msk [vmem:[%s15593_s15 + $0x488] sm:$0xff] %vm392_vm0, %v11331_v29  ;;  %10105 = vst.msk [vmem:[%s15593_s15 + $0x470] sm:$0xff] %vm392_vm0, %v9095_v10 }
 0x7e1   : > { %v9209_v39 = vpop.f32.mrf.mxu0 }
 0x7e2   : > { %10115 = vst.msk [vmem:[%s15593_s15 + $0x480] sm:$0xff] %vm392_vm0, %v9209_v39 }
 0x7e3   : > { %v11334_v48 = vpop.f32.mrf.mxu0 }
 0x7e4   : > { %10118 = vst.msk [vmem:[%s15593_s15 + $0x498] sm:$0xff] %vm392_vm0, %v11334_v48 }
 0x7e5   : > { %v9219_v62 = vpop.f32.mrf.mxu0 }
 0x7e6   : > { %10117 = vst.msk [vmem:[%s15593_s15 + $0x490] sm:$0xff] %vm392_vm0, %v9219_v62 }
 0x7e7   : > { %v11337_v45 = vpop.f32.mrf.mxu0 }
 0x7e8   : > { %10120 = vst.msk [vmem:[%s15593_s15 + $0x4a8] sm:$0xff] %vm392_vm0, %v11337_v45 }
 0x7e9   : > { %v9229_v19 = vpop.f32.mrf.mxu0 }
 0x7ea   : > { %10119 = vst.msk [vmem:[%s15593_s15 + $0x4a0] sm:$0xff] %vm392_vm0, %v9229_v19 }
 0x7eb   : > { %v11340_v41 = vpop.f32.mrf.mxu0 }
 0x7ec   : > { %10122 = vst.msk [vmem:[%s15593_s15 + $0x4b8] sm:$0xff] %vm392_vm0, %v11340_v41 }
 0x7ed   : > { %v9239_v9 = vpop.f32.mrf.mxu0 }
 0x7ee   : > { %10121 = vst.msk [vmem:[%s15593_s15 + $0x4b0] sm:$0xff] %vm392_vm0, %v9239_v9 }
 0x7ef   : > { %11945 = shalt.err (!%p11942_p4)
}
 0x7f0   : > { %s11946_s19 = scalar_lea.hbm %s15900_s29, 19456  ;;  %s11950_s23 = scalar_lea.hbm %s15958_s9, 38912 }
 0x7f1   : > { %p11947_p6 = scmp.ne.s32.totalorder %s15900_s29, %s11946_s19  ;;  %p11951_p11 = scmp.lt.s32.totalorder %s15900_s29, %s15958_s9 }
 0x7f2   : > { %p11952_p3 = scmp.lt.s32.totalorder %s11950_s23, %s11946_s19 }
 0x7f3   : > { %p11948_p8 = pnand %p11947_p6, %p16036_p10 }
 0x7f4   : > { %p11953_p7 = por %p11952_p3, %p11951_p11 }
 0x7f5   : > { %p11949_p1 = pneg %p11948_p8 }
 0x7f7   : > { %p11954_p12 = pnand %p11953_p7, %p11949_p1 }
 0x7f9   : > { %11957 = shalt.err (!%p11954_p12)
}
 0x7fa   : > { %s12021_s26 = smov 128   ;;  %s12022_s28 = smov 8  }
 0x7fb   : > { %11373 = dma.vmem_to_hbm [thread:$0]  (%p16036_p10), %s15904_s21, 19456, %s15900_s29, %s9258_s13, %s12021_s26, %s12021_s26, %s12022_s28  }
 0x7fc PF: > { %s9286_s25 = sand.u32 1, %s11992_s30   ;;  %p16037_p13 = scmp.ne.s32.totalorder %s15981_s16, 0 }
 0x7fd   : > { %p16038_p0 = scmp.ge.s32.totalorder %s12004_s12, 2  ;;  %s9287_s22 = scalar_lea.sflag [#allocation6], %s9286_s25 }
 0x7ff   : > { %p11390_p5 = pnand %p16038_p0, %p16037_p13 }
 0x801   : > { %p11391_p9 = pneg %p11390_p5 }
 0x803   : > { %11987 = dma.done.wait (%p11391_p9), %s9287_s22, 19456  }
 0x804   : > { %11989 = vsyncadd (%p11391_p9), %s9287_s22, 4294947840  ;;  %p24_p2 = scmp.ge.s32.totalorder %s12160_s27, 4   ;;  %s16039_s30 = smov %s11996_s10 }
 0x805   : > { %s16040_s10 = smov %s12000_s11  ;;  %s16041_s11 = smov %s12170_s14 }
 0x806   : > { %s16042_s12 = smov %s12160_s27  ;;  %26 = sbr.rel (!%p24_p2) target bundleno = 11 (0xb), region = 141 }
 0x80b   :  { %9292 = vsyncpa [#allocation5], 1 }
 0x80c   :  { %9294 = vsyncpa [#allocation5 + $0x1], 1 }
 0x80d   :  { %9295 = vsyncpa [#allocation8], 1 }
 0x80e   :  { %9296 = vsyncpa [#allocation11], 1 }
 0x80f   :  { %9297 = vsyncpa [#allocation6], 1 }
 0x810   :  { %9299 = vsyncpa [#allocation6 + $0x1], 1 }

</bundles_post_ra>
